<compile_context>
chip_gen: v7x
topology: tpu7x:2x2x1
jax: 0.10.0
libtpu: 0.0.40
codegen_flags: <defaults>
</compile_context>

<pallas_src>
import functools

import jax
import jax.numpy as jnp
from jax.experimental import pallas as pl
from jax.experimental.pallas import tpu as pltpu

BN_EPS = 1e-5
COUT_PAD = 128                       # lane-dense output width (>= 4 or 12)
TAP_GROUPS = ((0, 4), (4, 8), (8, 9))  # K per MXU pass = 256, 256, 64


def _round_up(x, m):
    return (x + m - 1) // m * m


# ---------------------------------------------------------------------------
# Fused Pallas kernel: full conv/BN/ReLU stack for one image (grid over batch)
# ---------------------------------------------------------------------------
def _dncnn_kernel(x_ref, w_first_ref, w_mid_ref, shift_ref, w_last_ref,
                  o_ref, buf, *, H, W, Wp, Cmid, nmid):
    # x_ref:       (1, H, Wp, Cmid)      bf16  input, channels zero-extended,
    #                                          W axis pre-padded with the halo
    # w_first_ref: (9*Cmid, Cmid)        bf16  (padded input-channel rows = 0)
    # w_mid_ref:   (nmid, 9*Cmid, Cmid)  bf16  BN scale folded into columns
    # shift_ref:   (nmid, 1, Cmid)       f32   folded BN shift
    # w_last_ref:  (9*Cmid, COUT_PAD)    bf16  zero-padded output columns
    # o_ref:       (H*W, COUT_PAD)       f32   lane-dense output slab
    # buf:         (1, H+2, Wp, Cmid)    bf16  padded activations (in-place)
    Mb = H * W

    def conv(w_ref, layer_idx=None):
        """3x3 'same' conv as tap-grouped MXU matmuls with f32 accumulation."""
        acc = None
        for t0, t1 in TAP_GROUPS:
            cols = []
            for t in range(t0, t1):
                dy, dx = divmod(t, 3)
                cols.append(buf[:, dy:dy + H, dx:dx + W, :].reshape(Mb, Cmid))
            lhs = cols[0] if len(cols) == 1 else jnp.concatenate(cols, axis=1)
            if layer_idx is None:
                rhs = w_ref[t0 * Cmid:t1 * Cmid, :]
            else:
                rhs = w_ref[layer_idx, t0 * Cmid:t1 * Cmid, :]
            part = jnp.dot(lhs, rhs, preferred_element_type=jnp.float32)
            acc = part if acc is None else acc + part
        return acc

    def store_activation(pre_act):
        """ReLU + writeback into buf's interior rows as one full-sublane-extent
        store (zero W-halo columns concatenated in-register)."""
        act = jnp.maximum(pre_act, 0.0).astype(buf.dtype).reshape(1, H, W, Cmid)
        zl = jnp.zeros((1, H, 1, Cmid), buf.dtype)
        zr = jnp.zeros((1, H, Wp - W - 1, Cmid), buf.dtype)
        buf[:, 1:H + 1, :, :] = jnp.concatenate([zl, act, zr], axis=2)

    # Zero only the two H-halo rows (never written again); W halo is handled
    # by the wrapper padding and the full-extent interior stores.
    buf[:, 0:1, :, :] = jnp.zeros((1, 1, Wp, Cmid), buf.dtype)
    buf[:, H + 1:H + 2, :, :] = jnp.zeros((1, 1, Wp, Cmid), buf.dtype)

    # Layer 0: conv + ReLU.
    buf[:, 1:H + 1, :, :] = x_ref[...]
    store_activation(conv(w_first_ref))

    # Middle layers: conv + folded BN shift + ReLU (in-place buffer update;
    # all tap loads feed the dots, so the writeback can't race them).
    def mid_body(i, carry):
        store_activation(conv(w_mid_ref, i) + shift_ref[i])
        return carry

    jax.lax.fori_loop(0, nmid, mid_body, 0)

    # Last layer: conv only, lane-dense f32 store.
    o_ref[...] = conv(w_last_ref)


# ---------------------------------------------------------------------------
# Parameters & wrapper (PyTorch-style NCHW interface)
# ---------------------------------------------------------------------------
def init_intermediate_dncnn_params(key, input_features=5, middle_features=64,
                                   num_conv_layers=15):
    if input_features == 5:
        output_features = 4
    elif input_features == 15:
        output_features = 12
    else:
        raise Exception('Invalid number of input features')
    assert num_conv_layers >= 3

    dims = ([(input_features, middle_features)]
            + [(middle_features, middle_features)] * (num_conv_layers - 2)
            + [(middle_features, output_features)])
    keys = jax.random.split(key, num_conv_layers)
    weights = []
    for k, (ci, co) in zip(keys, dims):
        # conv weights stored HWIO: (3, 3, Cin, Cout); He-style init, no bias
        w = jax.random.normal(k, (3, 3, ci, co), jnp.float32) * jnp.sqrt(2.0 / (9 * ci))
        weights.append(w)

    nmid = num_conv_layers - 2
    return {
        "weights": weights,
        "gamma": jnp.ones((nmid, middle_features), jnp.float32),         # BN weight
        "beta": jnp.zeros((nmid, middle_features), jnp.float32),         # BN bias
        "running_mean": jnp.zeros((nmid, middle_features), jnp.float32),
        "running_var": jnp.ones((nmid, middle_features), jnp.float32),
    }


def intermediate_dncnn_forward(params, x_nchw):
    """IntermediateDnCNN.forward (eval-mode BN). (N,Cin,H,W) f32 -> (N,Cout,H,W) f32."""
    ws = params["weights"]
    nlayers = len(ws)
    Cin, Cmid = ws[0].shape[2], ws[0].shape[3]
    Cout = ws[-1].shape[3]
    N, C, H, W = x_nchw.shape
    assert C == Cin
    assert (H * W) % 8 == 0, "per-image output block needs H*W % 8 == 0"
    Wp = _round_up(W + 2, 8)
    nmid = nlayers - 2

    # Layout glue (one-time, tiny): NCHW -> NHWC (channels on lanes), zero-extend
    # channels to Cmid, pre-pad the W (sublane) axis with the conv halo so every
    # in-kernel store is full-extent; bf16 operands for the MXU.
    x = jnp.transpose(x_nchw, (0, 2, 3, 1))
    x = jnp.pad(x, ((0, 0), (0, 0), (1, Wp - W - 1), (0, Cmid - Cin)))
    x = x.astype(jnp.bfloat16)

    # im2col weight matrices (rows tap-major, channel-minor).
    w_first = jnp.zeros((3, 3, Cmid, Cmid), jnp.float32).at[:, :, :Cin, :].set(ws[0])
    w_first = w_first.reshape(9 * Cmid, Cmid).astype(jnp.bfloat16)

    # Fold eval-mode BatchNorm: scale into the conv output columns, keep shift.
    scale = params["gamma"] * jax.lax.rsqrt(params["running_var"] + BN_EPS)   # (nmid, Cmid)
    shift = params["beta"] - params["running_mean"] * scale                   # (nmid, Cmid)
    w_mid = jnp.stack([w.reshape(9 * Cmid, Cmid) for w in ws[1:-1]])          # (nmid, 9C, C)
    w_mid = (w_mid * scale[:, None, :]).astype(jnp.bfloat16)
    shift = shift[:, None, :].astype(jnp.float32)                             # (nmid, 1, Cmid)

    # Last layer: zero-pad output columns to a lane-dense width.
    w_last = jnp.zeros((9 * Cmid, COUT_PAD), jnp.float32)
    w_last = w_last.at[:, :Cout].set(ws[-1].reshape(9 * Cmid, Cout)).astype(jnp.bfloat16)

    M = N * H * W
    kernel = functools.partial(_dncnn_kernel, H=H, W=W, Wp=Wp, Cmid=Cmid, nmid=nmid)

    flops = 2 * M * (9 * Cmid) * Cmid * (nlayers - 1) + 2 * M * (9 * Cmid) * COUT_PAD
    bytes_accessed = (x.size * 2 + w_first.size * 2 + w_mid.size * 2
                      + w_last.size * 2 + shift.size * 4 + M * COUT_PAD * 4)

    out2d = pl.pallas_call(
        kernel,
        grid=(N,),
        out_shape=jax.ShapeDtypeStruct((M, COUT_PAD), jnp.float32),
        in_specs=[
            pl.BlockSpec((1, H, Wp, Cmid), lambda n: (n, 0, 0, 0)),      # x (per image)
            pl.BlockSpec((9 * Cmid, Cmid), lambda n: (0, 0)),            # w_first
            pl.BlockSpec((nmid, 9 * Cmid, Cmid), lambda n: (0, 0, 0)),   # w_mid
            pl.BlockSpec((nmid, 1, Cmid), lambda n: (0, 0, 0)),          # shift
            pl.BlockSpec((9 * Cmid, COUT_PAD), lambda n: (0, 0)),        # w_last
        ],
        out_specs=pl.BlockSpec((H * W, COUT_PAD), lambda n: (n, 0)),
        scratch_shapes=[
            pltpu.VMEM((1, H + 2, Wp, Cmid), jnp.bfloat16),              # activations
        ],
        compiler_params=pltpu.CompilerParams(
            dimension_semantics=("parallel",),
            vmem_limit_bytes=48 * 1024 * 1024),
        cost_estimate=pl.CostEstimate(flops=flops, transcendentals=0,
                                      bytes_accessed=bytes_accessed),
    )(x, w_first, w_mid, shift, w_last)

    out = out2d[:, :Cout].reshape(N, H, W, Cout)
    return jnp.transpose(out, (0, 3, 1, 2))                              # back to NCHW


# ---------------------------------------------------------------------------
if __name__ == "__main__":
    key = jax.random.PRNGKey(0)
    k_param, k_x = jax.random.split(key)

    # FFDNet grayscale configuration of IntermediateDnCNN:
    #   input_features=5, middle_features=64, num_conv_layers=15 -> out=4
    input_features, middle_features, num_conv_layers = 5, 64, 15
    params = init_intermediate_dncnn_params(k_param, input_features,
                                            middle_features, num_conv_layers)

    N, H, W = 2, 16, 16
    x = jax.random.normal(k_x, (N, input_features, H, W), jnp.float32)

    out = jax.jit(intermediate_dncnn_forward)(params, x)
    out = jax.block_until_ready(out)

    assert out.shape == (N, 4, H, W), out.shape
    assert bool(jnp.all(jnp.isfinite(out)))
    print("KERNEL_OK")
</pallas_src>

<mosaic_0001>
module attributes {stable_mosaic.version = 11 : i64} {
  func.func @_dncnn_kernel(%arg0: i32, %arg1: memref<1x16x24x64xbf16, #tpu.memory_space<vmem>>, %arg2: memref<576x64xbf16, #tpu.memory_space<vmem>>, %arg3: memref<13x576x64xbf16, #tpu.memory_space<vmem>>, %arg4: memref<13x1x64xf32, #tpu.memory_space<vmem>>, %arg5: memref<576x128xbf16, #tpu.memory_space<vmem>>, %arg6: memref<256x128xf32, #tpu.memory_space<vmem>>, %arg7: memref<1x18x24x64xbf16, #tpu.memory_space<vmem>>) attributes {dimension_semantics = [#tpu.dimension_semantics<parallel>], iteration_bounds = array<i64: 2>, scalar_prefetch = 0 : i64, scratch_operands = 1 : i64, tpu.core_type = #tpu.core_type<tc>, window_params = [{transform_indices = @transform_0, window_bounds = array<i64: 1, 16, 24, 64>}, {pipeline_mode = #tpu.pipeline_mode<synchronous>, transform_indices = @transform_1, window_bounds = array<i64: 576, 64>}, {pipeline_mode = #tpu.pipeline_mode<synchronous>, transform_indices = @transform_2, window_bounds = array<i64: 13, 576, 64>}, {pipeline_mode = #tpu.pipeline_mode<synchronous>, transform_indices = @transform_3, window_bounds = array<i64: 13, 1, 64>}, {pipeline_mode = #tpu.pipeline_mode<synchronous>, transform_indices = @transform_4, window_bounds = array<i64: 576, 128>}, {transform_indices = @transform_5, window_bounds = array<i64: 256, 128>}]} {
    %cst = arith.constant 0.000000e+00 : bf16
    %0 = vector.broadcast %cst : bf16 to vector<1x1x24x64xbf16>
    %c0 = arith.constant 0 : index
    %c0_0 = arith.constant 0 : index
    %c0_1 = arith.constant 0 : index
    %c0_2 = arith.constant 0 : index
    %1 = vector.load %arg7[%c0, %c0_0, %c0_1, %c0_2] : memref<1x18x24x64xbf16, #tpu.memory_space<vmem>>, vector<1x1x24x64xbf16>
    tpu.vector_store %arg7[%c0, %c0_0, %c0_1, %c0_2], %0 {strides = array<i32>} : memref<1x18x24x64xbf16, #tpu.memory_space<vmem>>, vector<1x1x24x64xbf16>,
    %cst_3 = arith.constant 0.000000e+00 : bf16
    %2 = vector.broadcast %cst_3 : bf16 to vector<1x1x24x64xbf16>
    %c0_4 = arith.constant 0 : index
    %c17 = arith.constant 17 : index
    %c0_5 = arith.constant 0 : index
    %c0_6 = arith.constant 0 : index
    %3 = vector.load %arg7[%c0_4, %c17, %c0_5, %c0_6] : memref<1x18x24x64xbf16, #tpu.memory_space<vmem>>, vector<1x1x24x64xbf16>
    tpu.vector_store %arg7[%c0_4, %c17, %c0_5, %c0_6], %2 {strides = array<i32>} : memref<1x18x24x64xbf16, #tpu.memory_space<vmem>>, vector<1x1x24x64xbf16>,
    %c0_7 = arith.constant 0 : index
    %c0_8 = arith.constant 0 : index
    %c0_9 = arith.constant 0 : index
    %c0_10 = arith.constant 0 : index
    %4 = vector.load %arg1[%c0_7, %c0_8, %c0_9, %c0_10] : memref<1x16x24x64xbf16, #tpu.memory_space<vmem>>, vector<1x16x24x64xbf16>
    %c0_11 = arith.constant 0 : index
    %c1 = arith.constant 1 : index
    %c0_12 = arith.constant 0 : index
    %c0_13 = arith.constant 0 : index
    %5 = vector.load %arg7[%c0_11, %c1, %c0_12, %c0_13] : memref<1x18x24x64xbf16, #tpu.memory_space<vmem>>, vector<1x16x24x64xbf16>
    tpu.vector_store %arg7[%c0_11, %c1, %c0_12, %c0_13], %4 {strides = array<i32>} : memref<1x18x24x64xbf16, #tpu.memory_space<vmem>>, vector<1x16x24x64xbf16>,
    %c0_14 = arith.constant 0 : index
    %c0_15 = arith.constant 0 : index
    %c0_16 = arith.constant 0 : index
    %c0_17 = arith.constant 0 : index
    %6 = vector.load %arg7[%c0_14, %c0_15, %c0_16, %c0_17] : memref<1x18x24x64xbf16, #tpu.memory_space<vmem>>, vector<1x16x16x64xbf16>
    %7 = vector.shape_cast %6 : vector<1x16x16x64xbf16> to vector<256x64xbf16>
    %c0_18 = arith.constant 0 : index
    %c0_19 = arith.constant 0 : index
    %c1_20 = arith.constant 1 : index
    %c0_21 = arith.constant 0 : index
    %8 = vector.load %arg7[%c0_18, %c0_19, %c1_20, %c0_21] : memref<1x18x24x64xbf16, #tpu.memory_space<vmem>>, vector<1x16x16x64xbf16>
    %9 = vector.shape_cast %8 : vector<1x16x16x64xbf16> to vector<256x64xbf16>
    %c0_22 = arith.constant 0 : index
    %c0_23 = arith.constant 0 : index
    %c2 = arith.constant 2 : index
    %c0_24 = arith.constant 0 : index
    %10 = vector.load %arg7[%c0_22, %c0_23, %c2, %c0_24] : memref<1x18x24x64xbf16, #tpu.memory_space<vmem>>, vector<1x16x16x64xbf16>
    %11 = vector.shape_cast %10 : vector<1x16x16x64xbf16> to vector<256x64xbf16>
    %c0_25 = arith.constant 0 : index
    %c1_26 = arith.constant 1 : index
    %c0_27 = arith.constant 0 : index
    %c0_28 = arith.constant 0 : index
    %12 = vector.load %arg7[%c0_25, %c1_26, %c0_27, %c0_28] : memref<1x18x24x64xbf16, #tpu.memory_space<vmem>>, vector<1x16x16x64xbf16>
    %13 = vector.shape_cast %12 : vector<1x16x16x64xbf16> to vector<256x64xbf16>
    %14 = tpu.concatenate %7, %9, %11, %13 in 1 : vector<256x64xbf16>, vector<256x64xbf16>, vector<256x64xbf16>, vector<256x64xbf16> -> vector<256x256xbf16>
    %c0_29 = arith.constant 0 : index
    %c0_30 = arith.constant 0 : index
    %15 = vector.load %arg2[%c0_29, %c0_30] : memref<576x64xbf16, #tpu.memory_space<vmem>>, vector<256x64xbf16>
    %cst_31 = arith.constant dense<0.000000e+00> : vector<256x64xf32>
    %16 = tpu.matmul %14, %15, %cst_31 {dimension_numbers = #tpu.dot_dimension_numbers<[1], [0], [0], [1], [0, 0, 1, 1], [], []>} : vector<256x256xbf16>, vector<256x64xbf16>, vector<256x64xf32> -> vector<256x64xf32>
    %c0_32 = arith.constant 0 : index
    %c1_33 = arith.constant 1 : index
    %c1_34 = arith.constant 1 : index
    %c0_35 = arith.constant 0 : index
    %17 = vector.load %arg7[%c0_32, %c1_33, %c1_34, %c0_35] : memref<1x18x24x64xbf16, #tpu.memory_space<vmem>>, vector<1x16x16x64xbf16>
    %18 = vector.shape_cast %17 : vector<1x16x16x64xbf16> to vector<256x64xbf16>
    %c0_36 = arith.constant 0 : index
    %c1_37 = arith.constant 1 : index
    %c2_38 = arith.constant 2 : index
    %c0_39 = arith.constant 0 : index
    %19 = vector.load %arg7[%c0_36, %c1_37, %c2_38, %c0_39] : memref<1x18x24x64xbf16, #tpu.memory_space<vmem>>, vector<1x16x16x64xbf16>
    %20 = vector.shape_cast %19 : vector<1x16x16x64xbf16> to vector<256x64xbf16>
    %c0_40 = arith.constant 0 : index
    %c2_41 = arith.constant 2 : index
    %c0_42 = arith.constant 0 : index
    %c0_43 = arith.constant 0 : index
    %21 = vector.load %arg7[%c0_40, %c2_41, %c0_42, %c0_43] : memref<1x18x24x64xbf16, #tpu.memory_space<vmem>>, vector<1x16x16x64xbf16>
    %22 = vector.shape_cast %21 : vector<1x16x16x64xbf16> to vector<256x64xbf16>
    %c0_44 = arith.constant 0 : index
    %c2_45 = arith.constant 2 : index
    %c1_46 = arith.constant 1 : index
    %c0_47 = arith.constant 0 : index
    %23 = vector.load %arg7[%c0_44, %c2_45, %c1_46, %c0_47] : memref<1x18x24x64xbf16, #tpu.memory_space<vmem>>, vector<1x16x16x64xbf16>
    %24 = vector.shape_cast %23 : vector<1x16x16x64xbf16> to vector<256x64xbf16>
    %25 = tpu.concatenate %18, %20, %22, %24 in 1 : vector<256x64xbf16>, vector<256x64xbf16>, vector<256x64xbf16>, vector<256x64xbf16> -> vector<256x256xbf16>
    %c256 = arith.constant 256 : index
    %c0_48 = arith.constant 0 : index
    %26 = vector.load %arg2[%c256, %c0_48] : memref<576x64xbf16, #tpu.memory_space<vmem>>, vector<256x64xbf16>
    %cst_49 = arith.constant dense<0.000000e+00> : vector<256x64xf32>
    %27 = tpu.matmul %25, %26, %cst_49 {dimension_numbers = #tpu.dot_dimension_numbers<[1], [0], [0], [1], [0, 0, 1, 1], [], []>} : vector<256x256xbf16>, vector<256x64xbf16>, vector<256x64xf32> -> vector<256x64xf32>
    %28 = arith.addf %16, %27 : vector<256x64xf32>
    %c0_50 = arith.constant 0 : index
    %c2_51 = arith.constant 2 : index
    %c2_52 = arith.constant 2 : index
    %c0_53 = arith.constant 0 : index
    %29 = vector.load %arg7[%c0_50, %c2_51, %c2_52, %c0_53] : memref<1x18x24x64xbf16, #tpu.memory_space<vmem>>, vector<1x16x16x64xbf16>
    %30 = vector.shape_cast %29 : vector<1x16x16x64xbf16> to vector<256x64xbf16>
    %c512 = arith.constant 512 : index
    %c0_54 = arith.constant 0 : index
    %31 = vector.load %arg2[%c512, %c0_54] : memref<576x64xbf16, #tpu.memory_space<vmem>>, vector<64x64xbf16>
    %cst_55 = arith.constant dense<0.000000e+00> : vector<256x64xf32>
    %32 = tpu.matmul %30, %31, %cst_55 {dimension_numbers = #tpu.dot_dimension_numbers<[1], [0], [0], [1], [0, 0, 1, 1], [], []>} : vector<256x64xbf16>, vector<64x64xbf16>, vector<256x64xf32> -> vector<256x64xf32>
    %33 = arith.addf %28, %32 : vector<256x64xf32>
    %cst_56 = arith.constant 0.000000e+00 : f32
    %34 = vector.broadcast %cst_56 : f32 to vector<256x64xf32>
    %35 = arith.maximumf %33, %34 : vector<256x64xf32>
    %36 = arith.truncf %35 : vector<256x64xf32> to vector<256x64xbf16>
    %37 = vector.shape_cast %36 : vector<256x64xbf16> to vector<1x16x16x64xbf16>
    %cst_57 = arith.constant 0.000000e+00 : bf16
    %38 = vector.broadcast %cst_57 : bf16 to vector<1x16x1x64xbf16>
    %cst_58 = arith.constant 0.000000e+00 : bf16
    %39 = vector.broadcast %cst_58 : bf16 to vector<1x16x7x64xbf16>
    %40 = tpu.concatenate %38, %37, %39 in 2 : vector<1x16x1x64xbf16>, vector<1x16x16x64xbf16>, vector<1x16x7x64xbf16> -> vector<1x16x24x64xbf16>
    %c0_59 = arith.constant 0 : index
    %c1_60 = arith.constant 1 : index
    %c0_61 = arith.constant 0 : index
    %c0_62 = arith.constant 0 : index
    %41 = vector.load %arg7[%c0_59, %c1_60, %c0_61, %c0_62] : memref<1x18x24x64xbf16, #tpu.memory_space<vmem>>, vector<1x16x24x64xbf16>
    tpu.vector_store %arg7[%c0_59, %c1_60, %c0_61, %c0_62], %40 {strides = array<i32>} : memref<1x18x24x64xbf16, #tpu.memory_space<vmem>>, vector<1x16x24x64xbf16>,
    %c0_i32 = arith.constant 0 : i32
    %c13_i32 = arith.constant 13 : i32
    %42 = arith.addi %c0_i32, %c13_i32 : i32
    %c1_i32 = arith.constant 1 : i32
    scf.for %arg8 = %c0_i32 to %42 step %c1_i32  : i32 {
      %c0_111 = arith.constant 0 : index
      %c0_112 = arith.constant 0 : index
      %c0_113 = arith.constant 0 : index
      %c0_114 = arith.constant 0 : index
      %72 = vector.load %arg7[%c0_111, %c0_112, %c0_113, %c0_114] : memref<1x18x24x64xbf16, #tpu.memory_space<vmem>>, vector<1x16x16x64xbf16>
      %73 = vector.shape_cast %72 : vector<1x16x16x64xbf16> to vector<256x64xbf16>
      %c0_115 = arith.constant 0 : index
      %c0_116 = arith.constant 0 : index
      %c1_117 = arith.constant 1 : index
      %c0_118 = arith.constant 0 : index
      %74 = vector.load %arg7[%c0_115, %c0_116, %c1_117, %c0_118] : memref<1x18x24x64xbf16, #tpu.memory_space<vmem>>, vector<1x16x16x64xbf16>
      %75 = vector.shape_cast %74 : vector<1x16x16x64xbf16> to vector<256x64xbf16>
      %c0_119 = arith.constant 0 : index
      %c0_120 = arith.constant 0 : index
      %c2_121 = arith.constant 2 : index
      %c0_122 = arith.constant 0 : index
      %76 = vector.load %arg7[%c0_119, %c0_120, %c2_121, %c0_122] : memref<1x18x24x64xbf16, #tpu.memory_space<vmem>>, vector<1x16x16x64xbf16>
      %77 = vector.shape_cast %76 : vector<1x16x16x64xbf16> to vector<256x64xbf16>
      %c0_123 = arith.constant 0 : index
      %c1_124 = arith.constant 1 : index
      %c0_125 = arith.constant 0 : index
      %c0_126 = arith.constant 0 : index
      %78 = vector.load %arg7[%c0_123, %c1_124, %c0_125, %c0_126] : memref<1x18x24x64xbf16, #tpu.memory_space<vmem>>, vector<1x16x16x64xbf16>
      %79 = vector.shape_cast %78 : vector<1x16x16x64xbf16> to vector<256x64xbf16>
      %80 = tpu.concatenate %73, %75, %77, %79 in 1 : vector<256x64xbf16>, vector<256x64xbf16>, vector<256x64xbf16>, vector<256x64xbf16> -> vector<256x256xbf16>
      %81 = arith.index_cast %arg8 : i32 to index
      %c0_127 = arith.constant 0 : index
      %c0_128 = arith.constant 0 : index
      %82 = vector.load %arg3[%81, %c0_127, %c0_128] : memref<13x576x64xbf16, #tpu.memory_space<vmem>>, vector<1x256x64xbf16>
      %83 = vector.shape_cast %82 : vector<1x256x64xbf16> to vector<256x64xbf16>
      %cst_129 = arith.constant dense<0.000000e+00> : vector<256x64xf32>
      %84 = tpu.matmul %80, %83, %cst_129 {dimension_numbers = #tpu.dot_dimension_numbers<[1], [0], [0], [1], [0, 0, 1, 1], [], []>} : vector<256x256xbf16>, vector<256x64xbf16>, vector<256x64xf32> -> vector<256x64xf32>
      %c0_130 = arith.constant 0 : index
      %c1_131 = arith.constant 1 : index
      %c1_132 = arith.constant 1 : index
      %c0_133 = arith.constant 0 : index
      %85 = vector.load %arg7[%c0_130, %c1_131, %c1_132, %c0_133] : memref<1x18x24x64xbf16, #tpu.memory_space<vmem>>, vector<1x16x16x64xbf16>
      %86 = vector.shape_cast %85 : vector<1x16x16x64xbf16> to vector<256x64xbf16>
      %c0_134 = arith.constant 0 : index
      %c1_135 = arith.constant 1 : index
      %c2_136 = arith.constant 2 : index
      %c0_137 = arith.constant 0 : index
      %87 = vector.load %arg7[%c0_134, %c1_135, %c2_136, %c0_137] : memref<1x18x24x64xbf16, #tpu.memory_space<vmem>>, vector<1x16x16x64xbf16>
      %88 = vector.shape_cast %87 : vector<1x16x16x64xbf16> to vector<256x64xbf16>
      %c0_138 = arith.constant 0 : index
      %c2_139 = arith.constant 2 : index
      %c0_140 = arith.constant 0 : index
      %c0_141 = arith.constant 0 : index
      %89 = vector.load %arg7[%c0_138, %c2_139, %c0_140, %c0_141] : memref<1x18x24x64xbf16, #tpu.memory_space<vmem>>, vector<1x16x16x64xbf16>
      %90 = vector.shape_cast %89 : vector<1x16x16x64xbf16> to vector<256x64xbf16>
      %c0_142 = arith.constant 0 : index
      %c2_143 = arith.constant 2 : index
      %c1_144 = arith.constant 1 : index
      %c0_145 = arith.constant 0 : index
      %91 = vector.load %arg7[%c0_142, %c2_143, %c1_144, %c0_145] : memref<1x18x24x64xbf16, #tpu.memory_space<vmem>>, vector<1x16x16x64xbf16>
      %92 = vector.shape_cast %91 : vector<1x16x16x64xbf16> to vector<256x64xbf16>
      %93 = tpu.concatenate %86, %88, %90, %92 in 1 : vector<256x64xbf16>, vector<256x64xbf16>, vector<256x64xbf16>, vector<256x64xbf16> -> vector<256x256xbf16>
      %94 = arith.index_cast %arg8 : i32 to index
      %c256_146 = arith.constant 256 : index
      %c0_147 = arith.constant 0 : index
      %95 = vector.load %arg3[%94, %c256_146, %c0_147] : memref<13x576x64xbf16, #tpu.memory_space<vmem>>, vector<1x256x64xbf16>
      %96 = vector.shape_cast %95 : vector<1x256x64xbf16> to vector<256x64xbf16>
      %cst_148 = arith.constant dense<0.000000e+00> : vector<256x64xf32>
      %97 = tpu.matmul %93, %96, %cst_148 {dimension_numbers = #tpu.dot_dimension_numbers<[1], [0], [0], [1], [0, 0, 1, 1], [], []>} : vector<256x256xbf16>, vector<256x64xbf16>, vector<256x64xf32> -> vector<256x64xf32>
      %98 = arith.addf %84, %97 : vector<256x64xf32>
      %c0_149 = arith.constant 0 : index
      %c2_150 = arith.constant 2 : index
      %c2_151 = arith.constant 2 : index
      %c0_152 = arith.constant 0 : index
      %99 = vector.load %arg7[%c0_149, %c2_150, %c2_151, %c0_152] : memref<1x18x24x64xbf16, #tpu.memory_space<vmem>>, vector<1x16x16x64xbf16>
      %100 = vector.shape_cast %99 : vector<1x16x16x64xbf16> to vector<256x64xbf16>
      %101 = arith.index_cast %arg8 : i32 to index
      %c512_153 = arith.constant 512 : index
      %c0_154 = arith.constant 0 : index
      %102 = vector.load %arg3[%101, %c512_153, %c0_154] : memref<13x576x64xbf16, #tpu.memory_space<vmem>>, vector<1x64x64xbf16>
      %103 = vector.shape_cast %102 : vector<1x64x64xbf16> to vector<64x64xbf16>
      %cst_155 = arith.constant dense<0.000000e+00> : vector<256x64xf32>
      %104 = tpu.matmul %100, %103, %cst_155 {dimension_numbers = #tpu.dot_dimension_numbers<[1], [0], [0], [1], [0, 0, 1, 1], [], []>} : vector<256x64xbf16>, vector<64x64xbf16>, vector<256x64xf32> -> vector<256x64xf32>
      %105 = arith.addf %98, %104 : vector<256x64xf32>
      %106 = arith.index_cast %arg8 : i32 to index
      %c0_156 = arith.constant 0 : index
      %c0_157 = arith.constant 0 : index
      %107 = vector.load %arg4[%106, %c0_156, %c0_157] : memref<13x1x64xf32, #tpu.memory_space<vmem>>, vector<1x1x64xf32>
      %108 = vector.shape_cast %107 : vector<1x1x64xf32> to vector<1x64xf32>
      %109 = vector.broadcast %108 : vector<1x64xf32> to vector<256x64xf32>
      %110 = arith.addf %105, %109 : vector<256x64xf32>
      %cst_158 = arith.constant 0.000000e+00 : f32
      %111 = vector.broadcast %cst_158 : f32 to vector<256x64xf32>
      %112 = arith.maximumf %110, %111 : vector<256x64xf32>
      %113 = arith.truncf %112 : vector<256x64xf32> to vector<256x64xbf16>
      %114 = vector.shape_cast %113 : vector<256x64xbf16> to vector<1x16x16x64xbf16>
      %cst_159 = arith.constant 0.000000e+00 : bf16
      %115 = vector.broadcast %cst_159 : bf16 to vector<1x16x1x64xbf16>
      %cst_160 = arith.constant 0.000000e+00 : bf16
      %116 = vector.broadcast %cst_160 : bf16 to vector<1x16x7x64xbf16>
      %117 = tpu.concatenate %115, %114, %116 in 2 : vector<1x16x1x64xbf16>, vector<1x16x16x64xbf16>, vector<1x16x7x64xbf16> -> vector<1x16x24x64xbf16>
      %c0_161 = arith.constant 0 : index
      %c1_162 = arith.constant 1 : index
      %c0_163 = arith.constant 0 : index
      %c0_164 = arith.constant 0 : index
      %118 = vector.load %arg7[%c0_161, %c1_162, %c0_163, %c0_164] : memref<1x18x24x64xbf16, #tpu.memory_space<vmem>>, vector<1x16x24x64xbf16>
      tpu.vector_store %arg7[%c0_161, %c1_162, %c0_163, %c0_164], %117 {strides = array<i32>} : memref<1x18x24x64xbf16, #tpu.memory_space<vmem>>, vector<1x16x24x64xbf16>,
    }
    %c13_i32_63 = arith.constant 13 : i32
    %c0_64 = arith.constant 0 : index
    %c0_65 = arith.constant 0 : index
    %c0_66 = arith.constant 0 : index
    %c0_67 = arith.constant 0 : index
    %43 = vector.load %arg7[%c0_64, %c0_65, %c0_66, %c0_67] : memref<1x18x24x64xbf16, #tpu.memory_space<vmem>>, vector<1x16x16x64xbf16>
    %44 = vector.shape_cast %43 : vector<1x16x16x64xbf16> to vector<256x64xbf16>
    %c0_68 = arith.constant 0 : index
    %c0_69 = arith.constant 0 : index
    %c1_70 = arith.constant 1 : index
    %c0_71 = arith.constant 0 : index
    %45 = vector.load %arg7[%c0_68, %c0_69, %c1_70, %c0_71] : memref<1x18x24x64xbf16, #tpu.memory_space<vmem>>, vector<1x16x16x64xbf16>
    %46 = vector.shape_cast %45 : vector<1x16x16x64xbf16> to vector<256x64xbf16>
    %c0_72 = arith.constant 0 : index
    %c0_73 = arith.constant 0 : index
    %c2_74 = arith.constant 2 : index
    %c0_75 = arith.constant 0 : index
    %47 = vector.load %arg7[%c0_72, %c0_73, %c2_74, %c0_75] : memref<1x18x24x64xbf16, #tpu.memory_space<vmem>>, vector<1x16x16x64xbf16>
    %48 = vector.shape_cast %47 : vector<1x16x16x64xbf16> to vector<256x64xbf16>
    %c0_76 = arith.constant 0 : index
    %c1_77 = arith.constant 1 : index
    %c0_78 = arith.constant 0 : index
    %c0_79 = arith.constant 0 : index
    %49 = vector.load %arg7[%c0_76, %c1_77, %c0_78, %c0_79] : memref<1x18x24x64xbf16, #tpu.memory_space<vmem>>, vector<1x16x16x64xbf16>
    %50 = vector.shape_cast %49 : vector<1x16x16x64xbf16> to vector<256x64xbf16>
    %51 = tpu.concatenate %44, %46, %48, %50 in 1 : vector<256x64xbf16>, vector<256x64xbf16>, vector<256x64xbf16>, vector<256x64xbf16> -> vector<256x256xbf16>
    %c0_80 = arith.constant 0 : index
    %c0_81 = arith.constant 0 : index
    %52 = vector.load %arg5[%c0_80, %c0_81] : memref<576x128xbf16, #tpu.memory_space<vmem>>, vector<256x128xbf16>
    %cst_82 = arith.constant dense<0.000000e+00> : vector<256x128xf32>
    %53 = tpu.matmul %51, %52, %cst_82 {dimension_numbers = #tpu.dot_dimension_numbers<[1], [0], [0], [1], [0, 0, 1, 1], [], []>} : vector<256x256xbf16>, vector<256x128xbf16>, vector<256x128xf32> -> vector<256x128xf32>
    %c0_83 = arith.constant 0 : index
    %c1_84 = arith.constant 1 : index
    %c1_85 = arith.constant 1 : index
    %c0_86 = arith.constant 0 : index
    %54 = vector.load %arg7[%c0_83, %c1_84, %c1_85, %c0_86] : memref<1x18x24x64xbf16, #tpu.memory_space<vmem>>, vector<1x16x16x64xbf16>
    %55 = vector.shape_cast %54 : vector<1x16x16x64xbf16> to vector<256x64xbf16>
    %c0_87 = arith.constant 0 : index
    %c1_88 = arith.constant 1 : index
    %c2_89 = arith.constant 2 : index
    %c0_90 = arith.constant 0 : index
    %56 = vector.load %arg7[%c0_87, %c1_88, %c2_89, %c0_90] : memref<1x18x24x64xbf16, #tpu.memory_space<vmem>>, vector<1x16x16x64xbf16>
    %57 = vector.shape_cast %56 : vector<1x16x16x64xbf16> to vector<256x64xbf16>
    %c0_91 = arith.constant 0 : index
    %c2_92 = arith.constant 2 : index
    %c0_93 = arith.constant 0 : index
    %c0_94 = arith.constant 0 : index
    %58 = vector.load %arg7[%c0_91, %c2_92, %c0_93, %c0_94] : memref<1x18x24x64xbf16, #tpu.memory_space<vmem>>, vector<1x16x16x64xbf16>
    %59 = vector.shape_cast %58 : vector<1x16x16x64xbf16> to vector<256x64xbf16>
    %c0_95 = arith.constant 0 : index
    %c2_96 = arith.constant 2 : index
    %c1_97 = arith.constant 1 : index
    %c0_98 = arith.constant 0 : index
    %60 = vector.load %arg7[%c0_95, %c2_96, %c1_97, %c0_98] : memref<1x18x24x64xbf16, #tpu.memory_space<vmem>>, vector<1x16x16x64xbf16>
    %61 = vector.shape_cast %60 : vector<1x16x16x64xbf16> to vector<256x64xbf16>
    %62 = tpu.concatenate %55, %57, %59, %61 in 1 : vector<256x64xbf16>, vector<256x64xbf16>, vector<256x64xbf16>, vector<256x64xbf16> -> vector<256x256xbf16>
    %c256_99 = arith.constant 256 : index
    %c0_100 = arith.constant 0 : index
    %63 = vector.load %arg5[%c256_99, %c0_100] : memref<576x128xbf16, #tpu.memory_space<vmem>>, vector<256x128xbf16>
    %cst_101 = arith.constant dense<0.000000e+00> : vector<256x128xf32>
    %64 = tpu.matmul %62, %63, %cst_101 {dimension_numbers = #tpu.dot_dimension_numbers<[1], [0], [0], [1], [0, 0, 1, 1], [], []>} : vector<256x256xbf16>, vector<256x128xbf16>, vector<256x128xf32> -> vector<256x128xf32>
    %65 = arith.addf %53, %64 : vector<256x128xf32>
    %c0_102 = arith.constant 0 : index
    %c2_103 = arith.constant 2 : index
    %c2_104 = arith.constant 2 : index
    %c0_105 = arith.constant 0 : index
    %66 = vector.load %arg7[%c0_102, %c2_103, %c2_104, %c0_105] : memref<1x18x24x64xbf16, #tpu.memory_space<vmem>>, vector<1x16x16x64xbf16>
    %67 = vector.shape_cast %66 : vector<1x16x16x64xbf16> to vector<256x64xbf16>
    %c512_106 = arith.constant 512 : index
    %c0_107 = arith.constant 0 : index
    %68 = vector.load %arg5[%c512_106, %c0_107] : memref<576x128xbf16, #tpu.memory_space<vmem>>, vector<64x128xbf16>
    %cst_108 = arith.constant dense<0.000000e+00> : vector<256x128xf32>
    %69 = tpu.matmul %67, %68, %cst_108 {dimension_numbers = #tpu.dot_dimension_numbers<[1], [0], [0], [1], [0, 0, 1, 1], [], []>} : vector<256x64xbf16>, vector<64x128xbf16>, vector<256x128xf32> -> vector<256x128xf32>
    %70 = arith.addf %65, %69 : vector<256x128xf32>
    %c0_109 = arith.constant 0 : index
    %c0_110 = arith.constant 0 : index
    %71 = vector.load %arg6[%c0_109, %c0_110] : memref<256x128xf32, #tpu.memory_space<vmem>>, vector<256x128xf32>
    tpu.vector_store %arg6[%c0_109, %c0_110], %70 {strides = array<i32>} : memref<256x128xf32, #tpu.memory_space<vmem>>, vector<256x128xf32>,
    return
  }
  func.func @transform_0(%arg0: i32) -> (i32, i32, i32, i32) {
    %c0_i32 = arith.constant 0 : i32
    %c0_i32_0 = arith.constant 0 : i32
    %c0_i32_1 = arith.constant 0 : i32
    %c0_i32_2 = arith.constant 0 : i32
    return %arg0, %c0_i32, %c0_i32_0, %c0_i32_1 : i32, i32, i32, i32
  }
  func.func @transform_1(%arg0: i32) -> (i32, i32) {
    %c0_i32 = arith.constant 0 : i32
    %c0_i32_0 = arith.constant 0 : i32
    %c0_i32_1 = arith.constant 0 : i32
    return %c0_i32, %c0_i32_0 : i32, i32
  }
  func.func @transform_2(%arg0: i32) -> (i32, i32, i32) {
    %c0_i32 = arith.constant 0 : i32
    %c0_i32_0 = arith.constant 0 : i32
    %c0_i32_1 = arith.constant 0 : i32
    %c0_i32_2 = arith.constant 0 : i32
    return %c0_i32, %c0_i32_0, %c0_i32_1 : i32, i32, i32
  }
  func.func @transform_3(%arg0: i32) -> (i32, i32, i32) {
    %c0_i32 = arith.constant 0 : i32
    %c0_i32_0 = arith.constant 0 : i32
    %c0_i32_1 = arith.constant 0 : i32
    %c0_i32_2 = arith.constant 0 : i32
    return %c0_i32, %c0_i32_0, %c0_i32_1 : i32, i32, i32
  }
  func.func @transform_4(%arg0: i32) -> (i32, i32) {
    %c0_i32 = arith.constant 0 : i32
    %c0_i32_0 = arith.constant 0 : i32
    %c0_i32_1 = arith.constant 0 : i32
    return %c0_i32, %c0_i32_0 : i32, i32
  }
  func.func @transform_5(%arg0: i32) -> (i32, i32) {
    %c0_i32 = arith.constant 0 : i32
    %c0_i32_0 = arith.constant 0 : i32
    return %arg0, %c0_i32 : i32, i32
  }
}

</mosaic_0001>

<bundles_post_ra>
// kernel: intermediate_dncnn_forward.1
= control target key start
LH: loop header
LB: loop body
LE: loop exit
PB: predicated region body
PF: predicated region fallthrough
CT: control target
= control target key end

     0   :  { %s14440_s18 = smov 0   ;;  %s18292_s0 = inlined_call_operand.vmem [shape: bf16[2,16,24,64], index: 0, kind: input, shape index: {}]   ;;  %s18293_s1 = inlined_call_operand.vmem [shape: bf16[576,64], index: 1, kind: input, shape index: {}]   ;;  %s18294_s2 = inlined_call_operand.vmem [shape: bf16[13,576,64], index: 2, kind: input, shape index: {}]   ;;  %s18295_s3 = inlined_call_operand.vmem [shape: f32[13,1,64], index: 3, kind: input, shape index: {}]   ;;  %s18296_s4 = inlined_call_operand.vmem [shape: bf16[576,128], index: 4, kind: input, shape index: {}]   ;;  %s18297_s5 = inlined_call_operand.vmem [shape: f32[512,128], index: 5, kind: output, shape index: {}]  }
   0x1 LB: > { %s14446_s19 = sadd.s32 4294967295, %s14401_s18   ;;  %p12005_p0 = scmp.ge.s32.totalorder %s14401_s18, 1  ;;  %s14401_s18 = sphi %s14440_s18, %s15_s18  }
   0x2   : > { %p187_p1 = scmp.lt.s32.totalorder %s14401_s18, 3 }
   0x4   : > { %p188_p2 = pnand %p12005_p0, %p187_p1 }
   0x5   : > { %p215_p3 = scmp.lt.s32.totalorder (!%p188_p2), %s14446_s19, 1  ;;  %vm227_vm0 = vcmask (!%p188_p2), 519168   ;;  %v14407_v0 = vmov (!%p188_p2), 0   ;;  %vm380_vm1 = vsmask.f32 (!%p188_p2), 3328  ;;  %vm831_vm3 = vcmask (!%p188_p2), 1042432  }
   0x6   : > { %191 = sbr.rel (%p188_p2) target bundleno = 1768 (0x6e8), region = 40  ;;  %232 = vst.msk [vmem:[#allocation2 + $0xcc] sm:$0xf] (!%p188_p2), %vm227_vm0, %v14407_v0  ;;  %233 = vst.msk [vmem:[#allocation2 + $0xd0] sm:$0xf] (!%p188_p2), %vm227_vm0, %v14407_v0  ;;  %vm832_vm4 = vcmask (!%p188_p2), 1046532  }
   0x7   : > { %234 = vst.msk [vmem:[#allocation2 + $0xd4] sm:$0xf] (!%p188_p2), %vm227_vm0, %v14407_v0  ;;  %228 = vst.msk [vmem:[#allocation2] sm:$0xf] (!%p188_p2), %vm227_vm0, %v14407_v0  ;;  %vm381_vm2 = vsmask.f32 (!%p188_p2), 7440 }
   0x8   : > { %229 = vst.msk [vmem:[#allocation2 + $0x4] sm:$0xf] (!%p188_p2), %vm227_vm0, %v14407_v0  ;;  %230 = vst.msk [vmem:[#allocation2 + $0x8] sm:$0xf] (!%p188_p2), %vm227_vm0, %v14407_v0  ;;  %s14408_s27 = smov (!%p188_p2), 64   ;;  %s12007_s30 = sshll.u32 (!%p188_p2), %s14446_s19, 5 }
   0x9   : > { %vm14513_vm5 = vmor (!%p188_p2), %vm380_vm1, %vm381_vm2  ;;  %p14554_p4 = scmp.lt.s32.totalorder (!%p188_p2), %s12007_s30, 63  ;;  %vm1282_vm7 = vcmask (!%p188_p2), 523264   ;;  %vm4071_vm8 = vcmask (!%p188_p2), 1040384   ;;  %vm4072_vm9 = vsmask.f32 (!%p188_p2), 256  ;;  %s15931_s16 = smov (!%p188_p2), 0  }
   0xa   : > { %vm14521_vm6 = vmor (!%p188_p2), %vm831_vm3, %vm832_vm4 }
   0xb   : > { %vm15764_vm10 = vmand (!%p188_p2), %vm4071_vm8, %vm4072_vm9 }
   0xd   : > { %s216_s20 = scalar_select %p215_p3, %s14446_s19, 1 }
   0xe   : > { %s18306_s30 = smov (!%p14554_p4, %s12007_s30), 63 }
   0xf   : > { %s13742_s21 = smul.u32 192, %s216_s20  ;;  %s12008_s9 = sshll.u32 %s18306_s30, 3 }
  0x10   : > { %s14588_s12 = scalar_lea.vmem %s18297_s5, %s12008_s9 }
  0x11   : > { %s14461_s24 = scalar_lea.vmem %s18292_s0, %s13742_s21 }
  0x12   : > { %v274_v1 = vld [vmem:[%s14461_s24 + $0x9c] sm:$0xf]  ;;  %v275_v2 = vld [vmem:[%s14461_s24 + $0xa0] sm:$0xf]  ;;  %v276_v3 = vld [vmem:[%s14461_s24 + $0xa4] sm:$0xf] }
  0x13   : > { %323 = vst.msk [vmem:[#allocation2 + $0xa8] sm:$0xf] %vm227_vm0, %v274_v1  ;;  %324 = vst.msk [vmem:[#allocation2 + $0xac] sm:$0xf] %vm227_vm0, %v275_v2  ;;  %v238_v4 = vld [vmem:[%s14461_s24 + $0xc] sm:$0xf] }
  0x14   : > { %325 = vst.msk [vmem:[#allocation2 + $0xb0] sm:$0xf] %vm227_vm0, %v276_v3  ;;  %v239_v5 = vld [vmem:[%s14461_s24 + $0x10] sm:$0xf]  ;;  %v240_v6 = vld [vmem:[%s14461_s24 + $0x14] sm:$0xf] }
  0x15   : > { %287 = vst.msk [vmem:[#allocation2 + $0x18] sm:$0xf] %vm227_vm0, %v238_v4  ;;  %288 = vst.msk [vmem:[#allocation2 + $0x1c] sm:$0xf] %vm227_vm0, %v239_v5  ;;  %v271_v7 = vld [vmem:[%s14461_s24 + $0x90] sm:$0xf] }
  0x16   : > { %289 = vst.msk [vmem:[#allocation2 + $0x20] sm:$0xf] %vm227_vm0, %v240_v6  ;;  %v272_v8 = vld [vmem:[%s14461_s24 + $0x94] sm:$0xf]  ;;  %v273_v9 = vld [vmem:[%s14461_s24 + $0x98] sm:$0xf] }
  0x17   : > { %320 = vst.msk [vmem:[#allocation2 + $0x9c] sm:$0xf] %vm227_vm0, %v271_v7  ;;  %321 = vst.msk [vmem:[#allocation2 + $0xa0] sm:$0xf] %vm227_vm0, %v272_v8  ;;  %v235_v10 = vld [vmem:[%s14461_s24] sm:$0xf] }
  0x18   : > { %322 = vst.msk [vmem:[#allocation2 + $0xa4] sm:$0xf] %vm227_vm0, %v273_v9  ;;  %v236_v11 = vld [vmem:[%s14461_s24 + $0x4] sm:$0xf]  ;;  %v237_v12 = vld [vmem:[%s14461_s24 + $0x8] sm:$0xf] }
  0x19   : > { %284 = vst.msk [vmem:[#allocation2 + $0xc] sm:$0xf] %vm227_vm0, %v235_v10  ;;  %285 = vst.msk [vmem:[#allocation2 + $0x10] sm:$0xf] %vm227_vm0, %v236_v11  ;;  %v277_v13 = vld [vmem:[%s14461_s24 + $0xa8] sm:$0xf] }
  0x1a   : > { %286 = vst.msk [vmem:[#allocation2 + $0x14] sm:$0xf] %vm227_vm0, %v237_v12  ;;  %v278_v14 = vld [vmem:[%s14461_s24 + $0xac] sm:$0xf]  ;;  %v279_v15 = vld [vmem:[%s14461_s24 + $0xb0] sm:$0xf] }
  0x1b   : > { %326 = vst.msk [vmem:[#allocation2 + $0xb4] sm:$0xf] %vm227_vm0, %v277_v13  ;;  %327 = vst.msk [vmem:[#allocation2 + $0xb8] sm:$0xf] %vm227_vm0, %v278_v14  ;;  %v241_v16 = vld [vmem:[%s14461_s24 + $0x18] sm:$0xf] }
  0x1c   : > { %328 = vst.msk [vmem:[#allocation2 + $0xbc] sm:$0xf] %vm227_vm0, %v279_v15  ;;  %v242_v17 = vld [vmem:[%s14461_s24 + $0x1c] sm:$0xf]  ;;  %v243_v18 = vld [vmem:[%s14461_s24 + $0x20] sm:$0xf] }
  0x1d   : > { %290 = vst.msk [vmem:[#allocation2 + $0x24] sm:$0xf] %vm227_vm0, %v241_v16  ;;  %291 = vst.msk [vmem:[#allocation2 + $0x28] sm:$0xf] %vm227_vm0, %v242_v17  ;;  %v280_v19 = vld [vmem:[%s14461_s24 + $0xb4] sm:$0xf] }
  0x1e   : > { %292 = vst.msk [vmem:[#allocation2 + $0x2c] sm:$0xf] %vm227_vm0, %v243_v18  ;;  %v281_v20 = vld [vmem:[%s14461_s24 + $0xb8] sm:$0xf]  ;;  %v282_v21 = vld [vmem:[%s14461_s24 + $0xbc] sm:$0xf] }
  0x1f   : > { %329 = vst.msk [vmem:[#allocation2 + $0xc0] sm:$0xf] %vm227_vm0, %v280_v19  ;;  %330 = vst.msk [vmem:[#allocation2 + $0xc4] sm:$0xf] %vm227_vm0, %v281_v20  ;;  %v244_v22 = vld [vmem:[%s14461_s24 + $0x24] sm:$0xf] }
  0x20   : > { %331 = vst.msk [vmem:[#allocation2 + $0xc8] sm:$0xf] %vm227_vm0, %v282_v21  ;;  %v245_v23 = vld [vmem:[%s14461_s24 + $0x28] sm:$0xf]  ;;  %v246_v24 = vld [vmem:[%s14461_s24 + $0x2c] sm:$0xf] }
  0x21   : > { %v2028_v25 = vld [vmem:[#allocation2 + $0xa8] sm:$0xf]  ;;  %v2029_v26 = vld [vmem:[#allocation2 + $0xac] sm:$0xf]  ;;  %v2048_v27 = vld [vmem:[#allocation2 + $0xb0] sm:$0x1] }
  0x22   : > { %293 = vst.msk [vmem:[#allocation2 + $0x30] sm:$0xf] %vm227_vm0, %v244_v22  ;;  %294 = vst.msk [vmem:[#allocation2 + $0x34] sm:$0xf] %vm227_vm0, %v245_v23  ;;  %v2341_v28 = vshrl.u32 %v2028_v25, 16  ;;  %v2344_v29 = vshll.u32 %v2028_v25, 16 }
  0x23   : > { %295 = vst.msk [vmem:[#allocation2 + $0x38] sm:$0xf] %vm227_vm0, %v246_v24  ;;  %v2350_v30 = vshll.u32 %v2029_v26, 16  ;;  %v2354_v31 = vshrl.u32 %v2029_v26, 16  ;;  %v2004_v32 = vld [vmem:[#allocation2 + $0x18] sm:$0xf] }
  0x24   : > { %v2360_v33 = vshll.u32 %v2048_v27, 16  ;;  %v2005_v34 = vld [vmem:[#allocation2 + $0x1c] sm:$0xf]  ;;  %v2036_v35 = vld [vmem:[#allocation2 + $0x20] sm:$0x1]  ;;  %v2343_v36 = vrot.slane %v2341_v28, 4 }
  0x25   : > { %v2346_v37 = vrot.slane %v2344_v29, 5  ;;  %v2352_v38 = vrot.slane %v2350_v30, 5  ;;  %v2356_v39 = vrot.slane %v2354_v31, 4  ;;  %v2053_v41 = vshrl.u32 %v2004_v32, 16  ;;  %v971_v44 = vld [vmem:[#allocation2 + $0xa0] sm:$0xf] }
  0x26   : > { %v2362_v40 = vrot.slane %v2360_v33, 5  ;;  %v2056_v42 = vshll.u32 %v2004_v32, 16  ;;  %v2062_v43 = vshll.u32 %v2005_v34, 16  ;;  %v2066_v47 = vshrl.u32 %v2005_v34, 16  ;;  %v1455_v49 = vld [vmem:[#allocation2 + $0xa4] sm:$0x1] }
  0x27   : > { %v2347_v45 = vor.u32 %v2346_v37, %v2343_v36  ;;  %v2357_v46 = vor.u32 %v2356_v39, %v2352_v38  ;;  %v2072_v48 = vshll.u32 %v2036_v35, 16  ;;  %v1855_v50 = vld [vmem:[#allocation2 + $0x9c] sm:$0xe]  ;;  %v2055_v52 = vrot.slane %v2053_v41, 4  ;;  %v14517_v55 = vld [vmem:[#allocation2 + $0x10] sm:$0xf] }
  0x28   : > { %v2058_v53 = vrot.slane %v2056_v42, 5  ;;  %v2064_v54 = vrot.slane %v2062_v43, 5  ;;  %v1443_v56 = vld [vmem:[#allocation2 + $0x14] sm:$0x1]  ;;  %v2068_v59 = vrot.slane %v2066_v47, 4  ;;  %v12101_v0 = vrot.slane %v1855_v50, 9 }
  0x29   : > { %v2348_v57 = vrot.slane %v2347_v45, 4  ;;  %v2358_v58 = vrot.slane %v2357_v46, 4  ;;  %v2074_v60 = vrot.slane %v2072_v48, 5  ;;  %v1843_v62 = vld [vmem:[#allocation2 + $0xc] sm:$0xe]  ;;  %v1977_v1 = vrot.slane %v971_v44, 5 }
  0x2a   : > { %v2059_v63 = vor.u32 %v2058_v53, %v2055_v52  ;;  %v1980_v2 = vrot.slane %v1455_v49, 5  ;;  %v2030_v3 = vld [vmem:[#allocation2 + $0xb4] sm:$0xf]  ;;  %v2069_v6 = vor.u32 %v2068_v59, %v2064_v54  ;;  %v12089_v7 = vrot.slane %v1843_v62, 9  ;;  %v2031_v8 = vld [vmem:[#allocation2 + $0xb8] sm:$0xf] }
  0x2b   : > { %v2353_v4 = vsel %vm14513_vm5, %v2348_v57, %v2352_v38  ;;  %v2363_v5 = vsel %vm14513_vm5, %v2358_v58, %v2362_v40  ;;  %v13762_v9 = vld [vmem:[%s18293_s1 + $0xc0] sm:$0xff]   ;;  %v1978_v12 = vsel %vm14521_vm6, %v12101_v0, %v1977_v1  ;;  %v1979_v13 = vrot.slane %v1977_v1, 4  ;;  %v2049_v20 = vld [vmem:[#allocation2 + $0xbc] sm:$0x1]  ;;  %v1856_v23 = vld [vmem:[#allocation2 + $0xa8] sm:$0xe] }
  0x2c   : > { %v12165_v10 = vcombine.low %v2353_v4, %v2363_v5  ;;  %v2060_v11 = vrot.slane %v2059_v63, 4  ;;  %v2070_v14 = vrot.slane %v2069_v6, 4  ;;  %v1893_v15 = vrot.slane %v14517_v55, 5  ;;  %13694 = vmatprep.subr.bf16.mxu1 %v13762_v9  ;;  %12842 = vmatprep.subr.bf16.mxu0 %v13762_v9  ;;  %v973_v28 = vld [vmem:[#allocation2 + $0xac] sm:$0xf]  ;;  %v13763_v30 = vld [vmem:[%s18293_s1 + $0x80] sm:$0xff]  }
  0x2d   : > { %v1896_v16 = vrot.slane %v1443_v56, 5  ;;  %v2365_v17 = vshrl.u32 %v2030_v3, 16  ;;  %v1981_v19 = vsel %vm14521_vm6, %v1979_v13, %v1980_v2  ;;  %v2368_v21 = vshll.u32 %v2030_v3, 16  ;;  %v1456_v29 = vld [vmem:[#allocation2 + $0xb0] sm:$0x1]  ;;  %13702 = vmatpush3.bf16.msra.mxu1 %v13763_v30  ;;  %12843 = vmatpush3.bf16.msra.mxu0 %v13763_v30  ;;  %v13764_v62 = vld [vmem:[%s18293_s1 + $0xc8] sm:$0xff]  }
  0x2e   : > { %2716 = vrot.lane.b32.xlu0 %v12165_v10, %s14408_s27  ;;  %v2065_v18 = vsel %vm14513_vm5, %v2060_v11, %v2064_v54  ;;  %v2374_v22 = vshll.u32 %v2031_v8, 16  ;;  %v2075_v24 = vsel %vm14513_vm5, %v2070_v14, %v2074_v60  ;;  %v12133_v25 = vcombine.low %v1978_v12, %v1981_v19  ;;  %v2006_v35 = vld [vmem:[#allocation2 + $0x24] sm:$0xf]  ;;  %v2007_v40 = vld [vmem:[#allocation2 + $0x28] sm:$0xf]  ;;  %13695 = vmatprep.subr.bf16.mxu1 %v13764_v62 }
  0x2f   : > { %v1894_v26 = vsel %vm14521_vm6, %v12089_v7, %v1893_v15  ;;  %v1895_v27 = vrot.slane %v1893_v15, 4  ;;  %v12153_v31 = vcombine.low %v2065_v18, %v2075_v24  ;;  %v2367_v32 = vrot.slane %v2365_v17, 4  ;;  %v2037_v47 = vld [vmem:[#allocation2 + $0x2c] sm:$0x1]  ;;  %v1844_v60 = vld [vmem:[#allocation2 + $0x18] sm:$0xe]  ;;  %12844 = vmatprep.subr.bf16.mxu0 %v13764_v62 }
  0x30   : > { %v2370_v33 = vrot.slane %v2368_v21, 5  ;;  %v2376_v34 = vrot.slane %v2374_v22, 5  ;;  %v2378_v37 = vshrl.u32 %v2031_v8, 16  ;;  %v2384_v38 = vshll.u32 %v2049_v20, 16  ;;  %v14568_v3 = vld [vmem:[#allocation2 + $0x1c] sm:$0xf] }
  0x31   : > { %v1897_v36 = vsel %vm14521_vm6, %v1895_v27, %v1896_v16  ;;  %v12102_v39 = vrot.slane %v1856_v23, 9  ;;  %2692 = vrot.lane.b32.xlu1 %v12153_v31, %s14408_s27  ;;  %v1984_v43 = vrot.slane %v973_v28, 5  ;;  %v1987_v44 = vrot.slane %v1456_v29, 5  ;;  %v1444_v8 = vld [vmem:[#allocation2 + $0x20] sm:$0x1] }
  0x32   : > { %2556 = vrot.lane.b32.xlu0 %v12133_v25, %s14408_s27  ;;  %v12121_v41 = vcombine.low %v1894_v26, %v1897_v36  ;;  %v2371_v42 = vor.u32 %v2370_v33, %v2367_v32  ;;  %v2380_v45 = vrot.slane %v2378_v37, 4  ;;  %v2386_v46 = vrot.slane %v2384_v38, 5  ;;  %v2032_v9 = vld [vmem:[#allocation2 + $0xc0] sm:$0xf]  ;;  %v2033_v16 = vld [vmem:[#allocation2 + $0xc4] sm:$0xf] }
  0x33   : > { %v2077_v48 = vshrl.u32 %v2006_v35, 16  ;;  %v2080_v49 = vshll.u32 %v2006_v35, 16  ;;  %v1985_v52 = vsel %vm14521_vm6, %v12102_v39, %v1984_v43  ;;  %v1986_v53 = vrot.slane %v1984_v43, 4  ;;  %v2050_v17 = vld [vmem:[#allocation2 + $0xc8] sm:$0x1] }
  0x34   : > { %v2372_v50 = vrot.slane %v2371_v42, 4  ;;  %v2086_v54 = vshll.u32 %v2007_v40, 16  ;;  %v2381_v56 = vor.u32 %v2380_v45, %v2376_v34  ;;  %v2090_v59 = vshrl.u32 %v2007_v40, 16  ;;  %v1857_v22 = vld [vmem:[#allocation2 + $0xb4] sm:$0xe]  ;;  %v13765_v45 = vld [vmem:[%s18293_s1 + $0x88] sm:$0xff]  }
  0x35   : > { %v2079_v57 = vrot.slane %v2077_v48, 4  ;;  %v2082_v58 = vrot.slane %v2080_v49, 5  ;;  %2532 = vrot.lane.b32.xlu1 %v12121_v41, %s14408_s27  ;;  %v1988_v0 = vsel %vm14521_vm6, %v1986_v53, %v1987_v44  ;;  %v2096_v2 = vshll.u32 %v2037_v47, 16  ;;  %v975_v27 = vld [vmem:[#allocation2 + $0xb8] sm:$0xf]  ;;  %13703 = vmatpush3.bf16.msra.mxu1 %v13765_v45 }
  0x36   : > { %v2377_v63 = vsel %vm14513_vm5, %v2372_v50, %v2376_v34  ;;  %v2088_v1 = vrot.slane %v2086_v54, 5  ;;  %v2382_v4 = vrot.slane %v2381_v56, 4  ;;  %v12134_v5 = vcombine.low %v1985_v52, %v1988_v0  ;;  %v1457_v32 = vld [vmem:[#allocation2 + $0xbc] sm:$0x1]  ;;  %v2008_v37 = vld [vmem:[#allocation2 + $0x30] sm:$0xf]  ;;  %12845 = vmatpush3.bf16.msra.mxu0 %v13765_v45 }
  0x37   : > { %v2083_v6 = vor.u32 %v2082_v58, %v2079_v57  ;;  %v2092_v7 = vrot.slane %v2090_v59, 4  ;;  %v2098_v10 = vrot.slane %v2096_v2, 5  ;;  %v12090_v11 = vrot.slane %v1844_v60, 9  ;;  %v2009_v38 = vld [vmem:[#allocation2 + $0x34] sm:$0xf] }
  0x38   : > { %v2387_v12 = vsel %vm14513_vm5, %v2382_v4, %v2386_v46  ;;  %v1900_v15 = vrot.slane %v14568_v3, 5  ;;  %v1903_v19 = vrot.slane %v1444_v8, 5  ;;  %v2389_v20 = vshrl.u32 %v2032_v9, 16  ;;  %v247_v43 = vld [vmem:[%s14461_s24 + $0x30] sm:$0xf] }
  0x39   : > { %v2084_v13 = vrot.slane %v2083_v6, 4  ;;  %v2093_v14 = vor.u32 %v2092_v7, %v2088_v1  ;;  %v12166_v18 = vcombine.low %v2377_v63, %v2387_v12  ;;  %2558 = vrot.lane.b32.xlu1 %v12134_v5, %s14408_s27  ;;  %v2392_v21 = vshll.u32 %v2032_v9, 16  ;;  %v248_v44 = vld [vmem:[%s14461_s24 + $0x34] sm:$0xf]  ;;  %v249_v50 = vld [vmem:[%s14461_s24 + $0x38] sm:$0xf] }
  0x3a   : > { %v1901_v25 = vsel %vm14521_vm6, %v12090_v11, %v1900_v15  ;;  %v1902_v26 = vrot.slane %v1900_v15, 4  ;;  %v2391_v28 = vrot.slane %v2389_v20, 4  ;;  %v2398_v30 = vshll.u32 %v2033_v16, 16  ;;  %296 = vst.msk [vmem:[#allocation2 + $0x3c] sm:$0xf] %vm227_vm0, %v247_v43  ;;  %v13766_v7 = vld [vmem:[%s18293_s1 + $0xd0] sm:$0xff]  }
  0x3b   : > { %v2089_v23 = vsel %vm14513_vm5, %v2084_v13, %v2088_v1  ;;  %v2094_v24 = vrot.slane %v2093_v14, 4  ;;  %2718 = vrot.lane.b32.xlu0 %v12166_v18, %s14408_s27  ;;  %v2394_v29 = vrot.slane %v2392_v21, 5  ;;  %v2402_v31 = vshrl.u32 %v2033_v16, 16  ;;  %297 = vst.msk [vmem:[#allocation2 + $0x40] sm:$0xf] %vm227_vm0, %v248_v44  ;;  %v13767_v13 = vld [vmem:[%s18293_s1 + $0x90] sm:$0xff]   ;;  %13696 = vmatprep.subr.bf16.mxu1 %v13766_v7 }
  0x3c   : > { %v1904_v34 = vsel %vm14521_vm6, %v1902_v26, %v1903_v19  ;;  %v2408_v35 = vshll.u32 %v2050_v17, 16  ;;  %v12103_v36 = vrot.slane %v1857_v22, 9  ;;  %v2400_v42 = vrot.slane %v2398_v30, 5  ;;  %v2038_v53 = vld [vmem:[#allocation2 + $0x38] sm:$0x1]  ;;  %12846 = vmatprep.subr.bf16.mxu0 %v13766_v7  ;;  %13704 = vmatpush3.bf16.msra.mxu1 %v13767_v13 }
  0x3d   : > { %v2099_v33 = vsel %vm14513_vm5, %v2094_v24, %v2098_v10  ;;  %v12122_v40 = vcombine.low %v1901_v25, %v1904_v34  ;;  %v2395_v41 = vor.u32 %v2394_v29, %v2391_v28  ;;  %v2404_v46 = vrot.slane %v2402_v31, 4  ;;  %298 = vst.msk [vmem:[#allocation2 + $0x44] sm:$0xf] %vm227_vm0, %v249_v50  ;;  %v14608_v63 = vld [vmem:[#allocation2 + $0x28] sm:$0xf]  ;;  %12847 = vmatpush3.bf16.msra.mxu0 %v13767_v13 }
  0x3e   : > { %v12154_v39 = vcombine.low %v2089_v23, %v2099_v33  ;;  %v2410_v47 = vrot.slane %v2408_v35, 5  ;;  %v1991_v48 = vrot.slane %v975_v27, 5  ;;  %v1994_v49 = vrot.slane %v1457_v32, 5  ;;  %v1845_v0 = vld [vmem:[#allocation2 + $0x24] sm:$0xe] }
  0x3f   : > { %2534 = vrot.lane.b32.xlu1 %v12122_v40, %s14408_s27  ;;  %v2396_v52 = vrot.slane %v2395_v41, 4  ;;  %v2101_v54 = vshrl.u32 %v2008_v37, 16  ;;  %v2104_v56 = vshll.u32 %v2008_v37, 16  ;;  %v2110_v57 = vshll.u32 %v2009_v38, 16  ;;  %v1445_v6 = vld [vmem:[#allocation2 + $0x2c] sm:$0x1] }
  0x40   : > { %2694 = vrot.lane.b32.xlu0 %v12154_v39, %s14408_s27  ;;  %v2405_v58 = vor.u32 %v2404_v46, %v2400_v42  ;;  %v1992_v59 = vsel %vm14521_vm6, %v12103_v36, %v1991_v48  ;;  %v1993_v60 = vrot.slane %v1991_v48, 4  ;;  %v2114_v62 = vshrl.u32 %v2009_v38, 16  ;;  %v2034_v12 = vld [vmem:[#allocation2 + $0xcc] sm:$0xf]  ;;  %v2035_v18 = vld [vmem:[#allocation2 + $0xd0] sm:$0xf] }
  0x41   : > { %v2401_v1 = vsel %vm14513_vm5, %v2396_v52, %v2400_v42  ;;  %v2103_v2 = vrot.slane %v2101_v54, 4  ;;  %v2106_v4 = vrot.slane %v2104_v56, 5  ;;  %v2112_v5 = vrot.slane %v2110_v57, 5  ;;  %v2051_v19 = vld [vmem:[#allocation2 + $0xd4] sm:$0x1]  ;;  %v13768_v52 = vld [vmem:[%s18293_s1 + $0xd8] sm:$0xff]  }
  0x42   : > { %v2406_v8 = vrot.slane %v2405_v58, 4  ;;  %v1995_v9 = vsel %vm14521_vm6, %v1993_v60, %v1994_v49  ;;  %v2116_v10 = vrot.slane %v2114_v62, 4  ;;  %v2120_v11 = vshll.u32 %v2038_v53, 16  ;;  %v250_v24 = vld [vmem:[%s14461_s24 + $0x3c] sm:$0xf]  ;;  %13697 = vmatprep.subr.bf16.mxu1 %v13768_v52  ;;  %12848 = vmatprep.subr.bf16.mxu0 %v13768_v52 }
  0x43   : > { %v12135_v14 = vcombine.low %v1992_v59, %v1995_v9  ;;  %v2107_v15 = vor.u32 %v2106_v4, %v2103_v2  ;;  %v12091_v16 = vrot.slane %v1845_v0, 9  ;;  %v1907_v17 = vrot.slane %v14608_v63, 5  ;;  %v251_v25 = vld [vmem:[%s14461_s24 + $0x40] sm:$0xf]  ;;  %299 = vst.msk [vmem:[#allocation2 + $0x48] sm:$0xf] %vm227_vm0, %v250_v24 }
  0x44   : > { %v2411_v20 = vsel %vm14513_vm5, %v2406_v8, %v2410_v47  ;;  %v2117_v21 = vor.u32 %v2116_v10, %v2112_v5  ;;  %v2122_v22 = vrot.slane %v2120_v11, 5  ;;  %v1910_v23 = vrot.slane %v1445_v6, 5  ;;  %300 = vst.msk [vmem:[#allocation2 + $0x4c] sm:$0xf] %vm227_vm0, %v251_v25  ;;  %v977_v34 = vld [vmem:[#allocation2 + $0xc4] sm:$0xf] }
  0x45   : > { %v12167_v26 = vcombine.low %v2401_v1, %v2411_v20  ;;  %2560 = vrot.lane.b32.xlu1 %v12135_v14, %s14408_s27  ;;  %v2108_v27 = vrot.slane %v2107_v15, 4  ;;  %v1908_v28 = vsel %vm14521_vm6, %v12091_v16, %v1907_v17  ;;  %v1909_v29 = vrot.slane %v1907_v17, 4  ;;  %v1858_v39 = vld [vmem:[#allocation2 + $0xc0] sm:$0xe]  ;;  %v252_v40 = vld [vmem:[%s14461_s24 + $0x44] sm:$0xf] }
  0x46   : > { %v2118_v30 = vrot.slane %v2117_v21, 4  ;;  %v2413_v31 = vshrl.u32 %v2034_v12, 16  ;;  %v2416_v32 = vshll.u32 %v2034_v12, 16  ;;  %v2422_v33 = vshll.u32 %v2035_v18, 16  ;;  %v1458_v45 = vld [vmem:[#allocation2 + $0xc8] sm:$0x1] }
  0x47   : > { %2720 = vrot.lane.b32.xlu0 %v12167_v26, %s14408_s27  ;;  %v2113_v35 = vsel %vm14513_vm5, %v2108_v27, %v2112_v5  ;;  %v1911_v36 = vsel %vm14521_vm6, %v1909_v29, %v1910_v23  ;;  %v2426_v37 = vshrl.u32 %v2035_v18, 16  ;;  %v2432_v38 = vshll.u32 %v2051_v19, 16  ;;  %v2010_v46 = vld [vmem:[#allocation2 + $0x3c] sm:$0xf]  ;;  %301 = vst.msk [vmem:[#allocation2 + $0x50] sm:$0xf] %vm227_vm0, %v252_v40 }
  0x48   : > { %v2123_v41 = vsel %vm14513_vm5, %v2118_v30, %v2122_v22  ;;  %v12123_v42 = vcombine.low %v1908_v28, %v1911_v36  ;;  %v2415_v43 = vrot.slane %v2413_v31, 4  ;;  %v2418_v44 = vrot.slane %v2416_v32, 5  ;;  %v2011_v50 = vld [vmem:[#allocation2 + $0x40] sm:$0xf]  ;;  %v13769_v58 = vld [vmem:[%s18293_s1 + $0x98] sm:$0xff]   ;;  %v13772_v28 = vld [vmem:[%s18293_s1 + $0xe8] sm:$0xff]  }
  0x49   : > { %v12155_v47 = vcombine.low %v2113_v35, %v2123_v41  ;;  %v2424_v48 = vrot.slane %v2422_v33, 5  ;;  %v2428_v49 = vrot.slane %v2426_v37, 4  ;;  %v2434_v54 = vrot.slane %v2432_v38, 5  ;;  %v2039_v62 = vld [vmem:[#allocation2 + $0x44] sm:$0x1]  ;;  %13705 = vmatpush3.bf16.msra.mxu1 %v13769_v58  ;;  %12849 = vmatpush3.bf16.msra.mxu0 %v13769_v58  ;;  %v13773_v33 = vld [vmem:[%s18293_s1 + $0xa8] sm:$0xff]  }
  0x4a   : > { %2536 = vrot.lane.b32.xlu1 %v12123_v42, %s14408_s27  ;;  %v2419_v53 = vor.u32 %v2418_v44, %v2415_v43  ;;  %v12104_v56 = vrot.slane %v1858_v39, 9  ;;  %v1998_v57 = vrot.slane %v977_v34, 5  ;;  %v2001_v60 = vrot.slane %v1458_v45, 5  ;;  %v14647_v2 = vld [vmem:[#allocation2 + $0x34] sm:$0xf]  ;;  %v13770_v4 = vld [vmem:[%s18293_s1 + $0xe0] sm:$0xff]  }
  0x4b   : > { %2696 = vrot.lane.b32.xlu0 %v12155_v47, %s14408_s27  ;;  %v2429_v59 = vor.u32 %v2428_v49, %v2424_v48  ;;  %v2125_v0 = vshrl.u32 %v2010_v46, 16  ;;  %v2128_v1 = vshll.u32 %v2010_v46, 16  ;;  %v2134_v8 = vshll.u32 %v2011_v50, 16  ;;  %v1446_v9 = vld [vmem:[#allocation2 + $0x38] sm:$0x1]  ;;  %v13771_v10 = vld [vmem:[%s18293_s1 + $0xa0] sm:$0xff]   ;;  %13698 = vmatprep.subr.bf16.mxu1 %v13770_v4 }
  0x4c   : > { %v2420_v5 = vrot.slane %v2419_v53, 4  ;;  %v1999_v6 = vsel %vm14521_vm6, %v12104_v56, %v1998_v57  ;;  %v2000_v7 = vrot.slane %v1998_v57, 4  ;;  %v2138_v14 = vshrl.u32 %v2011_v50, 16  ;;  %v1846_v15 = vld [vmem:[#allocation2 + $0x30] sm:$0xe]  ;;  %12850 = vmatprep.subr.bf16.mxu0 %v13770_v4 }
  0x4d   : > { %v2430_v11 = vrot.slane %v2429_v59, 4  ;;  %v2127_v12 = vrot.slane %v2125_v0, 4  ;;  %v2130_v13 = vrot.slane %v2128_v1, 5  ;;  %v2136_v18 = vrot.slane %v2134_v8, 5  ;;  %v14661_v20 = vld [vmem:[#allocation2 + $0xc] sm:$0xf]  ;;  %13706 = vmatpush3.bf16.msra.mxu1 %v13771_v10  ;;  %12851 = vmatpush3.bf16.msra.mxu0 %v13771_v10 }
  0x4e   : > { %v2425_v16 = vsel %vm14513_vm5, %v2420_v5, %v2424_v48  ;;  %v2002_v17 = vsel %vm14521_vm6, %v2000_v7, %v2001_v60  ;;  %v2144_v19 = vshll.u32 %v2039_v62, 16  ;;  %v253_v21 = vld [vmem:[%s14461_s24 + $0x48] sm:$0xf]  ;;  %v2140_v25 = vrot.slane %v2138_v14, 4  ;;  %v332_v26 = vld [vmem:[#allocation2] sm:$0xf]  ;;  %13699 = vmatprep.subr.bf16.mxu1 %v13772_v28  ;;  %12852 = vmatprep.subr.bf16.mxu0 %v13772_v28 }
  0x4f   : > { %v2435_v22 = vsel %vm14513_vm5, %v2430_v11, %v2434_v54  ;;  %v12136_v23 = vcombine.low %v1999_v6, %v2002_v17  ;;  %v2131_v24 = vor.u32 %v2130_v13, %v2127_v12  ;;  %v254_v27 = vld [vmem:[%s14461_s24 + $0x4c] sm:$0xf]  ;;  %302 = vst.msk [vmem:[#allocation2 + $0x54] sm:$0xf] %vm227_vm0, %v253_v21  ;;  %v12092_v30 = vrot.slane %v1846_v15, 9  ;;  %v13774_v43 = vld [vmem:[%s18293_s1 + $0xf0] sm:$0xff]  }
  0x50   : > { %v12168_v29 = vcombine.low %v2425_v16, %v2435_v22  ;;  %v1914_v31 = vrot.slane %v14647_v2, 5  ;;  %v255_v32 = vld [vmem:[%s14461_s24 + $0x50] sm:$0xf]  ;;  %303 = vst.msk [vmem:[#allocation2 + $0x58] sm:$0xf] %vm227_vm0, %v254_v27  ;;  %v2141_v35 = vor.u32 %v2140_v25, %v2136_v18  ;;  %v2146_v36 = vrot.slane %v2144_v19, 5 }
  0x51   : > { %2562 = vrot.lane.b32.xlu1 %v12136_v23, %s14408_s27  ;;  %v2132_v34 = vrot.slane %v2131_v24, 4  ;;  %v1917_v37 = vrot.slane %v1446_v9, 5  ;;  %v333_v38 = vld [vmem:[#allocation2 + $0x4] sm:$0xf]  ;;  %304 = vst.msk [vmem:[#allocation2 + $0x5c] sm:$0xf] %vm227_vm0, %v255_v32  ;;  %v12073_v41 = vcombine.low %v14661_v20, %v14517_v55  ;;  %13707 = vmatpush3.bf16.msra.mxu1 %v13773_v33 }
  0x52   : > { %2722 = vrot.lane.b32.xlu0 %v12168_v29, %s14408_s27  ;;  %v1915_v39 = vsel %vm14521_vm6, %v12092_v30, %v1914_v31  ;;  %v1916_v40 = vrot.slane %v1914_v31, 4  ;;  %v364_v42 = vld [vmem:[#allocation2 + $0x8] sm:$0x1]  ;;  %v2142_v45 = vrot.slane %v2141_v35, 4  ;;  %v384_v46 = vshrl.u32 %v332_v26, 16  ;;  %v13775_v56 = vld [vmem:[%s18293_s1 + $0xb0] sm:$0xff]   ;;  %12853 = vmatpush3.bf16.msra.mxu0 %v13773_v33 }
  0x53   : > { %v2137_v44 = vsel %vm14513_vm5, %v2132_v34, %v2136_v18  ;;  %v387_v47 = vshll.u32 %v332_v26, 16  ;;  %v2012_v48 = vld [vmem:[#allocation2 + $0x48] sm:$0xf]  ;;  %v1460_v50 = vshrl.u32 %v14661_v20, 16  ;;  %v1463_v52 = vshll.u32 %v14661_v20, 16  ;;  %13700 = vmatprep.subr.bf16.mxu1 %v13774_v43  ;;  %v13776_v0 = vld [vmem:[%s18293_s1 + $0xf8] sm:$0xff]   ;;  %12854 = vmatprep.subr.bf16.mxu0 %v13774_v43 }
  0x54   : > { %v1918_v49 = vsel %vm14521_vm6, %v1916_v40, %v1917_v37  ;;  %v393_v53 = vshll.u32 %v333_v38, 16  ;;  %v2013_v54 = vld [vmem:[#allocation2 + $0x4c] sm:$0xf]  ;;  %v2147_v57 = vsel %vm14513_vm5, %v2142_v45, %v2146_v36  ;;  %v386_v59 = vrot.slane %v384_v46, 4  ;;  %v2040_v62 = vld [vmem:[#allocation2 + $0x50] sm:$0x1] }
  0x55   : > { %v12124_v58 = vcombine.low %v1915_v39, %v1918_v49  ;;  %v389_v60 = vrot.slane %v387_v47, 5  ;;  %v12156_v1 = vcombine.low %v2137_v44, %v2147_v57  ;;  %v397_v5 = vshrl.u32 %v333_v38, 16  ;;  %v14703_v7 = vld [vmem:[#allocation2 + $0x40] sm:$0xf]  ;;  %v1447_v8 = vld [vmem:[#allocation2 + $0x44] sm:$0x1]  ;;  %13708 = vmatpush3.bf16.msra.mxu1 %v13775_v56 }
  0x56   : > { %v14701_v4 = vrot.slane %v393_v53, 5  ;;  %v403_v6 = vshll.u32 %v364_v42, 16  ;;  %v2149_v10 = vshrl.u32 %v2012_v48, 16  ;;  %v2152_v11 = vshll.u32 %v2012_v48, 16  ;;  %v1847_v13 = vld [vmem:[#allocation2 + $0x3c] sm:$0xe]  ;;  %12855 = vmatpush3.bf16.msra.mxu0 %v13775_v56  ;;  %13701 = vmatprep.subr.bf16.mxu1 %v13776_v0 }
  0x57   : > { %2538 = vrot.lane.b32.xlu1 %v12124_v58, %s14408_s27  ;;  %v390_v9 = vor.u32 %v389_v60, %v386_v59  ;;  %v2158_v12 = vshll.u32 %v2013_v54, 16  ;;  %2698 = vrot.lane.b32.xlu0 %v12156_v1, %s14408_s27  ;;  %v14707_v14 = vrot.slane %v1460_v50, 4  ;;  %v399_v15 = vrot.slane %v397_v5, 4  ;;  %v14709_v18 = vld [vmem:[#allocation2 + $0x18] sm:$0xf]  ;;  %v13779_v21 = vld [vmem:[%s18293_s1 + $0x40] sm:$0xff]  }
  0x58   : > { %v2162_v16 = vshrl.u32 %v2013_v54, 16  ;;  %v2168_v17 = vshll.u32 %v2040_v62, 16  ;;  %v13778_v19 = vld [vmem:[%s18293_s1 + $0xb8] sm:$0xff]   ;;  %v2151_v23 = vrot.slane %v2149_v10, 4  ;;  %v2154_v24 = vrot.slane %v2152_v11, 5  ;;  %12856 = vmatprep.subr.bf16.mxu0 %v13776_v0  ;;  %v13782_v50 = vld [vmem:[%s18293_s1 + $0x100] sm:$0xff]  }
  0x59   : > { %v391_v22 = vrot.slane %v390_v9, 4  ;;  %v2160_v25 = vrot.slane %v2158_v12, 5  ;;  %v334_v26 = vld [vmem:[#allocation2 + $0xc] sm:$0xf]  ;;  %v256_v27 = vld [vmem:[%s14461_s24 + $0x54] sm:$0xf]  ;;  %v400_v28 = vor.u32 %v399_v15, %v14701_v4  ;;  %13709 = vmatpush3.bf16.msra.mxu1 %v13778_v19  ;;  %v12074_v46 = vcombine.low %v14709_v18, %v14568_v3 }
  0x5a   : > { %v405_v29 = vrot.slane %v403_v6, 5  ;;  %v2164_v30 = vrot.slane %v2162_v16, 4  ;;  %v12093_v31 = vrot.slane %v1847_v13, 9  ;;  %v257_v32 = vld [vmem:[%s14461_s24 + $0x58] sm:$0xf]  ;;  %v14721_v33 = vrot.slane %v1463_v52, 5  ;;  %12857 = vmatpush3.bf16.msra.mxu0 %v13778_v19  ;;  %12954 = vmatprep.subr.bf16.mxu1 %v13779_v21 }
  0x5b   : > { %305 = vst.msk [vmem:[#allocation2 + $0x60] sm:$0xf] %vm227_vm0, %v256_v27  ;;  %v2155_v34 = vor.u32 %v2154_v24, %v2151_v23  ;;  %v1921_v35 = vrot.slane %v14703_v7, 5  ;;  %v1924_v36 = vrot.slane %v1447_v8, 5  ;;  %v258_v37 = vld [vmem:[%s14461_s24 + $0x5c] sm:$0xf]  ;;  %1250 = vrot.lane.b32.xlu0 %v12073_v41, %s14408_s27  ;;  %v396_v38 = vsel %vm14513_vm5, %v391_v22, %v14701_v4  ;;  %13574 = vmatprep.subr.bf16.mxu0 %v13782_v50 }
  0x5c   : > { %306 = vst.msk [vmem:[#allocation2 + $0x64] sm:$0xf] %vm227_vm0, %v257_v32  ;;  %v401_v39 = vrot.slane %v400_v28, 4  ;;  %v2165_v40 = vor.u32 %v2164_v30, %v2160_v25  ;;  %v2170_v42 = vrot.slane %v2168_v17, 5  ;;  %307 = vst.msk [vmem:[#allocation2 + $0x68] sm:$0xf] %vm227_vm0, %v258_v37 }
  0x5d   : > { %v2156_v43 = vrot.slane %v2155_v34, 4  ;;  %v1922_v44 = vsel %vm14521_vm6, %v12093_v31, %v1921_v35  ;;  %v1923_v45 = vrot.slane %v1921_v35, 4  ;;  %v335_v55 = vld [vmem:[#allocation2 + $0x10] sm:$0xf]  ;;  %v1484_v47 = vshrl.u32 %v14709_v18, 16 }
  0x5e   : > { %v406_v20 = vsel %vm14513_vm5, %v401_v39, %v405_v29  ;;  %v2166_v41 = vrot.slane %v2165_v40, 4  ;;  %v365_v48 = vld [vmem:[#allocation2 + $0x14] sm:$0x1]  ;;  %v408_v49 = vshrl.u32 %v334_v26, 16  ;;  %v1487_v54 = vshll.u32 %v14709_v18, 16 }
  0x5f   : > { %v12041_v52 = vcombine.low %v396_v38, %v406_v20  ;;  %v2161_v3 = vsel %vm14513_vm5, %v2156_v43, %v2160_v25  ;;  %v1925_v53 = vsel %vm14521_vm6, %v1923_v45, %v1924_v36  ;;  %v2014_v56 = vld [vmem:[#allocation2 + $0x54] sm:$0xf]  ;;  %v2015_v57 = vld [vmem:[#allocation2 + $0x58] sm:$0xf]  ;;  %v411_v62 = vshll.u32 %v334_v26, 16 }
  0x60   : > { %v2171_v58 = vsel %vm14513_vm5, %v2166_v41, %v2170_v42  ;;  %v12125_v59 = vcombine.low %v1922_v44, %v1925_v53  ;;  %v410_v60 = vrot.slane %v408_v49, 4  ;;  %v259_v0 = vld [vmem:[%s14461_s24 + $0x60] sm:$0xf]  ;;  %v260_v1 = vld [vmem:[%s14461_s24 + $0x64] sm:$0xf]  ;;  %v417_v5 = vshll.u32 %v335_v55, 16 }
  0x61   : > { %1090 = vrot.lane.b32.xlu1 %v12041_v52, %s14408_s27  ;;  %v12157_v4 = vcombine.low %v2161_v3, %v2171_v58  ;;  %v421_v6 = vshrl.u32 %v335_v55, 16  ;;  %v427_v8 = vshll.u32 %v365_v48, 16  ;;  %v14754_v9 = vld [vmem:[#allocation2 + $0x4c] sm:$0xf]  ;;  %v1848_v10 = vld [vmem:[#allocation2 + $0x48] sm:$0xe] }
  0x62   : > { %308 = vst.msk [vmem:[#allocation2 + $0x6c] sm:$0xf] %vm227_vm0, %v259_v0  ;;  %309 = vst.msk [vmem:[#allocation2 + $0x70] sm:$0xf] %vm227_vm0, %v260_v1  ;;  %v413_v11 = vrot.slane %v411_v62, 5  ;;  %v2173_v13 = vshrl.u32 %v2014_v56, 16 }
  0x63   : > { %v2041_v12 = vld [vmem:[#allocation2 + $0x5c] sm:$0x1]  ;;  %v2176_v15 = vshll.u32 %v2014_v56, 16  ;;  %v2182_v16 = vshll.u32 %v2015_v57, 16  ;;  %2700 = vrot.lane.b32.xlu0 %v12157_v4, %s14408_s27  ;;  %v419_v17 = vrot.slane %v417_v5, 5  ;;  %v423_v18 = vrot.slane %v421_v6, 4 }
  0x64   : > { %v429_v19 = vrot.slane %v427_v8, 5  ;;  %v2186_v21 = vshrl.u32 %v2015_v57, 16  ;;  %v1448_v22 = vld [vmem:[#allocation2 + $0x50] sm:$0x1]  ;;  %v414_v23 = vor.u32 %v413_v11, %v410_v60  ;;  %v2175_v24 = vrot.slane %v2173_v13, 4 }
  0x65   : > { %v2178_v25 = vrot.slane %v2176_v15, 5  ;;  %v2184_v26 = vrot.slane %v2182_v16, 5  ;;  %v261_v27 = vld [vmem:[%s14461_s24 + $0x68] sm:$0xf]  ;;  %2540 = vrot.lane.b32.xlu1 %v12125_v59, %s14408_s27  ;;  %v424_v28 = vor.u32 %v423_v18, %v419_v17  ;;  %v2192_v30 = vshll.u32 %v2041_v12, 16 }
  0x66   : > { %v2188_v29 = vrot.slane %v2186_v21, 4  ;;  %v12094_v31 = vrot.slane %v1848_v10, 9  ;;  %310 = vst.msk [vmem:[#allocation2 + $0x74] sm:$0xf] %vm227_vm0, %v261_v27  ;;  %v415_v32 = vrot.slane %v414_v23, 4  ;;  %v1928_v35 = vrot.slane %v14754_v9, 5 }
  0x67   : > { %v2179_v34 = vor.u32 %v2178_v25, %v2175_v24  ;;  %v1931_v36 = vrot.slane %v1448_v22, 5  ;;  %v14763_v37 = vld [vmem:[#allocation2 + $0x24] sm:$0xf]  ;;  %v14765_v38 = vrot.slane %v1484_v47, 4  ;;  %1252 = vrot.lane.b32.xlu0 %v12074_v46, %s14408_s27  ;;  %v425_v39 = vrot.slane %v424_v28, 4 }
  0x68   : > { %v2189_v40 = vor.u32 %v2188_v29, %v2184_v26  ;;  %v2194_v42 = vrot.slane %v2192_v30, 5  ;;  %v336_v43 = vld [vmem:[#allocation2 + $0x18] sm:$0xf]  ;;  %v420_v44 = vsel %vm14513_vm5, %v415_v32, %v419_v17  ;;  %v1929_v55 = vsel %vm14521_vm6, %v12094_v31, %v1928_v35  ;;  %v337_v49 = vld [vmem:[#allocation2 + $0x1c] sm:$0xf] }
  0x69   : > { %v2180_v45 = vrot.slane %v2179_v34, 4  ;;  %v1930_v20 = vrot.slane %v1928_v35, 4  ;;  %v14772_v41 = vrot.slane %v1487_v54, 5  ;;  %v430_v47 = vsel %vm14513_vm5, %v425_v39, %v429_v19  ;;  %v366_v50 = vld [vmem:[#allocation2 + $0x20] sm:$0x1] }
  0x6a   : > { %v2190_v46 = vrot.slane %v2189_v40, 4  ;;  %v12075_v48 = vcombine.low %v14763_v37, %v14608_v63  ;;  %v12042_v52 = vcombine.low %v420_v44, %v430_v47  ;;  %v432_v54 = vshrl.u32 %v336_v43, 16  ;;  %v2016_v56 = vld [vmem:[#allocation2 + $0x60] sm:$0xf]  ;;  %v2017_v57 = vld [vmem:[#allocation2 + $0x64] sm:$0xf] }
  0x6b   : > { %v2185_v3 = vsel %vm14513_vm5, %v2180_v45, %v2184_v26  ;;  %v1932_v53 = vsel %vm14521_vm6, %v1930_v20, %v1931_v36  ;;  %v1508_v60 = vshrl.u32 %v14763_v37, 16  ;;  %v1511_v63 = vshll.u32 %v14763_v37, 16  ;;  %v262_v62 = vld [vmem:[%s14461_s24 + $0x6c] sm:$0xf]  ;;  %v263_v0 = vld [vmem:[%s14461_s24 + $0x70] sm:$0xf] }
  0x6c   : > { %v2195_v58 = vsel %vm14513_vm5, %v2190_v46, %v2194_v42  ;;  %v12126_v59 = vcombine.low %v1929_v55, %v1932_v53  ;;  %1092 = vrot.lane.b32.xlu1 %v12042_v52, %s14408_s27  ;;  %v434_v4 = vrot.slane %v432_v54, 4  ;;  %v435_v5 = vshll.u32 %v336_v43, 16  ;;  %v2042_v8 = vld [vmem:[#allocation2 + $0x68] sm:$0x1]  ;;  %v14789_v10 = vld [vmem:[#allocation2 + $0x58] sm:$0xf] }
  0x6d   : > { %v12158_v1 = vcombine.low %v2185_v3, %v2195_v58  ;;  %v441_v6 = vshll.u32 %v337_v49, 16  ;;  %311 = vst.msk [vmem:[#allocation2 + $0x78] sm:$0xf] %vm227_vm0, %v262_v62  ;;  %312 = vst.msk [vmem:[#allocation2 + $0x7c] sm:$0xf] %vm227_vm0, %v263_v0  ;;  %v445_v11 = vshrl.u32 %v337_v49, 16 }
  0x6e   : > { %v451_v12 = vshll.u32 %v366_v50, 16  ;;  %v2197_v13 = vshrl.u32 %v2016_v56, 16  ;;  %v2200_v15 = vshll.u32 %v2016_v56, 16  ;;  %v264_v16 = vld [vmem:[%s14461_s24 + $0x74] sm:$0xf]  ;;  %v437_v17 = vrot.slane %v435_v5, 5 }
  0x6f   : > { %2702 = vrot.lane.b32.xlu0 %v12158_v1, %s14408_s27  ;;  %v443_v18 = vrot.slane %v441_v6, 5  ;;  %v2206_v19 = vshll.u32 %v2017_v57, 16  ;;  %v2210_v21 = vshrl.u32 %v2017_v57, 16  ;;  %v1849_v22 = vld [vmem:[#allocation2 + $0x54] sm:$0xe]  ;;  %v447_v23 = vrot.slane %v445_v11, 4 }
  0x70   : > { %313 = vst.msk [vmem:[#allocation2 + $0x80] sm:$0xf] %vm227_vm0, %v264_v16  ;;  %v453_v24 = vrot.slane %v451_v12, 5  ;;  %v2199_v25 = vrot.slane %v2197_v13, 4  ;;  %v2202_v26 = vrot.slane %v2200_v15, 5  ;;  %2542 = vrot.lane.b32.xlu1 %v12126_v59, %s14408_s27  ;;  %v438_v28 = vor.u32 %v437_v17, %v434_v4 }
  0x71   : > { %v1449_v27 = vld [vmem:[#allocation2 + $0x5c] sm:$0x1]  ;;  %v2208_v29 = vrot.slane %v2206_v19, 5  ;;  %v2212_v30 = vrot.slane %v2210_v21, 4  ;;  %v2216_v31 = vshll.u32 %v2042_v8, 16  ;;  %v448_v32 = vor.u32 %v447_v23, %v443_v18 }
  0x72   : > { %v2203_v34 = vor.u32 %v2202_v26, %v2199_v25  ;;  %v12095_v35 = vrot.slane %v1849_v22, 9  ;;  %v1935_v36 = vrot.slane %v14789_v10, 5  ;;  %v439_v37 = vrot.slane %v438_v28, 4  ;;  %v14799_v43 = vld [vmem:[#allocation2 + $0x30] sm:$0xf] }
  0x73   : > { %1254 = vrot.lane.b32.xlu0 %v12075_v48, %s14408_s27  ;;  %v2213_v39 = vor.u32 %v2212_v30, %v2208_v29  ;;  %v2218_v40 = vrot.slane %v2216_v31, 5  ;;  %v1938_v42 = vrot.slane %v1449_v27, 5  ;;  %v14801_v44 = vrot.slane %v1508_v60, 4  ;;  %v338_v47 = vld [vmem:[#allocation2 + $0x24] sm:$0xf] }
  0x74   : > { %v449_v45 = vrot.slane %v448_v32, 4  ;;  %v2204_v55 = vrot.slane %v2203_v34, 4  ;;  %v1937_v20 = vrot.slane %v1935_v36, 4  ;;  %v14803_v46 = vrot.slane %v1511_v63, 5  ;;  %v339_v52 = vld [vmem:[#allocation2 + $0x28] sm:$0xf] }
  0x75   : > { %v444_v49 = vsel %vm14513_vm5, %v439_v37, %v443_v18  ;;  %v2214_v48 = vrot.slane %v2213_v39, 4  ;;  %v1936_v50 = vsel %vm14521_vm6, %v12095_v35, %v1935_v36  ;;  %v367_v3 = vld [vmem:[#allocation2 + $0x2c] sm:$0x1]  ;;  %v12076_v57 = vcombine.low %v14799_v43, %v14647_v2  ;;  %v2019_v59 = vld [vmem:[#allocation2 + $0x70] sm:$0xf] }
  0x76   : > { %v454_v53 = vsel %vm14513_vm5, %v449_v45, %v453_v24  ;;  %v2209_v54 = vsel %vm14513_vm5, %v2204_v55, %v2208_v29  ;;  %v1939_v56 = vsel %vm14521_vm6, %v1937_v20, %v1938_v42  ;;  %v2018_v58 = vld [vmem:[#allocation2 + $0x6c] sm:$0xf]  ;;  %v265_v60 = vld [vmem:[%s14461_s24 + $0x78] sm:$0xf]  ;;  %v1532_v0 = vshrl.u32 %v14799_v43, 16 }
  0x77   : > { %v12043_v63 = vcombine.low %v444_v49, %v454_v53  ;;  %v2219_v62 = vsel %vm14513_vm5, %v2214_v48, %v2218_v40  ;;  %v1535_v1 = vshll.u32 %v14799_v43, 16  ;;  %v266_v4 = vld [vmem:[%s14461_s24 + $0x7c] sm:$0xf]  ;;  %v267_v5 = vld [vmem:[%s14461_s24 + $0x80] sm:$0xf]  ;;  %v12127_v8 = vcombine.low %v1936_v50, %v1939_v56 }
  0x78   : > { %314 = vst.msk [vmem:[#allocation2 + $0x84] sm:$0xf] %vm227_vm0, %v265_v60  ;;  %v12159_v6 = vcombine.low %v2209_v54, %v2219_v62  ;;  %v456_v11 = vshrl.u32 %v338_v47, 16  ;;  %v459_v12 = vshll.u32 %v338_v47, 16  ;;  %v14825_v2 = vld [vmem:[#allocation2 + $0x64] sm:$0xf] }
  0x79   : > { %315 = vst.msk [vmem:[#allocation2 + $0x88] sm:$0xf] %vm227_vm0, %v266_v4  ;;  %316 = vst.msk [vmem:[#allocation2 + $0x8c] sm:$0xf] %vm227_vm0, %v267_v5  ;;  %1094 = vrot.lane.b32.xlu1 %v12043_v63, %s14408_s27  ;;  %v465_v13 = vshll.u32 %v339_v52, 16  ;;  %v469_v15 = vshrl.u32 %v339_v52, 16 }
  0x7a   : > { %v475_v16 = vshll.u32 %v367_v3, 16  ;;  %v2221_v17 = vshrl.u32 %v2018_v58, 16  ;;  %v1850_v18 = vld [vmem:[#allocation2 + $0x60] sm:$0xe]  ;;  %2704 = vrot.lane.b32.xlu0 %v12159_v6, %s14408_s27  ;;  %v458_v19 = vrot.slane %v456_v11, 4  ;;  %v461_v21 = vrot.slane %v459_v12, 5 }
  0x7b   : > { %v2043_v22 = vld [vmem:[#allocation2 + $0x74] sm:$0x1]  ;;  %v2224_v23 = vshll.u32 %v2018_v58, 16  ;;  %v2230_v24 = vshll.u32 %v2019_v59, 16  ;;  %v467_v25 = vrot.slane %v465_v13, 5  ;;  %v471_v26 = vrot.slane %v469_v15, 4 }
  0x7c   : > { %v477_v27 = vrot.slane %v475_v16, 5  ;;  %v2223_v28 = vrot.slane %v2221_v17, 4  ;;  %v1450_v29 = vld [vmem:[#allocation2 + $0x68] sm:$0x1]  ;;  %v462_v30 = vor.u32 %v461_v21, %v458_v19  ;;  %v2234_v34 = vshrl.u32 %v2019_v59, 16 }
  0x7d   : > { %v2226_v31 = vrot.slane %v2224_v23, 5  ;;  %v2232_v32 = vrot.slane %v2230_v24, 5  ;;  %2544 = vrot.lane.b32.xlu1 %v12127_v8, %s14408_s27  ;;  %v472_v35 = vor.u32 %v471_v26, %v467_v25  ;;  %v2240_v36 = vshll.u32 %v2043_v22, 16  ;;  %v14834_v55 = vld [vmem:[#allocation2 + $0x3c] sm:$0xf] }
  0x7e   : > { %v12096_v37 = vrot.slane %v1850_v18, 9  ;;  %v1942_v39 = vrot.slane %v14825_v2, 5  ;;  %1256 = vrot.lane.b32.xlu0 %v12076_v57, %s14408_s27  ;;  %v463_v40 = vrot.slane %v462_v30, 4  ;;  %v2236_v43 = vrot.slane %v2234_v34, 4  ;;  %v340_v50 = vld [vmem:[#allocation2 + $0x30] sm:$0xf] }
  0x7f   : > { %v2227_v42 = vor.u32 %v2226_v31, %v2223_v28  ;;  %v1945_v45 = vrot.slane %v1450_v29, 5  ;;  %v14836_v20 = vrot.slane %v1532_v0, 4  ;;  %v473_v47 = vrot.slane %v472_v35, 4  ;;  %v341_v56 = vld [vmem:[#allocation2 + $0x34] sm:$0xf] }
  0x80   : > { %v2242_v49 = vrot.slane %v2240_v36, 5  ;;  %v1944_v48 = vrot.slane %v1942_v39, 4  ;;  %v468_v52 = vsel %vm14513_vm5, %v463_v40, %v467_v25  ;;  %v2237_v53 = vor.u32 %v2236_v43, %v2232_v32  ;;  %v368_v57 = vld [vmem:[#allocation2 + $0x38] sm:$0x1]  ;;  %v268_v62 = vld [vmem:[%s14461_s24 + $0x84] sm:$0xf] }
  0x81   : > { %v2228_v3 = vrot.slane %v2227_v42, 4  ;;  %v1943_v54 = vsel %vm14521_vm6, %v12096_v37, %v1942_v39  ;;  %v14842_v58 = vrot.slane %v1535_v1, 5  ;;  %v478_v59 = vsel %vm14513_vm5, %v473_v47, %v477_v27  ;;  %v269_v0 = vld [vmem:[%s14461_s24 + $0x88] sm:$0xf]  ;;  %v2020_v1 = vld [vmem:[#allocation2 + $0x78] sm:$0xf] }
  0x82   : > { %v1946_v60 = vsel %vm14521_vm6, %v1944_v48, %v1945_v45  ;;  %v12077_v63 = vcombine.low %v14834_v55, %v14703_v7  ;;  %v12044_v4 = vcombine.low %v468_v52, %v478_v59  ;;  %v2238_v6 = vrot.slane %v2237_v53, 4  ;;  %v270_v11 = vld [vmem:[%s14461_s24 + $0x8c] sm:$0xf]  ;;  %317 = vst.msk [vmem:[#allocation2 + $0x90] sm:$0xf] %vm227_vm0, %v268_v62 }
  0x83   : > { %v2233_v5 = vsel %vm14513_vm5, %v2228_v3, %v2232_v32  ;;  %v1556_v8 = vshrl.u32 %v14834_v55, 16  ;;  %318 = vst.msk [vmem:[#allocation2 + $0x94] sm:$0xf] %vm227_vm0, %v269_v0  ;;  %v12128_v12 = vcombine.low %v1943_v54, %v1946_v60  ;;  %v1559_v13 = vshll.u32 %v14834_v55, 16  ;;  %v1851_v16 = vld [vmem:[#allocation2 + $0x6c] sm:$0xe] }
  0x84   : > { %v480_v15 = vshrl.u32 %v340_v50, 16  ;;  %v483_v7 = vshll.u32 %v340_v50, 16  ;;  %319 = vst.msk [vmem:[#allocation2 + $0x98] sm:$0xf] %vm227_vm0, %v270_v11  ;;  %1096 = vrot.lane.b32.xlu1 %v12044_v4, %s14408_s27  ;;  %v2243_v17 = vsel %vm14513_vm5, %v2238_v6, %v2242_v49  ;;  %v489_v18 = vshll.u32 %v341_v56, 16 }
  0x85   : > { %v493_v19 = vshrl.u32 %v341_v56, 16  ;;  %v499_v21 = vshll.u32 %v368_v57, 16  ;;  %v2021_v22 = vld [vmem:[#allocation2 + $0x7c] sm:$0xf]  ;;  %v12160_v23 = vcombine.low %v2233_v5, %v2243_v17  ;;  %v2044_v26 = vld [vmem:[#allocation2 + $0x80] sm:$0x1] }
  0x86   : > { %v482_v24 = vrot.slane %v480_v15, 4  ;;  %v485_v25 = vrot.slane %v483_v7, 5  ;;  %v2245_v27 = vshrl.u32 %v2020_v1, 16  ;;  %v491_v28 = vrot.slane %v489_v18, 5  ;;  %v14863_v32 = vld [vmem:[#allocation2 + $0x70] sm:$0xf] }
  0x87   : > { %v495_v29 = vrot.slane %v493_v19, 4  ;;  %v501_v30 = vrot.slane %v499_v21, 5  ;;  %v2248_v31 = vshll.u32 %v2020_v1, 16  ;;  %2706 = vrot.lane.b32.xlu0 %v12160_v23, %s14408_s27  ;;  %v2254_v36 = vshll.u32 %v2021_v22, 16  ;;  %v1451_v39 = vld [vmem:[#allocation2 + $0x74] sm:$0x1] }
  0x88   : > { %v486_v34 = vor.u32 %v485_v25, %v482_v24  ;;  %v2247_v35 = vrot.slane %v2245_v27, 4  ;;  %v2258_v37 = vshrl.u32 %v2021_v22, 16  ;;  %2546 = vrot.lane.b32.xlu1 %v12128_v12, %s14408_s27  ;;  %v2264_v43 = vshll.u32 %v2044_v26, 16  ;;  %v14870_v54 = vld [vmem:[#allocation2 + $0x48] sm:$0xf] }
  0x89   : > { %v496_v40 = vor.u32 %v495_v29, %v491_v28  ;;  %v2250_v42 = vrot.slane %v2248_v31, 5  ;;  %v12097_v45 = vrot.slane %v1851_v16, 9  ;;  %v2256_v47 = vrot.slane %v2254_v36, 5  ;;  %v342_v62 = vld [vmem:[#allocation2 + $0x3c] sm:$0xf] }
  0x8a   : > { %v487_v55 = vrot.slane %v486_v34, 4  ;;  %v2260_v49 = vrot.slane %v2258_v37, 4  ;;  %v1949_v48 = vrot.slane %v14863_v32, 5  ;;  %v14868_v50 = vrot.slane %v1556_v8, 4  ;;  %v343_v8 = vld [vmem:[#allocation2 + $0x40] sm:$0xf] }
  0x8b   : > { %v497_v52 = vrot.slane %v496_v40, 4  ;;  %v2251_v3 = vor.u32 %v2250_v42, %v2247_v35  ;;  %v1952_v53 = vrot.slane %v1451_v39, 5  ;;  %1258 = vrot.lane.b32.xlu0 %v12077_v63, %s14408_s27  ;;  %v2266_v59 = vrot.slane %v2264_v43, 5  ;;  %v369_v15 = vld [vmem:[#allocation2 + $0x44] sm:$0x1] }
  0x8c   : > { %v492_v56 = vsel %vm14513_vm5, %v487_v55, %v491_v28  ;;  %v2261_v57 = vor.u32 %v2260_v49, %v2256_v47  ;;  %v1951_v60 = vrot.slane %v1949_v48, 4  ;;  %v14875_v0 = vrot.slane %v1559_v13, 5  ;;  %v2022_v7 = vld [vmem:[#allocation2 + $0x84] sm:$0xf]  ;;  %v2023_v19 = vld [vmem:[#allocation2 + $0x88] sm:$0xf] }
  0x8d   : > { %v502_v4 = vsel %vm14513_vm5, %v497_v52, %v501_v30  ;;  %v2252_v5 = vrot.slane %v2251_v3, 4  ;;  %v1950_v6 = vsel %vm14521_vm6, %v12097_v45, %v1949_v48  ;;  %v12078_v12 = vcombine.low %v14870_v54, %v14754_v9  ;;  %v2045_v9 = vld [vmem:[#allocation2 + $0x8c] sm:$0x1]  ;;  %v1852_v35 = vld [vmem:[#allocation2 + $0x78] sm:$0xe] }
  0x8e   : > { %v12045_v1 = vcombine.low %v492_v56, %v502_v4  ;;  %v2262_v11 = vrot.slane %v2261_v57, 4  ;;  %v1953_v63 = vsel %vm14521_vm6, %v1951_v60, %v1952_v53  ;;  %v1580_v16 = vshrl.u32 %v14870_v54, 16  ;;  %v14893_v42 = vld [vmem:[#allocation2 + $0x7c] sm:$0xf]  ;;  %v1452_v49 = vld [vmem:[#allocation2 + $0x80] sm:$0x1] }
  0x8f   : > { %v2257_v13 = vsel %vm14513_vm5, %v2252_v5, %v2256_v47  ;;  %v1583_v17 = vshll.u32 %v14870_v54, 16  ;;  %v504_v18 = vshrl.u32 %v342_v62, 16  ;;  %v12129_v22 = vcombine.low %v1950_v6, %v1953_v63  ;;  %v344_v54 = vld [vmem:[#allocation2 + $0x48] sm:$0xf] }
  0x90   : > { %1098 = vrot.lane.b32.xlu1 %v12045_v1, %s14408_s27  ;;  %v2267_v21 = vsel %vm14513_vm5, %v2262_v11, %v2266_v59  ;;  %v507_v23 = vshll.u32 %v342_v62, 16  ;;  %v513_v24 = vshll.u32 %v343_v8, 16  ;;  %v517_v27 = vshrl.u32 %v343_v8, 16  ;;  %v14897_v62 = vld [vmem:[#allocation2 + $0x54] sm:$0xf] }
  0x91   : > { %v12161_v25 = vcombine.low %v2257_v13, %v2267_v21  ;;  %v506_v26 = vrot.slane %v504_v18, 4  ;;  %v523_v28 = vshll.u32 %v369_v15, 16  ;;  %v2269_v31 = vshrl.u32 %v2022_v7, 16  ;;  %v345_v8 = vld [vmem:[#allocation2 + $0x4c] sm:$0xf] }
  0x92   : > { %v509_v29 = vrot.slane %v507_v23, 5  ;;  %v515_v30 = vrot.slane %v513_v24, 5  ;;  %v2272_v34 = vshll.u32 %v2022_v7, 16  ;;  %v519_v36 = vrot.slane %v517_v27, 4  ;;  %v370_v7 = vld [vmem:[#allocation2 + $0x50] sm:$0x1] }
  0x93   : > { %2708 = vrot.lane.b32.xlu0 %v12161_v25, %s14408_s27  ;;  %v525_v37 = vrot.slane %v523_v28, 5  ;;  %v2278_v39 = vshll.u32 %v2023_v19, 16  ;;  %v2282_v40 = vshrl.u32 %v2023_v19, 16  ;;  %v2271_v45 = vrot.slane %v2269_v31, 4  ;;  %v2024_v21 = vld [vmem:[#allocation2 + $0x90] sm:$0xf] }
  0x94   : > { %2548 = vrot.lane.b32.xlu1 %v12129_v22, %s14408_s27  ;;  %v510_v43 = vor.u32 %v509_v29, %v506_v26  ;;  %v2274_v55 = vrot.slane %v2272_v34, 5  ;;  %v2288_v47 = vshll.u32 %v2045_v9, 16  ;;  %v520_v48 = vor.u32 %v519_v36, %v515_v30  ;;  %v2025_v27 = vld [vmem:[#allocation2 + $0x94] sm:$0xf]  ;;  %v2046_v34 = vld [vmem:[#allocation2 + $0x98] sm:$0x1] }
  0x95   : > { %v2280_v52 = vrot.slane %v2278_v39, 5  ;;  %v2284_v3 = vrot.slane %v2282_v40, 4  ;;  %v12098_v53 = vrot.slane %v1852_v35, 9  ;;  %v1956_v60 = vrot.slane %v14893_v42, 5  ;;  %v14920_v35 = vld [vmem:[#allocation2 + $0x88] sm:$0xf] }
  0x96   : > { %v511_v56 = vrot.slane %v510_v43, 4  ;;  %v2275_v57 = vor.u32 %v2274_v55, %v2271_v45  ;;  %v2290_v59 = vrot.slane %v2288_v47, 5  ;;  %v521_v4 = vrot.slane %v520_v48, 4  ;;  %v1853_v36 = vld [vmem:[#allocation2 + $0x84] sm:$0xe] }
  0x97   : > { %1260 = vrot.lane.b32.xlu0 %v12078_v12, %s14408_s27  ;;  %v2285_v5 = vor.u32 %v2284_v3, %v2280_v52  ;;  %v1959_v6 = vrot.slane %v1452_v49, 5  ;;  %v1957_v63 = vsel %vm14521_vm6, %v12098_v53, %v1956_v60  ;;  %v1958_v15 = vrot.slane %v1956_v60, 4  ;;  %v1453_v45 = vld [vmem:[#allocation2 + $0x8c] sm:$0x1]  ;;  %v14924_v60 = vld [vmem:[#allocation2 + $0x60] sm:$0xf] }
  0x98   : > { %v516_v1 = vsel %vm14513_vm5, %v511_v56, %v515_v30  ;;  %v2276_v11 = vrot.slane %v2275_v57, 4  ;;  %v14904_v13 = vrot.slane %v1580_v16, 4  ;;  %v14906_v18 = vrot.slane %v1583_v17, 5 }
  0x99   : > { %v526_v12 = vsel %vm14513_vm5, %v521_v4, %v525_v37  ;;  %v2286_v19 = vrot.slane %v2285_v5, 4  ;;  %v1960_v24 = vsel %vm14521_vm6, %v1958_v15, %v1959_v6  ;;  %v528_v9 = vshrl.u32 %v344_v54, 16 }
  0x9a   : > { %v12046_v22 = vcombine.low %v516_v1, %v526_v12  ;;  %v2281_v23 = vsel %vm14513_vm5, %v2276_v11, %v2280_v52  ;;  %v12130_v16 = vcombine.low %v1957_v63, %v1960_v24  ;;  %v12079_v17 = vcombine.low %v14897_v62, %v14789_v10 }
  0x9b   : > { %v2291_v25 = vsel %vm14513_vm5, %v2286_v19, %v2290_v59  ;;  %v1604_v26 = vshrl.u32 %v14897_v62, 16  ;;  %v530_v29 = vrot.slane %v528_v9, 4  ;;  %v531_v30 = vshll.u32 %v344_v54, 16 }
  0x9c   : > { %1100 = vrot.lane.b32.xlu1 %v12046_v22, %s14408_s27  ;;  %v12162_v28 = vcombine.low %v2281_v23, %v2291_v25  ;;  %v537_v31 = vshll.u32 %v345_v8, 16  ;;  %v541_v37 = vshrl.u32 %v345_v8, 16  ;;  %v547_v39 = vshll.u32 %v370_v7, 16  ;;  %v346_v7 = vld [vmem:[#allocation2 + $0x54] sm:$0xf] }
  0x9d   : > { %v2293_v40 = vshrl.u32 %v2024_v21, 16  ;;  %v2296_v43 = vshll.u32 %v2024_v21, 16  ;;  %v533_v10 = vrot.slane %v531_v30, 5  ;;  %v2302_v47 = vshll.u32 %v2025_v27, 16  ;;  %v2027_v30 = vld [vmem:[#allocation2 + $0xa0] sm:$0xf] }
  0x9e   : > { %2710 = vrot.lane.b32.xlu0 %v12162_v28, %s14408_s27  ;;  %v539_v55 = vrot.slane %v537_v31, 5  ;;  %v2306_v49 = vshrl.u32 %v2025_v27, 16  ;;  %v543_v48 = vrot.slane %v541_v37, 4  ;;  %v549_v52 = vrot.slane %v547_v39, 5  ;;  %v371_v28 = vld [vmem:[#allocation2 + $0x5c] sm:$0x1] }
  0x9f   : > { %v2295_v3 = vrot.slane %v2293_v40, 4  ;;  %v2298_v53 = vrot.slane %v2296_v43, 5  ;;  %v534_v54 = vor.u32 %v533_v10, %v530_v29  ;;  %v2304_v56 = vrot.slane %v2302_v47, 5  ;;  %v2026_v29 = vld [vmem:[#allocation2 + $0x9c] sm:$0xf] }
  0xa0   : > { %2550 = vrot.lane.b32.xlu1 %v12130_v16, %s14408_s27  ;;  %v2308_v57 = vrot.slane %v2306_v49, 4  ;;  %v2312_v59 = vshll.u32 %v2046_v34, 16  ;;  %v544_v4 = vor.u32 %v543_v48, %v539_v55  ;;  %v12099_v6 = vrot.slane %v1853_v36, 9  ;;  %v347_v16 = vld [vmem:[#allocation2 + $0x58] sm:$0xf] }
  0xa1   : > { %v2299_v5 = vor.u32 %v2298_v53, %v2295_v3  ;;  %v1963_v8 = vrot.slane %v14920_v35, 5  ;;  %v535_v1 = vrot.slane %v534_v54, 4  ;;  %v1966_v15 = vrot.slane %v1453_v45, 5  ;;  %v2047_v10 = vld [vmem:[#allocation2 + $0xa4] sm:$0x1] }
  0xa2   : > { %1262 = vrot.lane.b32.xlu0 %v12079_v17, %s14408_s27  ;;  %v2309_v11 = vor.u32 %v2308_v57, %v2304_v56  ;;  %v2314_v63 = vrot.slane %v2312_v59, 5  ;;  %v1607_v12 = vshll.u32 %v14897_v62, 16  ;;  %v545_v19 = vrot.slane %v544_v4, 4  ;;  %v1854_v47 = vld [vmem:[#allocation2 + $0x90] sm:$0xe] }
  0xa3   : > { %v2300_v21 = vrot.slane %v2299_v5, 4  ;;  %v1965_v22 = vrot.slane %v1963_v8, 4  ;;  %v14929_v23 = vrot.slane %v1604_v26, 4  ;;  %v540_v24 = vsel %vm14513_vm5, %v535_v1, %v539_v55  ;;  %v14947_v55 = vld [vmem:[#allocation2 + $0x94] sm:$0xf] }
  0xa4   : > { %v2310_v9 = vrot.slane %v2309_v11, 4  ;;  %v1964_v25 = vsel %vm14521_vm6, %v12099_v6, %v1963_v8  ;;  %v550_v17 = vsel %vm14513_vm5, %v545_v19, %v549_v52  ;;  %v12080_v26 = vcombine.low %v14924_v60, %v14825_v2  ;;  %v14949_v2 = vpop.permute.xlu0 %2716  ;;  %v1454_v53 = vld [vmem:[#allocation2 + $0x98] sm:$0x1] }
  0xa5   : > { %v2305_v27 = vsel %vm14513_vm5, %v2300_v21, %v2304_v56  ;;  %v1967_v62 = vsel %vm14521_vm6, %v1965_v22, %v1966_v15  ;;  %v12047_v31 = vcombine.low %v540_v24, %v550_v17  ;;  %v1628_v36 = vshrl.u32 %v14924_v60, 16 }
  0xa6   : > { %v2315_v34 = vsel %vm14513_vm5, %v2310_v9, %v2314_v63  ;;  %v1631_v37 = vshll.u32 %v14924_v60, 16  ;;  %v12131_v40 = vcombine.low %v1964_v25, %v1967_v62  ;;  %v552_v43 = vshrl.u32 %v346_v7, 16 }
  0xa7   : > { %v12163_v39 = vcombine.low %v2305_v27, %v2315_v34  ;;  %v555_v45 = vshll.u32 %v346_v7, 16  ;;  %1102 = vrot.lane.b32.xlu1 %v12047_v31, %s14408_s27  ;;  %v561_v49 = vshll.u32 %v347_v16, 16  ;;  %v565_v48 = vshrl.u32 %v347_v16, 16  ;;  %v14956_v16 = vpop.permute.xlu1 %2692  ;;  %v348_v31 = vld [vmem:[#allocation2 + $0x60] sm:$0xf] }
  0xa8   : > { %v571_v52 = vshll.u32 %v371_v28, 16  ;;  %v2317_v3 = vshrl.u32 %v2026_v29, 16  ;;  %v554_v54 = vrot.slane %v552_v43, 4  ;;  %v2320_v57 = vshll.u32 %v2026_v29, 16  ;;  %v14958_v17 = vpop.permute.xlu0 %2556 }
  0xa9   : > { %2712 = vrot.lane.b32.xlu0 %v12163_v39, %s14408_s27  ;;  %v557_v56 = vrot.slane %v555_v45, 5  ;;  %v2326_v59 = vshll.u32 %v2027_v30, 16  ;;  %v563_v60 = vrot.slane %v561_v49, 5  ;;  %v567_v4 = vrot.slane %v565_v48, 4  ;;  %v372_v49 = vld [vmem:[#allocation2 + $0x68] sm:$0x1] }
  0xaa   : > { %v573_v5 = vrot.slane %v571_v52, 5  ;;  %v2319_v6 = vrot.slane %v2317_v3, 4  ;;  %v2322_v1 = vrot.slane %v2320_v57, 5  ;;  %v2330_v63 = vshrl.u32 %v2027_v30, 16  ;;  %v962_v30 = vld [vmem:[#allocation2 + $0x6c] sm:$0xf] }
  0xab   : > { %v558_v8 = vor.u32 %v557_v56, %v554_v54  ;;  %v2328_v11 = vrot.slane %v2326_v59, 5  ;;  %2552 = vrot.lane.b32.xlu1 %v12131_v40, %s14408_s27  ;;  %v568_v15 = vor.u32 %v567_v4, %v563_v60  ;;  %v2336_v7 = vshll.u32 %v2047_v10, 16  ;;  %v350_v54 = vld [vmem:[#allocation2 + $0x6c] sm:$0xf] }
  0xac   : > { %v12100_v19 = vrot.slane %v1854_v47, 9  ;;  %v1970_v21 = vrot.slane %v14947_v55, 5  ;;  %v2323_v24 = vor.u32 %v2322_v1, %v2319_v6  ;;  %v2332_v9 = vrot.slane %v2330_v63, 4  ;;  %v349_v47 = vld [vmem:[#allocation2 + $0x64] sm:$0xf] }
  0xad   : > { %1264 = vrot.lane.b32.xlu0 %v12080_v26, %s14408_s27  ;;  %v559_v22 = vrot.slane %v558_v8, 4  ;;  %v1973_v25 = vrot.slane %v1454_v53, 5  ;;  %v14960_v27 = vrot.slane %v1607_v12, 5  ;;  %v569_v62 = vrot.slane %v568_v15, 4  ;;  %v351_v6 = vld [vmem:[#allocation2 + $0x70] sm:$0xf]  ;;  %v14979_v8 = vpop.permute.xlu1 %2532  ;;  %v14981_v1 = vpop.permute.xlu0 %2718 }
  0xae   : > { %v2338_v28 = vrot.slane %v2336_v7, 5  ;;  %v1972_v29 = vrot.slane %v1970_v21, 4  ;;  %v2324_v39 = vrot.slane %v2323_v24, 4  ;;  %v2333_v26 = vor.u32 %v2332_v9, %v2328_v11  ;;  %v14983_v7 = vld [vmem:[#allocation2 + $0x78] sm:$0xf] }
  0xaf   : > { %v564_v34 = vsel %vm14513_vm5, %v559_v22, %v563_v60  ;;  %v1971_v40 = vsel %vm14521_vm6, %v12100_v19, %v1970_v21  ;;  %v14966_v43 = vrot.slane %v1628_v36, 4  ;;  %v14968_v45 = vrot.slane %v1631_v37, 5  ;;  %v373_v19 = vld [vmem:[#allocation2 + $0x74] sm:$0x1] }
  0xb0   : > { %v574_v12 = vsel %vm14513_vm5, %v569_v62, %v573_v5  ;;  %v1974_v10 = vsel %vm14521_vm6, %v1972_v29, %v1973_v25  ;;  %v2329_v52 = vsel %vm14513_vm5, %v2324_v39, %v2328_v11  ;;  %v2334_v3 = vrot.slane %v2333_v26, 4 }
  0xb1   : > { %v12048_v48 = vcombine.low %v564_v34, %v574_v12  ;;  %v1652_v53 = vshrl.u32 %v962_v30, 16  ;;  %v12132_v56 = vcombine.low %v1971_v40, %v1974_v10  ;;  %v1655_v36 = vshll.u32 %v962_v30, 16 }
  0xb2   : > { %v576_v57 = vshrl.u32 %v348_v31, 16  ;;  %v579_v37 = vshll.u32 %v348_v31, 16  ;;  %v2339_v59 = vsel %vm14513_vm5, %v2334_v3, %v2338_v28  ;;  %v585_v60 = vshll.u32 %v349_v47, 16  ;;  %v14995_v3 = vpop.permute.xlu1 %2558 }
  0xb3   : > { %1104 = vrot.lane.b32.xlu1 %v12048_v48, %s14408_s27  ;;  %v589_v4 = vshrl.u32 %v349_v47, 16  ;;  %v595_v5 = vshll.u32 %v372_v49, 16  ;;  %v12164_v11 = vcombine.low %v2329_v52, %v2339_v59  ;;  %v12081_v21 = vcombine.low %v962_v30, %v14863_v32  ;;  %v14993_v52 = vld [vmem:[#allocation2 + $0x84] sm:$0xf]  ;;  %v353_v59 = vld [vmem:[#allocation2 + $0x7c] sm:$0xf] }
  0xb4   : > { %v578_v63 = vrot.slane %v576_v57, 4  ;;  %v581_v15 = vrot.slane %v579_v37, 5  ;;  %v14986_v22 = vrot.slane %v1652_v53, 4  ;;  %v587_v24 = vrot.slane %v585_v60, 5  ;;  %v14997_v53 = vpop.permute.xlu0 %2694  ;;  %v352_v37 = vld [vmem:[#allocation2 + $0x78] sm:$0xf] }
  0xb5   : > { %v591_v9 = vrot.slane %v589_v4, 4  ;;  %2714 = vrot.lane.b32.xlu0 %v12164_v11, %s14408_s27  ;;  %v597_v62 = vrot.slane %v595_v5, 5  ;;  %v600_v28 = vshrl.u32 %v350_v54, 16  ;;  %v603_v29 = vshll.u32 %v350_v54, 16 }
  0xb6   : > { %v582_v25 = vor.u32 %v581_v15, %v578_v63  ;;  %v1676_v34 = vshrl.u32 %v14983_v7, 16  ;;  %v609_v39 = vshll.u32 %v351_v6, 16  ;;  %v613_v26 = vshrl.u32 %v351_v6, 16 }
  0xb7   : > { %2554 = vrot.lane.b32.xlu1 %v12132_v56, %s14408_s27  ;;  %v592_v31 = vor.u32 %v591_v9, %v587_v24  ;;  %v14991_v40 = vrot.slane %v1655_v36, 5  ;;  %v602_v30 = vrot.slane %v600_v28, 4  ;;  %v605_v12 = vrot.slane %v603_v29, 5  ;;  %v13811_v9 = vld [vmem:[#allocation2 + $0xa8] sm:$0xf] }
  0xb8   : > { %v583_v32 = vrot.slane %v582_v25, 4  ;;  %v611_v47 = vrot.slane %v609_v39, 5  ;;  %v615_v49 = vrot.slane %v613_v26, 4  ;;  %v619_v48 = vshll.u32 %v373_v19, 16  ;;  %v374_v19 = vld [vmem:[#allocation2 + $0x80] sm:$0x1] }
  0xb9   : > { %v593_v10 = vrot.slane %v592_v31, 4  ;;  %1266 = vrot.lane.b32.xlu0 %v12081_v21, %s14408_s27  ;;  %v12082_v56 = vcombine.low %v14983_v7, %v14893_v42  ;;  %v1679_v36 = vshll.u32 %v14983_v7, 16  ;;  %v606_v57 = vor.u32 %v605_v12, %v602_v30  ;;  %v15011_v42 = vld [vmem:[#allocation2 + $0x9c] sm:$0xf]  ;;  %v13812_v25 = vld [vmem:[#allocation2 + $0xac] sm:$0xf]  ;;  %v15022_v12 = vpop.permute.xlu1 %2534 }
  0xba   : > { %v588_v54 = vsel %vm14513_vm5, %v583_v32, %v587_v24  ;;  %v15007_v4 = vrot.slane %v1676_v34, 4  ;;  %v616_v5 = vor.u32 %v615_v49, %v611_v47  ;;  %v621_v6 = vrot.slane %v619_v48, 5 }
  0xbb   : > { %v598_v60 = vsel %vm14513_vm5, %v593_v10, %v597_v62  ;;  %v607_v63 = vrot.slane %v606_v57, 4  ;;  %v12083_v15 = vcombine.low %v14993_v52, %v14920_v35  ;;  %v1700_v24 = vshrl.u32 %v14993_v52, 16  ;;  %v15024_v10 = vpop.permute.xlu0 %2720  ;;  %v13813_v57 = vld [vmem:[#allocation2 + $0x18] sm:$0xf] }
  0xbc   : > { %v12049_v11 = vcombine.low %v588_v54, %v598_v60  ;;  %v617_v21 = vrot.slane %v616_v5, 4  ;;  %v12149_v28 = vcombine.low %v13811_v9, %v13812_v25  ;;  %v624_v62 = vshrl.u32 %v352_v37, 16 }
  0xbd   : > { %1268 = vrot.lane.b32.xlu0 %v12082_v56, %s14408_s27  ;;  %v612_v29 = vsel %vm14513_vm5, %v607_v63, %v611_v47  ;;  %v627_v31 = vshll.u32 %v352_v37, 16  ;;  %v633_v35 = vshll.u32 %v353_v59, 16  ;;  %v637_v34 = vshrl.u32 %v353_v59, 16  ;;  %v13814_v37 = vld [vmem:[#allocation2 + $0x1c] sm:$0xf] }
  0xbe   : > { %1106 = vrot.lane.b32.xlu1 %v12049_v11, %s14408_s27  ;;  %v622_v39 = vsel %vm14513_vm5, %v617_v21, %v621_v6  ;;  %v2838_v26 = vsel %vm1282_vm7, %v12149_v28, %v14949_v2  ;;  %v626_v32 = vrot.slane %v624_v62, 4  ;;  %v643_v30 = vshll.u32 %v374_v19, 16  ;;  %v15030_v11 = vld [vmem:[#allocation2 + $0xa0] sm:$0xf]  ;;  %v13816_v28 = vld [vmem:[#allocation2 + $0xa4] sm:$0x1] }
  0xbf   : > { %v12050_v49 = vcombine.low %v612_v29, %v622_v39  ;;  %3108 = vmatprep.mubr.bf16.mxu1 %v2838_v26  ;;  %v629_v48 = vrot.slane %v627_v31, 5  ;;  %v635_v54 = vrot.slane %v633_v35, 5  ;;  %v639_v47 = vrot.slane %v637_v34, 4  ;;  %v15036_v29 = vld [vmem:[#allocation2 + $0x90] sm:$0xf] }
  0xc0   : > { %v645_v56 = vrot.slane %v643_v30, 5  ;;  %v12137_v59 = vcombine.low %v13813_v57, %v13814_v37  ;;  %v1748_v60 = vshrl.u32 %v15011_v42, 16  ;;  %v1751_v5 = vshll.u32 %v15011_v42, 16  ;;  %v13817_v30 = vld [vmem:[#allocation2 + $0x10] sm:$0xf] }
  0xc1   : > { %1270 = vrot.lane.b32.xlu0 %v12083_v15, %s14408_s27  ;;  %v630_v2 = vor.u32 %v629_v48, %v626_v32  ;;  %v640_v6 = vor.u32 %v639_v47, %v635_v54  ;;  %v1757_v63 = vshll.u32 %v15030_v11, 16  ;;  %v1761_v19 = vshrl.u32 %v15030_v11, 16  ;;  %v354_v48 = vld [vmem:[#allocation2 + $0x84] sm:$0xf]  ;;  %v15042_v47 = vpop.permute.xlu0 %2696 }
  0xc2   : > { %1108 = vrot.lane.b32.xlu1 %v12050_v49, %s14408_s27  ;;  %v2790_v21 = vsel %vm1282_vm7, %v12137_v59, %v14956_v16  ;;  %v1750_v9 = vrot.slane %v1748_v60, 4  ;;  %v1753_v25 = vrot.slane %v1751_v5, 5  ;;  %v1767_v62 = vshll.u32 %v13816_v28, 16  ;;  %v15040_v16 = vpop.permute.xlu1 %2560  ;;  %v375_v28 = vld [vmem:[#allocation2 + $0x8c] sm:$0x1] }
  0xc3   : > { %v631_v31 = vrot.slane %v630_v2, 4  ;;  %v641_v35 = vrot.slane %v640_v6, 4  ;;  %3012 = vmatprep.mubr.bf16.mxu0 %v2790_v21  ;;  %v1759_v15 = vrot.slane %v1757_v63, 5  ;;  %v1763_v34 = vrot.slane %v1761_v19, 4  ;;  %v13818_v21 = vld [vmem:[#allocation2 + $0x14] sm:$0x1] }
  0xc4   : > { %v1754_v39 = vor.u32 %v1753_v25, %v1750_v9  ;;  %v1769_v26 = vrot.slane %v1767_v62, 5  ;;  %v1466_v32 = vor.u32 %v14721_v33, %v14707_v14  ;;  %v1469_v49 = vshll.u32 %v13817_v30, 16  ;;  %v355_v14 = vld [vmem:[#allocation2 + $0x88] sm:$0xf] }
  0xc5   : > { %v636_v57 = vsel %vm14513_vm5, %v631_v31, %v635_v54  ;;  %v646_v37 = vsel %vm14513_vm5, %v641_v35, %v645_v56  ;;  %v1764_v59 = vor.u32 %v1763_v34, %v1759_v15  ;;  %v1473_v60 = vshrl.u32 %v13817_v30, 16 }
  0xc6   : > { %v12051_v5 = vcombine.low %v636_v57, %v646_v37  ;;  %v1755_v2 = vrot.slane %v1754_v39, 4  ;;  %v1467_v6 = vrot.slane %v1466_v32, 4  ;;  %v1471_v63 = vrot.slane %v1469_v49, 5  ;;  %v13780_v39 = vld [vmem:[%s18293_s1] sm:$0xff]   ;;  %v15070_v30 = vpop.permute.xlu1 %2536  ;;  %v13781_v57 = vld [vmem:[%s18293_s1 + $0x48] sm:$0xff]  }
  0xc7   : > { %v1765_v33 = vrot.slane %v1764_v59, 4  ;;  %v1475_v19 = vrot.slane %v1473_v60, 4  ;;  %v1479_v9 = vshll.u32 %v13818_v21, 16  ;;  %v12084_v25 = vcombine.low %v15036_v29, %v14947_v55 }
  0xc8   : > { %v15052_v54 = vrot.slane %v1679_v36, 5  ;;  %v1703_v56 = vshll.u32 %v14993_v52, 16  ;;  %1110 = vrot.lane.b32.xlu1 %v12051_v5, %s14408_s27  ;;  %v1760_v62 = vsel %vm14513_vm5, %v1755_v2, %v1759_v15  ;;  %v648_v55 = vshrl.u32 %v354_v48, 16 }
  0xc9   : > { %v1770_v31 = vsel %vm14513_vm5, %v1765_v33, %v1769_v26  ;;  %v1476_v35 = vor.u32 %v1475_v19, %v1471_v63  ;;  %v1481_v34 = vrot.slane %v1479_v9, 5  ;;  %1272 = vrot.lane.b32.xlu0 %v12084_v25, %s14408_s27  ;;  %v15063_v7 = vrot.slane %v1700_v24, 4  ;;  %v15072_v26 = vpop.permute.xlu0 %2722  ;;  %v13819_v33 = vld [vmem:[#allocation2 + $0xb4] sm:$0xf]  ;;  %v13821_v25 = vld [vmem:[#allocation2 + $0x24] sm:$0xf] }
  0xca   : > { %v12117_v36 = vcombine.low %v1760_v62, %v1770_v31  ;;  %v1472_v15 = vsel %vm14513_vm5, %v1467_v6, %v1471_v63  ;;  %v651_v32 = vshll.u32 %v354_v48, 16  ;;  %v650_v24 = vrot.slane %v648_v55, 4  ;;  %v13820_v6 = vld [vmem:[#allocation2 + $0xb8] sm:$0xf]  ;;  %v15079_v63 = vld [vmem:[#allocation2 + $0xa8] sm:$0xf] }
  0xcb   : > { %v1477_v49 = vrot.slane %v1476_v35, 4  ;;  %v657_v37 = vshll.u32 %v355_v14, 16  ;;  %v661_v59 = vshrl.u32 %v355_v14, 16  ;;  %v667_v2 = vshll.u32 %v375_v28, 16  ;;  %v13822_v62 = vld [vmem:[#allocation2 + $0x28] sm:$0xf] }
  0xcc   : > { %v2774_v60 = vsel %vm1282_vm7, %v12117_v36, %v14958_v17  ;;  %v653_v5 = vrot.slane %v651_v32, 5  ;;  %v12150_v48 = vcombine.low %v13819_v33, %v13820_v6  ;;  %v12138_v31 = vcombine.low %v13821_v25, %v13822_v62  ;;  %v13784_v17 = vld [vmem:[%s18293_s1 + $0x8] sm:$0xff]   ;;  %v13786_v62 = vld [vmem:[%s18293_s1 + $0x10] sm:$0xff]  }
  0xcd   : > { %3109 = vmatmul.mubr.bf16.vlgmr.msra.gmra.mrb[0].mxu1 %v2774_v60  ;;  %v1482_v19 = vsel %vm14513_vm5, %v1477_v49, %v1481_v34  ;;  %v659_v21 = vrot.slane %v657_v37, 5  ;;  %v663_v9 = vrot.slane %v661_v59, 4  ;;  %v669_v35 = vrot.slane %v667_v2, 5  ;;  %v13785_v34 = vld [vmem:[%s18293_s1 + $0x50] sm:$0xff]   ;;  %v15097_v37 = vld [vmem:[#allocation2 + $0xac] sm:$0xf]  ;;  %v15101_v59 = vpop.permute.xlu1 %2562  ;;  %v15103_v60 = vpop.permute.xlu0 %2698 }
  0xce   : > { %12955 = vmatpush3.bf16.msra.mxu1 %v13780_v39  ;;  %v12105_v14 = vcombine.low %v1472_v15, %v1482_v19  ;;  %v654_v28 = vor.u32 %v653_v5, %v650_v24  ;;  %v2842_v55 = vsel %vm1282_vm7, %v12150_v48, %v14981_v1  ;;  %v2794_v39 = vsel %vm1282_vm7, %v12138_v31, %v14997_v53  ;;  %v13796_v53 = vld [vmem:[%s18293_s1 + $0x108] sm:$0xff]   ;;  %v13825_v48 = vld [vmem:[%s18293_s1 + $0x100] sm:$0xff]  }
  0xcf   : > { %12956 = vmatprep.subr.bf16.mxu1 %v13781_v57  ;;  %v664_v36 = vor.u32 %v663_v9, %v659_v21  ;;  %3116 = vmatprep.mubr.bf16.mxu1 %v2842_v55  ;;  %v1772_v15 = vshrl.u32 %v15079_v63, 16  ;;  %v1775_v32 = vshll.u32 %v15079_v63, 16  ;;  %v1781_v1 = vshll.u32 %v15097_v37, 16 }
  0xd0   : > { %v2726_v49 = vsel %vm1282_vm7, %v12105_v14, %v14979_v8  ;;  %v655_v24 = vrot.slane %v654_v28, 4  ;;  %v1785_v57 = vshrl.u32 %v15097_v37, 16  ;;  %v13824_v8 = vld [vmem:[#allocation2 + $0xb0] sm:$0x1]  ;;  %v1490_v31 = vor.u32 %v14772_v41, %v14765_v38  ;;  %v13787_v14 = vld [vmem:[%s18293_s1 + $0x58] sm:$0xff]  }
  0xd1   : > { %3013 = vmatmul.mubr.bf16.vlgmr.msra.gmra.mrb[0].mxu0 %v2726_v49  ;;  %v665_v5 = vrot.slane %v664_v36, 4  ;;  %v1774_v2 = vrot.slane %v1772_v15, 4  ;;  %v1777_v33 = vrot.slane %v1775_v32, 5  ;;  %v1791_v6 = vshll.u32 %v13824_v8, 16  ;;  %v13826_v36 = vld [vmem:[#allocation2 + $0x1c] sm:$0xf] }
  0xd2   : > { %12957 = vmatpush3.bf16.msra.mxu1 %v13784_v17  ;;  %13575 = vmatpush3.bf16.msra.mxu0 %v13825_v48  ;;  %v660_v19 = vsel %vm14513_vm5, %v655_v24, %v659_v21  ;;  %v1783_v9 = vrot.slane %v1781_v1, 5  ;;  %v1787_v25 = vrot.slane %v1785_v57, 4  ;;  %v356_v17 = vld [vmem:[#allocation2 + $0x90] sm:$0xf]  ;;  %v1493_v15 = vshll.u32 %v13826_v36, 16 }
  0xd3   : > { %v670_v28 = vsel %vm14513_vm5, %v665_v5, %v669_v35  ;;  %12958 = vmatprep.subr.bf16.mxu1 %v13785_v34  ;;  %3020 = vmatprep.mubr.bf16.mxu0 %v2794_v39  ;;  %v1778_v21 = vor.u32 %v1777_v33, %v1774_v2  ;;  %v1793_v55 = vrot.slane %v1791_v6, 5  ;;  %v15123_v24 = vrot.slane %v1490_v31, 4  ;;  %v357_v38 = vld [vmem:[#allocation2 + $0x94] sm:$0xf]  ;;  %v13827_v8 = vld [vmem:[#allocation2 + $0x20] sm:$0x1]  ;;  %v15136_v31 = vpop.permute.xlu0 %1250 }
  0xd4   : > { %v12052_v32 = vcombine.low %v660_v19, %v670_v28  ;;  %v1788_v49 = vor.u32 %v1787_v25, %v1783_v9  ;;  %v1497_v1 = vshrl.u32 %v13826_v36, 16  ;;  %13576 = vmatprep.subr.bf16.mxu0 %v13796_v53  ;;  %v1495_v57 = vrot.slane %v1493_v15, 5  ;;  %v13788_v34 = vld [vmem:[%s18293_s1 + $0x18] sm:$0xff]   ;;  %v13798_v39 = vld [vmem:[%s18293_s1 + $0x110] sm:$0xff]   ;;  %v15134_v25 = vpop.permute.xlu1 %2538 }
  0xd5   : > { %v1779_v41 = vrot.slane %v1778_v21, 4  ;;  %v1503_v48 = vshll.u32 %v13827_v8, 16  ;;  %v12085_v35 = vcombine.low %v15011_v42, %v15030_v11  ;;  %v376_v33 = vld [vmem:[#allocation2 + $0x98] sm:$0x1]  ;;  %v672_v6 = vshrl.u32 %v356_v17, 16 }
  0xd6   : > { %1112 = vrot.lane.b32.xlu1 %v12052_v32, %s14408_s27  ;;  %v1789_v5 = vrot.slane %v1788_v49, 4  ;;  %12959 = vmatpush3.bf16.msra.mxu1 %v13786_v62  ;;  %v1499_v2 = vrot.slane %v1497_v1, 4  ;;  %v675_v19 = vshll.u32 %v356_v17, 16  ;;  %v1496_v11 = vsel %vm14513_vm5, %v15123_v24, %v1495_v57  ;;  %v13789_v17 = vld [vmem:[%s18293_s1 + $0x60] sm:$0xff]  }
  0xd7   : > { %v1784_v42 = vsel %vm14513_vm5, %v1779_v41, %v1783_v9  ;;  %v1505_v28 = vrot.slane %v1503_v48, 5  ;;  %12960 = vmatprep.subr.bf16.mxu1 %v13787_v14  ;;  %1274 = vrot.lane.b32.xlu0 %v12085_v35, %s14408_s27  ;;  %v681_v62 = vshll.u32 %v357_v38, 16  ;;  %v674_v15 = vrot.slane %v672_v6, 4  ;;  %v15149_v9 = vld [vmem:[#allocation2 + $0xb4] sm:$0xf]  ;;  %v13799_v41 = vld [vmem:[%s18293_s1 + $0x118] sm:$0xff]  }
  0xd8   : > { %v1794_v21 = vsel %vm14513_vm5, %v1789_v5, %v1793_v55  ;;  %v1500_v36 = vor.u32 %v1499_v2, %v1495_v57  ;;  %v677_v32 = vrot.slane %v675_v19, 5  ;;  %13577 = vmatpush3.bf16.msra.mxu0 %v13796_v53  ;;  %v685_v14 = vshrl.u32 %v357_v38, 16  ;;  %v13828_v55 = vld [vmem:[#allocation2 + $0xc0] sm:$0xf]  ;;  %v13829_v57 = vld [vmem:[#allocation2 + $0xc4] sm:$0xf] }
  0xd9   : > { %v12118_v49 = vcombine.low %v1784_v42, %v1794_v21  ;;  %v15151_v24 = vrot.slane %v681_v62, 5  ;;  %v691_v1 = vshll.u32 %v376_v33, 16  ;;  %13578 = vmatprep.subr.bf16.mxu0 %v13798_v39  ;;  %v12151_v35 = vcombine.low %v13828_v55, %v13829_v57  ;;  %v13830_v5 = vld [vmem:[#allocation2 + $0x30] sm:$0xf]  ;;  %v15156_v2 = vld [vmem:[#allocation2 + $0x34] sm:$0xf] }
  0xda   : > { %v1501_v8 = vrot.slane %v1500_v36, 4  ;;  %12961 = vmatpush3.bf16.msra.mxu1 %v13788_v34  ;;  %v678_v48 = vor.u32 %v677_v32, %v674_v15  ;;  %v12139_v53 = vcombine.low %v13830_v5, %v15156_v2  ;;  %v13790_v38 = vld [vmem:[%s18293_s1 + $0x20] sm:$0xff]   ;;  %v687_v6 = vrot.slane %v685_v14, 4  ;;  %v13791_v42 = vld [vmem:[%s18293_s1 + $0x68] sm:$0xff]   ;;  %v15174_v15 = vpop.permute.xlu1 %1090  ;;  %v13793_v5 = vld [vmem:[%s18293_s1 + $0x70] sm:$0xff]  }
  0xdb   : > { %v2778_v33 = vsel %vm1282_vm7, %v12118_v49, %v14995_v3  ;;  %v693_v19 = vrot.slane %v691_v1, 5  ;;  %12962 = vmatprep.subr.bf16.mxu1 %v13789_v17  ;;  %v1796_v34 = vshrl.u32 %v15149_v9, 16  ;;  %v2846_v36 = vsel %vm1282_vm7, %v12151_v35, %v15024_v10  ;;  %v15176_v17 = vpop.permute.xlu0 %2700 }
  0xdc   : > { %3117 = vmatmul.mubr.bf16.gmra.mrb[4].mxu1 %v2778_v33  ;;  %v1506_v62 = vsel %vm14513_vm5, %v1501_v8, %v1505_v28  ;;  %v679_v21 = vrot.slane %v678_v48, 4  ;;  %v2798_v3 = vsel %vm1282_vm7, %v12139_v53, %v15042_v47  ;;  %13579 = vmatpush3.bf16.msra.mxu0 %v13798_v39  ;;  %v688_v49 = vor.u32 %v687_v6, %v15151_v24  ;;  %v15183_v28 = vld [vmem:[#allocation2 + $0xb8] sm:$0xf]  ;;  %v13833_v48 = vld [vmem:[#allocation2 + $0xbc] sm:$0x1] }
  0xdd   : > { %v12106_v32 = vcombine.low %v1496_v11, %v1506_v62  ;;  %3124 = vmatprep.mubr.bf16.mxu1 %v2846_v36  ;;  %v1798_v14 = vrot.slane %v1796_v34, 4  ;;  %v1799_v1 = vshll.u32 %v15149_v9, 16  ;;  %13580 = vmatprep.subr.bf16.mxu0 %v13799_v41  ;;  %v1805_v47 = vshll.u32 %v15183_v28, 16  ;;  %v13792_v11 = vld [vmem:[%s18293_s1 + $0x28] sm:$0xff]   ;;  %v358_v62 = vld [vmem:[#allocation2 + $0x9c] sm:$0xf] }
  0xde   : > { %v684_v10 = vsel %vm14513_vm5, %v679_v21, %v15151_v24  ;;  %v1809_v8 = vshrl.u32 %v15183_v28, 16  ;;  %v1815_v39 = vshll.u32 %v13833_v48, 16  ;;  %12963 = vmatpush3.bf16.msra.mxu1 %v13790_v38  ;;  %v689_v57 = vrot.slane %v688_v49, 4  ;;  %v13834_v6 = vld [vmem:[#allocation2 + $0x28] sm:$0xf]  ;;  %v15202_v48 = vpop.permute.xlu1 %2540 }
  0xdf   : > { %v2730_v55 = vsel %vm1282_vm7, %v12106_v32, %v15022_v12  ;;  %v1801_v35 = vrot.slane %v1799_v1, 5  ;;  %v1514_v24 = vor.u32 %v14803_v46, %v14801_v44  ;;  %12964 = vmatprep.subr.bf16.mxu1 %v13791_v42  ;;  %v1807_v53 = vrot.slane %v1805_v47, 5  ;;  %v13835_v49 = vld [vmem:[#allocation2 + $0x2c] sm:$0x1]  ;;  %v359_v47 = vld [vmem:[#allocation2 + $0xa0] sm:$0xf] }
  0xe0   : > { %3021 = vmatmul.mubr.bf16.gmra.mrb[4].mxu0 %v2730_v55  ;;  %v1811_v38 = vrot.slane %v1809_v8, 4  ;;  %v1817_v33 = vrot.slane %v1815_v39, 5  ;;  %v1517_v34 = vshll.u32 %v13834_v6, 16  ;;  %v694_v12 = vsel %vm14513_vm5, %v689_v57, %v693_v19  ;;  %v13794_v8 = vld [vmem:[%s18293_s1 + $0x30] sm:$0xff]   ;;  %v15204_v39 = vpop.permute.xlu0 %1252 }
  0xe1   : > { %3028 = vmatprep.mubr.bf16.mxu0 %v2798_v3  ;;  %v1802_v21 = vor.u32 %v1801_v35, %v1798_v14  ;;  %v1515_v36 = vrot.slane %v1514_v24, 4  ;;  %v1521_v32 = vshrl.u32 %v13834_v6, 16  ;;  %13581 = vmatpush3.bf16.msra.mxu0 %v13799_v41  ;;  %v12053_v44 = vcombine.low %v684_v10, %v694_v12  ;;  %v377_v14 = vld [vmem:[#allocation2 + $0xa4] sm:$0x1] }
  0xe2   : > { %v1812_v46 = vor.u32 %v1811_v38, %v1807_v53  ;;  %v1519_v42 = vrot.slane %v1517_v34, 5  ;;  %v1527_v1 = vshll.u32 %v13835_v49, 16  ;;  %12965 = vmatpush3.bf16.msra.mxu1 %v13792_v11  ;;  %v12086_v41 = vcombine.low %v15079_v63, %v15097_v37  ;;  %v13795_v11 = vld [vmem:[%s18293_s1 + $0x78] sm:$0xff]   ;;  %v13837_v49 = vld [vmem:[#allocation2 + $0xd0] sm:$0xf] }
  0xe3   : > { %v1803_v19 = vrot.slane %v1802_v21, 4  ;;  %v1523_v3 = vrot.slane %v1521_v32, 4  ;;  %v696_v10 = vshrl.u32 %v358_v62, 16  ;;  %12966 = vmatprep.subr.bf16.mxu1 %v13793_v5  ;;  %1114 = vrot.lane.b32.xlu1 %v12053_v44, %s14408_s27  ;;  %v699_v24 = vshll.u32 %v358_v62, 16  ;;  %v15219_v32 = vld [vmem:[#allocation2 + $0xc0] sm:$0xf] }
  0xe4   : > { %v1813_v55 = vrot.slane %v1812_v46, 4  ;;  %v1520_v57 = vsel %vm14513_vm5, %v1515_v36, %v1519_v42  ;;  %v1529_v35 = vrot.slane %v1527_v1, 5  ;;  %1276 = vrot.lane.b32.xlu0 %v12086_v41, %s14408_s27  ;;  %v705_v37 = vshll.u32 %v359_v47, 16  ;;  %v13836_v46 = vld [vmem:[#allocation2 + $0xcc] sm:$0xf] }
  0xe5   : > { %v1808_v38 = vsel %vm14513_vm5, %v1803_v19, %v1807_v53  ;;  %v1524_v6 = vor.u32 %v1523_v3, %v1519_v42  ;;  %v698_v63 = vrot.slane %v696_v10, 4  ;;  %v701_v34 = vrot.slane %v699_v24, 5  ;;  %v13797_v42 = vld [vmem:[%s18293_s1 + $0x38] sm:$0xff]  }
  0xe6   : > { %v1818_v5 = vsel %vm14513_vm5, %v1813_v55, %v1817_v33  ;;  %v709_v12 = vshrl.u32 %v359_v47, 16  ;;  %v715_v21 = vshll.u32 %v377_v14, 16  ;;  %12967 = vmatpush3.bf16.msra.mxu1 %v13794_v8  ;;  %v707_v62 = vrot.slane %v705_v37, 5  ;;  %v13838_v3 = vld [vmem:[#allocation2 + $0x3c] sm:$0xf]  ;;  %v15227_v8 = vpop.permute.xlu1 %1092  ;;  %v15229_v14 = vpop.permute.xlu0 %2702 }
  0xe7   : > { %v12119_v36 = vcombine.low %v1808_v38, %v1818_v5  ;;  %v1525_v44 = vrot.slane %v1524_v6, 4  ;;  %v12152_v53 = vcombine.low %v13836_v46, %v13837_v49  ;;  %12968 = vmatprep.subr.bf16.mxu1 %v13795_v11  ;;  %v702_v1 = vor.u32 %v701_v34, %v698_v63  ;;  %v15224_v47 = vld [vmem:[#allocation2 + $0x40] sm:$0xf] }
  0xe8   : > { %v711_v19 = vrot.slane %v709_v12, 4  ;;  %v717_v33 = vrot.slane %v715_v21, 5  ;;  %v12140_v41 = vcombine.low %v13838_v3, %v15224_v47  ;;  %v1820_v24 = vshrl.u32 %v15219_v32, 16 }
  0xe9   : > { %v2782_v10 = vsel %vm1282_vm7, %v12119_v36, %v15040_v16  ;;  %v1530_v11 = vsel %vm14513_vm5, %v1525_v44, %v1529_v35  ;;  %v2850_v55 = vsel %vm1282_vm7, %v12152_v53, %v15072_v26  ;;  %v703_v6 = vrot.slane %v702_v1, 4  ;;  %v15241_v16 = vld [vmem:[#allocation2 + $0xc4] sm:$0xf]  ;;  %v13841_v36 = vld [vmem:[#allocation2 + $0xc8] sm:$0x1] }
  0xea   : > { %3125 = vmatmul.mubr.bf16.gmra.mrb[8].mxu1 %v2782_v10  ;;  %v12107_v38 = vcombine.low %v1520_v57, %v1530_v11  ;;  %v712_v63 = vor.u32 %v711_v19, %v707_v62  ;;  %v2802_v37 = vsel %vm1282_vm7, %v12140_v41, %v15103_v60  ;;  %v1822_v5 = vrot.slane %v1820_v24, 4  ;;  %v13842_v19 = vld [vmem:[#allocation2 + $0x34] sm:$0xf]  ;;  %v360_v41 = vld [vmem:[#allocation2 + $0xa8] sm:$0xf]  ;;  %v15255_v10 = vpop.permute.xlu0 %1254 }
  0xeb   : > { %3132 = vmatprep.mubr.bf16.mxu1 %v2850_v55  ;;  %v1823_v34 = vshll.u32 %v15219_v32, 16  ;;  %v1829_v35 = vshll.u32 %v15241_v16, 16  ;;  %v1833_v12 = vshrl.u32 %v15241_v16, 16  ;;  %12969 = vmatpush3.bf16.msra.mxu1 %v13797_v42  ;;  %v708_v57 = vsel %vm14513_vm5, %v703_v6, %v707_v62  ;;  %v15253_v62 = vpop.permute.xlu1 %2542 }
  0xec   : > { %v2734_v26 = vsel %vm1282_vm7, %v12107_v38, %v15070_v30  ;;  %v713_v21 = vrot.slane %v712_v63, 4  ;;  %v1839_v60 = vshll.u32 %v13841_v36, 16  ;;  %v1538_v53 = vor.u32 %v14842_v58, %v14836_v20  ;;  %v13843_v20 = vld [vmem:[#allocation2 + $0x38] sm:$0x1] }
  0xed   : > { %3029 = vmatmul.mubr.bf16.gmra.mrb[8].mxu0 %v2734_v26  ;;  %v1825_v44 = vrot.slane %v1823_v34, 5  ;;  %v1831_v46 = vrot.slane %v1829_v35, 5  ;;  %v1835_v49 = vrot.slane %v1833_v12, 4  ;;  %v1541_v30 = vshll.u32 %v13842_v19, 16  ;;  %v13844_v34 = vld [vmem:[#allocation2] sm:$0xf] }
  0xee   : > { %v718_v1 = vsel %vm14513_vm5, %v713_v21, %v717_v33  ;;  %3036 = vmatprep.mubr.bf16.mxu0 %v2802_v37  ;;  %v1841_v42 = vrot.slane %v1839_v60, 5  ;;  %v1545_v3 = vshrl.u32 %v13842_v19, 16  ;;  %v1539_v38 = vrot.slane %v1538_v53, 4  ;;  %v13845_v33 = vld [vmem:[#allocation2 + $0x4] sm:$0xf] }
  0xef   : > { %v12054_v11 = vcombine.low %v708_v57, %v718_v1  ;;  %v1826_v55 = vor.u32 %v1825_v44, %v1822_v5  ;;  %v1836_v24 = vor.u32 %v1835_v49, %v1831_v46  ;;  %v1543_v6 = vrot.slane %v1541_v30, 5  ;;  %v15260_v21 = vld [vmem:[#allocation2 + $0xac] sm:$0xf]  ;;  %v15268_v49 = vld [vmem:[#allocation2 + $0xb0] sm:$0x1] }
  0xf0   : > { %v1547_v63 = vrot.slane %v1545_v3, 4  ;;  %v1551_v58 = vshll.u32 %v13843_v20, 16  ;;  %v12025_v37 = vcombine.low %v13844_v34, %v13845_v33  ;;  %v12087_v26 = vcombine.low %v15149_v9, %v15183_v28  ;;  %v767_v53 = vld [vmem:[#allocation2] sm:$0xe] }
  0xf1   : > { %1116 = vrot.lane.b32.xlu1 %v12054_v11, %s14408_s27  ;;  %v1827_v35 = vrot.slane %v1826_v55, 4  ;;  %v1837_v12 = vrot.slane %v1836_v24, 4  ;;  %v720_v57 = vshrl.u32 %v360_v41, 16  ;;  %v1544_v5 = vsel %vm14513_vm5, %v1539_v38, %v1543_v6  ;;  %v15277_v55 = vpop.permute.xlu1 %1094  ;;  %v15279_v24 = vpop.permute.xlu0 %2704 }
  0xf2   : > { %v1548_v36 = vor.u32 %v1547_v63, %v1543_v6  ;;  %v1553_v60 = vrot.slane %v1551_v58, 5  ;;  %v15266_v44 = vsel %vm1282_vm7, %v12025_v37, %v15174_v15  ;;  %1278 = vrot.lane.b32.xlu0 %v12087_v26, %s14408_s27  ;;  %v723_v19 = vshll.u32 %v360_v41, 16 }
  0xf3   : > { %v1832_v1 = vsel %vm14513_vm5, %v1827_v35, %v1831_v46  ;;  %v1842_v9 = vsel %vm14513_vm5, %v1837_v12, %v1841_v42  ;;  %v722_v28 = vrot.slane %v720_v57, 4  ;;  %v729_v11 = vshll.u32 %v15260_v21, 16 }
  0xf4   : > { %v12120_v30 = vcombine.low %v1832_v1, %v1842_v9  ;;  %v1549_v3 = vrot.slane %v1548_v36, 4  ;;  %v733_v15 = vshrl.u32 %v15260_v21, 16  ;;  %v725_v38 = vrot.slane %v723_v19, 5  ;;  %v13846_v36 = vld [vmem:[#allocation2 + $0x8] sm:$0x1] }
  0xf5   : > { %v739_v46 = vshll.u32 %v15268_v49, 16  ;;  %v12009_v6 = vrot.slane %v767_v53, 9  ;;  %v836_v63 = vrot.slane %v13845_v33, 5  ;;  %v731_v20 = vrot.slane %v729_v11, 5  ;;  %v13847_v33 = vld [vmem:[#allocation2 + $0x48] sm:$0xf] }
  0xf6   : > { %v2786_v42 = vsel %vm1282_vm7, %v12120_v30, %v15101_v59  ;;  %v1554_v41 = vsel %vm14513_vm5, %v1549_v3, %v1553_v60  ;;  %v735_v58 = vrot.slane %v733_v15, 4  ;;  %v726_v37 = vor.u32 %v725_v38, %v722_v28  ;;  %v15288_v1 = vld [vmem:[#allocation2 + $0x4c] sm:$0xf]  ;;  %v13849_v28 = vld [vmem:[#allocation2 + $0x40] sm:$0xf] }
  0xf7   : > { %3133 = vmatmul.mubr.bf16.gmra.mrb[12].mxu1 %v2786_v42  ;;  %v12108_v34 = vcombine.low %v1544_v5, %v1554_v41  ;;  %v741_v35 = vrot.slane %v739_v46, 5  ;;  %v837_v12 = vsel %vm14521_vm6, %v12009_v6, %v836_v63  ;;  %v838_v57 = vrot.slane %v836_v63, 4  ;;  %v362_v38 = vld [vmem:[#allocation2 + $0xb4] sm:$0xf]  ;;  %v15299_v46 = vpop.permute.xlu1 %2544  ;;  %v15301_v6 = vpop.permute.xlu0 %1256  ;;  %v15305_v42 = vld [vmem:[#allocation2 + $0xb8] sm:$0xf] }
  0xf8   : > { %v736_v26 = vor.u32 %v735_v58, %v731_v20  ;;  %v839_v53 = vrot.slane %v13846_v36, 5  ;;  %v12141_v59 = vcombine.low %v13847_v33, %v15288_v1  ;;  %v727_v9 = vrot.slane %v726_v37, 4 }
  0xf9   : > { %v2738_v60 = vsel %vm1282_vm7, %v12108_v34, %v15134_v25  ;;  %v1562_v5 = vor.u32 %v14875_v0, %v14868_v50  ;;  %v1565_v19 = vshll.u32 %v13849_v28, 16  ;;  %v1569_v15 = vshrl.u32 %v13849_v28, 16 }
  0xfa   : > { %3037 = vmatmul.mubr.bf16.gmra.mrb[12].mxu0 %v2738_v60  ;;  %v737_v30 = vrot.slane %v736_v26, 4  ;;  %v840_v3 = vsel %vm14521_vm6, %v838_v57, %v839_v53  ;;  %v2806_v11 = vsel %vm1282_vm7, %v12141_v59, %v15176_v17  ;;  %v732_v25 = vsel %vm14513_vm5, %v727_v9, %v731_v20  ;;  %v13850_v17 = vld [vmem:[#allocation2 + $0x44] sm:$0x1]  ;;  %v15311_v26 = vld [vmem:[#allocation2 + $0xbc] sm:$0x1] }
  0xfb   : > { %v12057_v50 = vcombine.low %v837_v12, %v840_v3  ;;  %3044 = vmatprep.mubr.bf16.mxu0 %v2806_v11  ;;  %v1563_v0 = vrot.slane %v1562_v5, 4  ;;  %v1567_v63 = vrot.slane %v1565_v19, 5  ;;  %v1571_v58 = vrot.slane %v1569_v15, 4  ;;  %v768_v57 = vld [vmem:[#allocation2 + $0xc] sm:$0xe]  ;;  %v15323_v11 = vpop.permute.xlu1 %1096  ;;  %v15325_v15 = vpop.permute.xlu0 %2706 }
  0xfc   : > { %v742_v41 = vsel %vm14513_vm5, %v737_v30, %v741_v35  ;;  %v1575_v34 = vshll.u32 %v13850_v17, 16  ;;  %v12088_v37 = vcombine.low %v15219_v32, %v15241_v16  ;;  %v744_v53 = vshrl.u32 %v362_v38, 16  ;;  %v13851_v30 = vld [vmem:[#allocation2 + $0x10] sm:$0xf] }
  0xfd   : > { %v12055_v36 = vcombine.low %v732_v25, %v742_v41  ;;  %v1349_v20 = vsel %vm1282_vm7, %v12057_v50, %v15136_v31  ;;  %v1568_v12 = vsel %vm14513_vm5, %v1563_v0, %v1567_v63  ;;  %v1572_v33 = vor.u32 %v1571_v58, %v1567_v63  ;;  %v13852_v50 = vld [vmem:[#allocation2 + $0x14] sm:$0x1]  ;;  %v15327_v63 = vld [vmem:[#allocation2 + $0x58] sm:$0xf] }
  0xfe   : > { %3269 = vmatprep.mubr.bf16.mxu1 %v1349_v20  ;;  %v1577_v35 = vrot.slane %v1575_v34, 5  ;;  %1280 = vrot.lane.b32.xlu0 %v12088_v37, %s14408_s27  ;;  %v747_v59 = vshll.u32 %v362_v38, 16  ;;  %v753_v60 = vshll.u32 %v15305_v42, 16  ;;  %v746_v32 = vrot.slane %v744_v53, 4  ;;  %v13855_v53 = vld [vmem:[#allocation2 + $0xc] sm:$0xf] }
  0xff   : > { %1118 = vrot.lane.b32.xlu1 %v12055_v36, %s14408_s27  ;;  %3270 = vmatmul.mubr.bf16.vlgmr.msra.gmra.mrb[16].mxu1 %v15266_v44  ;;  %v757_v16 = vshrl.u32 %v15305_v42, 16  ;;  %v763_v31 = vshll.u32 %v15311_v26, 16  ;;  %v12010_v9 = vrot.slane %v768_v57, 9  ;;  %v1573_v5 = vrot.slane %v1572_v33, 4  ;;  %v13853_v44 = vld [vmem:[#allocation2 + $0x54] sm:$0xf] }
 0x100   : > { %v749_v28 = vrot.slane %v747_v59, 5  ;;  %v755_v19 = vrot.slane %v753_v60, 5  ;;  %v843_v3 = vrot.slane %v13851_v30, 5  ;;  %v846_v0 = vrot.slane %v13852_v50, 5  ;;  %v15346_v50 = vpop.permute.xlu1 %2546 }
 0x101   : > { %v759_v38 = vrot.slane %v757_v16, 4  ;;  %v765_v25 = vrot.slane %v763_v31, 5  ;;  %v12142_v41 = vcombine.low %v13853_v44, %v15327_v63  ;;  %v1578_v58 = vsel %vm14513_vm5, %v1573_v5, %v1577_v35  ;;  %v13856_v35 = vld [vmem:[#allocation2 + $0x4c] sm:$0xf]  ;;  %v769_v31 = vld [vmem:[#allocation2 + $0x18] sm:$0xe] }
 0x102   : > { %v750_v17 = vor.u32 %v749_v28, %v746_v32  ;;  %v844_v34 = vsel %vm14521_vm6, %v12010_v9, %v843_v3  ;;  %v845_v37 = vrot.slane %v843_v3, 4  ;;  %v12109_v57 = vcombine.low %v1568_v12, %v1578_v58 }
 0x103   : > { %v760_v36 = vor.u32 %v759_v38, %v755_v19  ;;  %v2810_v20 = vsel %vm1282_vm7, %v12142_v41, %v15229_v14  ;;  %v12026_v33 = vcombine.low %v13855_v53, %v13851_v30  ;;  %v1586_v16 = vor.u32 %v14906_v18, %v14904_v13  ;;  %v15348_v13 = vpop.permute.xlu0 %1258 }
 0x104   : > { %v751_v59 = vrot.slane %v750_v17, 4  ;;  %v847_v60 = vsel %vm14521_vm6, %v845_v37, %v846_v0  ;;  %v1589_v32 = vshll.u32 %v13856_v35, 16  ;;  %v2742_v9 = vsel %vm1282_vm7, %v12109_v57, %v15202_v48  ;;  %v13857_v0 = vld [vmem:[#allocation2 + $0x50] sm:$0x1]  ;;  %v13858_v17 = vld [vmem:[#allocation2 + $0x1c] sm:$0xf] }
 0x105   : > { %v761_v12 = vrot.slane %v760_v36, 4  ;;  %v12058_v5 = vcombine.low %v844_v34, %v847_v60  ;;  %v1289_v14 = vsel %vm1282_vm7, %v12026_v33, %v15227_v8  ;;  %3045 = vmatmul.mubr.bf16.gmra.mrb[16].mxu0 %v2742_v9  ;;  %v1587_v30 = vrot.slane %v1586_v16, 4  ;;  %v13859_v57 = vld [vmem:[#allocation2 + $0x20] sm:$0x1] }
 0x106   : > { %v756_v28 = vsel %vm14513_vm5, %v751_v59, %v755_v19  ;;  %v1591_v3 = vrot.slane %v1589_v32, 5  ;;  %v1593_v38 = vshrl.u32 %v13856_v35, 16  ;;  %3052 = vmatprep.mubr.bf16.mxu0 %v2810_v20  ;;  %v1599_v8 = vshll.u32 %v13857_v0, 16  ;;  %v770_v59 = vld [vmem:[#allocation2 + $0x24] sm:$0xe] }
 0x107   : > { %v766_v18 = vsel %vm14513_vm5, %v761_v12, %v765_v25  ;;  %v1353_v48 = vsel %vm1282_vm7, %v12058_v5, %v15204_v39  ;;  %v12011_v44 = vrot.slane %v769_v31, 9  ;;  %v15356_v19 = vrot.slane %v1703_v56, 5  ;;  %v13860_v39 = vld [vmem:[#allocation2 + $0x18] sm:$0xf]  ;;  %v13861_v16 = vld [vmem:[#allocation2 + $0x60] sm:$0xf] }
 0x108   : > { %v12056_v41 = vcombine.low %v756_v28, %v766_v18  ;;  %3277 = vmatprep.mubr.bf16.mxu1 %v1353_v48  ;;  %v1595_v58 = vrot.slane %v1593_v38, 4  ;;  %v850_v34 = vrot.slane %v13858_v17, 5  ;;  %v1724_v37 = vshrl.u32 %v15036_v29, 16  ;;  %v15366_v35 = vld [vmem:[#allocation2 + $0x64] sm:$0xf] }
 0x109   : > { %3278 = vmatmul.mubr.bf16.gmra.mrb[20].mxu1 %v1289_v14  ;;  %v1601_v25 = vrot.slane %v1599_v8, 5  ;;  %v853_v36 = vrot.slane %v13859_v57, 5  ;;  %v12027_v20 = vcombine.low %v13860_v39, %v13858_v17  ;;  %v1610_v33 = vor.u32 %v14960_v27, %v14929_v23  ;;  %v13863_v31 = vld [vmem:[#allocation2 + $0x58] sm:$0xf]  ;;  %v13864_v38 = vld [vmem:[#allocation2 + $0x5c] sm:$0x1]  ;;  %v15371_v23 = vpop.permute.xlu1 %1098  ;;  %v15373_v27 = vpop.permute.xlu0 %2708 }
 0x10a   : > { %1120 = vrot.lane.b32.xlu1 %v12056_v41, %s14408_s27  ;;  %v1596_v53 = vor.u32 %v1595_v58, %v1591_v3  ;;  %v851_v52 = vsel %vm14521_vm6, %v12011_v44, %v850_v34  ;;  %v852_v56 = vrot.slane %v850_v34, 4  ;;  %v1592_v60 = vsel %vm14513_vm5, %v1587_v30, %v1591_v3  ;;  %v13865_v41 = vld [vmem:[#allocation2 + $0x28] sm:$0xf]  ;;  %v13866_v17 = vld [vmem:[#allocation2 + $0x2c] sm:$0x1] }
 0x10b   : > { %v12143_v32 = vcombine.low %v13861_v16, %v15366_v35  ;;  %v1613_v9 = vshll.u32 %v13863_v31, 16  ;;  %v1617_v12 = vshrl.u32 %v13863_v31, 16  ;;  %v1611_v28 = vrot.slane %v1610_v33, 4  ;;  %v771_v16 = vld [vmem:[#allocation2 + $0x30] sm:$0xe] }
 0x10c   : > { %v1597_v5 = vrot.slane %v1596_v53, 4  ;;  %v854_v14 = vsel %vm14521_vm6, %v852_v56, %v853_v36  ;;  %v1623_v18 = vshll.u32 %v13864_v38, 16  ;;  %v12012_v0 = vrot.slane %v770_v59, 9  ;;  %v13867_v59 = vld [vmem:[#allocation2 + $0x64] sm:$0xf] }
 0x10d   : > { %v12059_v30 = vcombine.low %v851_v52, %v854_v14  ;;  %v1615_v3 = vrot.slane %v1613_v9, 5  ;;  %v1619_v48 = vrot.slane %v1617_v12, 4  ;;  %v1293_v44 = vsel %vm1282_vm7, %v12027_v20, %v15277_v55  ;;  %v15393_v31 = vld [vmem:[#allocation2 + $0x70] sm:$0xf]  ;;  %v13870_v12 = vld [vmem:[#allocation2 + $0x24] sm:$0xf]  ;;  %v15396_v14 = vpop.permute.xlu1 %2548 }
 0x10e   : > { %v1602_v8 = vsel %vm14513_vm5, %v1597_v5, %v1601_v25  ;;  %v857_v58 = vrot.slane %v13865_v41, 5  ;;  %v860_v34 = vrot.slane %v13866_v17, 5  ;;  %v1625_v53 = vrot.slane %v1623_v18, 5 }
 0x10f   : > { %v12110_v57 = vcombine.low %v1592_v60, %v1602_v8  ;;  %v1357_v36 = vsel %vm1282_vm7, %v12059_v30, %v15255_v10  ;;  %v1620_v39 = vor.u32 %v1619_v48, %v1615_v3  ;;  %v2814_v52 = vsel %vm1282_vm7, %v12143_v32, %v15279_v24  ;;  %v13868_v32 = vld [vmem:[#allocation2 + $0x6c] sm:$0xf]  ;;  %v13871_v48 = vld [vmem:[#allocation2 + $0x68] sm:$0x1] }
 0x110   : > { %3285 = vmatprep.mubr.bf16.mxu1 %v1357_v36  ;;  %v1616_v25 = vsel %vm14513_vm5, %v1611_v28, %v1615_v3  ;;  %v858_v55 = vsel %vm14521_vm6, %v12012_v0, %v857_v58  ;;  %v859_v20 = vrot.slane %v857_v58, 4  ;;  %v1634_v10 = vor.u32 %v14968_v45, %v14966_v43  ;;  %v15398_v28 = vpop.permute.xlu0 %1260  ;;  %v13872_v58 = vld [vmem:[#allocation2 + $0x34] sm:$0xf] }
 0x111   : > { %v2746_v56 = vsel %vm1282_vm7, %v12110_v57, %v15253_v62  ;;  %3286 = vmatmul.mubr.bf16.gmra.mrb[24].mxu1 %v1293_v44  ;;  %v1621_v33 = vrot.slane %v1620_v39, 4  ;;  %v1637_v60 = vshll.u32 %v13867_v59, 16  ;;  %v12144_v9 = vcombine.low %v13868_v32, %v15393_v31  ;;  %v15423_v32 = vld [vmem:[#allocation2 + $0x7c] sm:$0xf] }
 0x112   : > { %3053 = vmatmul.mubr.bf16.gmra.mrb[20].mxu0 %v2746_v56  ;;  %v861_v24 = vsel %vm14521_vm6, %v859_v20, %v860_v34  ;;  %v12028_v5 = vcombine.low %v13870_v12, %v13865_v41  ;;  %v1641_v62 = vshrl.u32 %v13867_v59, 16  ;;  %v1635_v38 = vrot.slane %v1634_v10, 4  ;;  %v13873_v34 = vld [vmem:[#allocation2 + $0x38] sm:$0x1]  ;;  %v13878_v12 = vld [vmem:[#allocation2 + $0x74] sm:$0x1] }
 0x113   : > { %3060 = vmatprep.mubr.bf16.mxu0 %v2814_v52  ;;  %v1626_v43 = vsel %vm14513_vm5, %v1621_v33, %v1625_v53  ;;  %v12060_v45 = vcombine.low %v858_v55, %v861_v24  ;;  %v1639_v18 = vrot.slane %v1637_v60, 5  ;;  %v1647_v0 = vshll.u32 %v13871_v48, 16  ;;  %v13875_v24 = vld [vmem:[#allocation2 + $0x78] sm:$0xf]  ;;  %v15428_v48 = vld [vmem:[#allocation2 + $0x40] sm:$0xf] }
 0x114   : > { %v12111_v30 = vcombine.low %v1616_v25, %v1626_v43  ;;  %v1643_v3 = vrot.slane %v1641_v62, 4  ;;  %v12013_v8 = vrot.slane %v771_v16, 9  ;;  %v1727_v44 = vshll.u32 %v15036_v29, 16  ;;  %v15419_v60 = vpop.permute.xlu0 %2710  ;;  %v772_v16 = vld [vmem:[#allocation2 + $0x3c] sm:$0xe] }
 0x115   : > { %v1361_v41 = vsel %vm1282_vm7, %v12060_v45, %v15301_v6  ;;  %v864_v17 = vrot.slane %v13872_v58, 5  ;;  %v867_v57 = vrot.slane %v13873_v34, 5  ;;  %v2818_v36 = vsel %vm1282_vm7, %v12144_v9, %v15325_v15  ;;  %v13874_v15 = vld [vmem:[#allocation2 + $0x70] sm:$0xf]  ;;  %v774_v29 = vld [vmem:[#allocation2 + $0x54] sm:$0xe] }
 0x116   : > { %3293 = vmatprep.mubr.bf16.mxu1 %v1361_v41  ;;  %v1297_v39 = vsel %vm1282_vm7, %v12028_v5, %v15323_v11  ;;  %v1644_v53 = vor.u32 %v1643_v3, %v1639_v18  ;;  %v1649_v52 = vrot.slane %v1647_v0, 5  ;;  %v2750_v25 = vsel %vm1282_vm7, %v12111_v30, %v15299_v46  ;;  %v15417_v11 = vpop.permute.xlu1 %1100 }
 0x117   : > { %v865_v55 = vsel %vm14521_vm6, %v12013_v8, %v864_v17  ;;  %v866_v6 = vrot.slane %v864_v17, 4  ;;  %v1658_v20 = vor.u32 %v14991_v40, %v14986_v22  ;;  %v1640_v56 = vsel %vm14513_vm5, %v1635_v38, %v1639_v18  ;;  %v13877_v40 = vld [vmem:[#allocation2 + $0x30] sm:$0xf]  ;;  %v13880_v17 = vld [vmem:[#allocation2 + $0x44] sm:$0x1] }
 0x118   : > { %v1645_v33 = vrot.slane %v1644_v53, 4  ;;  %v1661_v10 = vshll.u32 %v13874_v15, 16  ;;  %v1665_v59 = vshrl.u32 %v13874_v15, 16  ;;  %v12145_v22 = vcombine.low %v13875_v24, %v15423_v32  ;;  %v13882_v15 = vld [vmem:[#allocation2 + $0x80] sm:$0x1] }
 0x119   : > { %3294 = vmatmul.mubr.bf16.gmra.mrb[28].mxu1 %v1297_v39  ;;  %v868_v46 = vsel %vm14521_vm6, %v866_v6, %v867_v57  ;;  %v12029_v9 = vcombine.low %v13877_v40, %v13872_v58  ;;  %v1671_v5 = vshll.u32 %v13878_v12, 16  ;;  %v1659_v30 = vrot.slane %v1658_v20, 4  ;;  %v13881_v6 = vld [vmem:[#allocation2 + $0x7c] sm:$0xf]  ;;  %v1263_v20 = vpop.permute.xlu0 %1262 }
 0x11a   : > { %3061 = vmatmul.mubr.bf16.gmra.mrb[24].mxu0 %v2750_v25  ;;  %v1650_v62 = vsel %vm14513_vm5, %v1645_v33, %v1649_v52  ;;  %v12061_v43 = vcombine.low %v865_v55, %v868_v46  ;;  %v1663_v45 = vrot.slane %v1661_v10, 5  ;;  %v1667_v38 = vrot.slane %v1665_v59, 4  ;;  %v15443_v25 = vpop.permute.xlu1 %2550  ;;  %v773_v59 = vld [vmem:[#allocation2 + $0x48] sm:$0xe] }
 0x11b   : > { %3068 = vmatprep.mubr.bf16.mxu0 %v2818_v36  ;;  %v12112_v18 = vcombine.low %v1640_v56, %v1650_v62  ;;  %v12014_v3 = vrot.slane %v772_v16, 9  ;;  %v871_v0 = vrot.slane %v15428_v48, 5  ;;  %v1673_v58 = vrot.slane %v1671_v5, 5  ;;  %v15455_v46 = vld [vmem:[#allocation2 + $0x88] sm:$0xf] }
 0x11c   : > { %v1365_v8 = vsel %vm1282_vm7, %v12061_v43, %v15348_v13  ;;  %v1668_v41 = vor.u32 %v1667_v38, %v1663_v45  ;;  %v874_v34 = vrot.slane %v13880_v17, 5  ;;  %v15435_v57 = vrot.slane %v1724_v37, 4  ;;  %v13886_v43 = vld [vmem:[#allocation2 + $0x4c] sm:$0xf]  ;;  %v13887_v38 = vld [vmem:[#allocation2 + $0x50] sm:$0x1] }
 0x11d   : > { %3301 = vmatprep.mubr.bf16.mxu1 %v1365_v8  ;;  %v2822_v36 = vsel %vm1282_vm7, %v12145_v22, %v15373_v27  ;;  %v872_v39 = vsel %vm14521_vm6, %v12014_v3, %v871_v0  ;;  %v873_v53 = vrot.slane %v871_v0, 4  ;;  %v1301_v52 = vsel %vm1282_vm7, %v12029_v9, %v15371_v23  ;;  %v13888_v8 = vld [vmem:[#allocation2 + $0x88] sm:$0xf]  ;;  %v15467_v17 = vpop.permute.xlu0 %2712 }
 0x11e   : > { %v1669_v13 = vrot.slane %v1668_v41, 4  ;;  %v1682_v55 = vor.u32 %v15052_v54, %v15007_v4  ;;  %v1685_v37 = vshll.u32 %v13881_v6, 16  ;;  %v2754_v56 = vsel %vm1282_vm7, %v12112_v18, %v15346_v50  ;;  %v13883_v54 = vld [vmem:[#allocation2 + $0x84] sm:$0xf]  ;;  %v13885_v50 = vld [vmem:[#allocation2 + $0x3c] sm:$0xf] }
 0x11f   : > { %v875_v27 = vsel %vm14521_vm6, %v873_v53, %v874_v34  ;;  %v1689_v33 = vshrl.u32 %v13881_v6, 16  ;;  %v1695_v10 = vshll.u32 %v13882_v15, 16  ;;  %v1664_v23 = vsel %vm14513_vm5, %v1659_v30, %v1663_v45  ;;  %v13889_v6 = vld [vmem:[#allocation2 + $0x8c] sm:$0x1] }
 0x120   : > { %v1674_v16 = vsel %vm14513_vm5, %v1669_v13, %v1673_v58  ;;  %v12062_v4 = vcombine.low %v872_v39, %v875_v27  ;;  %v12146_v24 = vcombine.low %v13883_v54, %v15455_v46  ;;  %v12030_v22 = vcombine.low %v13885_v50, %v15428_v48 }
 0x121   : > { %3302 = vmatmul.mubr.bf16.gmra.mrb[32].mxu1 %v1301_v52  ;;  %v1683_v40 = vrot.slane %v1682_v55, 4  ;;  %v1687_v9 = vrot.slane %v1685_v37, 5  ;;  %v1691_v12 = vrot.slane %v1689_v33, 4  ;;  %v12015_v62 = vrot.slane %v773_v59, 9  ;;  %v13890_v33 = vld [vmem:[#allocation2 + $0x48] sm:$0xf] }
 0x122   : > { %3069 = vmatmul.mubr.bf16.gmra.mrb[28].mxu0 %v2754_v56  ;;  %v1369_v5 = vsel %vm1282_vm7, %v12062_v4, %v15398_v28  ;;  %v878_v45 = vrot.slane %v13886_v43, 5  ;;  %v881_v18 = vrot.slane %v13887_v38, 5  ;;  %v12113_v30 = vcombine.low %v1664_v23, %v1674_v16  ;;  %v1103_v28 = vpop.permute.xlu1 %1102  ;;  %v15485_v59 = vld [vmem:[#allocation2 + $0x58] sm:$0xf] }
 0x123   : > { %3076 = vmatprep.mubr.bf16.mxu0 %v2822_v36  ;;  %3309 = vmatprep.mubr.bf16.mxu1 %v1369_v5  ;;  %v1692_v3 = vor.u32 %v1691_v12, %v1687_v9  ;;  %v1697_v0 = vrot.slane %v1695_v10, 5  ;;  %v1709_v41 = vshll.u32 %v13888_v8, 16  ;;  %v15463_v48 = vrot.slane %v1727_v44, 5 }
 0x124   : > { %v2826_v58 = vsel %vm1282_vm7, %v12146_v24, %v15419_v60  ;;  %v879_v34 = vsel %vm14521_vm6, %v12015_v62, %v878_v45  ;;  %v880_v36 = vrot.slane %v878_v45, 4  ;;  %v1706_v53 = vor.u32 %v15356_v19, %v15063_v7  ;;  %v13893_v62 = vld [vmem:[#allocation2 + $0x94] sm:$0xf]  ;;  %v13894_v45 = vld [vmem:[#allocation2 + $0x90] sm:$0xf] }
 0x125   : > { %v1693_v39 = vrot.slane %v1692_v3, 4  ;;  %v15473_v52 = vrot.slane %v1709_v41, 5  ;;  %v1713_v13 = vshrl.u32 %v13888_v8, 16  ;;  %v1305_v44 = vsel %vm1282_vm7, %v12030_v22, %v15417_v11 }
 0x126   : > { %v1688_v60 = vsel %vm14513_vm5, %v1683_v40, %v1687_v9  ;;  %v882_v55 = vsel %vm14521_vm6, %v880_v36, %v881_v18  ;;  %v1719_v37 = vshll.u32 %v13889_v6, 16  ;;  %v2758_v56 = vsel %vm1282_vm7, %v12113_v30, %v15396_v14  ;;  %v13892_v14 = vld [vmem:[#allocation2 + $0x5c] sm:$0x1]  ;;  %v15490_v50 = vpop.permute.xlu1 %2552  ;;  %v1265_v40 = vpop.permute.xlu0 %1264 }
 0x127   : > { %v1698_v7 = vsel %vm14513_vm5, %v1693_v39, %v1697_v0  ;;  %v12063_v19 = vcombine.low %v879_v34, %v882_v55  ;;  %v1715_v27 = vrot.slane %v1713_v13, 4  ;;  %v12031_v15 = vcombine.low %v13890_v33, %v13886_v43  ;;  %v775_v0 = vld [vmem:[#allocation2 + $0x60] sm:$0xe]  ;;  %v776_v33 = vld [vmem:[#allocation2 + $0x6c] sm:$0xe] }
 0x128   : > { %v1707_v10 = vrot.slane %v1706_v53, 4  ;;  %v12016_v11 = vrot.slane %v774_v29, 9  ;;  %v885_v23 = vrot.slane %v15485_v59, 5  ;;  %v12114_v16 = vcombine.low %v1688_v60, %v1698_v7  ;;  %v13896_v53 = vld [vmem:[#allocation2 + $0x98] sm:$0x1] }
 0x129   : > { %3310 = vmatmul.mubr.bf16.gmra.mrb[36].mxu1 %v1305_v44  ;;  %v1373_v4 = vsel %vm1282_vm7, %v12063_v19, %v1263_v20  ;;  %v1716_v54 = vor.u32 %v1715_v27, %v15473_v52  ;;  %v888_v24 = vrot.slane %v13892_v14, 5  ;;  %v1721_v22 = vrot.slane %v1719_v37, 5  ;;  %v15494_v20 = vld [vmem:[#allocation2 + $0x94] sm:$0xf]  ;;  %v13901_v14 = vld [vmem:[#allocation2 + $0x9c] sm:$0xf] }
 0x12a   : > { %3077 = vmatmul.mubr.bf16.gmra.mrb[32].mxu0 %v2758_v56  ;;  %3317 = vmatprep.mubr.bf16.mxu1 %v1373_v4  ;;  %v886_v9 = vsel %vm14521_vm6, %v12016_v11, %v885_v23  ;;  %v887_v12 = vrot.slane %v885_v23, 4  ;;  %v1733_v43 = vshll.u32 %v13893_v62, 16  ;;  %v12147_v38 = vcombine.low %v13894_v45, %v15494_v20  ;;  %v2715_v6 = vpop.permute.xlu0 %2714  ;;  %v13899_v56 = vld [vmem:[#allocation2 + $0x54] sm:$0xf]  ;;  %v13900_v4 = vld [vmem:[#allocation2 + $0x1c] sm:$0xf] }
 0x12b   : > { %3084 = vmatprep.mubr.bf16.mxu0 %v2826_v58  ;;  %v1717_v5 = vrot.slane %v1716_v54, 4  ;;  %v1309_v18 = vsel %vm1282_vm7, %v12031_v15, %v1103_v28  ;;  %v1737_v3 = vshrl.u32 %v13893_v62, 16  ;;  %v2762_v8 = vsel %vm1282_vm7, %v12114_v16, %v15443_v25  ;;  %v15512_v25 = vld [vmem:[#allocation2 + $0x64] sm:$0xf]  ;;  %v3398_v16 = vld [vmem:[#allocation2 + $0x18] sm:$0xe] }
 0x12c   : > { %v889_v30 = vsel %vm14521_vm6, %v887_v12, %v888_v24  ;;  %v1712_v41 = vsel %vm14513_vm5, %v1707_v10, %v15473_v52  ;;  %v1730_v34 = vor.u32 %v15463_v48, %v15435_v57  ;;  %v15509_v28 = vrot.slane %v1733_v43, 5  ;;  %v13898_v52 = vld [vmem:[#allocation2 + $0x68] sm:$0x1]  ;;  %v1105_v48 = vpop.permute.xlu1 %1104  ;;  %v13903_v12 = vld [vmem:[#allocation2 + $0x20] sm:$0x1] }
 0x12d   : > { %v12064_v58 = vcombine.low %v886_v9, %v889_v30  ;;  %v1722_v36 = vsel %vm14513_vm5, %v1717_v5, %v1721_v22  ;;  %v1739_v39 = vrot.slane %v1737_v3, 4  ;;  %v1743_v13 = vshll.u32 %v13896_v53, 16  ;;  %v15527_v43 = vld [vmem:[#allocation2 + $0x70] sm:$0xf]  ;;  %v13906_v53 = vld [vmem:[#allocation2 + $0x60] sm:$0xf] }
 0x12e   : > { %v12017_v44 = vrot.slane %v775_v0, 9  ;;  %v892_v60 = vrot.slane %v15512_v25, 5  ;;  %v895_v55 = vrot.slane %v13898_v52, 5  ;;  %v2830_v57 = vsel %vm1282_vm7, %v12147_v38, %v15467_v17  ;;  %v1267_v22 = vpop.permute.xlu0 %1266  ;;  %v13905_v0 = vld [vmem:[#allocation2 + $0x74] sm:$0x1] }
 0x12f   : > { %v1377_v29 = vsel %vm1282_vm7, %v12064_v58, %v1265_v40  ;;  %v1740_v37 = vor.u32 %v1739_v39, %v15509_v28  ;;  %v12032_v7 = vcombine.low %v13899_v56, %v15485_v59  ;;  %v12115_v15 = vcombine.low %v1712_v41, %v1722_v36  ;;  %v15523_v59 = vld [vmem:[#allocation2 + $0xa0] sm:$0xf] }
 0x130   : > { %v893_v19 = vsel %vm14521_vm6, %v12017_v44, %v892_v60  ;;  %v894_v27 = vrot.slane %v892_v60, 4  ;;  %v1731_v10 = vrot.slane %v1730_v34, 4  ;;  %v1745_v17 = vrot.slane %v1743_v13, 5  ;;  %v13907_v44 = vld [vmem:[#allocation2 + $0x28] sm:$0xf] }
 0x131   : > { %3318 = vmatmul.mubr.bf16.gmra.mrb[40].mxu1 %v1309_v18  ;;  %v1741_v11 = vrot.slane %v1740_v37, 4  ;;  %v3448_v54 = vrot.slane %v13900_v4, 5  ;;  %v12148_v24 = vcombine.low %v13901_v14, %v15523_v59  ;;  %v12018_v9 = vrot.slane %v776_v33, 9  ;;  %v2555_v18 = vpop.permute.xlu1 %2554  ;;  %v3399_v37 = vld [vmem:[#allocation2 + $0x24] sm:$0xe] }
 0x132   : > { %3085 = vmatmul.mubr.bf16.gmra.mrb[36].mxu0 %v2762_v8  ;;  %3325 = vmatprep.mubr.bf16.mxu1 %v1377_v29  ;;  %v896_v23 = vsel %vm14521_vm6, %v894_v27, %v895_v55  ;;  %v3451_v5 = vrot.slane %v13903_v12, 5  ;;  %v1313_v62 = vsel %vm1282_vm7, %v12032_v7, %v1105_v48  ;;  %v899_v45 = vrot.slane %v15527_v43, 5  ;;  %v777_v29 = vld [vmem:[#allocation2 + $0x78] sm:$0xe]  ;;  %v3400_v27 = vld [vmem:[#allocation2 + $0x30] sm:$0xe] }
 0x133   : > { %3092 = vmatprep.mubr.bf16.mxu0 %v2830_v57  ;;  %v12065_v40 = vcombine.low %v893_v19, %v896_v23  ;;  %v2766_v38 = vsel %vm1282_vm7, %v12115_v15, %v15490_v50  ;;  %v1736_v30 = vsel %vm14513_vm5, %v1731_v10, %v15509_v28  ;;  %v12201_v3 = vrot.slane %v3398_v16, 9  ;;  %v15544_v57 = vld [vmem:[#allocation2 + $0x7c] sm:$0xf]  ;;  %v1269_v19 = vpop.permute.xlu0 %1268  ;;  %v13909_v10 = vld [vmem:[#allocation2 + $0x80] sm:$0x1] }
 0x134   : > { %v902_v8 = vrot.slane %v13905_v0, 5  ;;  %v1746_v41 = vsel %vm14513_vm5, %v1741_v11, %v1745_v17  ;;  %v3450_v34 = vrot.slane %v3448_v54, 4  ;;  %v901_v36 = vrot.slane %v899_v45, 4  ;;  %v13910_v17 = vld [vmem:[#allocation2 + $0x2c] sm:$0x1] }
 0x135   : > { %v1381_v58 = vsel %vm1282_vm7, %v12065_v40, %v1267_v22  ;;  %v2834_v39 = vsel %vm1282_vm7, %v12148_v24, %v2715_v6  ;;  %v900_v50 = vsel %vm14521_vm6, %v12018_v9, %v899_v45  ;;  %v12033_v13 = vcombine.low %v13906_v53, %v15512_v25  ;;  %v1107_v55 = vpop.permute.xlu1 %1106  ;;  %v15559_v45 = vld [vmem:[#allocation2 + $0x88] sm:$0xf] }
 0x136   : > { %v903_v28 = vsel %vm14521_vm6, %v901_v36, %v902_v8  ;;  %v3455_v60 = vrot.slane %v13907_v44, 5  ;;  %v12116_v52 = vcombine.low %v1736_v30, %v1746_v41  ;;  %v906_v48 = vrot.slane %v15544_v57, 5  ;;  %v3401_v36 = vld [vmem:[#allocation2 + $0x3c] sm:$0xe]  ;;  %v13914_v44 = vld [vmem:[#allocation2 + $0x8c] sm:$0x1] }
 0x137   : > { %v3449_v6 = vsel %vm14521_vm6, %v12201_v3, %v3448_v54  ;;  %v3452_v25 = vsel %vm14521_vm6, %v3450_v34, %v3451_v5  ;;  %v12066_v56 = vcombine.low %v900_v50, %v903_v28  ;;  %v3462_v7 = vrot.slane %v15156_v2, 5  ;;  %v13911_v2 = vld [vmem:[#allocation2 + $0x38] sm:$0x1]  ;;  %v778_v3 = vld [vmem:[#allocation2 + $0x84] sm:$0xe]  ;;  %v1271_v53 = vpop.permute.xlu0 %1270 }
 0x138   : > { %v12019_v33 = vrot.slane %v777_v29, 9  ;;  %v908_v15 = vrot.slane %v906_v48, 4  ;;  %v909_v11 = vrot.slane %v13909_v10, 5  ;;  %v3458_v23 = vrot.slane %v13910_v17, 5  ;;  %v15580_v10 = vld [vmem:[#allocation2 + $0x94] sm:$0xf] }
 0x139   : > { %3326 = vmatmul.mubr.bf16.gmra.mrb[44].mxu1 %v1313_v62  ;;  %v1317_v16 = vsel %vm1282_vm7, %v12033_v13, %v1107_v55  ;;  %v2770_v4 = vsel %vm1282_vm7, %v12116_v52, %v2555_v18  ;;  %v12217_v54 = vcombine.low %v3449_v6, %v3452_v25  ;;  %v12202_v14 = vrot.slane %v3399_v37, 9  ;;  %v13913_v18 = vld [vmem:[#allocation2 + $0x6c] sm:$0xf]  ;;  %v1109_v41 = vpop.permute.xlu1 %1108  ;;  %v3402_v13 = vld [vmem:[#allocation2 + $0x48] sm:$0xe] }
 0x13a   : > { %3093 = vmatmul.mubr.bf16.gmra.mrb[40].mxu0 %v2766_v38  ;;  %3333 = vmatprep.mubr.bf16.mxu1 %v1381_v58  ;;  %v3457_v24 = vrot.slane %v3455_v60, 4  ;;  %v1385_v22 = vsel %vm1282_vm7, %v12066_v56, %v1269_v19  ;;  %v12203_v40 = vrot.slane %v3400_v27, 9  ;;  %v3464_v9 = vrot.slane %v3462_v7, 4  ;;  %v13915_v25 = vld [vmem:[#allocation2 + $0x44] sm:$0x1] }
 0x13b   : > { %3100 = vmatprep.mubr.bf16.mxu0 %v2834_v39  ;;  %v3465_v12 = vrot.slane %v13911_v2, 5  ;;  %v907_v5 = vsel %vm14521_vm6, %v12019_v33, %v906_v48  ;;  %v910_v62 = vsel %vm14521_vm6, %v908_v15, %v909_v11  ;;  %v913_v38 = vrot.slane %v15559_v45, 5  ;;  %v13916_v27 = vld [vmem:[#allocation2 + $0x50] sm:$0x1]  ;;  %v13918_v17 = vld [vmem:[#allocation2 + $0x78] sm:$0xf] }
 0x13c   : > { %v12034_v30 = vcombine.low %v13913_v18, %v15527_v43  ;;  %v3456_v0 = vsel %vm14521_vm6, %v12202_v14, %v3455_v60  ;;  %v3459_v8 = vsel %vm14521_vm6, %v3457_v24, %v3458_v23  ;;  %v3469_v58 = vrot.slane %v15224_v47, 5  ;;  %v13919_v18 = vld [vmem:[#allocation2 + $0x98] sm:$0x1] }
 0x13d   : > { %v3463_v34 = vsel %vm14521_vm6, %v12203_v40, %v3462_v7  ;;  %v3466_v43 = vsel %vm14521_vm6, %v3464_v9, %v3465_v12  ;;  %v12067_v39 = vcombine.low %v907_v5, %v910_v62  ;;  %v3476_v50 = vrot.slane %v15288_v1, 5  ;;  %v1111_v14 = vpop.permute.xlu1 %1110  ;;  %v3403_v40 = vld [vmem:[#allocation2 + $0x54] sm:$0xe]  ;;  %v1273_v12 = vpop.permute.xlu0 %1272  ;;  %v3404_v5 = vld [vmem:[#allocation2 + $0x60] sm:$0xe] }
 0x13e   : > { %v12020_v28 = vrot.slane %v778_v3, 9  ;;  %v915_v29 = vrot.slane %v913_v38, 4  ;;  %v916_v60 = vrot.slane %v13914_v44, 5  ;;  %v12218_v52 = vcombine.low %v3456_v0, %v3459_v8  ;;  %v780_v44 = vld [vmem:[#allocation2 + $0x9c] sm:$0xe] }
 0x13f   : > { %v1321_v47 = vsel %vm1282_vm7, %v12034_v30, %v1109_v41  ;;  %v12219_v55 = vcombine.low %v3463_v34, %v3466_v43  ;;  %v12204_v48 = vrot.slane %v3401_v36, 9  ;;  %v3471_v6 = vrot.slane %v3469_v58, 4 }
 0x140   : > { %v3472_v37 = vrot.slane %v13915_v25, 5  ;;  %v1389_v56 = vsel %vm1282_vm7, %v12067_v39, %v1271_v53  ;;  %v12205_v7 = vrot.slane %v3402_v13, 9  ;;  %v3478_v19 = vrot.slane %v3476_v50, 4 }
 0x141   : > { %3334 = vmatmul.mubr.bf16.gmra.mrb[48].mxu1 %v1317_v16  ;;  %v3479_v1 = vrot.slane %v13916_v27, 5  ;;  %v914_v33 = vsel %vm14521_vm6, %v12020_v28, %v913_v38  ;;  %v917_v15 = vsel %vm14521_vm6, %v915_v29, %v916_v60  ;;  %v920_v11 = vrot.slane %v15580_v10, 5  ;;  %v779_v16 = vld [vmem:[#allocation2 + $0x90] sm:$0xe]  ;;  %v15602_v28 = vld [vmem:[#allocation2 + $0xa0] sm:$0xf] }
 0x142   : > { %3101 = vmatmul.mubr.bf16.gmra.mrb[44].mxu0 %v2770_v4  ;;  %3341 = vmatprep.mubr.bf16.mxu1 %v1385_v22  ;;  %v12035_v23 = vcombine.low %v13918_v17, %v15544_v57  ;;  %v3470_v4 = vsel %vm14521_vm6, %v12204_v48, %v3469_v58  ;;  %v3483_v24 = vrot.slane %v15327_v63, 5  ;;  %v3477_v22 = vsel %vm14521_vm6, %v12205_v7, %v3476_v50  ;;  %v13920_v58 = vld [vmem:[#allocation2 + $0x5c] sm:$0x1]  ;;  %v13921_v50 = vld [vmem:[#allocation2 + $0x68] sm:$0x1] }
 0x143   : > { %13582 = vmatprep.mubr.msk.bf16.mxu0 %vm1282_vm7, %v12217_v54  ;;  %v3473_v54 = vsel %vm14521_vm6, %v3471_v6, %v3472_v37  ;;  %v3480_v57 = vsel %vm14521_vm6, %v3478_v19, %v3479_v1  ;;  %v12068_v9 = vcombine.low %v914_v33, %v917_v15  ;;  %v3490_v2 = vrot.slane %v15366_v35, 5  ;;  %v3405_v48 = vld [vmem:[#allocation2 + $0x6c] sm:$0xe]  ;;  %v3406_v1 = vld [vmem:[#allocation2 + $0x78] sm:$0xe] }
 0x144   : > { %v12021_v62 = vrot.slane %v779_v16, 9  ;;  %v922_v38 = vrot.slane %v920_v11, 4  ;;  %v923_v30 = vrot.slane %v13919_v18, 5  ;;  %v12220_v3 = vcombine.low %v3470_v4, %v3473_v54  ;;  %v13925_v54 = vld [vmem:[#allocation2 + $0x74] sm:$0x1] }
 0x145   : > { %v1325_v63 = vsel %vm1282_vm7, %v12035_v23, %v1111_v14  ;;  %v12221_v0 = vcombine.low %v3477_v22, %v3480_v57  ;;  %v12206_v8 = vrot.slane %v3403_v40, 9  ;;  %v3485_v41 = vrot.slane %v3483_v24, 4  ;;  %v13926_v40 = vld [vmem:[#allocation2 + $0x80] sm:$0x1]  ;;  %v13927_v18 = vld [vmem:[#allocation2 + $0x90] sm:$0xf] }
 0x146   : > { %v3486_v34 = vrot.slane %v13920_v58, 5  ;;  %v1393_v43 = vsel %vm1282_vm7, %v12068_v9, %v1273_v12  ;;  %v12207_v36 = vrot.slane %v3404_v5, 9  ;;  %v3492_v39 = vrot.slane %v3490_v2, 4  ;;  %v781_v5 = vld [vmem:[#allocation2 + $0xa8] sm:$0xe] }
 0x147   : > { %v3493_v35 = vrot.slane %v13921_v50, 5  ;;  %v921_v53 = vsel %vm14521_vm6, %v12021_v62, %v920_v11  ;;  %v924_v13 = vsel %vm14521_vm6, %v922_v38, %v923_v30  ;;  %v927_v29 = vrot.slane %v15602_v28, 5 }
 0x148   : > { %v3484_v60 = vsel %vm14521_vm6, %v12206_v8, %v3483_v24  ;;  %v3497_v6 = vrot.slane %v15393_v31, 5  ;;  %v1113_v25 = vpop.permute.xlu1 %1112  ;;  %v3491_v37 = vsel %vm14521_vm6, %v12207_v36, %v3490_v2  ;;  %v12069_v7 = vcombine.low %v921_v53, %v924_v13  ;;  %v3407_v8 = vld [vmem:[#allocation2 + $0x84] sm:$0xe]  ;;  %v13928_v13 = vld [vmem:[#allocation2 + $0x8c] sm:$0x1] }
 0x149   : > { %3342 = vmatmul.mubr.bf16.gmra.mrb[52].mxu1 %v1321_v47  ;;  %v13923_v47 = vld [vmem:[#allocation2 + $0x84] sm:$0xf]  ;;  %v3504_v19 = vrot.slane %v15423_v32, 5  ;;  %v1275_v27 = vpop.permute.xlu0 %1274  ;;  %v12022_v33 = vrot.slane %v780_v44, 9  ;;  %v929_v15 = vrot.slane %v927_v29, 4  ;;  %v12208_v31 = vrot.slane %v3405_v48, 9 }
 0x14a   : > { %13583 = vmatmul.mubr.msk.bf16.vlgmr.msra.gmra.mrb[48].mxu0 %vm1282_vm7, %v12218_v52  ;;  %3349 = vmatprep.mubr.bf16.mxu1 %v1389_v56  ;;  %v3487_v52 = vsel %vm14521_vm6, %v3485_v41, %v3486_v34  ;;  %v3494_v56 = vsel %vm14521_vm6, %v3492_v39, %v3493_v35  ;;  %v3499_v4 = vrot.slane %v3497_v6, 4  ;;  %v3500_v14 = vrot.slane %v13925_v54, 5  ;;  %v3408_v34 = vld [vmem:[#allocation2 + $0x90] sm:$0xe] }
 0x14b   : > { %13586 = vmatprep.mubr.msk.bf16.mxu0 %vm1282_vm7, %v12219_v55  ;;  %v12036_v55 = vcombine.low %v13923_v47, %v15559_v45  ;;  %v13924_v45 = vld [vmem:[#allocation2 + $0xa4] sm:$0x1]  ;;  %v12222_v17 = vcombine.low %v3484_v60, %v3487_v52  ;;  %v12223_v16 = vcombine.low %v3491_v37, %v3494_v56  ;;  %v1397_v24 = vsel %vm1282_vm7, %v12069_v7, %v1275_v27  ;;  %v13930_v37 = vld [vmem:[#allocation2 + $0x9c] sm:$0xf] }
 0x14c   : > { %v930_v11 = vrot.slane %v13924_v45, 5  ;;  %v12209_v22 = vrot.slane %v3406_v1, 9  ;;  %v3506_v57 = vrot.slane %v3504_v19, 4  ;;  %v3507_v32 = vrot.slane %v13926_v40, 5  ;;  %v3409_v7 = vld [vmem:[#allocation2 + $0x9c] sm:$0xe] }
 0x14d   : > { %v1329_v23 = vsel %vm1282_vm7, %v12036_v55, %v1113_v25  ;;  %v928_v9 = vsel %vm14521_vm6, %v12022_v33, %v927_v29  ;;  %v934_v12 = vrot.slane %v15260_v21, 5  ;;  %v3498_v62 = vsel %vm14521_vm6, %v12208_v31, %v3497_v6  ;;  %v13929_v55 = vld [vmem:[#allocation2 + $0x98] sm:$0x1] }
 0x14e   : > { %v931_v2 = vsel %vm14521_vm6, %v929_v15, %v930_v11  ;;  %v3501_v38 = vsel %vm14521_vm6, %v3499_v4, %v3500_v14  ;;  %v12037_v30 = vcombine.low %v13927_v18, %v15580_v10  ;;  %v3505_v21 = vsel %vm14521_vm6, %v12209_v22, %v3504_v19  ;;  %v782_v15 = vld [vmem:[#allocation2 + $0xb4] sm:$0xe]  ;;  %v3410_v4 = vld [vmem:[#allocation2 + $0xa8] sm:$0xe] }
 0x14f   : > { %v12070_v41 = vcombine.low %v928_v9, %v931_v2  ;;  %v12023_v36 = vrot.slane %v781_v5, 9  ;;  %v936_v39 = vrot.slane %v934_v12, 4  ;;  %v937_v10 = vrot.slane %v15268_v49, 5  ;;  %v13933_v9 = vld [vmem:[#allocation2 + $0xb0] sm:$0x1] }
 0x150   : > { %v12210_v35 = vrot.slane %v3407_v8, 9  ;;  %v3514_v29 = vrot.slane %v13928_v13, 5  ;;  %v12211_v52 = vrot.slane %v3408_v34, 9  ;;  %v3521_v48 = vrot.slane %v13929_v55, 5  ;;  %v13935_v8 = vld [vmem:[#allocation2 + $0xc4] sm:$0xf] }
 0x151   : > { %3350 = vmatmul.mubr.bf16.gmra.mrb[56].mxu1 %v1325_v63  ;;  %v938_v49 = vsel %vm14521_vm6, %v936_v39, %v937_v10  ;;  %v12038_v56 = vcombine.low %v13930_v37, %v15602_v28  ;;  %v941_v19 = vrot.slane %v15305_v42, 5  ;;  %v3525_v1 = vrot.slane %v15523_v59, 5  ;;  %v3412_v34 = vld [vmem:[#allocation2 + $0xc0] sm:$0xe]  ;;  %v13937_v39 = vld [vmem:[#allocation2 + $0xac] sm:$0xf] }
 0x152   : > { %13587 = vmatmul.mubr.msk.bf16.gmra.mrb[52].mxu0 %vm1282_vm7, %v12220_v3  ;;  %3357 = vmatprep.mubr.bf16.mxu1 %v1393_v43  ;;  %v3511_v3 = vrot.slane %v15455_v46, 5  ;;  %v3518_v43 = vrot.slane %v15494_v20, 5  ;;  %v12224_v46 = vcombine.low %v3498_v62, %v3501_v38  ;;  %v935_v20 = vsel %vm14521_vm6, %v12023_v36, %v934_v12  ;;  %v13936_v36 = vld [vmem:[#allocation2 + $0xa8] sm:$0xf] }
 0x153   : > { %13590 = vmatprep.mubr.msk.bf16.mxu0 %vm1282_vm7, %v12221_v0  ;;  %v3508_v0 = vsel %vm14521_vm6, %v3506_v57, %v3507_v32  ;;  %v12071_v33 = vcombine.low %v935_v20, %v938_v49  ;;  %v12212_v28 = vrot.slane %v3409_v7, 9  ;;  %v12024_v54 = vrot.slane %v782_v15, 9  ;;  %v13932_v57 = vld [vmem:[#allocation2 + $0xa4] sm:$0x1] }
 0x154   : > { %v3513_v53 = vrot.slane %v3511_v3, 4  ;;  %v12225_v44 = vcombine.low %v3505_v21, %v3508_v0  ;;  %v3520_v47 = vrot.slane %v3518_v43, 4  ;;  %v3512_v6 = vsel %vm14521_vm6, %v12210_v35, %v3511_v3  ;;  %v3411_v0 = vld [vmem:[#allocation2 + $0xb4] sm:$0xe] }
 0x155   : > { %v1115_v63 = vpop.permute.xlu1 %1114  ;;  %v3519_v45 = vsel %vm14521_vm6, %v12211_v52, %v3518_v43  ;;  %v943_v14 = vrot.slane %v941_v19, 4  ;;  %v944_v59 = vrot.slane %v15311_v26, 5  ;;  %v3527_v22 = vrot.slane %v3525_v1, 4  ;;  %v13939_v52 = vld [vmem:[#allocation2 + $0xc8] sm:$0x1] }
 0x156   : > { %v1277_v58 = vpop.permute.xlu0 %1276  ;;  %v1333_v50 = vsel %vm1282_vm7, %v12037_v30, %v1115_v63  ;;  %v3515_v25 = vsel %vm14521_vm6, %v3513_v53, %v3514_v29  ;;  %v3522_v11 = vsel %vm14521_vm6, %v3520_v47, %v3521_v48  ;;  %v3528_v40 = vrot.slane %v13932_v57, 5  ;;  %v13934_v30 = vld [vmem:[#allocation2 + $0xb8] sm:$0xf]  ;;  %v13938_v53 = vld [vmem:[#allocation2 + $0xbc] sm:$0x1] }
 0x157   : > { %v1401_v60 = vsel %vm1282_vm7, %v12070_v41, %v1277_v58  ;;  %v3535_v2 = vrot.slane %v13933_v9, 5  ;;  %v12213_v12 = vrot.slane %v3410_v4, 9  ;;  %v942_v62 = vsel %vm14521_vm6, %v12024_v54, %v941_v19  ;;  %v3413_v19 = vld [vmem:[#allocation2 + $0xcc] sm:$0xe] }
 0x158   : > { %v945_v26 = vsel %vm14521_vm6, %v943_v14, %v944_v59  ;;  %v3526_v38 = vsel %vm14521_vm6, %v12212_v28, %v3525_v1  ;;  %v3529_v18 = vsel %vm14521_vm6, %v3527_v22, %v3528_v40  ;;  %v3539_v3 = vrot.slane %v13934_v30, 5  ;;  %v13941_v1 = vld [vmem:[#allocation2 + $0xd4] sm:$0x1] }
 0x159   : > { %3358 = vmatmul.mubr.bf16.gmra.mrb[60].mxu1 %v1329_v23  ;;  %v12226_v23 = vcombine.low %v3512_v6, %v3515_v25  ;;  %v3546_v41 = vrot.slane %v13935_v8, 5  ;;  %v12072_v58 = vcombine.low %v942_v62, %v945_v26  ;;  %v12228_v43 = vcombine.low %v3526_v38, %v3529_v18  ;;  %v13940_v25 = vld [vmem:[#allocation2 + $0xd0] sm:$0xf] }
 0x15a   : > { %13591 = vmatmul.mubr.msk.bf16.gmra.mrb[56].mxu0 %vm1282_vm7, %v12222_v17  ;;  %3365 = vmatprep.mubr.bf16.mxu1 %v1397_v24  ;;  %v13931_v17 = vld [vmem:[#allocation2 + $0xac] sm:$0xf]  ;;  %v12227_v24 = vcombine.low %v3519_v45, %v3522_v11  ;;  %v12039_v10 = vcombine.low %v13936_v36, %v13937_v39  ;;  %v3541_v35 = vrot.slane %v3539_v3, 4  ;;  %v3542_v13 = vrot.slane %v13938_v53, 5 }
 0x15b   : > { %13594 = vmatprep.mubr.msk.bf16.mxu0 %vm1282_vm7, %v12223_v16  ;;  %v3532_v31 = vrot.slane %v13931_v17, 5  ;;  %v3549_v47 = vrot.slane %v13939_v52, 5  ;;  %v3553_v37 = vrot.slane %v13940_v25, 5  ;;  %v12216_v45 = vrot.slane %v3413_v19, 9  ;;  %v13942_v17 = vld [vmem:[#allocation2 + $0xb4] sm:$0xf] }
 0x15c   : > { %v3543_v6 = vsel %vm14521_vm6, %v3541_v35, %v3542_v13 }
 0x15d   : > { %v3534_v5 = vrot.slane %v3532_v31, 4  ;;  %v3533_v63 = vsel %vm14521_vm6, %v12213_v12, %v3532_v31  ;;  %v3555_v11 = vrot.slane %v3553_v37, 4  ;;  %v13943_v31 = vld [vmem:[#allocation2 + $0xb8] sm:$0xf]  ;;  %v3554_v28 = vsel %vm14521_vm6, %v12216_v45, %v3553_v37 }
 0x15f   : > { %v3536_v21 = vsel %vm14521_vm6, %v3534_v5, %v3535_v2 }
 0x161   : > { %3366 = vmatmul.mubr.bf16.gmra.mrb[64].mxu1 %v1333_v50  ;;  %v12214_v50 = vrot.slane %v3411_v0, 9 }
 0x162   : > { %13595 = vmatmul.mubr.msk.bf16.gmra.mrb[60].mxu0 %vm1282_vm7, %v12224_v46  ;;  %3373 = vmatprep.mubr.bf16.mxu1 %v1401_v60  ;;  %v12229_v46 = vcombine.low %v3533_v63, %v3536_v21  ;;  %v3548_v60 = vrot.slane %v3546_v41, 4 }
 0x163   : > { %13598 = vmatprep.mubr.msk.bf16.mxu0 %vm1282_vm7, %v12225_v44  ;;  %v1117_v27 = vpop.permute.xlu1 %1116  ;;  %v12215_v44 = vrot.slane %v3412_v34, 9  ;;  %v3540_v49 = vsel %vm14521_vm6, %v12214_v50, %v3539_v3 }
 0x164   : > { %v1279_v16 = vpop.permute.xlu0 %1278  ;;  %v1337_v42 = vsel %vm1282_vm7, %v12038_v56, %v1117_v27  ;;  %v3550_v7 = vsel %vm14521_vm6, %v3548_v60, %v3549_v47  ;;  %v12230_v27 = vcombine.low %v3540_v49, %v3543_v6 }
 0x165   : > { %v1405_v32 = vsel %vm1282_vm7, %v12071_v33, %v1279_v16  ;;  %v3547_v56 = vsel %vm14521_vm6, %v12215_v44, %v3546_v41  ;;  %v3556_v33 = vrot.slane %v13941_v1, 5 }
 0x166   : > { %v12231_v15 = vcombine.low %v3547_v56, %v3550_v7 }
 0x167   : > { %v3557_v16 = vsel %vm14521_vm6, %v3555_v11, %v3556_v33 }
 0x168   : > { %v12232_v54 = vcombine.low %v3554_v28, %v3557_v16 }
 0x169   : > { %3374 = vmatmul.mubr.bf16.gmra.mrb[68].mxu1 %v1337_v42 }
 0x16a   : > { %13599 = vmatmul.mubr.msk.bf16.gmra.mrb[64].mxu0 %vm1282_vm7, %v12226_v23  ;;  %3381 = vmatprep.mubr.bf16.mxu1 %v1405_v32  ;;  %v12040_v23 = vcombine.low %v13942_v17, %v13943_v31 }
 0x16b   : > { %13602 = vmatprep.mubr.msk.bf16.mxu0 %vm1282_vm7, %v12227_v24 }
 0x170   : > { %v1281_v29 = vpop.permute.xlu0 %1280 }
 0x171   : > { %v1119_v55 = vpop.permute.xlu1 %1118  ;;  %v1409_v48 = vsel %vm1282_vm7, %v12072_v58, %v1281_v29 }
 0x172   : > { %13603 = vmatmul.mubr.msk.bf16.gmra.mrb[68].mxu0 %vm1282_vm7, %v12228_v43  ;;  %v1341_v20 = vsel %vm1282_vm7, %v12039_v10, %v1119_v55 }
 0x173   : > { %3382 = vmatmul.mubr.bf16.gmra.mrb[72].mxu1 %v1341_v20  ;;  %13606 = vmatprep.mubr.msk.bf16.mxu0 %vm1282_vm7, %v12229_v46 }
 0x174   : > { %3389 = vmatprep.mubr.bf16.mxu1 %v1409_v48 }
 0x17a   : > { %13607 = vmatmul.mubr.msk.bf16.gmra.mrb[72].mxu0 %vm1282_vm7, %v12230_v27 }
 0x17b   : > { %13610 = vmatprep.mubr.msk.bf16.mxu0 %vm1282_vm7, %v12231_v15 }
 0x17c   : > { %v1121_v4 = vpop.permute.xlu1 %1120 }
 0x17d   : > { %v1345_v42 = vsel %vm1282_vm7, %v12040_v23, %v1121_v4 }
 0x17e   : > { %3390 = vmatmul.mubr.bf16.gmra.mrb[76].mxu1 %v1345_v42 }
 0x182   : > { %13611 = vmatmul.mubr.msk.bf16.gmra.mrb[76].mxu0 %vm1282_vm7, %v12232_v54 }
 0x1a0   : > { %v12930_v14 = vpop.f32.mrb[0].mxu1 }
 0x1a1   : > { %v12931_v59 = vpop.f32.mrb[1].mxu1 }
 0x1a2   : > { %v15695_v24 = vadd.f32 %v12931_v59, %v12930_v14  ;;  %v12933_v22 = vpop.f32.mrb[2].mxu1 }
 0x1a3   : > { %v12934_v57 = vpop.f32.mrb[3].mxu1 }
 0x1a4   : > { %v12858_v40 = vpop.f32.mrb[0].mxu0  ;;  %v15697_v32 = vadd.f32 %v12934_v57, %v12933_v22 }
 0x1a5   : > { %v12859_v9 = vpop.f32.mrb[1].mxu0 }
 0x1a6   : > { %v12860_v2 = vadd.f32 %v12859_v9, %v12858_v40  ;;  %v12861_v12 = vpop.f32.mrb[2].mxu0 }
 0x1a7   : > { %v12862_v5 = vpop.f32.mrb[3].mxu0 }
 0x1a8   : > { %v12863_v62 = vadd.f32 %v12862_v5, %v12861_v12 }
 0x1af   : > { %v12936_v26 = vpop.f32.mrb[4].mxu1 }
 0x1b0   : > { %v12937_v38 = vpop.f32.mrb[5].mxu1 }
 0x1b1   : > { %v15699_v18 = vadd.f32 %v12937_v38, %v12936_v26  ;;  %v12939_v30 = vpop.f32.mrb[6].mxu1 }
 0x1b2   : > { %v12940_v3 = vpop.f32.mrb[7].mxu1 }
 0x1b3   : > { %v12864_v63 = vpop.f32.mrb[4].mxu0  ;;  %v15701_v21 = vadd.f32 %v12940_v3, %v12939_v30 }
 0x1b4   : > { %v12865_v0 = vpop.f32.mrb[5].mxu0 }
 0x1b5   : > { %v12866_v8 = vadd.f32 %v12865_v0, %v12864_v63  ;;  %v12867_v41 = vpop.f32.mrb[6].mxu0 }
 0x1b6   : > { %v12868_v58 = vpop.f32.mrb[7].mxu0 }
 0x1b7   : > { %v12869_v34 = vadd.f32 %v12868_v58, %v12867_v41 }
 0x1bd   : > { %v12942_v43 = vpop.f32.mrb[8].mxu1 }
 0x1be   : > { %v12943_v36 = vpop.f32.mrb[9].mxu1 }
 0x1bf   : > { %v15703_v39 = vadd.f32 %v12943_v36, %v12942_v43  ;;  %v12945_v10 = vpop.f32.mrb[10].mxu1 }
 0x1c0   : > { %v12870_v46 = vpop.f32.mrb[8].mxu0  ;;  %v12946_v50 = vpop.f32.mrb[11].mxu1 }
 0x1c1   : > { %v12871_v35 = vpop.f32.mrb[9].mxu0  ;;  %v15705_v53 = vadd.f32 %v12946_v50, %v12945_v10 }
 0x1c2   : > { %v12872_v13 = vadd.f32 %v12871_v35, %v12870_v46  ;;  %v12873_v29 = vpop.f32.mrb[10].mxu0 }
 0x1c3   : > { %v12874_v44 = vpop.f32.mrb[11].mxu0 }
 0x1c4   : > { %v12875_v60 = vadd.f32 %v12874_v44, %v12873_v29 }
 0x1ca   : > { %v12948_v52 = vpop.f32.mrb[12].mxu1 }
 0x1cb   : > { %v12949_v47 = vpop.f32.mrb[13].mxu1 }
 0x1cc   : > { %v15707_v55 = vadd.f32 %v12949_v47, %v12948_v52  ;;  %v12951_v48 = vpop.f32.mrb[14].mxu1 }
 0x1cd   : > { %v12876_v20 = vpop.f32.mrb[12].mxu0  ;;  %v12952_v49 = vpop.f32.mrb[15].mxu1 }
 0x1ce   : > { %v12877_v6 = vpop.f32.mrb[13].mxu0  ;;  %v15709_v25 = vadd.f32 %v12952_v49, %v12951_v48 }
 0x1cf   : > { %v12878_v37 = vadd.f32 %v12877_v6, %v12876_v20  ;;  %v12879_v56 = vpop.f32.mrb[14].mxu0 }
 0x1d0   : > { %v12880_v7 = vpop.f32.mrb[15].mxu0 }
 0x1d1   : > { %v12881_v19 = vadd.f32 %v12880_v7, %v12879_v56 }
 0x1d2   : > { %v12970_v27 = vpop.f32.mrb[16].mxu1 }
 0x1d3   : > { %v12971_v1 = vpop.f32.mrb[17].mxu1 }
 0x1d4   : > { %v12972_v33 = vadd.f32 %v12971_v1, %v12970_v27  ;;  %v12973_v15 = vpop.f32.mrb[18].mxu1 }
 0x1d5   : > { %v12974_v45 = vpop.f32.mrb[19].mxu1 }
 0x1d6   : > { %v12975_v11 = vadd.f32 %v12974_v45, %v12973_v15  ;;  %v15711_v17 = vadd.f32 %v12972_v33, %v12860_v2 }
 0x1d8   : > { %v15713_v31 = vadd.f32 %v12975_v11, %v12863_v62  ;;  %v12882_v23 = vpop.f32.mrb[16].mxu0 }
 0x1d9   : > { %v12883_v28 = vpop.f32.mrb[17].mxu0 }
 0x1da   : > { %v12884_v16 = vadd.f32 %v12883_v28, %v12882_v23  ;;  %v12885_v4 = vpop.f32.mrb[18].mxu0 }
 0x1db   : > { %v12886_v42 = vpop.f32.mrb[19].mxu0 }
 0x1dc   : > { %v12976_v54 = vpop.f32.mrb[20].mxu1  ;;  %v12887_v14 = vadd.f32 %v12886_v42, %v12885_v4 }
 0x1dd   : > { %v12977_v59 = vpop.f32.mrb[21].mxu1 }
 0x1de   : > { %v12978_v22 = vadd.f32 %v12977_v59, %v12976_v54  ;;  %v12979_v57 = vpop.f32.mrb[22].mxu1 }
 0x1df   : > { %v12980_v40 = vpop.f32.mrb[23].mxu1 }
 0x1e0   : > { %v12981_v9 = vadd.f32 %v12980_v40, %v12979_v57  ;;  %v15715_v12 = vadd.f32 %v12978_v22, %v12866_v8 }
 0x1e2   : > { %v15717_v5 = vadd.f32 %v12981_v9, %v12869_v34 }
 0x1e4   : > { %v12982_v2 = vpop.f32.mrb[24].mxu1 }
 0x1e5   : > { %v12888_v26 = vpop.f32.mrb[20].mxu0  ;;  %v12983_v62 = vpop.f32.mrb[25].mxu1 }
 0x1e6   : > { %v12889_v38 = vpop.f32.mrb[21].mxu0  ;;  %v12984_v30 = vadd.f32 %v12983_v62, %v12982_v2  ;;  %v12985_v3 = vpop.f32.mrb[26].mxu1 }
 0x1e7   : > { %v12890_v63 = vadd.f32 %v12889_v38, %v12888_v26  ;;  %v12891_v0 = vpop.f32.mrb[22].mxu0  ;;  %v12986_v41 = vpop.f32.mrb[27].mxu1 }
 0x1e8   : > { %v12892_v58 = vpop.f32.mrb[23].mxu0  ;;  %v12987_v43 = vadd.f32 %v12986_v41, %v12985_v3  ;;  %v15719_v36 = vadd.f32 %v12984_v30, %v12872_v13 }
 0x1e9   : > { %v12893_v10 = vadd.f32 %v12892_v58, %v12891_v0 }
 0x1ea   : > { %v15721_v46 = vadd.f32 %v12987_v43, %v12875_v60 }
 0x1ec   : > { %v12988_v8 = vpop.f32.mrb[28].mxu1 }
 0x1ed   : > { %v12894_v50 = vpop.f32.mrb[24].mxu0  ;;  %v12989_v34 = vpop.f32.mrb[29].mxu1 }
 0x1ee   : > { %v12895_v35 = vpop.f32.mrb[25].mxu0  ;;  %v12990_v29 = vadd.f32 %v12989_v34, %v12988_v8  ;;  %v12991_v44 = vpop.f32.mrb[30].mxu1 }
 0x1ef   : > { %v12896_v52 = vadd.f32 %v12895_v35, %v12894_v50  ;;  %v12897_v47 = vpop.f32.mrb[26].mxu0  ;;  %v12992_v48 = vpop.f32.mrb[31].mxu1 }
 0x1f0   : > { %v12898_v20 = vpop.f32.mrb[27].mxu0  ;;  %v12993_v49 = vadd.f32 %v12992_v48, %v12991_v44  ;;  %v15723_v6 = vadd.f32 %v12990_v29, %v12878_v37 }
 0x1f1   : > { %v12899_v56 = vadd.f32 %v12898_v20, %v12897_v47 }
 0x1f2   : > { %v15725_v7 = vadd.f32 %v12993_v49, %v12881_v19 }
 0x1f4   : > { %v12994_v13 = vpop.f32.mrb[32].mxu1 }
 0x1f5   : > { %v12900_v27 = vpop.f32.mrb[28].mxu0  ;;  %v12995_v60 = vpop.f32.mrb[33].mxu1 }
 0x1f6   : > { %v12901_v1 = vpop.f32.mrb[29].mxu0  ;;  %v12996_v33 = vadd.f32 %v12995_v60, %v12994_v13  ;;  %v12997_v15 = vpop.f32.mrb[34].mxu1 }
 0x1f7   : > { %v12902_v45 = vadd.f32 %v12901_v1, %v12900_v27  ;;  %v12903_v11 = vpop.f32.mrb[30].mxu0  ;;  %v12998_v23 = vpop.f32.mrb[35].mxu1 }
 0x1f8   : > { %v12904_v28 = vpop.f32.mrb[31].mxu0  ;;  %v12999_v4 = vadd.f32 %v12998_v23, %v12997_v15  ;;  %v15727_v42 = vadd.f32 %v12996_v33, %v12884_v16 }
 0x1f9   : > { %v12905_v54 = vadd.f32 %v12904_v28, %v12903_v11 }
 0x1fa   : > { %v15729_v59 = vadd.f32 %v12999_v4, %v12887_v14 }
 0x1fc   : > { %v13000_v37 = vpop.f32.mrb[36].mxu1 }
 0x1fd   : > { %v12906_v22 = vpop.f32.mrb[32].mxu0  ;;  %v13001_v19 = vpop.f32.mrb[37].mxu1 }
 0x1fe   : > { %v12907_v57 = vpop.f32.mrb[33].mxu0  ;;  %v13002_v40 = vadd.f32 %v13001_v19, %v13000_v37  ;;  %v13003_v9 = vpop.f32.mrb[38].mxu1 }
 0x1ff   : > { %v12908_v2 = vadd.f32 %v12907_v57, %v12906_v22  ;;  %v12909_v26 = vpop.f32.mrb[34].mxu0  ;;  %v13004_v62 = vpop.f32.mrb[39].mxu1 }
 0x200   : > { %v12910_v38 = vpop.f32.mrb[35].mxu0  ;;  %v13005_v30 = vadd.f32 %v13004_v62, %v13003_v9  ;;  %v15731_v3 = vadd.f32 %v13002_v40, %v12890_v63 }
 0x201   : > { %v12911_v0 = vadd.f32 %v12910_v38, %v12909_v26 }
 0x202   : > { %v15733_v41 = vadd.f32 %v13005_v30, %v12893_v10 }
 0x204   : > { %v13006_v16 = vpop.f32.mrb[40].mxu1 }
 0x205   : > { %v12912_v58 = vpop.f32.mrb[36].mxu0  ;;  %v13007_v14 = vpop.f32.mrb[41].mxu1 }
 0x206   : > { %v12913_v43 = vpop.f32.mrb[37].mxu0  ;;  %v13008_v8 = vadd.f32 %v13007_v14, %v13006_v16  ;;  %v13009_v50 = vpop.f32.mrb[42].mxu1 }
 0x207   : > { %v12914_v34 = vadd.f32 %v12913_v43, %v12912_v58  ;;  %v12915_v35 = vpop.f32.mrb[38].mxu0  ;;  %v13010_v29 = vpop.f32.mrb[43].mxu1 }
 0x208   : > { %v12916_v44 = vpop.f32.mrb[39].mxu0  ;;  %v13011_v47 = vadd.f32 %v13010_v29, %v13009_v50  ;;  %v15735_v48 = vadd.f32 %v13008_v8, %v12896_v52 }
 0x209   : > { %v12917_v20 = vadd.f32 %v12916_v44, %v12915_v35 }
 0x20a   : > { %v15737_v49 = vadd.f32 %v13011_v47, %v12899_v56 }
 0x20c   : > { %v13012_v63 = vpop.f32.mrb[44].mxu1 }
 0x20d   : > { %v12918_v13 = vpop.f32.mrb[40].mxu0  ;;  %v13013_v10 = vpop.f32.mrb[45].mxu1 }
 0x20e   : > { %v12919_v27 = vpop.f32.mrb[41].mxu0  ;;  %v13014_v60 = vadd.f32 %v13013_v10, %v13012_v63  ;;  %v13015_v1 = vpop.f32.mrb[46].mxu1 }
 0x20f   : > { %v15739_v33 = vadd.f32 %v12919_v27, %v12918_v13  ;;  %v12921_v15 = vpop.f32.mrb[42].mxu0  ;;  %v13016_v11 = vpop.f32.mrb[47].mxu1 }
 0x210   : > { %v12922_v23 = vpop.f32.mrb[43].mxu0  ;;  %v13017_v28 = vadd.f32 %v13016_v11, %v13015_v1  ;;  %v15741_v4 = vadd.f32 %v13014_v60, %v12902_v45 }
 0x211   : > { %v15743_v37 = vadd.f32 %v12922_v23, %v12921_v15 }
 0x212   : > { %v15745_v52 = vadd.f32 %v13017_v28, %v12905_v54 }
 0x214   : > { %v13018_v56 = vpop.f32.mrb[48].mxu1 }
 0x215   : > { %v12924_v22 = vpop.f32.mrb[44].mxu0  ;;  %v13019_v19 = vpop.f32.mrb[49].mxu1 }
 0x216   : > { %v12925_v57 = vpop.f32.mrb[45].mxu0  ;;  %v13020_v40 = vadd.f32 %v13019_v19, %v13018_v56  ;;  %v13021_v9 = vpop.f32.mrb[50].mxu1 }
 0x217   : > { %v15747_v26 = vadd.f32 %v12925_v57, %v12924_v22  ;;  %v12927_v62 = vpop.f32.mrb[46].mxu0  ;;  %v13022_v38 = vpop.f32.mrb[51].mxu1 }
 0x218   : > { %v12928_v30 = vpop.f32.mrb[47].mxu0  ;;  %v13023_v16 = vadd.f32 %v13022_v38, %v13021_v9  ;;  %v15749_v58 = vadd.f32 %v13020_v40, %v12908_v2 }
 0x219   : > { %v15751_v45 = vadd.f32 %v12928_v30, %v12927_v62 }
 0x21a   : > { %v15753_v14 = vadd.f32 %v13023_v16, %v12911_v0 }
 0x21c   : > { %v13024_v54 = vpop.f32.mrb[52].mxu1 }
 0x21d   : > { %v13584_v43 = vpop.f32.mrb[48].mxu0  ;;  %v13025_v8 = vpop.f32.mrb[53].mxu1 }
 0x21e   : > { %v3849_v50 = vadd.f32 %v13584_v43, %v15715_v12  ;;  %v3720_v35 = vpop.f32.mrb[49].mxu0  ;;  %v13026_v29 = vadd.f32 %v13025_v8, %v13024_v54  ;;  %v13027_v44 = vpop.f32.mrb[54].mxu1 }
 0x21f   : > { %v3847_v47 = vadd.f32 %v3720_v35, %v15711_v17  ;;  %v13585_v63 = vpop.f32.mrb[50].mxu0  ;;  %v13028_v13 = vpop.f32.mrb[55].mxu1 }
 0x220   : > { %v3850_v10 = vadd.f32 %v13585_v63, %v15717_v5  ;;  %v3723_v2 = vpop.f32.mrb[51].mxu0  ;;  %v13029_v27 = vadd.f32 %v13028_v13, %v13027_v44  ;;  %v15758_v60 = vadd.f32 %v13026_v29, %v12914_v34  ;;  %v3881_v1 = vmax.f32 %v3849_v50, 0.0 }
 0x221   : > { %v3848_v0 = vadd.f32 %v3723_v2, %v15713_v31  ;;  %v3879_v12 = vmax.f32 %v3847_v47, 0.0 }
 0x222   : > { %v3882_v15 = vmax.f32 %v3850_v10, 0.0  ;;  %v15761_v11 = vadd.f32 %v13029_v27, %v12917_v20 }
 0x223   : > { %v3880_v23 = vmax.f32 %v3848_v0, 0.0 }
 0x224   : > { %v3912_v28 = vpack.c.bf16 %v3882_v15, %v3881_v1  ;;  %v13030_v17 = vpop.f32.mrb[56].mxu1 }
 0x225   : > { %v3911_v56 = vpack.c.bf16 %v3880_v23, %v3879_v12  ;;  %v13588_v22 = vpop.f32.mrb[52].mxu0  ;;  %v13031_v19 = vpop.f32.mrb[57].mxu1 }
 0x226   : > { %v3935_v5 = vshrl.u32 %v3912_v28, 16  ;;  %v3853_v57 = vadd.f32 %v13588_v22, %v15723_v6  ;;  %v3736_v34 = vpop.f32.mrb[53].mxu0  ;;  %v13032_v40 = vadd.f32 %v13031_v19, %v13030_v17  ;;  %v13033_v9 = vpop.f32.mrb[58].mxu1  ;;  %v3938_v31 = vshll.u32 %v3912_v28, 16 }
 0x227   : > { %v3928_v20 = vshrl.u32 %v3911_v56, 16  ;;  %v3931_v38 = vshll.u32 %v3911_v56, 16  ;;  %v3851_v30 = vadd.f32 %v3736_v34, %v15719_v36  ;;  %v13589_v16 = vpop.f32.mrb[54].mxu0  ;;  %v13034_v54 = vpop.f32.mrb[59].mxu1 }
 0x228   : > { %v3937_v43 = vrot.slane %v3935_v5, 7  ;;  %v3885_v8 = vmax.f32 %v3853_v57, 0.0  ;;  %v3854_v50 = vadd.f32 %v13589_v16, %v15725_v7  ;;  %v3739_v35 = vpop.f32.mrb[55].mxu0  ;;  %v13035_v6 = vadd.f32 %v13034_v54, %v13033_v9 }
 0x229   : > { %v3930_v29 = vrot.slane %v3928_v20, 7  ;;  %v3883_v44 = vmax.f32 %v3851_v30, 0.0  ;;  %v3852_v47 = vadd.f32 %v3739_v35, %v15721_v46  ;;  %v15772_v63 = vadd.f32 %v13032_v40, %v15739_v33 }
 0x22a   : > { %v3940_v13 = vor.u32 %v3938_v31, %v3937_v43  ;;  %v4091_v10 = vsel %vm15764_vm10, %v3937_v43, 0  ;;  %v3886_v36 = vmax.f32 %v3854_v50, 0.0  ;;  %v15777_v2 = vadd.f32 %v13035_v6, %v15743_v37 }
 0x22b   : > { %v12258_v27 = vcombine.low %v4091_v10, %v4091_v10  ;;  %v3933_v0 = vor.u32 %v3931_v38, %v3930_v29  ;;  %v4090_v7 = vsel %vm15764_vm10, %v3930_v29, 0  ;;  %v3884_v1 = vmax.f32 %v3852_v47, 0.0 }
 0x22c   : > { %v4075_v46 = vsel %vm15764_vm10, 0, %v3940_v13  ;;  %v12255_v15 = vcombine.low %v4090_v7, %v4090_v7  ;;  %v3914_v33 = vpack.c.bf16 %v3886_v36, %v3885_v8  ;;  %v13036_v12 = vpop.f32.mrb[60].mxu1 }
 0x22d   : > { %v12256_v23 = vcombine.low %v4075_v46, %v4075_v46  ;;  %v12257_v28 = vcombine.high %v4075_v46, %v4075_v46  ;;  %4287 = vst.msk [vmem:[#allocation2 + $0x20] sm:$0xf] %vm227_vm0, %v12258_v27  ;;  %v4074_v37 = vsel %vm15764_vm10, 0, %v3933_v0  ;;  %v3913_v17 = vpack.c.bf16 %v3884_v1, %v3883_v44  ;;  %v13592_v56 = vpop.f32.mrb[56].mxu0  ;;  %v13037_v22 = vpop.f32.mrb[61].mxu1 }
 0x22e   : > { %v12253_v19 = vcombine.low %v4074_v37, %v4074_v37  ;;  %v12254_v5 = vcombine.high %v4074_v37, %v4074_v37  ;;  %4284 = vst.msk [vmem:[#allocation2 + $0x14] sm:$0xf] %vm227_vm0, %v12255_v15  ;;  %v3949_v57 = vshrl.u32 %v3914_v33, 16  ;;  %v3952_v34 = vshll.u32 %v3914_v33, 16  ;;  %v3752_v40 = vpop.f32.mrb[57].mxu0  ;;  %v13039_v9 = vpop.f32.mrb[62].mxu1 }
 0x22f   : > { %4285 = vst.msk [vmem:[#allocation2 + $0x18] sm:$0xf] %vm227_vm0, %v12256_v23  ;;  %4286 = vst.msk [vmem:[#allocation2 + $0x1c] sm:$0xf] %vm227_vm0, %v12257_v28  ;;  %v3942_v31 = vshrl.u32 %v3913_v17, 16  ;;  %v3945_v20 = vshll.u32 %v3913_v17, 16  ;;  %v3857_v38 = vadd.f32 %v13592_v56, %v15731_v3  ;;  %v3855_v30 = vadd.f32 %v3752_v40, %v15727_v42 }
 0x230   : > { %v13593_v16 = vpop.f32.mrb[58].mxu0  ;;  %v13040_v54 = vpop.f32.mrb[63].mxu1  ;;  %4282 = vst.msk [vmem:[#allocation2 + $0xc] sm:$0xf] %vm227_vm0, %v12253_v19  ;;  %4283 = vst.msk [vmem:[#allocation2 + $0x10] sm:$0xf] %vm227_vm0, %v12254_v5  ;;  %v13038_v35 = vadd.f32 %v13037_v22, %v13036_v12 }
 0x231   : > { %v3951_v43 = vrot.slane %v3949_v57, 7  ;;  %v3858_v8 = vadd.f32 %v13593_v16, %v15733_v41  ;;  %v3755_v50 = vpop.f32.mrb[59].mxu0  ;;  %v13041_v6 = vadd.f32 %v13040_v54, %v13039_v9  ;;  %v3944_v29 = vrot.slane %v3942_v31, 7 }
 0x232   : > { %v3889_v44 = vmax.f32 %v3857_v38, 0.0  ;;  %v3887_v47 = vmax.f32 %v3855_v30, 0.0  ;;  %v3856_v13 = vadd.f32 %v3755_v50, %v15729_v59  ;;  %v15798_v36 = vadd.f32 %v13038_v35, %v15747_v26 }
 0x233   : > { %v3954_v3 = vor.u32 %v3952_v34, %v3951_v43  ;;  %v4093_v42 = vsel %vm15764_vm10, %v3951_v43, 0  ;;  %v3890_v10 = vmax.f32 %v3858_v8, 0.0  ;;  %v3947_v0 = vor.u32 %v3945_v20, %v3944_v29 }
 0x234   : > { %v12264_v27 = vcombine.low %v4093_v42, %v4093_v42  ;;  %v4092_v41 = vsel %vm15764_vm10, %v3944_v29, 0  ;;  %v3888_v7 = vmax.f32 %v3856_v13, 0.0  ;;  %v13042_v59 = vpop.f32.mrb[64].mxu1  ;;  %v15805_v33 = vadd.f32 %v13041_v6, %v15751_v45 }
 0x235   : > { %v4077_v1 = vsel %vm15764_vm10, 0, %v3954_v3  ;;  %v12261_v46 = vcombine.low %v4092_v41, %v4092_v41  ;;  %v3916_v15 = vpack.c.bf16 %v3890_v10, %v3889_v44  ;;  %v4076_v26 = vsel %vm15764_vm10, 0, %v3947_v0  ;;  %v13596_v37 = vpop.f32.mrb[60].mxu0  ;;  %v13043_v17 = vpop.f32.mrb[65].mxu1 }
 0x236   : > { %v12262_v12 = vcombine.low %v4077_v1, %v4077_v1  ;;  %v12263_v23 = vcombine.high %v4077_v1, %v4077_v1  ;;  %4293 = vst.msk [vmem:[#allocation2 + $0x38] sm:$0xf] %vm227_vm0, %v12264_v27  ;;  %v3915_v28 = vpack.c.bf16 %v3888_v7, %v3887_v47  ;;  %v12259_v56 = vcombine.low %v4076_v26, %v4076_v26  ;;  %v3768_v57 = vpop.f32.mrb[61].mxu0  ;;  %v13045_v34 = vpop.f32.mrb[66].mxu1 }
 0x237   : > { %v12260_v22 = vcombine.high %v4076_v26, %v4076_v26  ;;  %4290 = vst.msk [vmem:[#allocation2 + $0x2c] sm:$0xf] %vm227_vm0, %v12261_v46  ;;  %v3963_v19 = vshrl.u32 %v3916_v15, 16  ;;  %v3966_v5 = vshll.u32 %v3916_v15, 16  ;;  %v3861_v9 = vadd.f32 %v13596_v37, %v15741_v4  ;;  %v13597_v20 = vpop.f32.mrb[62].mxu0  ;;  %v13046_v38 = vpop.f32.mrb[67].mxu1 }
 0x238   : > { %4291 = vst.msk [vmem:[#allocation2 + $0x30] sm:$0xf] %vm227_vm0, %v12262_v12  ;;  %4292 = vst.msk [vmem:[#allocation2 + $0x34] sm:$0xf] %vm227_vm0, %v12263_v23  ;;  %v3956_v45 = vshrl.u32 %v3915_v28, 16  ;;  %v3959_v40 = vshll.u32 %v3915_v28, 16  ;;  %v3859_v31 = vadd.f32 %v3768_v57, %v15735_v48  ;;  %v3862_v16 = vadd.f32 %v13597_v20, %v15745_v52 }
 0x239   : > { %4288 = vst.msk [vmem:[#allocation2 + $0x24] sm:$0xf] %vm227_vm0, %v12259_v56  ;;  %4289 = vst.msk [vmem:[#allocation2 + $0x28] sm:$0xf] %vm227_vm0, %v12260_v22  ;;  %v3965_v30 = vrot.slane %v3963_v19, 7  ;;  %v3771_v54 = vpop.f32.mrb[63].mxu0  ;;  %v13044_v43 = vadd.f32 %v13043_v17, %v13042_v59  ;;  %v13047_v8 = vadd.f32 %v13046_v38, %v13045_v34 }
 0x23a   : > { %v3958_v50 = vrot.slane %v3956_v45, 7  ;;  %v3893_v35 = vmax.f32 %v3861_v9, 0.0  ;;  %v3891_v6 = vmax.f32 %v3859_v31, 0.0  ;;  %v3860_v29 = vadd.f32 %v3771_v54, %v15737_v49 }
 0x23b   : > { %v3968_v4 = vor.u32 %v3966_v5, %v3965_v30  ;;  %v4095_v48 = vsel %vm15764_vm10, %v3965_v30, 0  ;;  %v3894_v44 = vmax.f32 %v3862_v16, 0.0  ;;  %v15822_v47 = vadd.f32 %v13044_v43, %v15695_v24 }
 0x23c   : > { %v12270_v13 = vcombine.low %v4095_v48, %v4095_v48  ;;  %v3961_v3 = vor.u32 %v3959_v40, %v3958_v50  ;;  %v4094_v52 = vsel %vm15764_vm10, %v3958_v50, 0  ;;  %v3892_v42 = vmax.f32 %v3860_v29, 0.0  ;;  %v13048_v49 = vpop.f32.mrb[68].mxu1 }
 0x23d   : > { %v4079_v10 = vsel %vm15764_vm10, 0, %v3968_v4  ;;  %v12267_v27 = vcombine.low %v4094_v52, %v4094_v52  ;;  %v3918_v0 = vpack.c.bf16 %v3894_v44, %v3893_v35  ;;  %v15829_v41 = vadd.f32 %v13047_v8, %v15697_v32  ;;  %v13600_v15 = vpop.f32.mrb[64].mxu0  ;;  %v13049_v59 = vpop.f32.mrb[69].mxu1 }
 0x23e   : > { %v12268_v7 = vcombine.low %v4079_v10, %v4079_v10  ;;  %v12269_v1 = vcombine.high %v4079_v10, %v4079_v10  ;;  %4299 = vst.msk [vmem:[#allocation2 + $0x50] sm:$0xf] %vm227_vm0, %v12270_v13  ;;  %v4078_v24 = vsel %vm15764_vm10, 0, %v3961_v3  ;;  %v3917_v46 = vpack.c.bf16 %v3892_v42, %v3891_v6  ;;  %v3784_v37 = vpop.f32.mrb[65].mxu0  ;;  %v13051_v17 = vpop.f32.mrb[70].mxu1 }
 0x23f   : > { %v12265_v12 = vcombine.low %v4078_v24, %v4078_v24  ;;  %v12266_v23 = vcombine.high %v4078_v24, %v4078_v24  ;;  %4296 = vst.msk [vmem:[#allocation2 + $0x44] sm:$0xf] %vm227_vm0, %v12267_v27  ;;  %v3977_v26 = vshrl.u32 %v3918_v0, 16  ;;  %v3980_v28 = vshll.u32 %v3918_v0, 16  ;;  %v13601_v5 = vpop.f32.mrb[66].mxu0  ;;  %v13052_v57 = vpop.f32.mrb[71].mxu1 }
 0x240   : > { %4297 = vst.msk [vmem:[#allocation2 + $0x48] sm:$0xf] %vm227_vm0, %v12268_v7  ;;  %4298 = vst.msk [vmem:[#allocation2 + $0x4c] sm:$0xf] %vm227_vm0, %v12269_v1  ;;  %v3970_v32 = vshrl.u32 %v3917_v46, 16  ;;  %v3973_v56 = vshll.u32 %v3917_v46, 16  ;;  %v3865_v22 = vadd.f32 %v13600_v15, %v15758_v60  ;;  %v3863_v19 = vadd.f32 %v3784_v37, %v15749_v58 }
 0x241   : > { %4294 = vst.msk [vmem:[#allocation2 + $0x3c] sm:$0xf] %vm227_vm0, %v12265_v12  ;;  %4295 = vst.msk [vmem:[#allocation2 + $0x40] sm:$0xf] %vm227_vm0, %v12266_v23  ;;  %v3979_v34 = vrot.slane %v3977_v26, 7  ;;  %v3866_v45 = vadd.f32 %v13601_v5, %v15761_v11  ;;  %v3787_v40 = vpop.f32.mrb[67].mxu0  ;;  %v13050_v9 = vadd.f32 %v13049_v59, %v13048_v49  ;;  %v13053_v31 = vadd.f32 %v13052_v57, %v13051_v17 }
 0x242   : > { %v3972_v20 = vrot.slane %v3970_v32, 7  ;;  %v3897_v38 = vmax.f32 %v3865_v22, 0.0  ;;  %v3895_v30 = vmax.f32 %v3863_v19, 0.0  ;;  %v3864_v16 = vadd.f32 %v3787_v40, %v15753_v14 }
 0x243   : > { %v3982_v60 = vor.u32 %v3980_v28, %v3979_v34  ;;  %v4097_v58 = vsel %vm15764_vm10, %v3979_v34, 0  ;;  %v3898_v54 = vmax.f32 %v3866_v45, 0.0  ;;  %v15846_v43 = vadd.f32 %v13050_v9, %v15699_v18 }
 0x244   : > { %v12276_v8 = vcombine.low %v4097_v58, %v4097_v58  ;;  %v3975_v50 = vor.u32 %v3973_v56, %v3972_v20  ;;  %v4096_v11 = vsel %vm15764_vm10, %v3972_v20, 0  ;;  %v3896_v35 = vmax.f32 %v3864_v16, 0.0 }
 0x245   : > { %v4081_v6 = vsel %vm15764_vm10, 0, %v3982_v60  ;;  %v12273_v29 = vcombine.low %v4096_v11, %v4096_v11  ;;  %v3920_v4 = vpack.c.bf16 %v3898_v54, %v3897_v38  ;;  %v15853_v14 = vadd.f32 %v13053_v31, %v15701_v21  ;;  %v13604_v3 = vpop.f32.mrb[68].mxu0 }
 0x246   : > { %v12274_v48 = vcombine.low %v4081_v6, %v4081_v6  ;;  %v12275_v44 = vcombine.high %v4081_v6, %v4081_v6  ;;  %4305 = vst.msk [vmem:[#allocation2 + $0x68] sm:$0xf] %vm227_vm0, %v12276_v8  ;;  %v4080_v18 = vsel %vm15764_vm10, 0, %v3975_v50  ;;  %v3919_v13 = vpack.c.bf16 %v3896_v35, %v3895_v30  ;;  %v3800_v27 = vpop.f32.mrb[69].mxu0  ;;  %v13054_v0 = vpop.f32.mrb[72].mxu1 }
 0x247   : > { %v12271_v52 = vcombine.low %v4080_v18, %v4080_v18  ;;  %v12272_v42 = vcombine.high %v4080_v18, %v4080_v18  ;;  %4302 = vst.msk [vmem:[#allocation2 + $0x5c] sm:$0xf] %vm227_vm0, %v12273_v29  ;;  %v3991_v10 = vshrl.u32 %v3920_v4, 16  ;;  %v3994_v21 = vshll.u32 %v3920_v4, 16  ;;  %v13605_v24 = vpop.f32.mrb[70].mxu0  ;;  %v13055_v46 = vpop.f32.mrb[73].mxu1 }
 0x248   : > { %4303 = vst.msk [vmem:[#allocation2 + $0x60] sm:$0xf] %vm227_vm0, %v12274_v48  ;;  %4304 = vst.msk [vmem:[#allocation2 + $0x64] sm:$0xf] %vm227_vm0, %v12275_v44  ;;  %v3984_v49 = vshrl.u32 %v3919_v13, 16  ;;  %v3869_v7 = vadd.f32 %v13604_v3, %v15798_v36  ;;  %v3867_v1 = vadd.f32 %v3800_v27, %v15772_v63  ;;  %v3987_v59 = vshll.u32 %v3919_v13, 16 }
 0x249   : > { %4300 = vst.msk [vmem:[#allocation2 + $0x54] sm:$0xf] %vm227_vm0, %v12271_v52  ;;  %4301 = vst.msk [vmem:[#allocation2 + $0x58] sm:$0xf] %vm227_vm0, %v12272_v42  ;;  %v3993_v15 = vrot.slane %v3991_v10, 7  ;;  %v3870_v12 = vadd.f32 %v13605_v24, %v15805_v33  ;;  %v3803_v23 = vpop.f32.mrb[71].mxu0  ;;  %v13056_v26 = vadd.f32 %v13055_v46, %v13054_v0 }
 0x24a   : > { %v13057_v28 = vpop.f32.mrb[74].mxu1  ;;  %v3986_v37 = vrot.slane %v3984_v49, 7  ;;  %v3901_v17 = vmax.f32 %v3869_v7, 0.0  ;;  %v3899_v32 = vmax.f32 %v3867_v1, 0.0  ;;  %v3868_v36 = vadd.f32 %v3803_v23, %v15777_v2 }
 0x24b   : > { %v13058_v56 = vpop.f32.mrb[75].mxu1  ;;  %v3996_v63 = vor.u32 %v3994_v21, %v3993_v15  ;;  %v4099_v22 = vsel %vm15764_vm10, %v3993_v15, 0  ;;  %v3902_v19 = vmax.f32 %v3870_v12, 0.0  ;;  %v3384_v2 = vadd.f32 %v13056_v26, %v15703_v39 }
 0x24c   : > { %v13059_v5 = vadd.f32 %v13058_v56, %v13057_v28  ;;  %v12282_v57 = vcombine.low %v4099_v22, %v4099_v22  ;;  %v3989_v34 = vor.u32 %v3987_v59, %v3986_v37  ;;  %v4098_v33 = vsel %vm15764_vm10, %v3986_v37, 0 }
 0x24d   : > { %v3900_v45 = vmax.f32 %v3868_v36, 0.0  ;;  %v4083_v40 = vsel %vm15764_vm10, 0, %v3996_v63  ;;  %v12279_v9 = vcombine.low %v4098_v33, %v4098_v33  ;;  %v3922_v31 = vpack.c.bf16 %v3902_v19, %v3901_v17  ;;  %v13608_v60 = vpop.f32.mrb[72].mxu0 }
 0x24e   : > { %v12280_v20 = vcombine.low %v4083_v40, %v4083_v40  ;;  %v12281_v38 = vcombine.high %v4083_v40, %v4083_v40  ;;  %4311 = vst.msk [vmem:[#allocation2 + $0x80] sm:$0xf] %vm227_vm0, %v12282_v57  ;;  %v4082_v30 = vsel %vm15764_vm10, 0, %v3989_v34  ;;  %v3816_v50 = vpop.f32.mrb[73].mxu0  ;;  %v3873_v11 = vadd.f32 %v13608_v60, %v15846_v43 }
 0x24f   : > { %v3921_v16 = vpack.c.bf16 %v3900_v45, %v3899_v32  ;;  %v12277_v58 = vcombine.low %v4082_v30, %v4082_v30  ;;  %v12278_v54 = vcombine.high %v4082_v30, %v4082_v30  ;;  %4308 = vst.msk [vmem:[#allocation2 + $0x74] sm:$0xf] %vm227_vm0, %v12279_v9  ;;  %v4005_v8 = vshrl.u32 %v3922_v31, 16  ;;  %v13609_v6 = vpop.f32.mrb[74].mxu0 }
 0x250   : > { %4309 = vst.msk [vmem:[#allocation2 + $0x78] sm:$0xf] %vm227_vm0, %v12280_v20  ;;  %4310 = vst.msk [vmem:[#allocation2 + $0x7c] sm:$0xf] %vm227_vm0, %v12281_v38  ;;  %v3871_v35 = vadd.f32 %v3816_v50, %v15822_v47  ;;  %v4008_v4 = vshll.u32 %v3922_v31, 16  ;;  %v3874_v48 = vadd.f32 %v13609_v6, %v15853_v14  ;;  %v3819_v44 = vpop.f32.mrb[75].mxu0  ;;  %v3387_v18 = vadd.f32 %v13059_v5, %v15705_v53 }
 0x251   : > { %v3998_v39 = vshrl.u32 %v3921_v16, 16  ;;  %4306 = vst.msk [vmem:[#allocation2 + $0x6c] sm:$0xf] %vm227_vm0, %v12277_v58  ;;  %4307 = vst.msk [vmem:[#allocation2 + $0x70] sm:$0xf] %vm227_vm0, %v12278_v54  ;;  %v4007_v29 = vrot.slane %v4005_v8, 7  ;;  %v3872_v42 = vadd.f32 %v3819_v44, %v15829_v41 }
 0x252   : > { %v4001_v3 = vshll.u32 %v3921_v16, 16  ;;  %v3905_v52 = vmax.f32 %v3873_v11, 0.0  ;;  %v13060_v43 = vpop.f32.mrb[76].mxu1  ;;  %v3903_v27 = vmax.f32 %v3871_v35, 0.0  ;;  %v3906_v0 = vmax.f32 %v3874_v48, 0.0 }
 0x253   : > { %v4000_v13 = vrot.slane %v3998_v39, 7  ;;  %v4010_v10 = vor.u32 %v4008_v4, %v4007_v29  ;;  %v4101_v47 = vsel %vm15764_vm10, %v4007_v29, 0  ;;  %v13061_v21 = vpop.f32.mrb[77].mxu1  ;;  %v3904_v1 = vmax.f32 %v3872_v42, 0.0 }
 0x254   : > { %v12288_v49 = vcombine.low %v4101_v47, %v4101_v47  ;;  %v13063_v53 = vpop.f32.mrb[78].mxu1  ;;  %v3924_v41 = vpack.c.bf16 %v3906_v0, %v3905_v52  ;;  %v13062_v15 = vadd.f32 %v13061_v21, %v13060_v43 }
 0x255   : > { %v4003_v7 = vor.u32 %v4001_v3, %v4000_v13  ;;  %v4100_v14 = vsel %vm15764_vm10, %v4000_v13, 0  ;;  %v4085_v24 = vsel %vm15764_vm10, 0, %v4010_v10  ;;  %v13064_v59 = vpop.f32.mrb[79].mxu1  ;;  %v3923_v28 = vpack.c.bf16 %v3904_v1, %v3903_v27  ;;  %v13612_v37 = vpop.f32.mrb[76].mxu0 }
 0x256   : > { %v12285_v46 = vcombine.low %v4100_v14, %v4100_v14  ;;  %v12286_v12 = vcombine.low %v4085_v24, %v4085_v24  ;;  %v12287_v23 = vcombine.high %v4085_v24, %v4085_v24  ;;  %4317 = vst.msk [vmem:[#allocation2 + $0x98] sm:$0xf] %vm227_vm0, %v12288_v49  ;;  %v4019_v36 = vshrl.u32 %v3924_v41, 16  ;;  %v3832_v56 = vpop.f32.mrb[77].mxu0 }
 0x257   : > { %v4084_v26 = vsel %vm15764_vm10, 0, %v4003_v7  ;;  %v4012_v63 = vshrl.u32 %v3923_v28, 16  ;;  %v3392_v22 = vadd.f32 %v13062_v15, %v15707_v55  ;;  %v3875_v19 = vadd.f32 %v3832_v56, %v3384_v2  ;;  %v13613_v5 = vpop.f32.mrb[78].mxu0 }
 0x258   : > { %v12283_v17 = vcombine.low %v4084_v26, %v4084_v26  ;;  %v12284_v32 = vcombine.high %v4084_v26, %v4084_v26  ;;  %4314 = vst.msk [vmem:[#allocation2 + $0x8c] sm:$0xf] %vm227_vm0, %v12285_v46  ;;  %4315 = vst.msk [vmem:[#allocation2 + $0x90] sm:$0xf] %vm227_vm0, %v12286_v12  ;;  %v4021_v57 = vrot.slane %v4019_v36, 7  ;;  %v4022_v34 = vshll.u32 %v3924_v41, 16 }
 0x259   : > { %4316 = vst.msk [vmem:[#allocation2 + $0x94] sm:$0xf] %vm227_vm0, %v12287_v23  ;;  %v13065_v33 = vadd.f32 %v13064_v59, %v13063_v53  ;;  %v3835_v45 = vpop.f32.mrb[79].mxu0  ;;  %v4014_v40 = vrot.slane %v4012_v63, 7  ;;  %v4015_v9 = vshll.u32 %v3923_v28, 16  ;;  %v3877_v31 = vadd.f32 %v13612_v37, %v3392_v22 }
 0x25a   : > { %4312 = vst.msk [vmem:[#allocation2 + $0x84] sm:$0xf] %vm227_vm0, %v12283_v17  ;;  %4313 = vst.msk [vmem:[#allocation2 + $0x88] sm:$0xf] %vm227_vm0, %v12284_v32  ;;  %v3876_v20 = vadd.f32 %v3835_v45, %v3387_v18  ;;  %v4024_v38 = vor.u32 %v4022_v34, %v4021_v57  ;;  %v4103_v30 = vsel %vm15764_vm10, %v4021_v57, 0  ;;  %v3907_v58 = vmax.f32 %v3875_v19, 0.0 }
 0x25b   : > { %v3395_v55 = vadd.f32 %v13065_v33, %v15709_v25  ;;  %v12294_v2 = vcombine.low %v4103_v30, %v4103_v30  ;;  %v4017_v16 = vor.u32 %v4015_v9, %v4014_v40  ;;  %v4102_v60 = vsel %vm15764_vm10, %v4014_v40, 0 }
 0x25c   : > { %v4087_v54 = vsel %vm15764_vm10, 0, %v4024_v38  ;;  %v12291_v8 = vcombine.low %v4102_v60, %v4102_v60  ;;  %v3908_v39 = vmax.f32 %v3876_v20, 0.0  ;;  %v3909_v25 = vmax.f32 %v3877_v31, 0.0 }
 0x25d   : > { %v3878_v50 = vadd.f32 %v13613_v5, %v3395_v55  ;;  %v12292_v11 = vcombine.low %v4087_v54, %v4087_v54  ;;  %v12293_v35 = vcombine.high %v4087_v54, %v4087_v54  ;;  %4323 = vst.msk [vmem:[#allocation2 + $0xb0] sm:$0xf] %vm227_vm0, %v12294_v2  ;;  %v4086_v6 = vsel %vm15764_vm10, 0, %v4017_v16 }
 0x25e   : > { %v12289_v29 = vcombine.low %v4086_v6, %v4086_v6  ;;  %v12290_v4 = vcombine.high %v4086_v6, %v4086_v6  ;;  %4320 = vst.msk [vmem:[#allocation2 + $0xa4] sm:$0xf] %vm227_vm0, %v12291_v8  ;;  %v3925_v44 = vpack.c.bf16 %v3908_v39, %v3907_v58 }
 0x25f   : > { %v3910_v48 = vmax.f32 %v3878_v50, 0.0  ;;  %4321 = vst.msk [vmem:[#allocation2 + $0xa8] sm:$0xf] %vm227_vm0, %v12292_v11  ;;  %4322 = vst.msk [vmem:[#allocation2 + $0xac] sm:$0xf] %vm227_vm0, %v12293_v35 }
 0x260   : > { %4318 = vst.msk [vmem:[#allocation2 + $0x9c] sm:$0xf] %vm227_vm0, %v12289_v29  ;;  %4319 = vst.msk [vmem:[#allocation2 + $0xa0] sm:$0xf] %vm227_vm0, %v12290_v4  ;;  %v4026_v13 = vshrl.u32 %v3925_v44, 16  ;;  %v4029_v42 = vshll.u32 %v3925_v44, 16 }
 0x261   : > { %v3926_v18 = vpack.c.bf16 %v3910_v48, %v3909_v25 }
 0x262   : > { %v4028_v52 = vrot.slane %v4026_v13, 7 }
 0x263   : > { %v4033_v3 = vshrl.u32 %v3926_v18, 16  ;;  %v4036_v10 = vshll.u32 %v3926_v18, 16 }
 0x264   : > { %v4031_v47 = vor.u32 %v4029_v42, %v4028_v52  ;;  %v4104_v27 = vsel %vm15764_vm10, %v4028_v52, 0 }
 0x265   : > { %v4035_v43 = vrot.slane %v4033_v3, 7  ;;  %v12297_v0 = vcombine.low %v4104_v27, %v4104_v27 }
 0x266   : > { %v4088_v7 = vsel %vm15764_vm10, 0, %v4031_v47 }
 0x267   : > { %v4038_v21 = vor.u32 %v4036_v10, %v4035_v43  ;;  %v4105_v49 = vsel %vm15764_vm10, %v4035_v43, 0  ;;  %v12295_v1 = vcombine.low %v4088_v7, %v4088_v7  ;;  %v12296_v53 = vcombine.high %v4088_v7, %v4088_v7  ;;  %4326 = vst.msk [vmem:[#allocation2 + $0xbc] sm:$0xf] %vm227_vm0, %v12297_v0 }
 0x268   : > { %v12300_v14 = vcombine.low %v4105_v49, %v4105_v49 }
 0x269   : > { %v4089_v24 = vsel %vm15764_vm10, 0, %v4038_v21  ;;  %4324 = vst.msk [vmem:[#allocation2 + $0xb4] sm:$0xf] %vm227_vm0, %v12295_v1  ;;  %4325 = vst.msk [vmem:[#allocation2 + $0xb8] sm:$0xf] %vm227_vm0, %v12296_v53 }
 0x26a   : > { %v12298_v46 = vcombine.low %v4089_v24, %v4089_v24  ;;  %v12299_v41 = vcombine.high %v4089_v24, %v4089_v24  ;;  %4329 = vst.msk [vmem:[#allocation2 + $0xc8] sm:$0xf] %vm227_vm0, %v12300_v14 }
 0x26c   : > { %4327 = vst.msk [vmem:[#allocation2 + $0xc0] sm:$0xf] %vm227_vm0, %v12298_v46  ;;  %4328 = vst.msk [vmem:[#allocation2 + $0xc4] sm:$0xf] %vm227_vm0, %v12299_v41 }
 0x26d LB: >> { %v6027_v15 = vld [vmem:[#allocation2 + $0xa8] sm:$0xf]  ;;  %v6028_v59 = vld [vmem:[#allocation2 + $0xac] sm:$0xf]  ;;  %v6047_v12 = vld [vmem:[#allocation2 + $0xb0] sm:$0x1]  ;;  %s7878_s25 = scalar_lea.vmem %s18295_s3, %s14405_s16  ;;  %s14405_s16 = sphi %s15931_s16, %s4335_s16  }
 0x26e   : >> { %v6340_v23 = vshrl.u32 %v6027_v15, 16  ;;  %v6343_v26 = vshll.u32 %v6027_v15, 16  ;;  %v6349_v28 = vshll.u32 %v6028_v59, 16  ;;  %v6353_v37 = vshrl.u32 %v6028_v59, 16  ;;  %v6003_v32 = vld [vmem:[#allocation2 + $0x18] sm:$0xf] }
 0x26f   : >> { %v6359_v17 = vshll.u32 %v6047_v12, 16  ;;  %v6004_v36 = vld [vmem:[#allocation2 + $0x1c] sm:$0xf]  ;;  %s12841_s17 = smul.u32 288, %s14405_s16  ;;  %v6035_v5 = vld [vmem:[#allocation2 + $0x20] sm:$0x1] }
 0x270   : >> { %v6342_v56 = vrot.slane %v6340_v23, 4  ;;  %v6345_v63 = vrot.slane %v6343_v26, 5  ;;  %v6351_v22 = vrot.slane %v6349_v28, 5  ;;  %v6355_v19 = vrot.slane %v6353_v37, 4  ;;  %v4969_v40 = vld [vmem:[#allocation2 + $0xa0] sm:$0xf] }
 0x271   : >> { %v6361_v57 = vrot.slane %v6359_v17, 5  ;;  %v6052_v34 = vshrl.u32 %v6003_v32, 16  ;;  %v6055_v33 = vshll.u32 %v6003_v32, 16  ;;  %v6061_v45 = vshll.u32 %v6004_v36, 16  ;;  %v5455_v30 = vld [vmem:[#allocation2 + $0xa4] sm:$0x1]  ;;  %s15940_s21 = scalar_lea.vmem %s18294_s2, %s12841_s17 }
 0x272   : >> { %v6346_v9 = vor.u32 %v6345_v63, %v6342_v56  ;;  %v6356_v31 = vor.u32 %v6355_v19, %v6351_v22  ;;  %v6065_v20 = vshrl.u32 %v6004_v36, 16  ;;  %v6071_v38 = vshll.u32 %v6035_v5, 16  ;;  %v5855_v55 = vld [vmem:[#allocation2 + $0x9c] sm:$0xe]  ;;  %v15942_v54 = vld [vmem:[#allocation2 + $0x10] sm:$0xf] }
 0x273   : >> { %v6054_v2 = vrot.slane %v6052_v34, 4  ;;  %v6057_v16 = vrot.slane %v6055_v33, 5  ;;  %v6063_v60 = vrot.slane %v6061_v45, 5  ;;  %v12394_v58 = vrot.slane %v5855_v55, 9  ;;  %v5443_v35 = vld [vmem:[#allocation2 + $0x14] sm:$0x1] }
 0x274   : >> { %v6347_v8 = vrot.slane %v6346_v9, 4  ;;  %v6357_v50 = vrot.slane %v6356_v31, 4  ;;  %v6067_v39 = vrot.slane %v6065_v20, 4  ;;  %v6073_v11 = vrot.slane %v6071_v38, 5  ;;  %v5843_v4 = vld [vmem:[#allocation2 + $0xc] sm:$0xe] }
 0x275   : >> { %v6058_v6 = vor.u32 %v6057_v16, %v6054_v2  ;;  %v5977_v25 = vrot.slane %v4969_v40, 5  ;;  %v5980_v29 = vrot.slane %v5455_v30, 5  ;;  %v5893_v48 = vrot.slane %v15942_v54, 5  ;;  %v13951_v44 = vld [vmem:[%s15940_s21 + $0xc0] sm:$0xff]   ;;  %v6029_v42 = vld [vmem:[#allocation2 + $0xb4] sm:$0xf] }
 0x276   : >> { %v6352_v18 = vsel %vm14513_vm5, %v6347_v8, %v6351_v22  ;;  %v6362_v13 = vsel %vm14513_vm5, %v6357_v50, %v6361_v57  ;;  %v6068_v3 = vor.u32 %v6067_v39, %v6063_v60  ;;  %v12382_v52 = vrot.slane %v5843_v4, 9  ;;  %v13953_v43 = vld [vmem:[%s15940_s21 + $0x80] sm:$0xff]   ;;  %v6030_v21 = vld [vmem:[#allocation2 + $0xb8] sm:$0xf]  ;;  %13710 = vmatprep.subr.bf16.mxu1 %v13951_v44  ;;  %13086 = vmatprep.subr.bf16.mxu0 %v13951_v44  ;;  %v6048_v53 = vld [vmem:[#allocation2 + $0xbc] sm:$0x1] }
 0x277   : >> { %v12458_v10 = vcombine.low %v6352_v18, %v6362_v13  ;;  %v6059_v47 = vrot.slane %v6058_v6, 4  ;;  %v5978_v27 = vsel %vm14521_vm6, %v12394_v58, %v5977_v25  ;;  %v5979_v0 = vrot.slane %v5977_v25, 4  ;;  %13718 = vmatpush3.bf16.msra.mxu1 %v13953_v43  ;;  %13087 = vmatpush3.bf16.msra.mxu0 %v13953_v43  ;;  %v13954_v24 = vld [vmem:[%s15940_s21 + $0xc8] sm:$0xff]   ;;  %s14409_s22 = smov 64   ;;  %v5456_v32 = vld [vmem:[#allocation2 + $0xb0] sm:$0x1] }
 0x278   : >> { %v6069_v49 = vrot.slane %v6068_v3, 4  ;;  %v5894_v7 = vsel %vm14521_vm6, %v12382_v52, %v5893_v48  ;;  %v5895_v14 = vrot.slane %v5893_v48, 4  ;;  %v5896_v1 = vrot.slane %v5443_v35, 5  ;;  %v4971_v12 = vld [vmem:[#allocation2 + $0xac] sm:$0xf]  ;;  %13711 = vmatprep.subr.bf16.mxu1 %v13954_v24  ;;  %13088 = vmatprep.subr.bf16.mxu0 %v13954_v24  ;;  %v13956_v55 = vld [vmem:[%s15940_s21 + $0xd0] sm:$0xff]  }
 0x279   : >> { %6715 = vrot.lane.b32.xlu0 %v12458_v10, %s14409_s22  ;;  %v6064_v46 = vsel %vm14513_vm5, %v6059_v47, %v6063_v60  ;;  %v5981_v41 = vsel %vm14521_vm6, %v5979_v0, %v5980_v29  ;;  %v6364_v15 = vshrl.u32 %v6029_v42, 16  ;;  %v6367_v59 = vshll.u32 %v6029_v42, 16  ;;  %v5856_v23 = vld [vmem:[#allocation2 + $0xa8] sm:$0xe]  ;;  %v6005_v36 = vld [vmem:[#allocation2 + $0x24] sm:$0xf] }
 0x27a   : >> { %v6074_v26 = vsel %vm14513_vm5, %v6069_v49, %v6073_v11  ;;  %v12426_v28 = vcombine.low %v5978_v27, %v5981_v41  ;;  %v5897_v37 = vsel %vm14521_vm6, %v5895_v14, %v5896_v1  ;;  %v6373_v17 = vshll.u32 %v6030_v21, 16  ;;  %v13955_v56 = vld [vmem:[%s15940_s21 + $0x88] sm:$0xff]   ;;  %v15969_v8 = vld [vmem:[#allocation2 + $0x1c] sm:$0xf]  ;;  %v5444_v6 = vld [vmem:[#allocation2 + $0x20] sm:$0x1] }
 0x27b   : >> { %v12446_v63 = vcombine.low %v6064_v46, %v6074_v26  ;;  %v12414_v22 = vcombine.low %v5894_v7, %v5897_v37  ;;  %v6366_v19 = vrot.slane %v6364_v15, 4  ;;  %v6369_v5 = vrot.slane %v6367_v59, 5  ;;  %v6006_v57 = vld [vmem:[#allocation2 + $0x28] sm:$0xf]  ;;  %13719 = vmatpush3.bf16.msra.mxu1 %v13955_v56  ;;  %13089 = vmatpush3.bf16.msra.mxu0 %v13955_v56  ;;  %v6036_v38 = vld [vmem:[#allocation2 + $0x2c] sm:$0x1] }
 0x27c   : >> { %v6375_v34 = vrot.slane %v6373_v17, 5  ;;  %v6377_v33 = vshrl.u32 %v6030_v21, 16  ;;  %v6383_v45 = vshll.u32 %v6048_v53, 16  ;;  %v12395_v40 = vrot.slane %v5856_v23, 9  ;;  %13712 = vmatprep.subr.bf16.mxu1 %v13956_v55  ;;  %v13957_v25 = vld [vmem:[%s15940_s21 + $0x90] sm:$0xff]   ;;  %13090 = vmatprep.subr.bf16.mxu0 %v13956_v55  ;;  %v13959_v13 = vld [vmem:[%s15940_s21 + $0xd8] sm:$0xff]  }
 0x27d   : >> { %6691 = vrot.lane.b32.xlu1 %v12446_v63, %s14409_s22  ;;  %6555 = vrot.lane.b32.xlu0 %v12426_v28, %s14409_s22  ;;  %v6370_v9 = vor.u32 %v6369_v5, %v6366_v19  ;;  %v5984_v31 = vrot.slane %v4971_v12, 5  ;;  %v5987_v20 = vrot.slane %v5456_v32, 5  ;;  %v6076_v30 = vshrl.u32 %v6005_v36, 16  ;;  %v5844_v18 = vld [vmem:[#allocation2 + $0x18] sm:$0xe]  ;;  %s4335_s16 = sadd.s32 1, %s14405_s16  }
 0x27e   : >> { %v6379_v2 = vrot.slane %v6377_v33, 4  ;;  %v6385_v16 = vrot.slane %v6383_v45, 5  ;;  %v6079_v60 = vshll.u32 %v6005_v36, 16  ;;  %v6085_v58 = vshll.u32 %v6006_v57, 16  ;;  %v6031_v43 = vld [vmem:[#allocation2 + $0xc0] sm:$0xf] }
 0x27f   : >> { %v6371_v50 = vrot.slane %v6370_v9, 4  ;;  %v5985_v39 = vsel %vm14521_vm6, %v12395_v40, %v5984_v31  ;;  %v5986_v11 = vrot.slane %v5984_v31, 4  ;;  %v6078_v35 = vrot.slane %v6076_v30, 4  ;;  %13720 = vmatpush3.bf16.msra.mxu1 %v13957_v25  ;;  %13091 = vmatpush3.bf16.msra.mxu0 %v13957_v25  ;;  %v6032_v1 = vld [vmem:[#allocation2 + $0xc4] sm:$0xf]  ;;  %p4332_p5 = scmp.ge.s32.totalorder %s4335_s16, 13  }
 0x280   : >> { %v6380_v29 = vor.u32 %v6379_v2, %v6375_v34  ;;  %v6081_v4 = vrot.slane %v6079_v60, 5  ;;  %v6087_v48 = vrot.slane %v6085_v58, 5  ;;  %v6089_v44 = vshrl.u32 %v6006_v57, 16  ;;  %13713 = vmatprep.subr.bf16.mxu1 %v13959_v13  ;;  %13092 = vmatprep.subr.bf16.mxu0 %v13959_v13  ;;  %v6049_v41 = vld [vmem:[#allocation2 + $0xc8] sm:$0x1]  ;;  %v13961_v45 = vld [vmem:[%s15940_s21 + $0xe0] sm:$0xff]  }
 0x281   : >> { %6531 = vrot.lane.b32.xlu1 %v12414_v22, %s14409_s22  ;;  %v6376_v3 = vsel %vm14513_vm5, %v6371_v50, %v6375_v34  ;;  %v5988_v52 = vsel %vm14521_vm6, %v5986_v11, %v5987_v20  ;;  %v6095_v42 = vshll.u32 %v6036_v38, 16  ;;  %v12383_v49 = vrot.slane %v5844_v18, 9  ;;  %v4973_v28 = vld [vmem:[#allocation2 + $0xb8] sm:$0xf]  ;;  %v5857_v37 = vld [vmem:[#allocation2 + $0xb4] sm:$0xe] }
 0x282   : >> { %v6381_v10 = vrot.slane %v6380_v29, 4  ;;  %v12427_v47 = vcombine.low %v5985_v39, %v5988_v52  ;;  %v6082_v27 = vor.u32 %v6081_v4, %v6078_v35  ;;  %v6091_v0 = vrot.slane %v6089_v44, 4  ;;  %v5457_v63 = vld [vmem:[#allocation2 + $0xbc] sm:$0x1]  ;;  %v6007_v33 = vld [vmem:[#allocation2 + $0x30] sm:$0xf] }
 0x283   : >> { %v6097_v21 = vrot.slane %v6095_v42, 5  ;;  %v5900_v7 = vrot.slane %v15969_v8, 5  ;;  %v5903_v14 = vrot.slane %v5444_v6, 5  ;;  %v6388_v15 = vshrl.u32 %v6031_v43, 16  ;;  %v13960_v22 = vld [vmem:[%s15940_s21 + $0x98] sm:$0xff]   ;;  %v13964_v42 = vld [vmem:[%s15940_s21 + $0xe8] sm:$0xff]  }
 0x284   : >> { %v6386_v53 = vsel %vm14513_vm5, %v6381_v10, %v6385_v16  ;;  %v6083_v24 = vrot.slane %v6082_v27, 4  ;;  %v6092_v46 = vor.u32 %v6091_v0, %v6087_v48  ;;  %v6391_v26 = vshll.u32 %v6031_v43, 16  ;;  %v6008_v38 = vld [vmem:[#allocation2 + $0x34] sm:$0xf]  ;;  %13721 = vmatpush3.bf16.msra.mxu1 %v13960_v22  ;;  %13093 = vmatpush3.bf16.msra.mxu0 %v13960_v22  ;;  %v6037_v50 = vld [vmem:[#allocation2 + $0x38] sm:$0x1] }
 0x285   : >> { %v12459_v59 = vcombine.low %v6376_v3, %v6386_v53  ;;  %6557 = vrot.lane.b32.xlu1 %v12427_v47, %s14409_s22  ;;  %v5901_v12 = vsel %vm14521_vm6, %v12383_v49, %v5900_v7  ;;  %v5902_v23 = vrot.slane %v5900_v7, 4  ;;  %v6390_v36 = vrot.slane %v6388_v15, 4  ;;  %13714 = vmatprep.subr.bf16.mxu1 %v13961_v45  ;;  %v5845_v4 = vld [vmem:[#allocation2 + $0x24] sm:$0xe]  ;;  %v16000_v52 = vld [vmem:[#allocation2 + $0x28] sm:$0xf] }
 0x286   : >> { %v6088_v17 = vsel %vm14513_vm5, %v6083_v24, %v6087_v48  ;;  %v6093_v32 = vrot.slane %v6092_v46, 4  ;;  %v6397_v56 = vshll.u32 %v6032_v1, 16  ;;  %v6393_v5 = vrot.slane %v6391_v26, 5  ;;  %13094 = vmatprep.subr.bf16.mxu0 %v13961_v45  ;;  %v13962_v48 = vld [vmem:[%s15940_s21 + $0xa0] sm:$0xff]   ;;  %v5445_v0 = vld [vmem:[#allocation2 + $0x2c] sm:$0x1] }
 0x287   : >> { %6717 = vrot.lane.b32.xlu0 %v12459_v59, %s14409_s22  ;;  %v5904_v19 = vsel %vm14521_vm6, %v5902_v23, %v5903_v14  ;;  %v6401_v57 = vshrl.u32 %v6032_v1, 16  ;;  %v6407_v34 = vshll.u32 %v6049_v41, 16  ;;  %v12396_v20 = vrot.slane %v5857_v37, 9  ;;  %v6033_v53 = vld [vmem:[#allocation2 + $0xcc] sm:$0xf]  ;;  %v13966_v23 = vld [vmem:[%s15940_s21 + $0xf0] sm:$0xff]  }
 0x288   : >> { %v6098_v40 = vsel %vm14513_vm5, %v6093_v32, %v6097_v21  ;;  %v12415_v9 = vcombine.low %v5901_v12, %v5904_v19  ;;  %v6399_v31 = vrot.slane %v6397_v56, 5  ;;  %v6394_v55 = vor.u32 %v6393_v5, %v6390_v36  ;;  %13722 = vmatpush3.bf16.msra.mxu1 %v13962_v48  ;;  %13095 = vmatpush3.bf16.msra.mxu0 %v13962_v48  ;;  %v13965_v21 = vld [vmem:[%s15940_s21 + $0xa8] sm:$0xff]   ;;  %v6034_v59 = vld [vmem:[#allocation2 + $0xd0] sm:$0xf]  ;;  %v6050_v12 = vld [vmem:[#allocation2 + $0xd4] sm:$0x1] }
 0x289   : >> { %v12447_v30 = vcombine.low %v6088_v17, %v6098_v40  ;;  %v6403_v2 = vrot.slane %v6401_v57, 4  ;;  %v6409_v16 = vrot.slane %v6407_v34, 5  ;;  %v5991_v60 = vrot.slane %v4973_v28, 5  ;;  %13715 = vmatprep.subr.bf16.mxu1 %v13964_v42  ;;  %13096 = vmatprep.subr.bf16.mxu0 %v13964_v42  ;;  %v4975_v32 = vld [vmem:[#allocation2 + $0xc4] sm:$0xf]  ;;  %v13967_v5 = vld [vmem:[%s15940_s21 + $0xb0] sm:$0xff]  }
 0x28a   : >> { %6533 = vrot.lane.b32.xlu1 %v12415_v9, %s14409_s22  ;;  %v5994_v58 = vrot.slane %v5457_v63, 5  ;;  %v6100_v39 = vshrl.u32 %v6007_v33, 16  ;;  %v6103_v11 = vshll.u32 %v6007_v33, 16  ;;  %v6395_v35 = vrot.slane %v6394_v55, 4  ;;  %v5458_v19 = vld [vmem:[#allocation2 + $0xc8] sm:$0x1] }
 0x28b   : >> { %6693 = vrot.lane.b32.xlu0 %v12447_v30, %s14409_s22  ;;  %v6404_v6 = vor.u32 %v6403_v2, %v6399_v31  ;;  %v6109_v25 = vshll.u32 %v6008_v38, 16  ;;  %v6113_v29 = vshrl.u32 %v6008_v38, 16  ;;  %v5992_v44 = vsel %vm14521_vm6, %v12396_v20, %v5991_v60  ;;  %v5858_v40 = vld [vmem:[#allocation2 + $0xc0] sm:$0xe]  ;;  %v6009_v30 = vld [vmem:[#allocation2 + $0x3c] sm:$0xf] }
 0x28c   : >> { %v5993_v18 = vrot.slane %v5991_v60, 4  ;;  %v6102_v13 = vrot.slane %v6100_v39, 4  ;;  %v6105_v3 = vrot.slane %v6103_v11, 5  ;;  %v6400_v43 = vsel %vm14513_vm5, %v6395_v35, %v6399_v31  ;;  %13723 = vmatpush3.bf16.msra.mxu1 %v13965_v21  ;;  %13097 = vmatpush3.bf16.msra.mxu0 %v13965_v21  ;;  %v13969_v55 = vld [vmem:[%s15940_s21 + $0xf8] sm:$0xff]   ;;  %v6038_v48 = vld [vmem:[#allocation2 + $0x44] sm:$0x1] }
 0x28d   : >> { %v6405_v10 = vrot.slane %v6404_v6, 4  ;;  %v6111_v47 = vrot.slane %v6109_v25, 5  ;;  %v6115_v27 = vrot.slane %v6113_v29, 4  ;;  %v6119_v14 = vshll.u32 %v6037_v50, 16  ;;  %13716 = vmatprep.subr.bf16.mxu1 %v13966_v23  ;;  %13098 = vmatprep.subr.bf16.mxu0 %v13966_v23  ;;  %v6010_v50 = vld [vmem:[#allocation2 + $0x40] sm:$0xf] }
 0x28e   : >> { %v5995_v49 = vsel %vm14521_vm6, %v5993_v18, %v5994_v58  ;;  %v6106_v7 = vor.u32 %v6105_v3, %v6102_v13  ;;  %v12384_v1 = vrot.slane %v5845_v4, 9  ;;  %v5907_v15 = vrot.slane %v16000_v52, 5  ;;  %v13971_v25 = vld [vmem:[%s15940_s21 + $0xb8] sm:$0xff]   ;;  %v13972_v13 = vld [vmem:[%s15940_s21 + $0x40] sm:$0xff]   ;;  %v16036_v23 = vld [vmem:[#allocation2 + $0xc] sm:$0xf] }
 0x28f   : >> { %v6410_v24 = vsel %vm14513_vm5, %v6405_v10, %v6409_v16  ;;  %v12428_v46 = vcombine.low %v5992_v44, %v5995_v49  ;;  %v6116_v41 = vor.u32 %v6115_v27, %v6111_v47  ;;  %v6121_v37 = vrot.slane %v6119_v14, 5 }
 0x290   : >> { %v12460_v26 = vcombine.low %v6400_v43, %v6410_v24  ;;  %v6107_v28 = vrot.slane %v6106_v7, 4  ;;  %v5910_v17 = vrot.slane %v5445_v0, 5  ;;  %v5908_v56 = vsel %vm14521_vm6, %v12384_v1, %v5907_v15  ;;  %13724 = vmatpush3.bf16.msra.mxu1 %v13967_v5  ;;  %13099 = vmatpush3.bf16.msra.mxu0 %v13967_v5  ;;  %v5846_v7 = vld [vmem:[#allocation2 + $0x30] sm:$0xe] }
 0x291   : >> { %6559 = vrot.lane.b32.xlu1 %v12428_v46, %s14409_s22  ;;  %v6117_v36 = vrot.slane %v6116_v41, 4  ;;  %v5909_v63 = vrot.slane %v5907_v15, 4  ;;  %v6412_v22 = vshrl.u32 %v6033_v53, 16  ;;  %v6415_v34 = vshll.u32 %v6033_v53, 16  ;;  %13717 = vmatprep.subr.bf16.mxu1 %v13969_v55  ;;  %v5446_v46 = vld [vmem:[#allocation2 + $0x38] sm:$0x1] }
 0x292   : >> { %6719 = vrot.lane.b32.xlu0 %v12460_v26, %s14409_s22  ;;  %v6112_v57 = vsel %vm14513_vm5, %v6107_v28, %v6111_v47  ;;  %v6421_v33 = vshll.u32 %v6034_v59, 16  ;;  %v6425_v45 = vshrl.u32 %v6034_v59, 16  ;;  %v6431_v38 = vshll.u32 %v6050_v12, 16  ;;  %v16030_v47 = vld [vmem:[#allocation2 + $0x34] sm:$0xf]  ;;  %13100 = vmatprep.subr.bf16.mxu0 %v13969_v55 }
 0x293   : >> { %v6122_v9 = vsel %vm14513_vm5, %v6117_v36, %v6121_v37  ;;  %v5911_v31 = vsel %vm14521_vm6, %v5909_v63, %v5910_v17  ;;  %v6414_v20 = vrot.slane %v6412_v22, 4  ;;  %v6417_v60 = vrot.slane %v6415_v34, 5  ;;  %v4336_v26 = vld [vmem:[#allocation2] sm:$0xf]  ;;  %v4337_v36 = vld [vmem:[#allocation2 + $0x4] sm:$0xf] }
 0x294   : >> { %v12448_v2 = vcombine.low %v6112_v57, %v6122_v9  ;;  %v12416_v16 = vcombine.low %v5908_v56, %v5911_v31  ;;  %v6423_v58 = vrot.slane %v6421_v33, 5  ;;  %v6427_v39 = vrot.slane %v6425_v45, 4  ;;  %13725 = vmatpush3.bf16.msra.mxu1 %v13971_v25  ;;  %13101 = vmatpush3.bf16.msra.mxu0 %v13971_v25  ;;  %v13978_v56 = vld [vmem:[%s15940_s21 + $0x100] sm:$0xff]   ;;  %v4368_v57 = vld [vmem:[#allocation2 + $0x8] sm:$0x1] }
 0x295   : >> { %v6433_v11 = vrot.slane %v6431_v38, 5  ;;  %v12397_v35 = vrot.slane %v5858_v40, 9  ;;  %v5998_v6 = vrot.slane %v4975_v32, 5  ;;  %v6418_v29 = vor.u32 %v6417_v60, %v6414_v20  ;;  %13198 = vmatprep.subr.bf16.mxu1 %v13972_v13  ;;  %13614 = vmatprep.subr.bf16.mxu0 %v13978_v56  ;;  %v4369_v56 = vld [vmem:[#allocation2 + $0x14] sm:$0x1] }
 0x296   : >> { %6695 = vrot.lane.b32.xlu0 %v12448_v2, %s14409_s22  ;;  %6535 = vrot.lane.b32.xlu1 %v12416_v16, %s14409_s22  ;;  %v6001_v4 = vrot.slane %v5458_v19, 5  ;;  %v6124_v44 = vshrl.u32 %v6009_v30, 16  ;;  %v6127_v18 = vshll.u32 %v6009_v30, 16  ;;  %v6428_v3 = vor.u32 %v6427_v39, %v6423_v58  ;;  %v6011_v30 = vld [vmem:[#allocation2 + $0x48] sm:$0xf] }
 0x297   : >> { %v5999_v42 = vsel %vm14521_vm6, %v12397_v35, %v5998_v6  ;;  %v6000_v43 = vrot.slane %v5998_v6, 4  ;;  %v6133_v10 = vshll.u32 %v6010_v50, 16  ;;  %v6419_v27 = vrot.slane %v6418_v29, 4  ;;  %v6039_v35 = vld [vmem:[#allocation2 + $0x50] sm:$0x1] }
 0x298   : >> { %v6126_v0 = vrot.slane %v6124_v44, 4  ;;  %v6129_v21 = vrot.slane %v6127_v18, 5  ;;  %v6137_v49 = vshrl.u32 %v6010_v50, 16  ;;  %v6429_v14 = vrot.slane %v6428_v3, 4  ;;  %v5847_v6 = vld [vmem:[#allocation2 + $0x3c] sm:$0xe] }
 0x299   : >> { %v6002_v1 = vsel %vm14521_vm6, %v6000_v43, %v6001_v4  ;;  %v6135_v53 = vrot.slane %v6133_v10, 5  ;;  %v6143_v24 = vshll.u32 %v6038_v48, 16  ;;  %v6424_v41 = vsel %vm14513_vm5, %v6419_v27, %v6423_v58  ;;  %v6012_v58 = vld [vmem:[#allocation2 + $0x4c] sm:$0xf]  ;;  %v16054_v44 = vld [vmem:[#allocation2 + $0x40] sm:$0xf] }
 0x29a   : >> { %v12429_v15 = vcombine.low %v5999_v42, %v6002_v1  ;;  %v6130_v59 = vor.u32 %v6129_v21, %v6126_v0  ;;  %v6139_v12 = vrot.slane %v6137_v49, 4  ;;  %v6434_v28 = vsel %vm14513_vm5, %v6429_v14, %v6433_v11  ;;  %v5447_v43 = vld [vmem:[#allocation2 + $0x44] sm:$0x1]  ;;  %v16058_v49 = vld [vmem:[#allocation2 + $0x18] sm:$0xf] }
 0x29b   : >> { %v6145_v37 = vrot.slane %v6143_v24, 5  ;;  %v12385_v17 = vrot.slane %v5846_v7, 9  ;;  %v5914_v32 = vrot.slane %v16030_v47, 5  ;;  %v12461_v63 = vcombine.low %v6424_v41, %v6434_v28  ;;  %v4338_v24 = vld [vmem:[#allocation2 + $0xc] sm:$0xf] }
 0x29c   : >> { %6561 = vrot.lane.b32.xlu1 %v12429_v15, %s14409_s22  ;;  %v6131_v22 = vrot.slane %v6130_v59, 4  ;;  %v6140_v19 = vor.u32 %v6139_v12, %v6135_v53  ;;  %v5917_v5 = vrot.slane %v5446_v46, 5  ;;  %v12365_v45 = vcombine.low %v16036_v23, %v15942_v54 }
 0x29d   : >> { %v5915_v34 = vsel %vm14521_vm6, %v12385_v17, %v5914_v32  ;;  %v5916_v33 = vrot.slane %v5914_v32, 4  ;;  %v4385_v40 = vshrl.u32 %v4336_v26, 16  ;;  %6721 = vrot.lane.b32.xlu0 %v12461_v63, %s14409_s22  ;;  %v4388_v20 = vshll.u32 %v4336_v26, 16 }
 0x29e   : >> { %v6136_v9 = vsel %vm14513_vm5, %v6131_v22, %v6135_v53  ;;  %v6141_v31 = vrot.slane %v6140_v19, 4  ;;  %v4394_v38 = vshll.u32 %v4337_v36, 16  ;;  %v4398_v16 = vshrl.u32 %v4337_v36, 16 }
 0x29f   : >> { %v5918_v55 = vsel %vm14521_vm6, %v5916_v33, %v5917_v5  ;;  %v4387_v2 = vrot.slane %v4385_v40, 4  ;;  %v4404_v60 = vshll.u32 %v4368_v57, 16  ;;  %v4390_v39 = vrot.slane %v4388_v20, 5 }
 0x2a0   : >> { %v6146_v54 = vsel %vm14513_vm5, %v6141_v31, %v6145_v37  ;;  %v12417_v50 = vcombine.low %v5915_v34, %v5918_v55  ;;  %v4396_v11 = vrot.slane %v4394_v38, 5  ;;  %v4400_v29 = vrot.slane %v4398_v16, 4  ;;  %v4339_v37 = vld [vmem:[#allocation2 + $0x10] sm:$0xf]  ;;  %v6013_v34 = vld [vmem:[#allocation2 + $0x54] sm:$0xf] }
 0x2a1   : >> { %v12449_v25 = vcombine.low %v6136_v9, %v6146_v54  ;;  %v4406_v4 = vrot.slane %v4404_v60, 5  ;;  %v6148_v48 = vshrl.u32 %v6011_v30, 16  ;;  %v4391_v18 = vor.u32 %v4390_v39, %v4387_v2  ;;  %v6014_v9 = vld [vmem:[#allocation2 + $0x58] sm:$0xf]  ;;  %v6040_v55 = vld [vmem:[#allocation2 + $0x5c] sm:$0x1] }
 0x2a2   : >> { %6537 = vrot.lane.b32.xlu1 %v12417_v50, %s14409_s22  ;;  %v6151_v13 = vshll.u32 %v6011_v30, 16  ;;  %v6157_v3 = vshll.u32 %v6012_v58, 16  ;;  %v6161_v42 = vshrl.u32 %v6012_v58, 16  ;;  %v4401_v10 = vor.u32 %v4400_v29, %v4396_v11  ;;  %v16077_v54 = vld [vmem:[#allocation2 + $0x4c] sm:$0xf] }
 0x2a3   : >> { %6697 = vrot.lane.b32.xlu0 %v12449_v25, %s14409_s22  ;;  %v6150_v27 = vrot.slane %v6148_v48, 4  ;;  %v6167_v0 = vshll.u32 %v6039_v35, 16  ;;  %v12386_v21 = vrot.slane %v5847_v6, 9  ;;  %v4392_v7 = vrot.slane %v4391_v18, 4  ;;  %v5448_v50 = vld [vmem:[#allocation2 + $0x50] sm:$0x1] }
 0x2a4   : >> { %v6153_v14 = vrot.slane %v6151_v13, 5  ;;  %v6159_v1 = vrot.slane %v6157_v3, 5  ;;  %v6163_v53 = vrot.slane %v6161_v42, 4  ;;  %v4402_v46 = vrot.slane %v4401_v10, 4  ;;  %v5848_v25 = vld [vmem:[#allocation2 + $0x48] sm:$0xe] }
 0x2a5   : >> { %v6169_v41 = vrot.slane %v6167_v0, 5  ;;  %v5921_v15 = vrot.slane %v16054_v44, 5  ;;  %v5924_v59 = vrot.slane %v5447_v43, 5  ;;  %v4397_v12 = vsel %vm14513_vm5, %v4392_v7, %v4396_v11  ;;  %v16080_v13 = vld [vmem:[#allocation2 + $0x24] sm:$0xf] }
 0x2a6   : >> { %v6154_v23 = vor.u32 %v6153_v14, %v6150_v27  ;;  %v6164_v26 = vor.u32 %v6163_v53, %v6159_v1  ;;  %v12366_v28 = vcombine.low %v16058_v49, %v15969_v8  ;;  %v4407_v17 = vsel %vm14513_vm5, %v4402_v46, %v4406_v4  ;;  %v4340_v27 = vld [vmem:[#allocation2 + $0x18] sm:$0xf]  ;;  %v4341_v46 = vld [vmem:[#allocation2 + $0x1c] sm:$0xf] }
 0x2a7   : >> { %5248 = vrot.lane.b32.xlu0 %v12365_v45, %s14409_s22  ;;  %v5922_v32 = vsel %vm14521_vm6, %v12386_v21, %v5921_v15  ;;  %v5923_v36 = vrot.slane %v5921_v15, 4  ;;  %v4409_v63 = vshrl.u32 %v4338_v24, 16  ;;  %v12333_v22 = vcombine.low %v4397_v12, %v4407_v17  ;;  %v4370_v12 = vld [vmem:[#allocation2 + $0x20] sm:$0x1] }
 0x2a8   : >> { %v6155_v19 = vrot.slane %v6154_v23, 4  ;;  %v6165_v5 = vrot.slane %v6164_v26, 4  ;;  %v4412_v57 = vshll.u32 %v4338_v24, 16  ;;  %v4418_v40 = vshll.u32 %v4339_v37, 16 }
 0x2a9   : >> { %v5925_v8 = vsel %vm14521_vm6, %v5923_v36, %v5924_v59  ;;  %v4411_v33 = vrot.slane %v4409_v63, 4  ;;  %v4422_v45 = vshrl.u32 %v4339_v37, 16  ;;  %5088 = vrot.lane.b32.xlu1 %v12333_v22, %s14409_s22  ;;  %v4428_v58 = vshll.u32 %v4369_v56, 16 }
 0x2aa   : >> { %v6160_v31 = vsel %vm14513_vm5, %v6155_v19, %v6159_v1  ;;  %v6170_v20 = vsel %vm14513_vm5, %v6165_v5, %v6169_v41  ;;  %v12418_v38 = vcombine.low %v5922_v32, %v5925_v8  ;;  %v4414_v30 = vrot.slane %v4412_v57, 5 }
 0x2ab   : >> { %v12450_v2 = vcombine.low %v6160_v31, %v6170_v20  ;;  %v4420_v16 = vrot.slane %v4418_v40, 5  ;;  %v4424_v60 = vrot.slane %v4422_v45, 4  ;;  %v6172_v11 = vshrl.u32 %v6013_v34, 16  ;;  %v5849_v31 = vld [vmem:[#allocation2 + $0x54] sm:$0xe] }
 0x2ac   : >> { %v4415_v39 = vor.u32 %v4414_v30, %v4411_v33  ;;  %v6175_v35 = vshll.u32 %v6013_v34, 16  ;;  %v6181_v6 = vshll.u32 %v6014_v9, 16  ;;  %v4430_v4 = vrot.slane %v4428_v58, 5  ;;  %v6016_v34 = vld [vmem:[#allocation2 + $0x64] sm:$0xf] }
 0x2ad   : >> { %6699 = vrot.lane.b32.xlu0 %v12450_v2, %s14409_s22  ;;  %v4425_v29 = vor.u32 %v4424_v60, %v4420_v16  ;;  %v6185_v48 = vshrl.u32 %v6014_v9, 16  ;;  %v6191_v18 = vshll.u32 %v6040_v55, 16  ;;  %6539 = vrot.lane.b32.xlu1 %v12418_v38, %s14409_s22  ;;  %v6174_v42 = vrot.slane %v6172_v11, 4  ;;  %v6041_v9 = vld [vmem:[#allocation2 + $0x68] sm:$0x1] }
 0x2ae   : >> { %v4416_v3 = vrot.slane %v4415_v39, 4  ;;  %v6177_v43 = vrot.slane %v6175_v35, 5  ;;  %v6183_v10 = vrot.slane %v6181_v6, 5  ;;  %v12387_v7 = vrot.slane %v5848_v25, 9  ;;  %v16100_v2 = vld [vmem:[#allocation2 + $0x58] sm:$0xf] }
 0x2af   : >> { %v4426_v0 = vrot.slane %v4425_v29, 4  ;;  %v6187_v21 = vrot.slane %v6185_v48, 4  ;;  %v6193_v49 = vrot.slane %v6191_v18, 5  ;;  %v5928_v53 = vrot.slane %v16077_v54, 5  ;;  %v5449_v39 = vld [vmem:[#allocation2 + $0x5c] sm:$0x1] }
 0x2b0   : >> { %v4421_v14 = vsel %vm14513_vm5, %v4416_v3, %v4420_v16  ;;  %v6178_v1 = vor.u32 %v6177_v43, %v6174_v42  ;;  %v5931_v24 = vrot.slane %v5448_v50, 5  ;;  %v12367_v59 = vcombine.low %v16080_v13, %v16000_v52  ;;  %v16104_v29 = vld [vmem:[#allocation2 + $0x30] sm:$0xf]  ;;  %v4342_v3 = vld [vmem:[#allocation2 + $0x24] sm:$0xf] }
 0x2b1   : >> { %5250 = vrot.lane.b32.xlu0 %v12366_v28, %s14409_s22  ;;  %v4431_v41 = vsel %vm14513_vm5, %v4426_v0, %v4430_v4  ;;  %v6188_v15 = vor.u32 %v6187_v21, %v6183_v10  ;;  %v4433_v23 = vshrl.u32 %v4340_v27, 16  ;;  %v5929_v17 = vsel %vm14521_vm6, %v12387_v7, %v5928_v53  ;;  %v6015_v28 = vld [vmem:[#allocation2 + $0x60] sm:$0xf] }
 0x2b2   : >> { %v12334_v26 = vcombine.low %v4421_v14, %v4431_v41  ;;  %v6179_v37 = vrot.slane %v6178_v1, 4  ;;  %v5930_v32 = vrot.slane %v5928_v53, 4  ;;  %v4436_v63 = vshll.u32 %v4340_v27, 16  ;;  %v4343_v14 = vld [vmem:[#allocation2 + $0x28] sm:$0xf] }
 0x2b3   : >> { %v6189_v36 = vrot.slane %v6188_v15, 4  ;;  %v4435_v56 = vrot.slane %v4433_v23, 4  ;;  %v4442_v22 = vshll.u32 %v4341_v46, 16  ;;  %v4446_v5 = vshrl.u32 %v4341_v46, 16  ;;  %v4371_v46 = vld [vmem:[#allocation2 + $0x2c] sm:$0x1] }
 0x2b4   : >> { %5090 = vrot.lane.b32.xlu1 %v12334_v26, %s14409_s22  ;;  %v6184_v19 = vsel %vm14513_vm5, %v6179_v37, %v6183_v10  ;;  %v5932_v52 = vsel %vm14521_vm6, %v5930_v32, %v5931_v24  ;;  %v4452_v57 = vshll.u32 %v4370_v12, 16  ;;  %v4438_v40 = vrot.slane %v4436_v63, 5  ;;  %v6017_v15 = vld [vmem:[#allocation2 + $0x6c] sm:$0xf] }
 0x2b5   : >> { %v6194_v8 = vsel %vm14513_vm5, %v6189_v36, %v6193_v49  ;;  %v12419_v33 = vcombine.low %v5929_v17, %v5932_v52  ;;  %v4444_v45 = vrot.slane %v4442_v22, 5  ;;  %v4448_v38 = vrot.slane %v4446_v5, 4  ;;  %v6018_v17 = vld [vmem:[#allocation2 + $0x70] sm:$0xf]  ;;  %v5850_v52 = vld [vmem:[#allocation2 + $0x60] sm:$0xe] }
 0x2b6   : >> { %v12451_v20 = vcombine.low %v6184_v19, %v6194_v8  ;;  %v4454_v30 = vrot.slane %v4452_v57, 5  ;;  %v6196_v55 = vshrl.u32 %v6015_v28, 16  ;;  %v4439_v16 = vor.u32 %v4438_v40, %v4435_v56  ;;  %v6042_v56 = vld [vmem:[#allocation2 + $0x74] sm:$0x1]  ;;  %v5450_v40 = vld [vmem:[#allocation2 + $0x68] sm:$0x1] }
 0x2b7   : >> { %v6199_v60 = vshll.u32 %v6015_v28, 16  ;;  %v6205_v58 = vshll.u32 %v6016_v34, 16  ;;  %v6209_v50 = vshrl.u32 %v6016_v34, 16  ;;  %v4449_v11 = vor.u32 %v4448_v38, %v4444_v45  ;;  %v16125_v38 = vld [vmem:[#allocation2 + $0x3c] sm:$0xf] }
 0x2b8   : >> { %6701 = vrot.lane.b32.xlu0 %v12451_v20, %s14409_s22  ;;  %6541 = vrot.lane.b32.xlu1 %v12419_v33, %s14409_s22  ;;  %v6198_v35 = vrot.slane %v6196_v55, 4  ;;  %v6215_v6 = vshll.u32 %v6041_v9, 16  ;;  %v12388_v25 = vrot.slane %v5849_v31, 9  ;;  %v4440_v4 = vrot.slane %v4439_v16, 4  ;;  %v16123_v33 = vld [vmem:[#allocation2 + $0x64] sm:$0xf] }
 0x2b9   : >> { %v6201_v48 = vrot.slane %v6199_v60, 5  ;;  %v6207_v18 = vrot.slane %v6205_v58, 5  ;;  %v6211_v13 = vrot.slane %v6209_v50, 4  ;;  %v4450_v42 = vrot.slane %v4449_v11, 4 }
 0x2ba   : >> { %v6217_v43 = vrot.slane %v6215_v6, 5  ;;  %v5935_v10 = vrot.slane %v16100_v2, 5  ;;  %v5938_v27 = vrot.slane %v5449_v39, 5  ;;  %v4445_v0 = vsel %vm14513_vm5, %v4440_v4, %v4444_v45 }
 0x2bb   : >> { %v6202_v21 = vor.u32 %v6201_v48, %v6198_v35  ;;  %v6212_v49 = vor.u32 %v6211_v13, %v6207_v18  ;;  %v12368_v7 = vcombine.low %v16104_v29, %v16030_v47  ;;  %v4455_v1 = vsel %vm14513_vm5, %v4450_v42, %v4454_v30  ;;  %v4344_v30 = vld [vmem:[#allocation2 + $0x30] sm:$0xf]  ;;  %v4345_v42 = vld [vmem:[#allocation2 + $0x34] sm:$0xf] }
 0x2bc   : >> { %5252 = vrot.lane.b32.xlu0 %v12367_v59, %s14409_s22  ;;  %v5936_v53 = vsel %vm14521_vm6, %v12388_v25, %v5935_v10  ;;  %v5937_v24 = vrot.slane %v5935_v10, 4  ;;  %v4457_v41 = vshrl.u32 %v4342_v3, 16  ;;  %v12335_v12 = vcombine.low %v4445_v0, %v4455_v1 }
 0x2bd   : >> { %v6203_v23 = vrot.slane %v6202_v21, 4  ;;  %v6213_v26 = vrot.slane %v6212_v49, 4  ;;  %v4460_v37 = vshll.u32 %v4342_v3, 16  ;;  %v4466_v59 = vshll.u32 %v4343_v14, 16 }
 0x2be   : >> { %v5939_v47 = vsel %vm14521_vm6, %v5937_v24, %v5938_v27  ;;  %v4459_v32 = vrot.slane %v4457_v41, 4  ;;  %v4470_v36 = vshrl.u32 %v4343_v14, 16  ;;  %5092 = vrot.lane.b32.xlu1 %v12335_v12, %s14409_s22  ;;  %v4476_v8 = vshll.u32 %v4371_v46, 16  ;;  %v6019_v24 = vld [vmem:[#allocation2 + $0x78] sm:$0xf] }
 0x2bf   : >> { %v6208_v63 = vsel %vm14513_vm5, %v6203_v23, %v6207_v18  ;;  %v6218_v22 = vsel %vm14513_vm5, %v6213_v26, %v6217_v43  ;;  %v12420_v28 = vcombine.low %v5936_v53, %v5939_v47  ;;  %v4462_v19 = vrot.slane %v4460_v37, 5  ;;  %v4372_v43 = vld [vmem:[#allocation2 + $0x38] sm:$0x1]  ;;  %v6020_v46 = vld [vmem:[#allocation2 + $0x7c] sm:$0xf] }
 0x2c0   : >> { %v12452_v5 = vcombine.low %v6208_v63, %v6218_v22  ;;  %v4468_v57 = vrot.slane %v4466_v59, 5  ;;  %v4472_v34 = vrot.slane %v4470_v36, 4  ;;  %v6220_v9 = vshrl.u32 %v6017_v15, 16  ;;  %v6043_v23 = vld [vmem:[#allocation2 + $0x80] sm:$0x1] }
 0x2c1   : >> { %v4463_v45 = vor.u32 %v4462_v19, %v4459_v32  ;;  %v6223_v31 = vshll.u32 %v6017_v15, 16  ;;  %v6229_v20 = vshll.u32 %v6018_v17, 16  ;;  %v4478_v16 = vrot.slane %v4476_v8, 5  ;;  %v5451_v63 = vld [vmem:[#allocation2 + $0x74] sm:$0x1] }
 0x2c2   : >> { %6703 = vrot.lane.b32.xlu0 %v12452_v5, %s14409_s22  ;;  %v4473_v55 = vor.u32 %v4472_v34, %v4468_v57  ;;  %v6233_v60 = vshrl.u32 %v6018_v17, 16  ;;  %v6239_v58 = vshll.u32 %v6042_v56, 16  ;;  %6543 = vrot.lane.b32.xlu1 %v12420_v28, %s14409_s22  ;;  %v6222_v39 = vrot.slane %v6220_v9, 4  ;;  %v16146_v56 = vld [vmem:[#allocation2 + $0x70] sm:$0xf] }
 0x2c3   : >> { %v4464_v50 = vrot.slane %v4463_v45, 4  ;;  %v6225_v11 = vrot.slane %v6223_v31, 5  ;;  %v6231_v35 = vrot.slane %v6229_v20, 5  ;;  %v12389_v4 = vrot.slane %v5850_v52, 9  ;;  %v5851_v22 = vld [vmem:[#allocation2 + $0x6c] sm:$0xe] }
 0x2c4   : >> { %v4474_v6 = vrot.slane %v4473_v55, 4  ;;  %v6235_v25 = vrot.slane %v6233_v60, 4  ;;  %v6241_v29 = vrot.slane %v6239_v58, 5  ;;  %v5942_v13 = vrot.slane %v16123_v33, 5  ;;  %v4346_v9 = vld [vmem:[#allocation2 + $0x3c] sm:$0xf] }
 0x2c5   : >> { %v4469_v48 = vsel %vm14513_vm5, %v4464_v50, %v4468_v57  ;;  %v6226_v18 = vor.u32 %v6225_v11, %v6222_v39  ;;  %v5945_v3 = vrot.slane %v5450_v40, 5  ;;  %v12369_v0 = vcombine.low %v16125_v38, %v16054_v44  ;;  %v16148_v57 = vld [vmem:[#allocation2 + $0x48] sm:$0xf]  ;;  %v4347_v50 = vld [vmem:[#allocation2 + $0x40] sm:$0xf] }
 0x2c6   : >> { %5254 = vrot.lane.b32.xlu0 %v12368_v7, %s14409_s22  ;;  %v4479_v10 = vsel %vm14513_vm5, %v4474_v6, %v4478_v16  ;;  %v6236_v27 = vor.u32 %v6235_v25, %v6231_v35  ;;  %v4481_v21 = vshrl.u32 %v4344_v30, 16  ;;  %v5943_v1 = vsel %vm14521_vm6, %v12389_v4, %v5942_v13 }
 0x2c7   : >> { %v12336_v49 = vcombine.low %v4469_v48, %v4479_v10  ;;  %v6227_v14 = vrot.slane %v6226_v18, 4  ;;  %v5944_v53 = vrot.slane %v5942_v13, 4  ;;  %v4484_v12 = vshll.u32 %v4344_v30, 16  ;;  %v4373_v18 = vld [vmem:[#allocation2 + $0x44] sm:$0x1] }
 0x2c8   : >> { %v6237_v41 = vrot.slane %v6236_v27, 4  ;;  %v4483_v15 = vrot.slane %v4481_v21, 4  ;;  %v4490_v7 = vshll.u32 %v4345_v42, 16  ;;  %v4494_v37 = vshrl.u32 %v4345_v42, 16  ;;  %v6021_v10 = vld [vmem:[#allocation2 + $0x84] sm:$0xf] }
 0x2c9   : >> { %5094 = vrot.lane.b32.xlu1 %v12336_v49, %s14409_s22  ;;  %v6232_v26 = vsel %vm14513_vm5, %v6227_v14, %v6231_v35  ;;  %v5946_v44 = vsel %vm14521_vm6, %v5944_v53, %v5945_v3  ;;  %v4500_v17 = vshll.u32 %v4372_v43, 16  ;;  %v4486_v59 = vrot.slane %v4484_v12, 5  ;;  %v6022_v27 = vld [vmem:[#allocation2 + $0x88] sm:$0xf]  ;;  %v6044_v53 = vld [vmem:[#allocation2 + $0x8c] sm:$0x1] }
 0x2ca   : >> { %v6242_v47 = vsel %vm14513_vm5, %v6237_v41, %v6241_v29  ;;  %v12421_v32 = vcombine.low %v5943_v1, %v5946_v44  ;;  %v4492_v36 = vrot.slane %v4490_v7, 5  ;;  %v4496_v19 = vrot.slane %v4494_v37, 4 }
 0x2cb   : >> { %v12453_v28 = vcombine.low %v6232_v26, %v6242_v47  ;;  %v4502_v52 = vrot.slane %v4500_v17, 5  ;;  %v6244_v5 = vshrl.u32 %v6019_v24, 16  ;;  %v4487_v34 = vor.u32 %v4486_v59, %v4483_v15  ;;  %v16169_v47 = vld [vmem:[#allocation2 + $0x7c] sm:$0xf] }
 0x2cc   : >> { %v6247_v8 = vshll.u32 %v6019_v24, 16  ;;  %v6253_v40 = vshll.u32 %v6020_v46, 16  ;;  %v6257_v45 = vshrl.u32 %v6020_v46, 16  ;;  %v4497_v31 = vor.u32 %v4496_v19, %v4492_v36 }
 0x2cd   : >> { %6705 = vrot.lane.b32.xlu0 %v12453_v28, %s14409_s22  ;;  %6545 = vrot.lane.b32.xlu1 %v12421_v32, %s14409_s22  ;;  %v6246_v20 = vrot.slane %v6244_v5, 4  ;;  %v6263_v38 = vshll.u32 %v6043_v23, 16  ;;  %v12390_v30 = vrot.slane %v5851_v22, 9  ;;  %v4488_v55 = vrot.slane %v4487_v34, 4  ;;  %v5852_v23 = vld [vmem:[#allocation2 + $0x78] sm:$0xe] }
 0x2ce   : >> { %v6249_v16 = vrot.slane %v6247_v8, 5  ;;  %v6255_v60 = vrot.slane %v6253_v40, 5  ;;  %v6259_v58 = vrot.slane %v6257_v45, 4  ;;  %v4498_v39 = vrot.slane %v4497_v31, 4  ;;  %v5452_v32 = vld [vmem:[#allocation2 + $0x80] sm:$0x1] }
 0x2cf   : >> { %v6265_v11 = vrot.slane %v6263_v38, 5  ;;  %v5949_v35 = vrot.slane %v16146_v56, 5  ;;  %v5952_v6 = vrot.slane %v5451_v63, 5  ;;  %v4493_v25 = vsel %vm14513_vm5, %v4488_v55, %v4492_v36  ;;  %v16171_v28 = vld [vmem:[#allocation2 + $0x54] sm:$0xf] }
 0x2d0   : >> { %v6250_v29 = vor.u32 %v6249_v16, %v6246_v20  ;;  %v6260_v4 = vor.u32 %v6259_v58, %v6255_v60  ;;  %v12370_v48 = vcombine.low %v16148_v57, %v16077_v54  ;;  %v4503_v13 = vsel %vm14513_vm5, %v4498_v39, %v4502_v52 }
 0x2d1   : >> { %5256 = vrot.lane.b32.xlu0 %v12369_v0, %s14409_s22  ;;  %v5950_v3 = vsel %vm14521_vm6, %v12390_v30, %v5949_v35  ;;  %v5951_v42 = vrot.slane %v5949_v35, 4  ;;  %v4505_v43 = vshrl.u32 %v4346_v9, 16  ;;  %v12337_v21 = vcombine.low %v4493_v25, %v4503_v13 }
 0x2d2   : >> { %v6251_v49 = vrot.slane %v6250_v29, 4  ;;  %v6261_v14 = vrot.slane %v6260_v4, 4  ;;  %v4508_v1 = vshll.u32 %v4346_v9, 16  ;;  %v4514_v0 = vshll.u32 %v4347_v50, 16  ;;  %v4348_v9 = vld [vmem:[#allocation2 + $0x48] sm:$0xf] }
 0x2d3   : >> { %v5953_v54 = vsel %vm14521_vm6, %v5951_v42, %v5952_v6  ;;  %v4507_v24 = vrot.slane %v4505_v43, 4  ;;  %v4518_v46 = vshrl.u32 %v4347_v50, 16  ;;  %5096 = vrot.lane.b32.xlu1 %v12337_v21, %s14409_s22  ;;  %v4524_v17 = vshll.u32 %v4373_v18, 16  ;;  %v4349_v50 = vld [vmem:[#allocation2 + $0x4c] sm:$0xf] }
 0x2d4   : >> { %v6256_v41 = vsel %vm14513_vm5, %v6251_v49, %v6255_v60  ;;  %v6266_v15 = vsel %vm14513_vm5, %v6261_v14, %v6265_v11  ;;  %v12422_v12 = vcombine.low %v5950_v3, %v5953_v54  ;;  %v4510_v7 = vrot.slane %v4508_v1, 5  ;;  %v4374_v6 = vld [vmem:[#allocation2 + $0x50] sm:$0x1]  ;;  %v6024_v42 = vld [vmem:[#allocation2 + $0x94] sm:$0xf] }
 0x2d5   : >> { %v12454_v26 = vcombine.low %v6256_v41, %v6266_v15  ;;  %v4516_v44 = vrot.slane %v4514_v0, 5  ;;  %v4520_v37 = vrot.slane %v4518_v46, 4  ;;  %v6268_v36 = vshrl.u32 %v6021_v10, 16  ;;  %v6023_v29 = vld [vmem:[#allocation2 + $0x90] sm:$0xf] }
 0x2d6   : >> { %v4511_v59 = vor.u32 %v4510_v7, %v4507_v24  ;;  %v6271_v63 = vshll.u32 %v6021_v10, 16  ;;  %v6277_v22 = vshll.u32 %v6022_v27, 16  ;;  %v4526_v52 = vrot.slane %v4524_v17, 5  ;;  %v6045_v21 = vld [vmem:[#allocation2 + $0x98] sm:$0x1] }
 0x2d7   : >> { %6707 = vrot.lane.b32.xlu0 %v12454_v26, %s14409_s22  ;;  %v4521_v19 = vor.u32 %v4520_v37, %v4516_v44  ;;  %v6281_v5 = vshrl.u32 %v6022_v27, 16  ;;  %v6287_v57 = vshll.u32 %v6044_v53, 16  ;;  %6547 = vrot.lane.b32.xlu1 %v12422_v12, %s14409_s22  ;;  %v6270_v8 = vrot.slane %v6268_v36, 4  ;;  %v16192_v46 = vld [vmem:[#allocation2 + $0x88] sm:$0xf] }
 0x2d8   : >> { %v4512_v34 = vrot.slane %v4511_v59, 4  ;;  %v6273_v40 = vrot.slane %v6271_v63, 5  ;;  %v6279_v45 = vrot.slane %v6277_v22, 5  ;;  %v12391_v30 = vrot.slane %v5852_v23, 9  ;;  %v5453_v41 = vld [vmem:[#allocation2 + $0x8c] sm:$0x1] }
 0x2d9   : >> { %v4522_v31 = vrot.slane %v4521_v19, 4  ;;  %v6283_v20 = vrot.slane %v6281_v5, 4  ;;  %v6289_v38 = vrot.slane %v6287_v57, 5  ;;  %v5956_v60 = vrot.slane %v16169_v47, 5  ;;  %v5853_v15 = vld [vmem:[#allocation2 + $0x84] sm:$0xe] }
 0x2da   : >> { %v4517_v55 = vsel %vm14513_vm5, %v4512_v34, %v4516_v44  ;;  %v6274_v16 = vor.u32 %v6273_v40, %v6270_v8  ;;  %v5959_v58 = vrot.slane %v5452_v32, 5  ;;  %v12371_v35 = vcombine.low %v16171_v28, %v16100_v2  ;;  %v16196_v28 = vld [vmem:[#allocation2 + $0x60] sm:$0xf]  ;;  %v4350_v34 = vld [vmem:[#allocation2 + $0x54] sm:$0xf] }
 0x2db   : >> { %5258 = vrot.lane.b32.xlu0 %v12370_v48, %s14409_s22  ;;  %v4527_v39 = vsel %vm14513_vm5, %v4522_v31, %v4526_v52  ;;  %v6284_v11 = vor.u32 %v6283_v20, %v6279_v45  ;;  %v4529_v25 = vshrl.u32 %v4348_v9, 16  ;;  %v5957_v13 = vsel %vm14521_vm6, %v12391_v30, %v5956_v60  ;;  %v4351_v31 = vld [vmem:[#allocation2 + $0x58] sm:$0xf] }
 0x2dc   : >> { %v12338_v4 = vcombine.low %v4517_v55, %v4527_v39  ;;  %v6275_v18 = vrot.slane %v6274_v16, 4  ;;  %v5958_v3 = vrot.slane %v5956_v60, 4  ;;  %v4532_v48 = vshll.u32 %v4348_v9, 16  ;;  %v4375_v16 = vld [vmem:[#allocation2 + $0x5c] sm:$0x1] }
 0x2dd   : >> { %v6285_v43 = vrot.slane %v6284_v11, 4  ;;  %v4531_v10 = vrot.slane %v4529_v25, 4  ;;  %v4538_v27 = vshll.u32 %v4349_v50, 16  ;;  %v4542_v14 = vshrl.u32 %v4349_v50, 16  ;;  %v6025_v11 = vld [vmem:[#allocation2 + $0x9c] sm:$0xf] }
 0x2de   : >> { %5098 = vrot.lane.b32.xlu1 %v12338_v4, %s14409_s22  ;;  %v6280_v2 = vsel %vm14513_vm5, %v6275_v18, %v6279_v45  ;;  %v5960_v49 = vsel %vm14521_vm6, %v5958_v3, %v5959_v58  ;;  %v4548_v1 = vshll.u32 %v4374_v6, 16  ;;  %v4534_v24 = vrot.slane %v4532_v48, 5  ;;  %v6026_v6 = vld [vmem:[#allocation2 + $0xa0] sm:$0xf] }
 0x2df   : >> { %v6290_v53 = vsel %vm14513_vm5, %v6285_v43, %v6289_v38  ;;  %v12423_v54 = vcombine.low %v5957_v13, %v5960_v49  ;;  %v4540_v0 = vrot.slane %v4538_v27, 5  ;;  %v4544_v7 = vrot.slane %v4542_v14, 4  ;;  %v6046_v27 = vld [vmem:[#allocation2 + $0xa4] sm:$0x1] }
 0x2e0   : >> { %v12455_v12 = vcombine.low %v6280_v2, %v6290_v53  ;;  %v4550_v23 = vrot.slane %v4548_v1, 5  ;;  %v6292_v26 = vshrl.u32 %v6023_v29, 16  ;;  %v4535_v44 = vor.u32 %v4534_v24, %v4531_v10  ;;  %v16215_v53 = vld [vmem:[#allocation2 + $0x94] sm:$0xf] }
 0x2e1   : >> { %v6295_v37 = vshll.u32 %v6023_v29, 16  ;;  %v6301_v17 = vshll.u32 %v6024_v42, 16  ;;  %v6305_v32 = vshrl.u32 %v6024_v42, 16  ;;  %v4545_v59 = vor.u32 %v4544_v7, %v4540_v0  ;;  %v4352_v7 = vld [vmem:[#allocation2 + $0x60] sm:$0xf] }
 0x2e2   : >> { %6709 = vrot.lane.b32.xlu0 %v12455_v12, %s14409_s22  ;;  %6549 = vrot.lane.b32.xlu1 %v12423_v54, %s14409_s22  ;;  %v6294_v36 = vrot.slane %v6292_v26, 4  ;;  %v6311_v63 = vshll.u32 %v6045_v21, 16  ;;  %v12392_v22 = vrot.slane %v5853_v15, 9  ;;  %v4536_v19 = vrot.slane %v4535_v44, 4  ;;  %v5854_v21 = vld [vmem:[#allocation2 + $0x90] sm:$0xe] }
 0x2e3   : >> { %v6297_v52 = vrot.slane %v6295_v37, 5  ;;  %v6303_v5 = vrot.slane %v6301_v17, 5  ;;  %v6307_v57 = vrot.slane %v6305_v32, 4  ;;  %v4546_v8 = vrot.slane %v4545_v59, 4  ;;  %v5454_v54 = vld [vmem:[#allocation2 + $0x98] sm:$0x1] }
 0x2e4   : >> { %v6313_v40 = vrot.slane %v6311_v63, 5  ;;  %v5963_v45 = vrot.slane %v16192_v46, 5  ;;  %v5966_v9 = vrot.slane %v5453_v41, 5  ;;  %v4541_v20 = vsel %vm14513_vm5, %v4536_v19, %v4540_v0  ;;  %v16217_v12 = vld [vmem:[#allocation2 + $0x6c] sm:$0xf] }
 0x2e5   : >> { %v6298_v38 = vor.u32 %v6297_v52, %v6294_v36  ;;  %v6308_v30 = vor.u32 %v6307_v57, %v6303_v5  ;;  %v12372_v55 = vcombine.low %v16196_v28, %v16123_v33  ;;  %v4551_v60 = vsel %vm14513_vm5, %v4546_v8, %v4550_v23  ;;  %v4353_v8 = vld [vmem:[#allocation2 + $0x64] sm:$0xf] }
 0x2e6   : >> { %5260 = vrot.lane.b32.xlu0 %v12371_v35, %s14409_s22  ;;  %v5964_v58 = vsel %vm14521_vm6, %v12392_v22, %v5963_v45  ;;  %v5965_v50 = vrot.slane %v5963_v45, 4  ;;  %v4553_v39 = vshrl.u32 %v4350_v34, 16  ;;  %v12339_v25 = vcombine.low %v4541_v20, %v4551_v60 }
 0x2e7   : >> { %v6299_v29 = vrot.slane %v6298_v38, 4  ;;  %v6309_v4 = vrot.slane %v6308_v30, 4  ;;  %v4556_v18 = vshll.u32 %v4350_v34, 16  ;;  %v4562_v3 = vshll.u32 %v4351_v31, 16  ;;  %v16231_v30 = vld [vmem:[#allocation2 + $0x78] sm:$0xf] }
 0x2e8   : >> { %v5967_v33 = vsel %vm14521_vm6, %v5965_v50, %v5966_v9  ;;  %v4555_v13 = vrot.slane %v4553_v39, 4  ;;  %v4566_v35 = vshrl.u32 %v4351_v31, 16  ;;  %5100 = vrot.lane.b32.xlu1 %v12339_v25, %s14409_s22  ;;  %v4572_v1 = vshll.u32 %v4375_v16, 16 }
 0x2e9   : >> { %v6304_v42 = vsel %vm14513_vm5, %v6299_v29, %v6303_v5  ;;  %v6314_v43 = vsel %vm14513_vm5, %v6309_v4, %v6313_v40  ;;  %v12424_v10 = vcombine.low %v5964_v58, %v5967_v33  ;;  %v4558_v48 = vrot.slane %v4556_v18, 5  ;;  %v4376_v40 = vld [vmem:[#allocation2 + $0x68] sm:$0x1]  ;;  %v4377_v18 = vld [vmem:[#allocation2 + $0x74] sm:$0x1] }
 0x2ea   : >> { %v12456_v2 = vcombine.low %v6304_v42, %v6314_v43  ;;  %v4564_v49 = vrot.slane %v4562_v3, 5  ;;  %v4568_v14 = vrot.slane %v4566_v35, 4  ;;  %v6316_v0 = vshrl.u32 %v6025_v11, 16  ;;  %v16242_v35 = vld [vmem:[#allocation2 + $0x84] sm:$0xf] }
 0x2eb   : >> { %v4559_v24 = vor.u32 %v4558_v48, %v4555_v13  ;;  %v6319_v41 = vshll.u32 %v6025_v11, 16  ;;  %v6325_v15 = vshll.u32 %v6026_v6, 16  ;;  %v4574_v26 = vrot.slane %v4572_v1, 5  ;;  %v16224_v45 = vpop.permute.xlu0 %6715  ;;  %v4354_v11 = vld [vmem:[#allocation2 + $0x6c] sm:$0xf] }
 0x2ec   : >> { %6711 = vrot.lane.b32.xlu0 %v12456_v2, %s14409_s22  ;;  %v4569_v23 = vor.u32 %v4568_v14, %v4564_v49  ;;  %v6329_v44 = vshrl.u32 %v6026_v6, 16  ;;  %v6335_v37 = vshll.u32 %v6046_v27, 16  ;;  %6551 = vrot.lane.b32.xlu1 %v12424_v10, %s14409_s22  ;;  %v6318_v32 = vrot.slane %v6316_v0, 4  ;;  %v4356_v14 = vld [vmem:[#allocation2 + $0x78] sm:$0xf] }
 0x2ed   : >> { %v4560_v17 = vrot.slane %v4559_v24, 4  ;;  %v6321_v59 = vrot.slane %v6319_v41, 5  ;;  %v6327_v36 = vrot.slane %v6325_v15, 5  ;;  %v12393_v19 = vrot.slane %v5854_v21, 9  ;;  %v4357_v15 = vld [vmem:[#allocation2 + $0x7c] sm:$0xf] }
 0x2ee   : >> { %v4570_v63 = vrot.slane %v4569_v23, 4  ;;  %v6331_v22 = vrot.slane %v6329_v44, 4  ;;  %v6337_v28 = vrot.slane %v6335_v37, 5  ;;  %v5970_v57 = vrot.slane %v16215_v53, 5 }
 0x2ef   : >> { %v4565_v52 = vsel %vm14513_vm5, %v4560_v17, %v4564_v49  ;;  %v6322_v5 = vor.u32 %v6321_v59, %v6318_v32  ;;  %v5973_v34 = vrot.slane %v5454_v54, 5  ;;  %v12373_v20 = vcombine.low %v16217_v12, %v16146_v56  ;;  %v16233_v16 = vpop.permute.xlu1 %6691  ;;  %v16248_v1 = vpop.permute.xlu0 %6555  ;;  %v4378_v59 = vld [vmem:[#allocation2 + $0x80] sm:$0x1] }
 0x2f0   : >> { %5262 = vrot.lane.b32.xlu0 %v12372_v55, %s14409_s22  ;;  %v4575_v9 = vsel %vm14513_vm5, %v4570_v63, %v4574_v26  ;;  %v6332_v31 = vor.u32 %v6331_v22, %v6327_v36  ;;  %v4577_v38 = vshrl.u32 %v4352_v7, 16  ;;  %v5971_v50 = vsel %vm14521_vm6, %v12393_v19, %v5970_v57  ;;  %v4355_v55 = vld [vmem:[#allocation2 + $0x70] sm:$0xf]  ;;  %v14029_v19 = vld [vmem:[#allocation2 + $0xac] sm:$0xf] }
 0x2f1   : >> { %v12340_v60 = vcombine.low %v4565_v52, %v4575_v9  ;;  %v6323_v58 = vrot.slane %v6322_v5, 4  ;;  %v5972_v39 = vrot.slane %v5970_v57, 4  ;;  %v4580_v29 = vshll.u32 %v4352_v7, 16 }
 0x2f2   : >> { %v6333_v6 = vrot.slane %v6332_v31, 4  ;;  %v4579_v25 = vrot.slane %v4577_v38, 4  ;;  %v4586_v4 = vshll.u32 %v4353_v8, 16  ;;  %v4590_v13 = vshrl.u32 %v4353_v8, 16  ;;  %v16263_v38 = vld [vmem:[#allocation2 + $0x9c] sm:$0xf] }
 0x2f3   : >> { %5102 = vrot.lane.b32.xlu1 %v12340_v60, %s14409_s22  ;;  %v6328_v56 = vsel %vm14513_vm5, %v6323_v58, %v6327_v36  ;;  %v5974_v33 = vsel %vm14521_vm6, %v5972_v39, %v5973_v34  ;;  %v4596_v3 = vshll.u32 %v4376_v40, 16  ;;  %v4582_v10 = vrot.slane %v4580_v29, 5  ;;  %v16250_v12 = vpop.permute.xlu1 %6531 }
 0x2f4   : >> { %v6338_v42 = vsel %vm14513_vm5, %v6333_v6, %v6337_v28  ;;  %v12425_v43 = vcombine.low %v5971_v50, %v5974_v33  ;;  %v4588_v48 = vrot.slane %v4586_v4, 5  ;;  %v4592_v21 = vrot.slane %v4590_v13, 4  ;;  %v14028_v28 = vld [vmem:[#allocation2 + $0xa8] sm:$0xf]  ;;  %v14030_v4 = vld [vmem:[#allocation2 + $0xa4] sm:$0x1] }
 0x2f5   : >> { %v12457_v27 = vcombine.low %v6328_v56, %v6338_v42  ;;  %v4598_v2 = vrot.slane %v4596_v3, 5  ;;  %v12374_v49 = vcombine.low %v16231_v30, %v16169_v47  ;;  %v4583_v54 = vor.u32 %v4582_v10, %v4579_v25 }
 0x2f6   : >> { %v4601_v24 = vshrl.u32 %v4354_v11, 16  ;;  %v4604_v0 = vshll.u32 %v4354_v11, 16  ;;  %v4610_v41 = vshll.u32 %v4355_v55, 16  ;;  %v4593_v7 = vor.u32 %v4592_v21, %v4588_v48 }
 0x2f7   : >> { %6713 = vrot.lane.b32.xlu0 %v12457_v27, %s14409_s22  ;;  %6553 = vrot.lane.b32.xlu1 %v12425_v43, %s14409_s22  ;;  %v4614_v23 = vshrl.u32 %v4355_v55, 16  ;;  %v4620_v26 = vshll.u32 %v4377_v18, 16  ;;  %v12375_v47 = vcombine.low %v16242_v35, %v16192_v46  ;;  %v4584_v44 = vrot.slane %v4583_v54, 4  ;;  %v16267_v11 = vpop.permute.xlu1 %6557 }
 0x2f8   : >> { %v4603_v37 = vrot.slane %v4601_v24, 4  ;;  %v4606_v17 = vrot.slane %v4604_v0, 5  ;;  %v4612_v32 = vrot.slane %v4610_v41, 5  ;;  %v4594_v36 = vrot.slane %v4593_v7, 4  ;;  %v14032_v0 = vld [vmem:[#allocation2 + $0x14] sm:$0x1] }
 0x2f9   : >> { %v4616_v63 = vrot.slane %v4614_v23, 4  ;;  %v4622_v22 = vrot.slane %v4620_v26, 5  ;;  %v12442_v52 = vcombine.low %v14028_v28, %v14029_v19  ;;  %v4589_v5 = vsel %vm14513_vm5, %v4584_v44, %v4588_v48  ;;  %v16265_v30 = vpop.permute.xlu0 %6717 }
 0x2fa   : >> { %v4607_v57 = vor.u32 %v4606_v17, %v4603_v37  ;;  %v4625_v34 = vshrl.u32 %v4356_v14, 16  ;;  %v4628_v8 = vshll.u32 %v4356_v14, 16  ;;  %v4599_v46 = vsel %vm14513_vm5, %v4594_v36, %v4598_v2  ;;  %v16277_v2 = vld [vmem:[#allocation2 + $0xa0] sm:$0xf] }
 0x2fb   : >> { %5264 = vrot.lane.b32.xlu0 %v12373_v20, %s14409_s22  ;;  %v4617_v40 = vor.u32 %v4616_v63, %v4612_v32  ;;  %v6837_v9 = vsel %vm1282_vm7, %v12442_v52, %v16224_v45  ;;  %v4634_v31 = vshll.u32 %v4357_v15, 16  ;;  %v12341_v60 = vcombine.low %v4589_v5, %v4599_v46 }
 0x2fc   : >> { %v4608_v58 = vrot.slane %v4607_v57, 4  ;;  %7107 = vmatprep.mubr.bf16.mxu1 %v6837_v9  ;;  %v4627_v50 = vrot.slane %v4625_v34, 4  ;;  %v4630_v39 = vrot.slane %v4628_v8, 5  ;;  %v4638_v6 = vshrl.u32 %v4357_v15, 16  ;;  %v14033_v15 = vld [vmem:[#allocation2 + $0xc] sm:$0xf]  ;;  %v16286_v26 = vpop.permute.xlu1 %6533 }
 0x2fd   : >> { %v4618_v20 = vrot.slane %v4617_v40, 4  ;;  %v4636_v55 = vrot.slane %v4634_v31, 5  ;;  %v4644_v25 = vshll.u32 %v4378_v59, 16  ;;  %5104 = vrot.lane.b32.xlu1 %v12341_v60, %s14409_s22  ;;  %v5767_v18 = vshll.u32 %v14030_v4, 16  ;;  %v16291_v34 = vld [vmem:[#allocation2 + $0xa8] sm:$0xf] }
 0x2fe   : >> { %v4613_v45 = vsel %vm14513_vm5, %v4608_v58, %v4612_v32  ;;  %v4631_v29 = vor.u32 %v4630_v39, %v4627_v50  ;;  %v5748_v56 = vshrl.u32 %v16263_v38, 16  ;;  %v4640_v13 = vrot.slane %v4638_v6, 4  ;;  %v14035_v40 = vld [vmem:[#allocation2 + $0x18] sm:$0xf]  ;;  %v14036_v9 = vld [vmem:[#allocation2 + $0x1c] sm:$0xf] }
 0x2ff   : >> { %5266 = vrot.lane.b32.xlu0 %v12374_v49, %s14409_s22  ;;  %v4623_v33 = vsel %vm14513_vm5, %v4618_v20, %v4622_v22  ;;  %v4646_v3 = vrot.slane %v4644_v25, 5  ;;  %v5751_v35 = vshll.u32 %v16263_v38, 16  ;;  %v5769_v10 = vrot.slane %v5767_v18, 5  ;;  %v16281_v49 = vpop.permute.xlu0 %6693  ;;  %v14034_v22 = vld [vmem:[#allocation2 + $0x10] sm:$0xf] }
 0x300   : >> { %v12342_v42 = vcombine.low %v4613_v45, %v4623_v33  ;;  %v4632_v43 = vrot.slane %v4631_v29, 4  ;;  %v5750_v48 = vrot.slane %v5748_v56, 4  ;;  %v4641_v27 = vor.u32 %v4640_v13, %v4636_v55  ;;  %v14037_v39 = vld [vmem:[#allocation2 + $0xb4] sm:$0xf]  ;;  %v14038_v20 = vld [vmem:[#allocation2 + $0xb8] sm:$0xf] }
 0x301   : >> { %v5753_v21 = vrot.slane %v5751_v35, 5  ;;  %v5757_v14 = vshll.u32 %v16277_v2, 16  ;;  %v5761_v54 = vshrl.u32 %v16277_v2, 16  ;;  %v5479_v41 = vshll.u32 %v14032_v0, 16  ;;  %v4966_v18 = vld [vmem:[#allocation2 + $0x90] sm:$0xf] }
 0x302   : >> { %5106 = vrot.lane.b32.xlu1 %v12342_v42, %s14409_s22  ;;  %v4637_v24 = vsel %vm14513_vm5, %v4632_v43, %v4636_v55  ;;  %v5460_v7 = vshrl.u32 %v14033_v15, 16  ;;  %v5463_v23 = vshll.u32 %v14033_v15, 16  ;;  %v4642_v44 = vrot.slane %v4641_v27, 4  ;;  %v16308_v35 = vld [vmem:[#allocation2 + $0xac] sm:$0xf]  ;;  %v13974_v27 = vld [vmem:[%s15940_s21] sm:$0xff]  }
 0x303   : >> { %5268 = vrot.lane.b32.xlu0 %v12375_v47, %s14409_s22  ;;  %v5754_v37 = vor.u32 %v5753_v21, %v5750_v48  ;;  %v5759_v17 = vrot.slane %v5757_v14, 5  ;;  %v5763_v32 = vrot.slane %v5761_v54, 4  ;;  %v5481_v59 = vrot.slane %v5479_v41, 5  ;;  %v16302_v56 = vpop.permute.xlu1 %6559  ;;  %v4358_v42 = vld [vmem:[#allocation2 + $0x84] sm:$0xf]  ;;  %v13977_v54 = vld [vmem:[%s15940_s21 + $0x48] sm:$0xff]  }
 0x304   : >> { %v5462_v36 = vrot.slane %v5460_v7, 4  ;;  %v5465_v63 = vrot.slane %v5463_v23, 5  ;;  %v5469_v28 = vshll.u32 %v14034_v22, 16  ;;  %v4647_v19 = vsel %vm14513_vm5, %v4642_v44, %v4646_v3  ;;  %v16295_v6 = vpop.permute.xlu0 %6719  ;;  %v14040_v41 = vld [vmem:[#allocation2 + $0xb0] sm:$0x1] }
 0x305   : >> { %v5755_v52 = vrot.slane %v5754_v37, 4  ;;  %v5764_v5 = vor.u32 %v5763_v32, %v5759_v17  ;;  %v5473_v57 = vshrl.u32 %v14034_v22, 16  ;;  %v12343_v8 = vcombine.low %v4637_v24, %v4647_v19  ;;  %v4359_v15 = vld [vmem:[#allocation2 + $0x88] sm:$0xf]  ;;  %v4379_v37 = vld [vmem:[#allocation2 + $0x8c] sm:$0x1] }
 0x306   : >> { %v5466_v46 = vor.u32 %v5465_v63, %v5462_v36  ;;  %v5471_v47 = vrot.slane %v5469_v28, 5  ;;  %v12430_v31 = vcombine.low %v14035_v40, %v14036_v9  ;;  %v12443_v55 = vcombine.low %v14037_v39, %v14038_v20  ;;  %v13981_v40 = vld [vmem:[%s15940_s21 + $0x50] sm:$0xff]   ;;  %v14000_v20 = vld [vmem:[%s15940_s21 + $0x108] sm:$0xff]  }
 0x307   : >> { %v5760_v60 = vsel %vm14513_vm5, %v5755_v52, %v5759_v17  ;;  %v5765_v58 = vrot.slane %v5764_v5, 4  ;;  %v5475_v50 = vrot.slane %v5473_v57, 4  ;;  %5108 = vrot.lane.b32.xlu1 %v12343_v8, %s14409_s22  ;;  %v5772_v29 = vshrl.u32 %v16291_v34, 16 }
 0x308   : >> { %v5467_v25 = vrot.slane %v5466_v46, 4  ;;  %v6789_v45 = vsel %vm1282_vm7, %v12430_v31, %v16233_v16  ;;  %v5775_v4 = vshll.u32 %v16291_v34, 16  ;;  %v6841_v3 = vsel %vm1282_vm7, %v12443_v55, %v16265_v30  ;;  %v16323_v28 = vpop.permute.xlu0 %6695  ;;  %v16327_v57 = vpop.permute.xlu1 %6535 }
 0x309   : >> { %v5770_v33 = vsel %vm14513_vm5, %v5765_v58, %v5769_v10  ;;  %v5476_v13 = vor.u32 %v5475_v50, %v5471_v47  ;;  %7011 = vmatprep.mubr.bf16.mxu0 %v6789_v45  ;;  %v5781_v16 = vshll.u32 %v16308_v35, 16  ;;  %v5774_v21 = vrot.slane %v5772_v29, 4  ;;  %v14041_v58 = vld [vmem:[#allocation2 + $0x24] sm:$0xf]  ;;  %v14042_v50 = vld [vmem:[#allocation2 + $0x28] sm:$0xf] }
 0x30a   : >> { %v12410_v43 = vcombine.low %v5760_v60, %v5770_v33  ;;  %v5472_v48 = vsel %vm14513_vm5, %v5467_v25, %v5471_v47  ;;  %v5777_v14 = vrot.slane %v5775_v4, 5  ;;  %v5785_v0 = vshrl.u32 %v16308_v35, 16  ;;  %v13982_v4 = vld [vmem:[%s15940_s21 + $0x10] sm:$0xff]   ;;  %v14044_v33 = vld [vmem:[#allocation2 + $0x18] sm:$0xf] }
 0x30b   : >> { %v5477_v24 = vrot.slane %v5476_v13, 4  ;;  %v16315_v10 = vrot.slane %v5781_v16, 5  ;;  %v5791_v30 = vshll.u32 %v14040_v41, 16  ;;  %v12376_v44 = vcombine.low %v4966_v18, %v16215_v53  ;;  %v13979_v53 = vld [vmem:[%s15940_s21 + $0x8] sm:$0xff]   ;;  %v14043_v18 = vld [vmem:[%s15940_s21 + $0x100] sm:$0xff]  }
 0x30c   : >> { %v6773_v7 = vsel %vm1282_vm7, %v12410_v43, %v16248_v1  ;;  %v5778_v23 = vor.u32 %v5777_v14, %v5774_v21  ;;  %v4649_v17 = vshrl.u32 %v4358_v42, 16  ;;  %v5787_v36 = vrot.slane %v5785_v0, 4  ;;  %v14045_v16 = vld [vmem:[#allocation2 + $0x1c] sm:$0xf]  ;;  %v16341_v43 = vld [vmem:[#allocation2 + $0xb4] sm:$0xf] }
 0x30d   : >> { %v5482_v32 = vsel %vm14513_vm5, %v5477_v24, %v5481_v59  ;;  %7108 = vmatmul.mubr.bf16.vlgmr.msra.gmra.mrb[0].mxu1 %v6773_v7  ;;  %v5793_v63 = vrot.slane %v5791_v30, 5  ;;  %v4652_v22 = vshll.u32 %v4358_v42, 16  ;;  %5270 = vrot.lane.b32.xlu0 %v12376_v44, %s14409_s22  ;;  %v4658_v5 = vshll.u32 %v4359_v15, 16 }
 0x30e   : >> { %v12398_v19 = vcombine.low %v5472_v48, %v5482_v32  ;;  %13199 = vmatpush3.bf16.msra.mxu1 %v13974_v27  ;;  %v5779_v52 = vrot.slane %v5778_v23, 4  ;;  %v4651_v1 = vrot.slane %v4649_v17, 4  ;;  %v5788_v59 = vor.u32 %v5787_v36, %v16315_v10  ;;  %7115 = vmatprep.mubr.bf16.mxu1 %v6841_v3  ;;  %v13985_v48 = vld [vmem:[%s15940_s21 + $0x58] sm:$0xff]   ;;  %v16348_v30 = vpop.permute.xlu1 %6561 }
 0x30f   : >> { %13200 = vmatprep.subr.bf16.mxu1 %v13977_v54  ;;  %v4654_v8 = vrot.slane %v4652_v22, 5  ;;  %v4662_v46 = vshrl.u32 %v4359_v15, 16  ;;  %v4668_v47 = vshll.u32 %v4379_v37, 16  ;;  %v4660_v60 = vrot.slane %v4658_v5, 5  ;;  %v16346_v24 = vpop.permute.xlu0 %6721  ;;  %v14009_v15 = vld [vmem:[%s15940_s21 + $0x110] sm:$0xff]  }
 0x310   : >> { %v6725_v9 = vsel %vm1282_vm7, %v12398_v19, %v16250_v12  ;;  %v5784_v31 = vsel %vm14513_vm5, %v5779_v52, %v16315_v10  ;;  %v12431_v39 = vcombine.low %v14041_v58, %v14042_v50  ;;  %v5789_v55 = vrot.slane %v5788_v59, 4  ;;  %v14046_v37 = vld [vmem:[#allocation2 + $0x20] sm:$0x1]  ;;  %v14048_v22 = vld [vmem:[#allocation2 + $0xc4] sm:$0xf] }
 0x311   : >> { %7012 = vmatmul.mubr.bf16.vlgmr.msra.gmra.mrb[0].mxu0 %v6725_v9  ;;  %v4655_v25 = vor.u32 %v4654_v8, %v4651_v1  ;;  %v4664_v45 = vrot.slane %v4662_v46, 4  ;;  %v4670_v29 = vrot.slane %v4668_v47, 5  ;;  %v5484_v13 = vshrl.u32 %v14044_v33, 16  ;;  %v13986_v1 = vld [vmem:[%s15940_s21 + $0x18] sm:$0xff]   ;;  %v13988_v46 = vld [vmem:[%s15940_s21 + $0x60] sm:$0xff]  }
 0x312   : >> { %13201 = vmatpush3.bf16.msra.mxu1 %v13979_v53  ;;  %13615 = vmatpush3.bf16.msra.mxu0 %v14043_v18  ;;  %v6793_v12 = vsel %vm1282_vm7, %v12431_v39, %v16281_v49  ;;  %v5487_v3 = vshll.u32 %v14044_v33, 16  ;;  %v5493_v42 = vshll.u32 %v14045_v16, 16  ;;  %v5794_v27 = vsel %vm14513_vm5, %v5789_v55, %v5793_v63  ;;  %v14047_v63 = vld [vmem:[#allocation2 + $0xc0] sm:$0xf]  ;;  %v16364_v39 = vld [vmem:[#allocation2 + $0xb8] sm:$0xf] }
 0x313   : >> { %v4656_v21 = vrot.slane %v4655_v25, 4  ;;  %v4665_v14 = vor.u32 %v4664_v45, %v4660_v60  ;;  %v5497_v54 = vshrl.u32 %v14045_v16, 16  ;;  %13202 = vmatprep.subr.bf16.mxu1 %v13981_v40  ;;  %7019 = vmatprep.mubr.bf16.mxu0 %v6793_v12  ;;  %v12411_v49 = vcombine.low %v5784_v31, %v5794_v27  ;;  %v14050_v45 = vld [vmem:[#allocation2 + $0xbc] sm:$0x1]  ;;  %v4361_v18 = vld [vmem:[#allocation2 + $0x94] sm:$0xf] }
 0x314   : >> { %v5486_v10 = vrot.slane %v5484_v13, 4  ;;  %v5489_v0 = vrot.slane %v5487_v3, 5  ;;  %v5495_v41 = vrot.slane %v5493_v42, 5  ;;  %13616 = vmatprep.subr.bf16.mxu0 %v14000_v20  ;;  %v5503_v17 = vshll.u32 %v14046_v37, 16  ;;  %v13989_v33 = vld [vmem:[%s15940_s21 + $0x20] sm:$0xff]   ;;  %v16376_v13 = vpop.permute.xlu1 %6537 }
 0x315   : >> { %v4661_v7 = vsel %vm14513_vm5, %v4656_v21, %v4660_v60  ;;  %v4666_v23 = vrot.slane %v4665_v14, 4  ;;  %v5499_v44 = vrot.slane %v5497_v54, 4  ;;  %v6777_v32 = vsel %vm1282_vm7, %v12411_v49, %v16267_v11  ;;  %v4360_v11 = vld [vmem:[#allocation2 + $0x90] sm:$0xf]  ;;  %v14016_v60 = vld [vmem:[%s15940_s21 + $0x118] sm:$0xff]   ;;  %v16368_v25 = vpop.permute.xlu0 %6697  ;;  %v13992_v21 = vld [vmem:[%s15940_s21 + $0x68] sm:$0xff]  }
 0x316   : >> { %v5490_v36 = vor.u32 %v5489_v0, %v5486_v10  ;;  %13203 = vmatpush3.bf16.msra.mxu1 %v13982_v4  ;;  %v12444_v19 = vcombine.low %v14047_v63, %v14048_v22  ;;  %v5796_v52 = vshrl.u32 %v16341_v43, 16  ;;  %13617 = vmatpush3.bf16.msra.mxu0 %v14000_v20  ;;  %v5505_v59 = vrot.slane %v5503_v17, 5  ;;  %v4380_v27 = vld [vmem:[#allocation2 + $0x98] sm:$0x1]  ;;  %v14051_v37 = vld [vmem:[#allocation2 + $0x30] sm:$0xf] }
 0x317   : >> { %v4671_v5 = vsel %vm14513_vm5, %v4666_v23, %v4670_v29  ;;  %v5500_v53 = vor.u32 %v5499_v44, %v5495_v41  ;;  %7116 = vmatmul.mubr.bf16.gmra.mrb[4].mxu1 %v6777_v32  ;;  %v5799_v8 = vshll.u32 %v16341_v43, 16  ;;  %13204 = vmatprep.subr.bf16.mxu1 %v13985_v48  ;;  %v5805_v20 = vshll.u32 %v16364_v39, 16  ;;  %v13993_v32 = vld [vmem:[%s15940_s21 + $0x28] sm:$0xff]  }
 0x318   : >> { %v12344_v47 = vcombine.low %v4661_v7, %v4671_v5  ;;  %v5491_v40 = vrot.slane %v5490_v36, 4  ;;  %v6845_v9 = vsel %vm1282_vm7, %v12444_v19, %v16295_v6  ;;  %v5798_v31 = vrot.slane %v5796_v52, 4  ;;  %13618 = vmatprep.subr.bf16.mxu0 %v14009_v15  ;;  %v13995_v52 = vld [vmem:[%s15940_s21 + $0x70] sm:$0xff]  }
 0x319   : >> { %v5501_v58 = vrot.slane %v5500_v53, 4  ;;  %v5801_v50 = vrot.slane %v5799_v8, 5  ;;  %v5809_v55 = vshrl.u32 %v16364_v39, 16  ;;  %7123 = vmatprep.mubr.bf16.mxu1 %v6845_v9  ;;  %v5815_v29 = vshll.u32 %v14050_v45, 16  ;;  %v14054_v9 = vld [vmem:[#allocation2 + $0x28] sm:$0xf] }
 0x31a   : >> { %5110 = vrot.lane.b32.xlu1 %v12344_v47, %s14409_s22  ;;  %v5496_v6 = vsel %vm14513_vm5, %v5491_v40, %v5495_v41  ;;  %v12377_v4 = vcombine.low %v16263_v38, %v16277_v2  ;;  %v4673_v12 = vshrl.u32 %v4360_v11, 16  ;;  %13205 = vmatpush3.bf16.msra.mxu1 %v13986_v1  ;;  %v5807_v42 = vrot.slane %v5805_v20, 5  ;;  %v16388_v1 = vpop.permute.xlu0 %5248 }
 0x31b   : >> { %v5506_v3 = vsel %vm14513_vm5, %v5501_v58, %v5505_v59  ;;  %v5802_v16 = vor.u32 %v5801_v50, %v5798_v31  ;;  %v5811_v48 = vrot.slane %v5809_v55, 4  ;;  %13206 = vmatprep.subr.bf16.mxu1 %v13988_v46  ;;  %13619 = vmatpush3.bf16.msra.mxu0 %v14009_v15  ;;  %v5817_v54 = vrot.slane %v5815_v29, 5  ;;  %v14052_v15 = vld [vmem:[#allocation2 + $0x34] sm:$0xf]  ;;  %v14053_v59 = vld [vmem:[#allocation2 + $0x24] sm:$0xf] }
 0x31c   : >> { %v12399_v14 = vcombine.low %v5496_v6, %v5506_v3  ;;  %5272 = vrot.lane.b32.xlu0 %v12377_v4, %s14409_s22  ;;  %v4675_v38 = vrot.slane %v4673_v12, 4  ;;  %v4676_v2 = vshll.u32 %v4360_v11, 16  ;;  %13620 = vmatprep.subr.bf16.mxu0 %v14016_v60  ;;  %v4682_v0 = vshll.u32 %v4361_v18, 16  ;;  %v16392_v11 = vpop.permute.xlu1 %5088  ;;  %v13996_v6 = vld [vmem:[%s15940_s21 + $0x30] sm:$0xff]   ;;  %v14055_v4 = vld [vmem:[#allocation2 + $0x2c] sm:$0x1] }
 0x31d   : >> { %v5803_v49 = vrot.slane %v5802_v16, 4  ;;  %v5812_v10 = vor.u32 %v5811_v48, %v5807_v42  ;;  %v4686_v41 = vshrl.u32 %v4361_v18, 16  ;;  %v4692_v44 = vshll.u32 %v4380_v27, 16  ;;  %v13999_v12 = vld [vmem:[%s15940_s21 + $0x78] sm:$0xff]   ;;  %v14057_v48 = vld [vmem:[#allocation2 + $0xd0] sm:$0xf] }
 0x31e   : >> { %v6729_v7 = vsel %vm1282_vm7, %v12399_v14, %v16286_v26  ;;  %v4678_v23 = vrot.slane %v4676_v2, 5  ;;  %v12432_v17 = vcombine.low %v14051_v37, %v14052_v15  ;;  %13207 = vmatpush3.bf16.msra.mxu1 %v13989_v33  ;;  %v4684_v22 = vrot.slane %v4682_v0, 5  ;;  %v16415_v15 = vld [vmem:[#allocation2 + $0xc4] sm:$0xf] }
 0x31f   : >> { %7020 = vmatmul.mubr.bf16.gmra.mrb[4].mxu0 %v6729_v7  ;;  %v5808_v36 = vsel %vm14513_vm5, %v5803_v49, %v5807_v42  ;;  %v5813_v63 = vrot.slane %v5812_v10, 4  ;;  %v4688_v19 = vrot.slane %v4686_v41, 4  ;;  %13208 = vmatprep.subr.bf16.mxu1 %v13992_v21  ;;  %v4694_v26 = vrot.slane %v4692_v44, 5  ;;  %v14056_v42 = vld [vmem:[#allocation2 + $0xcc] sm:$0xf]  ;;  %v16407_v2 = vpop.permute.xlu0 %6699  ;;  %v14001_v7 = vld [vmem:[%s15940_s21 + $0x38] sm:$0xff]  }
 0x320   : >> { %v4679_v5 = vor.u32 %v4678_v23, %v4675_v38  ;;  %v6797_v53 = vsel %vm1282_vm7, %v12432_v17, %v16323_v28  ;;  %v5508_v8 = vshrl.u32 %v14053_v59, 16  ;;  %13621 = vmatpush3.bf16.msra.mxu0 %v14016_v60  ;;  %v5511_v40 = vshll.u32 %v14053_v59, 16  ;;  %v16396_v28 = vld [vmem:[#allocation2 + $0xc0] sm:$0xf]  ;;  %v4362_v41 = vld [vmem:[#allocation2 + $0x9c] sm:$0xf]  ;;  %v16413_v23 = vpop.permute.xlu1 %6539 }
 0x321   : >> { %v5818_v46 = vsel %vm14513_vm5, %v5813_v63, %v5817_v54  ;;  %v4689_v47 = vor.u32 %v4688_v19, %v4684_v22  ;;  %v5517_v31 = vshll.u32 %v14054_v9, 16  ;;  %7027 = vmatprep.mubr.bf16.mxu0 %v6797_v53  ;;  %v5521_v55 = vshrl.u32 %v14054_v9, 16  ;;  %v14059_v63 = vld [vmem:[#allocation2 + $0xc8] sm:$0x1]  ;;  %v4381_v59 = vld [vmem:[#allocation2 + $0xa4] sm:$0x1] }
 0x322   : >> { %v12412_v58 = vcombine.low %v5808_v36, %v5818_v46  ;;  %v4680_v50 = vrot.slane %v4679_v5, 4  ;;  %v5510_v20 = vrot.slane %v5508_v8, 4  ;;  %13209 = vmatpush3.bf16.msra.mxu1 %v13993_v32  ;;  %v5513_v29 = vrot.slane %v5511_v40, 5 }
 0x323   : >> { %v4690_v45 = vrot.slane %v4689_v47, 4  ;;  %v5519_v60 = vrot.slane %v5517_v31, 5  ;;  %v5527_v18 = vshll.u32 %v14055_v4, 16  ;;  %13210 = vmatprep.subr.bf16.mxu1 %v13995_v52  ;;  %v5523_v16 = vrot.slane %v5521_v55, 4  ;;  %v4363_v52 = vld [vmem:[#allocation2 + $0xa0] sm:$0xf] }
 0x324   : >> { %v6781_v33 = vsel %vm1282_vm7, %v12412_v58, %v16302_v56  ;;  %v4685_v3 = vsel %vm14513_vm5, %v4680_v50, %v4684_v22  ;;  %v12445_v27 = vcombine.low %v14056_v42, %v14057_v48  ;;  %v5514_v14 = vor.u32 %v5513_v29, %v5510_v20  ;;  %v16427_v50 = vpop.permute.xlu0 %5250 }
 0x325   : >> { %v4695_v21 = vsel %vm14513_vm5, %v4690_v45, %v4694_v26  ;;  %v5529_v54 = vrot.slane %v5527_v18, 5  ;;  %7124 = vmatmul.mubr.bf16.gmra.mrb[8].mxu1 %v6781_v33  ;;  %v5820_v38 = vshrl.u32 %v16396_v28, 16  ;;  %v5524_v56 = vor.u32 %v5523_v16, %v5519_v60  ;;  %v16433_v33 = vld [vmem:[#allocation2 + $0x40] sm:$0xf] }
 0x326   : >> { %v12345_v49 = vcombine.low %v4685_v3, %v4695_v21  ;;  %v6849_v10 = vsel %vm1282_vm7, %v12445_v27, %v16346_v24  ;;  %v5823_v0 = vshll.u32 %v16396_v28, 16  ;;  %13211 = vmatpush3.bf16.msra.mxu1 %v13996_v6  ;;  %v5515_v44 = vrot.slane %v5514_v14, 4  ;;  %v16429_v29 = vpop.permute.xlu1 %5090  ;;  %v14062_v14 = vld [vmem:[#allocation2 + $0x30] sm:$0xf] }
 0x327   : >> { %v5822_v37 = vrot.slane %v5820_v38, 4  ;;  %v5829_v17 = vshll.u32 %v16415_v15, 16  ;;  %v5833_v32 = vshrl.u32 %v16415_v15, 16  ;;  %7131 = vmatprep.mubr.bf16.mxu1 %v6849_v10  ;;  %13212 = vmatprep.subr.bf16.mxu1 %v13999_v12  ;;  %v5525_v24 = vrot.slane %v5524_v56, 4  ;;  %v14060_v12 = vld [vmem:[#allocation2 + $0x3c] sm:$0xf] }
 0x328   : >> { %5112 = vrot.lane.b32.xlu1 %v12345_v49, %s14409_s22  ;;  %v5825_v36 = vrot.slane %v5823_v0, 5  ;;  %v5839_v22 = vshll.u32 %v14059_v63, 16  ;;  %v12378_v19 = vcombine.low %v16291_v34, %v16308_v35  ;;  %v5520_v5 = vsel %vm14513_vm5, %v5515_v44, %v5519_v60  ;;  %v14063_v0 = vld [vmem:[#allocation2 + $0x34] sm:$0xf] }
 0x329   : >> { %v5831_v26 = vrot.slane %v5829_v17, 5  ;;  %v5835_v53 = vrot.slane %v5833_v32, 4  ;;  %v4697_v8 = vshrl.u32 %v4362_v41, 16  ;;  %v5530_v46 = vsel %vm14513_vm5, %v5525_v24, %v5529_v54  ;;  %v14064_v32 = vld [vmem:[#allocation2 + $0x38] sm:$0x1] }
 0x32a   : >> { %v5826_v47 = vor.u32 %v5825_v36, %v5822_v37  ;;  %v5841_v40 = vrot.slane %v5839_v22, 5  ;;  %5274 = vrot.lane.b32.xlu0 %v12378_v19, %s14409_s22  ;;  %v4700_v9 = vshll.u32 %v4362_v41, 16  ;;  %13213 = vmatpush3.bf16.msra.mxu1 %v14001_v7  ;;  %v12400_v31 = vcombine.low %v5520_v5, %v5530_v46  ;;  %v4768_v7 = vld [vmem:[#allocation2] sm:$0xe]  ;;  %v16442_v36 = vpop.permute.xlu0 %6701 }
 0x32b   : >> { %v5836_v58 = vor.u32 %v5835_v53, %v5831_v26  ;;  %v4699_v34 = vrot.slane %v4697_v8, 4  ;;  %v4706_v35 = vshll.u32 %v4363_v52, 16  ;;  %v4710_v6 = vshrl.u32 %v4363_v52, 16  ;;  %v16448_v52 = vpop.permute.xlu1 %6541  ;;  %v4364_v8 = vld [vmem:[#allocation2 + $0xa8] sm:$0xf] }
 0x32c   : >> { %v5827_v20 = vrot.slane %v5826_v47, 4  ;;  %v4702_v55 = vrot.slane %v4700_v9, 5  ;;  %v4716_v45 = vshll.u32 %v4381_v59, 16  ;;  %v6733_v60 = vsel %vm1282_vm7, %v12400_v31, %v16327_v57  ;;  %v14065_v47 = vld [vmem:[#allocation2 + $0x4] sm:$0xf] }
 0x32d   : >> { %v5837_v4 = vrot.slane %v5836_v58, 4  ;;  %v4708_v18 = vrot.slane %v4706_v35, 5  ;;  %v12433_v3 = vcombine.low %v14060_v12, %v16433_v33  ;;  %7028 = vmatmul.mubr.bf16.gmra.mrb[8].mxu0 %v6733_v60  ;;  %v4712_v48 = vrot.slane %v4710_v6, 4  ;;  %v14066_v9 = vld [vmem:[#allocation2 + $0x8] sm:$0x1] }
 0x32e   : >> { %v5832_v16 = vsel %vm14513_vm5, %v5827_v20, %v5831_v26  ;;  %v4703_v42 = vor.u32 %v4702_v55, %v4699_v34  ;;  %v4718_v27 = vrot.slane %v4716_v45, 5  ;;  %v5532_v54 = vshrl.u32 %v14062_v14, 16  ;;  %v16454_v58 = vld [vmem:[#allocation2 + $0xac] sm:$0xf]  ;;  %v14067_v55 = vld [vmem:[#allocation2] sm:$0xf] }
 0x32f   : >> { %v5842_v21 = vsel %vm14513_vm5, %v5837_v4, %v5841_v40  ;;  %v6801_v57 = vsel %vm1282_vm7, %v12433_v3, %v16368_v25  ;;  %v5535_v38 = vshll.u32 %v14062_v14, 16  ;;  %v4713_v10 = vor.u32 %v4712_v48, %v4708_v18  ;;  %v16459_v4 = vld [vmem:[#allocation2 + $0xb0] sm:$0x1] }
 0x330   : >> { %v12413_v49 = vcombine.low %v5832_v16, %v5842_v21  ;;  %v4704_v56 = vrot.slane %v4703_v42, 4  ;;  %v5541_v41 = vshll.u32 %v14063_v0, 16  ;;  %7035 = vmatprep.mubr.bf16.mxu0 %v6801_v57  ;;  %v5534_v44 = vrot.slane %v5532_v54, 4  ;;  %v16467_v42 = vpop.permute.xlu0 %5252  ;;  %v16472_v14 = vpop.permute.xlu1 %5092 }
 0x331   : >> { %v5537_v37 = vrot.slane %v5535_v38, 5  ;;  %v5545_v17 = vshrl.u32 %v14063_v0, 16  ;;  %v5551_v24 = vshll.u32 %v14064_v32, 16  ;;  %v4714_v22 = vrot.slane %v4713_v10, 4  ;;  %v14070_v32 = vld [vmem:[#allocation2 + $0x3c] sm:$0xf] }
 0x332   : >> { %v6785_v25 = vsel %vm1282_vm7, %v12413_v49, %v16348_v30  ;;  %v4709_v63 = vsel %vm14513_vm5, %v4704_v56, %v4708_v18  ;;  %v5543_v19 = vrot.slane %v5541_v41, 5  ;;  %v12301_v59 = vrot.slane %v4768_v7, 9  ;;  %v14068_v41 = vld [vmem:[#allocation2 + $0x48] sm:$0xf]  ;;  %v16477_v7 = vld [vmem:[#allocation2 + $0x4c] sm:$0xf] }
 0x333   : >> { %v5538_v5 = vor.u32 %v5537_v37, %v5534_v44  ;;  %v5547_v26 = vrot.slane %v5545_v17, 4  ;;  %v5553_v53 = vrot.slane %v5551_v24, 5  ;;  %7132 = vmatmul.mubr.bf16.gmra.mrb[12].mxu1 %v6785_v25  ;;  %v4719_v46 = vsel %vm14513_vm5, %v4714_v22, %v4718_v27 }
 0x334   : >> { %v4834_v40 = vrot.slane %v14065_v47, 5  ;;  %v4837_v30 = vrot.slane %v14066_v9, 5  ;;  %v12379_v31 = vcombine.low %v16341_v43, %v16364_v39  ;;  %v12346_v34 = vcombine.low %v4709_v63, %v4719_v46  ;;  %v4769_v63 = vld [vmem:[#allocation2 + $0xc] sm:$0xe] }
 0x335   : >> { %v5539_v35 = vrot.slane %v5538_v5, 4  ;;  %v5548_v20 = vor.u32 %v5547_v26, %v5543_v19  ;;  %v12317_v6 = vcombine.low %v14067_v55, %v14065_v47  ;;  %v4721_v18 = vshrl.u32 %v4364_v8, 16  ;;  %v16486_v47 = vpop.permute.xlu0 %6703  ;;  %v14073_v55 = vld [vmem:[#allocation2 + $0x10] sm:$0xf] }
 0x336   : >> { %v4835_v45 = vsel %vm14521_vm6, %v12301_v59, %v4834_v40  ;;  %v4836_v60 = vrot.slane %v4834_v40, 4  ;;  %5276 = vrot.lane.b32.xlu0 %v12379_v31, %s14409_s22  ;;  %v4724_v12 = vshll.u32 %v4364_v8, 16  ;;  %5114 = vrot.lane.b32.xlu1 %v12346_v34, %s14409_s22  ;;  %v4730_v16 = vshll.u32 %v16454_v58, 16  ;;  %v14071_v8 = vld [vmem:[#allocation2 + $0x40] sm:$0xf]  ;;  %v16490_v34 = vpop.permute.xlu1 %6543 }
 0x337   : >> { %v5544_v43 = vsel %vm14513_vm5, %v5539_v35, %v5543_v19  ;;  %v5549_v39 = vrot.slane %v5548_v20, 4  ;;  %v5282_v3 = vsel %vm1282_vm7, %v12317_v6, %v16392_v11  ;;  %v4723_v27 = vrot.slane %v4721_v18, 4 }
 0x338   : >> { %v4838_v48 = vsel %vm14521_vm6, %v4836_v60, %v4837_v30  ;;  %v4726_v21 = vrot.slane %v4724_v12, 5  ;;  %v4734_v57 = vshrl.u32 %v16454_v58, 16  ;;  %v4732_v49 = vrot.slane %v4730_v16, 5  ;;  %v14074_v12 = vld [vmem:[#allocation2 + $0x14] sm:$0x1] }
 0x339   : >> { %v5554_v54 = vsel %vm14513_vm5, %v5549_v39, %v5553_v53  ;;  %v12349_v38 = vcombine.low %v4835_v45, %v4838_v48  ;;  %v4740_v11 = vshll.u32 %v16459_v4, 16  ;;  %v12434_v44 = vcombine.low %v14068_v41, %v16477_v7  ;;  %v4366_v45 = vld [vmem:[#allocation2 + $0xb4] sm:$0xf]  ;;  %v16508_v41 = vpop.permute.xlu0 %5254 }
 0x33a   : >> { %v12401_v56 = vcombine.low %v5544_v43, %v5554_v54  ;;  %v4727_v10 = vor.u32 %v4726_v21, %v4723_v27  ;;  %v4736_v0 = vrot.slane %v4734_v57, 4  ;;  %v5556_v24 = vshrl.u32 %v14070_v32, 16  ;;  %v14075_v54 = vld [vmem:[#allocation2 + $0xc] sm:$0xf] }
 0x33b   : >> { %v5346_v37 = vsel %vm1282_vm7, %v12349_v38, %v16388_v1  ;;  %v4742_v17 = vrot.slane %v4740_v11, 5  ;;  %v5559_v25 = vshll.u32 %v14070_v32, 16  ;;  %v6805_v26 = vsel %vm1282_vm7, %v12434_v44, %v16407_v2 }
 0x33c   : >> { %v6737_v22 = vsel %vm1282_vm7, %v12401_v56, %v16376_v13  ;;  %v4728_v19 = vrot.slane %v4727_v10, 4  ;;  %v4737_v5 = vor.u32 %v4736_v0, %v4732_v49  ;;  %7268 = vmatprep.mubr.bf16.mxu1 %v5346_v37  ;;  %v5558_v53 = vrot.slane %v5556_v24, 4  ;;  %v14072_v13 = vld [vmem:[#allocation2 + $0x44] sm:$0x1]  ;;  %v16504_v56 = vld [vmem:[#allocation2 + $0xbc] sm:$0x1]  ;;  %v16514_v24 = vpop.permute.xlu1 %5094 }
 0x33d   : >> { %7036 = vmatmul.mubr.bf16.gmra.mrb[12].mxu0 %v6737_v22  ;;  %v5561_v59 = vrot.slane %v5559_v25, 5  ;;  %v5565_v46 = vshll.u32 %v14071_v8, 16  ;;  %v5569_v1 = vshrl.u32 %v14071_v8, 16  ;;  %7269 = vmatmul.mubr.bf16.vlgmr.msra.gmra.mrb[16].mxu1 %v5282_v3  ;;  %v5575_v30 = vshll.u32 %v14072_v13, 16  ;;  %v16496_v3 = vld [vmem:[#allocation2 + $0xb8] sm:$0xf] }
 0x33e   : >> { %v4733_v40 = vsel %vm14513_vm5, %v4728_v19, %v4732_v49  ;;  %v4738_v9 = vrot.slane %v4737_v5, 4  ;;  %7043 = vmatprep.mubr.bf16.mxu0 %v6805_v26  ;;  %v12302_v31 = vrot.slane %v4769_v63, 9  ;;  %v4841_v6 = vrot.slane %v14073_v55, 5  ;;  %v16519_v8 = vld [vmem:[#allocation2 + $0x58] sm:$0xf] }
 0x33f   : >> { %v5562_v2 = vor.u32 %v5561_v59, %v5558_v53  ;;  %v5567_v35 = vrot.slane %v5565_v46, 5  ;;  %v5571_v20 = vrot.slane %v5569_v1, 4  ;;  %v5577_v18 = vrot.slane %v5575_v30, 5  ;;  %v14076_v59 = vld [vmem:[#allocation2 + $0x54] sm:$0xf] }
 0x340   : >> { %v4743_v60 = vsel %vm14513_vm5, %v4738_v9, %v4742_v17  ;;  %v4844_v43 = vrot.slane %v14074_v12, 5  ;;  %v12380_v39 = vcombine.low %v16396_v28, %v16415_v15  ;;  %v4842_v21 = vsel %vm14521_vm6, %v12302_v31, %v4841_v6  ;;  %v4770_v30 = vld [vmem:[#allocation2 + $0x18] sm:$0xe] }
 0x341   : >> { %v12347_v16 = vcombine.low %v4733_v40, %v4743_v60  ;;  %v5563_v48 = vrot.slane %v5562_v2, 4  ;;  %v5572_v27 = vor.u32 %v5571_v20, %v5567_v35  ;;  %v4843_v57 = vrot.slane %v4841_v6, 4  ;;  %v14078_v40 = vld [vmem:[#allocation2 + $0x48] sm:$0xf]  ;;  %v14079_v60 = vld [vmem:[#allocation2 + $0x4c] sm:$0xf] }
 0x342   : >> { %5278 = vrot.lane.b32.xlu0 %v12380_v39, %s14409_s22  ;;  %v12318_v38 = vcombine.low %v14075_v54, %v14073_v55  ;;  %v4745_v49 = vshrl.u32 %v4366_v45, 16  ;;  %v4748_v11 = vshll.u32 %v4366_v45, 16  ;;  %v4754_v10 = vshll.u32 %v16496_v3, 16 }
 0x343   : >> { %5116 = vrot.lane.b32.xlu1 %v12347_v16, %s14409_s22  ;;  %v5568_v28 = vsel %vm14513_vm5, %v5563_v48, %v5567_v35  ;;  %v5573_v15 = vrot.slane %v5572_v27, 4  ;;  %v4758_v0 = vshrl.u32 %v16496_v3, 16  ;;  %v4845_v44 = vsel %vm14521_vm6, %v4843_v57, %v4844_v43  ;;  %v16532_v48 = vpop.permute.xlu1 %6545  ;;  %v14081_v57 = vld [vmem:[#allocation2 + $0x1c] sm:$0xf] }
 0x344   : >> { %v5286_v37 = vsel %vm1282_vm7, %v12318_v38, %v16429_v29  ;;  %v4747_v17 = vrot.slane %v4745_v49, 4  ;;  %v4750_v32 = vrot.slane %v4748_v11, 5  ;;  %v12350_v63 = vcombine.low %v4842_v21, %v4845_v44  ;;  %v14082_v11 = vld [vmem:[#allocation2 + $0x20] sm:$0x1]  ;;  %v14083_v44 = vld [vmem:[#allocation2 + $0x18] sm:$0xf] }
 0x345   : >> { %v5578_v25 = vsel %vm14513_vm5, %v5573_v15, %v5577_v18  ;;  %v4756_v22 = vrot.slane %v4754_v10, 5  ;;  %v4760_v19 = vrot.slane %v4758_v0, 4  ;;  %v4764_v53 = vshll.u32 %v16504_v56, 16  ;;  %v16528_v18 = vpop.permute.xlu0 %6705 }
 0x346   : >> { %v12402_v5 = vcombine.low %v5568_v28, %v5578_v25  ;;  %v4751_v26 = vor.u32 %v4750_v32, %v4747_v17  ;;  %v12435_v46 = vcombine.low %v14076_v59, %v16519_v8  ;;  %v5350_v29 = vsel %vm1282_vm7, %v12350_v63, %v16427_v50  ;;  %v14084_v25 = vld [vmem:[#allocation2 + $0x54] sm:$0xf] }
 0x347   : >> { %v4761_v1 = vor.u32 %v4760_v19, %v4756_v22  ;;  %v5580_v9 = vshrl.u32 %v14078_v40, 16  ;;  %v5583_v13 = vshll.u32 %v14078_v40, 16  ;;  %v4766_v35 = vrot.slane %v4764_v53, 5  ;;  %7276 = vmatprep.mubr.bf16.mxu1 %v5350_v29  ;;  %v16543_v53 = vld [vmem:[#allocation2 + $0x64] sm:$0xf] }
 0x348   : >> { %v6741_v31 = vsel %vm1282_vm7, %v12402_v5, %v16413_v23  ;;  %v4752_v2 = vrot.slane %v4751_v26, 4  ;;  %v6809_v20 = vsel %vm1282_vm7, %v12435_v46, %v16442_v36  ;;  %v5589_v50 = vshll.u32 %v14079_v60, 16  ;;  %7277 = vmatmul.mubr.bf16.gmra.mrb[20].mxu1 %v5286_v37  ;;  %v14080_v23 = vld [vmem:[#allocation2 + $0x50] sm:$0x1]  ;;  %v14085_v26 = vld [vmem:[#allocation2 + $0x60] sm:$0xf] }
 0x349   : >> { %7044 = vmatmul.mubr.bf16.gmra.mrb[16].mxu0 %v6741_v31  ;;  %v4762_v55 = vrot.slane %v4761_v1, 4  ;;  %v5582_v6 = vrot.slane %v5580_v9, 4  ;;  %v5585_v45 = vrot.slane %v5583_v13, 5  ;;  %v5593_v43 = vshrl.u32 %v14079_v60, 16  ;;  %v14087_v46 = vld [vmem:[#allocation2 + $0x58] sm:$0xf]  ;;  %v16546_v40 = vpop.permute.xlu0 %5256 }
 0x34a   : >> { %v4757_v12 = vsel %vm14513_vm5, %v4752_v2, %v4756_v22  ;;  %v5599_v39 = vshll.u32 %v14080_v23, 16  ;;  %7051 = vmatprep.mubr.bf16.mxu0 %v6809_v20  ;;  %v12303_v16 = vrot.slane %v4770_v30, 9  ;;  %v5591_v21 = vrot.slane %v5589_v50, 5  ;;  %v4771_v1 = vld [vmem:[#allocation2 + $0x24] sm:$0xe]  ;;  %v16550_v2 = vpop.permute.xlu1 %5096 }
 0x34b   : >> { %v4767_v36 = vsel %vm14513_vm5, %v4762_v55, %v4766_v35  ;;  %v5586_v27 = vor.u32 %v5585_v45, %v5582_v6  ;;  %v4848_v54 = vrot.slane %v14081_v57, 5  ;;  %v5595_v49 = vrot.slane %v5593_v43, 4  ;;  %v14088_v6 = vld [vmem:[#allocation2 + $0x5c] sm:$0x1]  ;;  %v14089_v43 = vld [vmem:[#allocation2 + $0x28] sm:$0xf] }
 0x34c   : >> { %v12348_v38 = vcombine.low %v4757_v12, %v4767_v36  ;;  %v4851_v28 = vrot.slane %v14082_v11, 5  ;;  %v12319_v37 = vcombine.low %v14083_v44, %v14081_v57  ;;  %v5601_v32 = vrot.slane %v5599_v39, 5  ;;  %v14090_v57 = vld [vmem:[#allocation2 + $0x2c] sm:$0x1]  ;;  %v16566_v44 = vld [vmem:[#allocation2 + $0x70] sm:$0xf] }
 0x34d   : >> { %v5587_v15 = vrot.slane %v5586_v27, 4  ;;  %v4849_v10 = vsel %vm14521_vm6, %v12303_v16, %v4848_v54  ;;  %v4850_v0 = vrot.slane %v4848_v54, 4  ;;  %v5596_v17 = vor.u32 %v5595_v49, %v5591_v21 }
 0x34e   : >> { %5118 = vrot.lane.b32.xlu1 %v12348_v38, %s14409_s22  ;;  %v5604_v63 = vshrl.u32 %v14084_v25, 16  ;;  %v5607_v22 = vshll.u32 %v14084_v25, 16  ;;  %v12436_v59 = vcombine.low %v14085_v26, %v16543_v53  ;;  %v5613_v29 = vshll.u32 %v14087_v46, 16  ;;  %v14091_v38 = vld [vmem:[#allocation2 + $0x24] sm:$0xf] }
 0x34f   : >> { %v5592_v19 = vsel %vm14513_vm5, %v5587_v15, %v5591_v21  ;;  %v4852_v5 = vsel %vm14521_vm6, %v4850_v0, %v4851_v28  ;;  %v5597_v9 = vrot.slane %v5596_v17, 4  ;;  %v5290_v30 = vsel %vm1282_vm7, %v12319_v37, %v16472_v14  ;;  %v14092_v0 = vld [vmem:[#allocation2 + $0x6c] sm:$0xf]  ;;  %v14094_v17 = vld [vmem:[#allocation2 + $0x60] sm:$0xf] }
 0x350   : >> { %v12351_v13 = vcombine.low %v4849_v10, %v4852_v5  ;;  %v5606_v31 = vrot.slane %v5604_v63, 4  ;;  %v5609_v35 = vrot.slane %v5607_v22, 5  ;;  %v5615_v20 = vrot.slane %v5613_v29, 5  ;;  %v16562_v10 = vpop.permute.xlu0 %6707  ;;  %v4772_v63 = vld [vmem:[#allocation2 + $0x30] sm:$0xe]  ;;  %v16569_v22 = vpop.permute.xlu1 %6547 }
 0x351   : >> { %v5617_v55 = vshrl.u32 %v14087_v46, 16  ;;  %v5623_v45 = vshll.u32 %v14088_v6, 16  ;;  %v5602_v60 = vsel %vm14513_vm5, %v5597_v9, %v5601_v32  ;;  %v12304_v12 = vrot.slane %v4771_v1, 9  ;;  %v14095_v29 = vld [vmem:[#allocation2 + $0x64] sm:$0xf] }
 0x352   : >> { %v5354_v50 = vsel %vm1282_vm7, %v12351_v13, %v16467_v42  ;;  %v4855_v23 = vrot.slane %v14089_v43, 5  ;;  %v12403_v39 = vcombine.low %v5592_v19, %v5602_v60  ;;  %v6813_v14 = vsel %vm1282_vm7, %v12436_v59, %v16486_v47 }
 0x353   : >> { %v5610_v16 = vor.u32 %v5609_v35, %v5606_v31  ;;  %v5619_v36 = vrot.slane %v5617_v55, 4  ;;  %7284 = vmatprep.mubr.bf16.mxu1 %v5354_v50  ;;  %v4858_v54 = vrot.slane %v14090_v57, 5  ;;  %v12320_v49 = vcombine.low %v14091_v38, %v14089_v43  ;;  %v14096_v31 = vld [vmem:[#allocation2 + $0x68] sm:$0x1]  ;;  %v14097_v50 = vld [vmem:[#allocation2 + $0x34] sm:$0xf] }
 0x354   : >> { %7285 = vmatmul.mubr.bf16.gmra.mrb[24].mxu1 %v5290_v30  ;;  %v4856_v27 = vsel %vm14521_vm6, %v12304_v12, %v4855_v23  ;;  %v4857_v21 = vrot.slane %v4855_v23, 4  ;;  %v6745_v42 = vsel %vm1282_vm7, %v12403_v39, %v16448_v52  ;;  %v5625_v15 = vrot.slane %v5623_v45, 5  ;;  %v14098_v43 = vld [vmem:[#allocation2 + $0x38] sm:$0x1]  ;;  %v14099_v39 = vld [vmem:[#allocation2 + $0x30] sm:$0xf]  ;;  %v5099_v57 = vpop.permute.xlu1 %5098 }
 0x355   : >> { %v5611_v11 = vrot.slane %v5610_v16, 4  ;;  %v5620_v28 = vor.u32 %v5619_v36, %v5615_v20  ;;  %7052 = vmatmul.mubr.bf16.gmra.mrb[20].mxu0 %v6745_v42  ;;  %v12437_v37 = vcombine.low %v14092_v0, %v16566_v44  ;;  %v5628_v32 = vshrl.u32 %v14094_v17, 16  ;;  %v16581_v16 = vpop.permute.xlu0 %5258  ;;  %v14100_v38 = vld [vmem:[#allocation2 + $0x78] sm:$0xf] }
 0x356   : >> { %v4859_v47 = vsel %vm14521_vm6, %v4857_v21, %v4858_v54  ;;  %v5631_v25 = vshll.u32 %v14094_v17, 16  ;;  %7059 = vmatprep.mubr.bf16.mxu0 %v6813_v14  ;;  %v5294_v26 = vsel %vm1282_vm7, %v12320_v49, %v16514_v24  ;;  %v5637_v1 = vshll.u32 %v14095_v29, 16  ;;  %v16587_v49 = vld [vmem:[#allocation2 + $0x7c] sm:$0xf] }
 0x357   : >> { %v5616_v52 = vsel %vm14513_vm5, %v5611_v11, %v5615_v20  ;;  %v5621_v19 = vrot.slane %v5620_v28, 4  ;;  %v12352_v5 = vcombine.low %v4856_v27, %v4859_v47  ;;  %v5630_v59 = vrot.slane %v5628_v32, 4  ;;  %v14102_v11 = vld [vmem:[#allocation2 + $0x6c] sm:$0xf] }
 0x358   : >> { %v5633_v46 = vrot.slane %v5631_v25, 5  ;;  %v5641_v9 = vshrl.u32 %v14095_v29, 16  ;;  %v5647_v35 = vshll.u32 %v14096_v31, 16  ;;  %v12305_v20 = vrot.slane %v4772_v63, 9  ;;  %v14103_v25 = vld [vmem:[#allocation2 + $0x70] sm:$0xf] }
 0x359   : >> { %v5626_v13 = vsel %vm14513_vm5, %v5621_v19, %v5625_v15  ;;  %v5358_v30 = vsel %vm1282_vm7, %v12352_v5, %v16508_v41  ;;  %v5639_v45 = vrot.slane %v5637_v1, 5  ;;  %v6817_v24 = vsel %vm1282_vm7, %v12437_v37, %v16528_v18  ;;  %v4773_v37 = vld [vmem:[#allocation2 + $0x3c] sm:$0xe] }
 0x35a   : >> { %v12404_v55 = vcombine.low %v5616_v52, %v5626_v13  ;;  %v5634_v6 = vor.u32 %v5633_v46, %v5630_v59  ;;  %v5643_v60 = vrot.slane %v5641_v9, 4  ;;  %7292 = vmatprep.mubr.bf16.mxu1 %v5358_v30  ;;  %v4862_v12 = vrot.slane %v14097_v50, 5  ;;  %v14104_v59 = vld [vmem:[#allocation2 + $0x74] sm:$0x1]  ;;  %v6710_v13 = vpop.permute.xlu0 %6709 }
 0x35b   : >> { %v4865_v23 = vrot.slane %v14098_v43, 5  ;;  %v12321_v14 = vcombine.low %v14099_v39, %v14097_v50  ;;  %v5649_v21 = vrot.slane %v5647_v35, 5  ;;  %v12438_v42 = vcombine.low %v14100_v38, %v16587_v49 }
 0x35c   : >> { %v6749_v41 = vsel %vm1282_vm7, %v12404_v55, %v16490_v34  ;;  %v5635_v36 = vrot.slane %v5634_v6, 4  ;;  %v5644_v27 = vor.u32 %v5643_v60, %v5639_v45  ;;  %7293 = vmatmul.mubr.bf16.gmra.mrb[28].mxu1 %v5294_v26  ;;  %v4863_v54 = vsel %vm14521_vm6, %v12305_v20, %v4862_v12  ;;  %v14105_v20 = vld [vmem:[#allocation2 + $0x40] sm:$0xf]  ;;  %v16600_v6 = vpop.permute.xlu1 %6549 }
 0x35d   : >> { %v4864_v18 = vrot.slane %v4862_v12, 4  ;;  %v5652_v28 = vshrl.u32 %v14102_v11, 16  ;;  %7060 = vmatmul.mubr.bf16.gmra.mrb[24].mxu0 %v6749_v41  ;;  %v5298_v47 = vsel %vm1282_vm7, %v12321_v14, %v16550_v2  ;;  %v5655_v0 = vshll.u32 %v14102_v11, 16  ;;  %v14107_v12 = vld [vmem:[#allocation2 + $0x3c] sm:$0xf] }
 0x35e   : >> { %v5640_v34 = vsel %vm14513_vm5, %v5635_v36, %v5639_v45  ;;  %v5645_v15 = vrot.slane %v5644_v27, 4  ;;  %7067 = vmatprep.mubr.bf16.mxu0 %v6817_v24  ;;  %v5661_v63 = vshll.u32 %v14103_v25, 16  ;;  %v5665_v52 = vshrl.u32 %v14103_v25, 16  ;;  %v14106_v24 = vld [vmem:[#allocation2 + $0x44] sm:$0x1] }
 0x35f   : >> { %v4866_v17 = vsel %vm14521_vm6, %v4864_v18, %v4865_v23  ;;  %v5654_v32 = vrot.slane %v5652_v28, 4  ;;  %v5657_v26 = vrot.slane %v5655_v0, 5  ;;  %v5671_v46 = vshll.u32 %v14104_v59, 16  ;;  %v14108_v36 = vld [vmem:[#allocation2 + $0x84] sm:$0xf] }
 0x360   : >> { %v5650_v19 = vsel %vm14513_vm5, %v5645_v15, %v5649_v21  ;;  %v12353_v5 = vcombine.low %v4863_v54, %v4866_v17  ;;  %v5663_v1 = vrot.slane %v5661_v63, 5  ;;  %v5667_v2 = vrot.slane %v5665_v52, 4  ;;  %v16608_v27 = vld [vmem:[#allocation2 + $0x88] sm:$0xf]  ;;  %v14110_v21 = vld [vmem:[#allocation2 + $0x78] sm:$0xf]  ;;  %v5261_v17 = vpop.permute.xlu0 %5260 }
 0x361   : >> { %v12405_v29 = vcombine.low %v5640_v34, %v5650_v19  ;;  %v12306_v9 = vrot.slane %v4773_v37, 9  ;;  %v5658_v31 = vor.u32 %v5657_v26, %v5654_v32  ;;  %v5673_v35 = vrot.slane %v5671_v46, 5  ;;  %v14111_v11 = vld [vmem:[#allocation2 + $0x7c] sm:$0xf]  ;;  %v4774_v34 = vld [vmem:[#allocation2 + $0x48] sm:$0xe] }
 0x362   : >> { %v5362_v30 = vsel %vm1282_vm7, %v12353_v5, %v16546_v40  ;;  %v4869_v55 = vrot.slane %v14105_v20, 5  ;;  %v5668_v60 = vor.u32 %v5667_v2, %v5663_v1  ;;  %v4872_v50 = vrot.slane %v14106_v24, 5  ;;  %v14112_v52 = vld [vmem:[#allocation2 + $0x80] sm:$0x1]  ;;  %v5101_v5 = vpop.permute.xlu1 %5100  ;;  %v14113_v46 = vld [vmem:[#allocation2 + $0x4c] sm:$0xf] }
 0x363   : >> { %v6753_v45 = vsel %vm1282_vm7, %v12405_v29, %v16532_v48  ;;  %7300 = vmatprep.mubr.bf16.mxu1 %v5362_v30  ;;  %v12322_v43 = vcombine.low %v14107_v12, %v14105_v20  ;;  %v6821_v23 = vsel %vm1282_vm7, %v12438_v42, %v16562_v10  ;;  %v5659_v39 = vrot.slane %v5658_v31, 4  ;;  %v14116_v12 = vld [vmem:[#allocation2 + $0x48] sm:$0xf] }
 0x364   : >> { %7301 = vmatmul.mubr.bf16.gmra.mrb[32].mxu1 %v5298_v47  ;;  %v4870_v40 = vsel %vm14521_vm6, %v12306_v9, %v4869_v55  ;;  %v4871_v14 = vrot.slane %v4869_v55, 4  ;;  %v5669_v41 = vrot.slane %v5668_v60, 4  ;;  %v12439_v48 = vcombine.low %v14108_v36, %v16608_v27  ;;  %v14114_v9 = vld [vmem:[#allocation2 + $0x50] sm:$0x1]  ;;  %v14115_v60 = vld [vmem:[#allocation2 + $0x84] sm:$0xf] }
 0x365   : >> { %v5676_v54 = vshrl.u32 %v14110_v21, 16  ;;  %v5679_v18 = vshll.u32 %v14110_v21, 16  ;;  %7068 = vmatmul.mubr.bf16.gmra.mrb[28].mxu0 %v6753_v45  ;;  %v5664_v38 = vsel %vm14513_vm5, %v5659_v39, %v5663_v1  ;;  %v5302_v42 = vsel %vm1282_vm7, %v12322_v43, %v5099_v57  ;;  %v16627_v39 = vld [vmem:[#allocation2 + $0x94] sm:$0xf] }
 0x366   : >> { %v4873_v10 = vsel %vm14521_vm6, %v4871_v14, %v4872_v50  ;;  %v5685_v28 = vshll.u32 %v14111_v11, 16  ;;  %v5674_v15 = vsel %vm14513_vm5, %v5669_v41, %v5673_v35  ;;  %7075 = vmatprep.mubr.bf16.mxu0 %v6821_v23  ;;  %v5689_v63 = vshrl.u32 %v14111_v11, 16  ;;  %v14117_v23 = vld [vmem:[#allocation2 + $0x90] sm:$0xf]  ;;  %v14119_v14 = vld [vmem:[#allocation2 + $0x88] sm:$0xf] }
 0x367   : >> { %v12354_v47 = vcombine.low %v4870_v40, %v4873_v10  ;;  %v5678_v0 = vrot.slane %v5676_v54, 4  ;;  %v5681_v37 = vrot.slane %v5679_v18, 5  ;;  %v12406_v32 = vcombine.low %v5664_v38, %v5674_v15  ;;  %v6712_v40 = vpop.permute.xlu0 %6711  ;;  %v4775_v36 = vld [vmem:[#allocation2 + $0x54] sm:$0xe]  ;;  %v16632_v38 = vpop.permute.xlu1 %6551 }
 0x368   : >> { %v5687_v25 = vrot.slane %v5685_v28, 5  ;;  %v5695_v19 = vshll.u32 %v14112_v52, 16  ;;  %v12307_v59 = vrot.slane %v4774_v34, 9  ;;  %v4876_v29 = vrot.slane %v14113_v46, 5  ;;  %v14120_v28 = vld [vmem:[#allocation2 + $0x8c] sm:$0x1] }
 0x369   : >> { %v5366_v57 = vsel %vm1282_vm7, %v12354_v47, %v16581_v16  ;;  %v5682_v26 = vor.u32 %v5681_v37, %v5678_v0  ;;  %v6825_v1 = vsel %vm1282_vm7, %v12439_v48, %v6710_v13  ;;  %v5691_v2 = vrot.slane %v5689_v63, 4  ;;  %v14121_v37 = vld [vmem:[#allocation2 + $0x58] sm:$0xf] }
 0x36a   : >> { %7308 = vmatprep.mubr.bf16.mxu1 %v5366_v57  ;;  %v4879_v30 = vrot.slane %v14114_v9, 5  ;;  %v6757_v31 = vsel %vm1282_vm7, %v12406_v32, %v16569_v22  ;;  %v4877_v20 = vsel %vm14521_vm6, %v12307_v59, %v4876_v29  ;;  %v4878_v55 = vrot.slane %v4876_v29, 4 }
 0x36b   : >> { %v5683_v35 = vrot.slane %v5682_v26, 4  ;;  %v5692_v45 = vor.u32 %v5691_v2, %v5687_v25  ;;  %v5697_v16 = vrot.slane %v5695_v19, 5  ;;  %v5700_v24 = vshrl.u32 %v14115_v60, 16 }
 0x36c   : >> { %7309 = vmatmul.mubr.bf16.gmra.mrb[36].mxu1 %v5302_v42  ;;  %v5703_v50 = vshll.u32 %v14115_v60, 16  ;;  %v4880_v13 = vsel %vm14521_vm6, %v4878_v55, %v4879_v30  ;;  %v12323_v43 = vcombine.low %v14116_v12, %v14113_v46  ;;  %v12440_v22 = vcombine.low %v14117_v23, %v16627_v39  ;;  %v14122_v46 = vld [vmem:[#allocation2 + $0x5c] sm:$0x1]  ;;  %v5263_v30 = vpop.permute.xlu0 %5262  ;;  %v14124_v55 = vld [vmem:[#allocation2 + $0x90] sm:$0xf] }
 0x36d   : >> { %v5709_v41 = vshll.u32 %v14119_v14, 16  ;;  %7076 = vmatmul.mubr.bf16.gmra.mrb[32].mxu0 %v6757_v31  ;;  %v5688_v48 = vsel %vm14513_vm5, %v5683_v35, %v5687_v25  ;;  %v5693_v21 = vrot.slane %v5692_v45, 4  ;;  %v12355_v54 = vcombine.low %v4877_v20, %v4880_v13  ;;  %v14123_v31 = vld [vmem:[#allocation2 + $0x54] sm:$0xf]  ;;  %v5103_v20 = vpop.permute.xlu1 %5102  ;;  %v4776_v60 = vld [vmem:[#allocation2 + $0x60] sm:$0xe] }
 0x36e   : >> { %v5702_v18 = vrot.slane %v5700_v24, 4  ;;  %7083 = vmatprep.mubr.bf16.mxu0 %v6825_v1  ;;  %v5705_v10 = vrot.slane %v5703_v50, 5  ;;  %v5713_v11 = vshrl.u32 %v14119_v14, 16  ;;  %v5719_v34 = vshll.u32 %v14120_v28, 16  ;;  %v14125_v13 = vld [vmem:[#allocation2 + $0x9c] sm:$0xf] }
 0x36f   : >> { %v5711_v42 = vrot.slane %v5709_v41, 5  ;;  %v5698_v15 = vsel %vm14513_vm5, %v5693_v21, %v5697_v16  ;;  %v5370_v47 = vsel %vm1282_vm7, %v12355_v54, %v5261_v17  ;;  %v12308_v0 = vrot.slane %v4775_v36, 9  ;;  %v16647_v12 = vld [vmem:[#allocation2 + $0xa0] sm:$0xf]  ;;  %v14128_v21 = vld [vmem:[#allocation2 + $0x98] sm:$0x1] }
 0x370   : >> { %v4883_v32 = vrot.slane %v14121_v37, 5  ;;  %v12407_v25 = vcombine.low %v5688_v48, %v5698_v15  ;;  %v5306_v63 = vsel %vm1282_vm7, %v12323_v43, %v5101_v5  ;;  %v5706_v52 = vor.u32 %v5705_v10, %v5702_v18  ;;  %7316 = vmatprep.mubr.bf16.mxu1 %v5370_v47  ;;  %v6714_v47 = vpop.permute.xlu0 %6713 }
 0x371   : >> { %v5715_v19 = vrot.slane %v5713_v11, 4  ;;  %v6829_v57 = vsel %vm1282_vm7, %v12440_v22, %v6712_v40  ;;  %v4886_v29 = vrot.slane %v14122_v46, 5  ;;  %v5721_v9 = vrot.slane %v5719_v34, 5  ;;  %v14127_v40 = vld [vmem:[#allocation2 + $0x94] sm:$0xf] }
 0x372   : >> { %v4884_v26 = vsel %vm14521_vm6, %v12308_v0, %v4883_v32  ;;  %v4885_v59 = vrot.slane %v4883_v32, 4  ;;  %v6761_v17 = vsel %vm1282_vm7, %v12407_v25, %v16600_v6  ;;  %v5707_v1 = vrot.slane %v5706_v52, 4  ;;  %v7397_v34 = vld [vmem:[#allocation2 + $0x18] sm:$0xe]  ;;  %v14129_v0 = vld [vmem:[#allocation2 + $0x64] sm:$0xf] }
 0x373   : >> { %v5716_v2 = vor.u32 %v5715_v19, %v5711_v42  ;;  %v12324_v35 = vcombine.low %v14123_v31, %v14121_v37  ;;  %v5724_v45 = vshrl.u32 %v14124_v55, 16  ;;  %v5727_v16 = vshll.u32 %v14124_v55, 16  ;;  %v14130_v32 = vld [vmem:[#allocation2 + $0x68] sm:$0x1]  ;;  %v14133_v55 = vld [vmem:[#allocation2 + $0x60] sm:$0xf] }
 0x374   : >> { %7317 = vmatmul.mubr.bf16.gmra.mrb[40].mxu1 %v5306_v63  ;;  %v4887_v5 = vsel %vm14521_vm6, %v4885_v59, %v4886_v29  ;;  %v5712_v24 = vsel %vm14513_vm5, %v5707_v1, %v5711_v42  ;;  %v12441_v43 = vcombine.low %v14125_v13, %v16647_v12  ;;  %v5733_v14 = vshll.u32 %v14127_v40, 16 }
 0x375   : >> { %v5717_v50 = vrot.slane %v5716_v2, 4  ;;  %v12356_v6 = vcombine.low %v4884_v26, %v4887_v5  ;;  %7084 = vmatmul.mubr.bf16.gmra.mrb[36].mxu0 %v6761_v17  ;;  %v5726_v23 = vrot.slane %v5724_v45, 4  ;;  %v5729_v22 = vrot.slane %v5727_v16, 5  ;;  %v6554_v26 = vpop.permute.xlu1 %6553  ;;  %v14131_v17 = vld [vmem:[#allocation2 + $0x1c] sm:$0xf] }
 0x376   : >> { %v5737_v41 = vshrl.u32 %v14127_v40, 16  ;;  %7091 = vmatprep.mubr.bf16.mxu0 %v6829_v57  ;;  %v5743_v54 = vshll.u32 %v14128_v21, 16  ;;  %v12309_v18 = vrot.slane %v4776_v60, 9  ;;  %v5735_v11 = vrot.slane %v5733_v14, 5  ;;  %v4777_v2 = vld [vmem:[#allocation2 + $0x6c] sm:$0xe] }
 0x377   : >> { %v5722_v36 = vsel %vm14513_vm5, %v5717_v50, %v5721_v9  ;;  %v5374_v48 = vsel %vm1282_vm7, %v12356_v6, %v5263_v30  ;;  %v5730_v42 = vor.u32 %v5729_v22, %v5726_v23  ;;  %v5310_v15 = vsel %vm1282_vm7, %v12324_v35, %v5103_v20  ;;  %v5265_v35 = vpop.permute.xlu0 %5264  ;;  %v7398_v60 = vld [vmem:[#allocation2 + $0x24] sm:$0xe]  ;;  %v14135_v22 = vld [vmem:[#allocation2 + $0x70] sm:$0xf]  ;;  %v14136_v14 = vld [vmem:[#allocation2 + $0x2c] sm:$0x1] }
 0x378   : >> { %v12408_v10 = vcombine.low %v5712_v24, %v5722_v36  ;;  %v5739_v28 = vrot.slane %v5737_v41, 4  ;;  %7324 = vmatprep.mubr.bf16.mxu1 %v5374_v48  ;;  %v4890_v37 = vrot.slane %v14129_v0, 5  ;;  %v4893_v25 = vrot.slane %v14130_v32, 5  ;;  %v14134_v24 = vld [vmem:[#allocation2 + $0x28] sm:$0xf] }
 0x379   : >> { %v5731_v52 = vrot.slane %v5730_v42, 4  ;;  %v5745_v57 = vrot.slane %v5743_v54, 5  ;;  %v12494_v29 = vrot.slane %v7397_v34, 9  ;;  %v7447_v1 = vrot.slane %v14131_v17, 5  ;;  %v7399_v54 = vld [vmem:[#allocation2 + $0x30] sm:$0xe] }
 0x37a   : >> { %v6765_v63 = vsel %vm1282_vm7, %v12408_v10, %v16632_v38  ;;  %v5740_v19 = vor.u32 %v5739_v28, %v5735_v11  ;;  %v4891_v59 = vsel %vm14521_vm6, %v12309_v18, %v4890_v37  ;;  %v4892_v46 = vrot.slane %v4890_v37, 4  ;;  %v14132_v38 = vld [vmem:[#allocation2 + $0x20] sm:$0x1]  ;;  %v14138_v32 = vld [vmem:[#allocation2 + $0x34] sm:$0xf] }
 0x37b   : >> { %v6833_v9 = vsel %vm1282_vm7, %v12441_v43, %v6714_v47  ;;  %v5736_v30 = vsel %vm14513_vm5, %v5731_v52, %v5735_v11  ;;  %v7450_v31 = vrot.slane %v14132_v38, 5  ;;  %v12325_v45 = vcombine.low %v14133_v55, %v14129_v0  ;;  %v5105_v43 = vpop.permute.xlu1 %5104  ;;  %v4778_v52 = vld [vmem:[#allocation2 + $0x78] sm:$0xe] }
 0x37c   : >> { %v5741_v5 = vrot.slane %v5740_v19, 4  ;;  %7325 = vmatmul.mubr.bf16.gmra.mrb[44].mxu1 %v5310_v15  ;;  %v4894_v20 = vsel %vm14521_vm6, %v4892_v46, %v4893_v25  ;;  %v7449_v16 = vrot.slane %v7447_v1, 4  ;;  %v7454_v50 = vrot.slane %v14134_v24, 5  ;;  %v14137_v15 = vld [vmem:[#allocation2 + $0x74] sm:$0x1] }
 0x37d   : >> { %7092 = vmatmul.mubr.bf16.gmra.mrb[40].mxu0 %v6765_v63  ;;  %v12357_v13 = vcombine.low %v4891_v59, %v4894_v20  ;;  %v12310_v23 = vrot.slane %v4777_v2, 9  ;;  %v4897_v40 = vrot.slane %v14135_v22, 5  ;;  %v7457_v41 = vrot.slane %v14136_v14, 5  ;;  %v7400_v63 = vld [vmem:[#allocation2 + $0x3c] sm:$0xe] }
 0x37e   : >> { %v5746_v6 = vsel %vm14513_vm5, %v5741_v5, %v5745_v57  ;;  %7099 = vmatprep.mubr.bf16.mxu0 %v6833_v9  ;;  %v7448_v48 = vsel %vm14521_vm6, %v12494_v29, %v7447_v1  ;;  %v7451_v21 = vsel %vm14521_vm6, %v7449_v16, %v7450_v31  ;;  %v12495_v10 = vrot.slane %v7398_v60, 9  ;;  %v5267_v57 = vpop.permute.xlu0 %5266  ;;  %v14139_v46 = vld [vmem:[#allocation2 + $0x38] sm:$0x1]  ;;  %v14140_v5 = vld [vmem:[#allocation2 + $0x6c] sm:$0xf] }
 0x37f   : >> { %v12409_v36 = vcombine.low %v5736_v30, %v5746_v6  ;;  %v5378_v18 = vsel %vm1282_vm7, %v12357_v13, %v5265_v35  ;;  %v7456_v42 = vrot.slane %v7454_v50, 4  ;;  %v4899_v11 = vrot.slane %v4897_v40, 4  ;;  %v14141_v35 = vld [vmem:[#allocation2 + $0x7c] sm:$0xf]  ;;  %v14142_v16 = vld [vmem:[#allocation2 + $0x44] sm:$0x1] }
 0x380   : >> { %v5314_v28 = vsel %vm1282_vm7, %v12325_v45, %v5105_v43  ;;  %7332 = vmatprep.mubr.bf16.mxu1 %v5378_v18  ;;  %v4898_v34 = vsel %vm14521_vm6, %v12310_v23, %v4897_v40  ;;  %v4900_v47 = vrot.slane %v14137_v15, 5  ;;  %v12510_v0 = vcombine.low %v7448_v48, %v7451_v21  ;;  %v5107_v45 = vpop.permute.xlu1 %5106  ;;  %v14143_v24 = vld [vmem:[#allocation2 + $0x80] sm:$0x1]  ;;  %v4779_v14 = vld [vmem:[#allocation2 + $0x84] sm:$0xe] }
 0x381   : >> { %v12496_v37 = vrot.slane %v7399_v54, 9  ;;  %v7461_v25 = vrot.slane %v14138_v32, 5  ;;  %v6769_v19 = vsel %vm1282_vm7, %v12409_v36, %v6554_v26  ;;  %v7464_v29 = vrot.slane %v14139_v46, 5  ;;  %v14146_v32 = vld [vmem:[#allocation2 + $0x8c] sm:$0x1] }
 0x382   : >> { %v4901_v59 = vsel %vm14521_vm6, %v4899_v11, %v4900_v47  ;;  %v7468_v17 = vrot.slane %v16433_v33, 5  ;;  %v7455_v1 = vsel %vm14521_vm6, %v12495_v10, %v7454_v50  ;;  %v7458_v2 = vsel %vm14521_vm6, %v7456_v42, %v7457_v41  ;;  %v5269_v36 = vpop.permute.xlu0 %5268  ;;  %v7402_v46 = vld [vmem:[#allocation2 + $0x54] sm:$0xe] }
 0x383   : >> { %v12358_v9 = vcombine.low %v4898_v34, %v4901_v59  ;;  %v7463_v30 = vrot.slane %v7461_v25, 4  ;;  %v12326_v38 = vcombine.low %v14140_v5, %v14135_v22  ;;  %v12497_v26 = vrot.slane %v7400_v63, 9  ;;  %v7401_v22 = vld [vmem:[#allocation2 + $0x48] sm:$0xe]  ;;  %v14147_v63 = vld [vmem:[#allocation2 + $0x78] sm:$0xf] }
 0x384   : >> { %7333 = vmatmul.mubr.bf16.gmra.mrb[48].mxu1 %v5314_v28  ;;  %v12311_v31 = vrot.slane %v4778_v52, 9  ;;  %v4904_v20 = vrot.slane %v14141_v35, 5  ;;  %v7462_v33 = vsel %vm14521_vm6, %v12496_v37, %v7461_v25  ;;  %v7471_v60 = vrot.slane %v14142_v16, 5  ;;  %v16697_v34 = vld [vmem:[#allocation2 + $0x88] sm:$0xf]  ;;  %v5109_v59 = vpop.permute.xlu1 %5108 }
 0x385   : >> { %7100 = vmatmul.mubr.bf16.gmra.mrb[44].mxu0 %v6769_v19  ;;  %v5382_v55 = vsel %vm1282_vm7, %v12358_v9, %v5267_v57  ;;  %v4907_v50 = vrot.slane %v14143_v24, 5  ;;  %v7465_v6 = vsel %vm14521_vm6, %v7463_v30, %v7464_v29  ;;  %v7470_v13 = vrot.slane %v7468_v17, 4  ;;  %v14149_v16 = vld [vmem:[#allocation2 + $0x5c] sm:$0x1] }
 0x386   : >> { %13622 = vmatprep.mubr.msk.bf16.mxu0 %vm1282_vm7, %v12510_v0  ;;  %7340 = vmatprep.mubr.bf16.mxu1 %v5382_v55  ;;  %v4905_v43 = vsel %vm14521_vm6, %v12311_v31, %v4904_v20  ;;  %v4906_v23 = vrot.slane %v4904_v20, 4  ;;  %v7475_v40 = vrot.slane %v16477_v7, 5  ;;  %v5318_v41 = vsel %vm1282_vm7, %v12326_v38, %v5107_v45  ;;  %v14145_v0 = vld [vmem:[#allocation2 + $0x50] sm:$0x1]  ;;  %v16714_v55 = vld [vmem:[#allocation2 + $0x94] sm:$0xf] }
 0x387   : >> { %v12511_v21 = vcombine.low %v7455_v1, %v7458_v2  ;;  %v12512_v54 = vcombine.low %v7462_v33, %v7465_v6  ;;  %v7469_v18 = vsel %vm14521_vm6, %v12497_v26, %v7468_v17  ;;  %v7472_v42 = vsel %vm14521_vm6, %v7470_v13, %v7471_v60  ;;  %v4780_v17 = vld [vmem:[#allocation2 + $0x90] sm:$0xe]  ;;  %v5271_v2 = vpop.permute.xlu0 %5270 }
 0x388   : >> { %v4908_v48 = vsel %vm14521_vm6, %v4906_v23, %v4907_v50  ;;  %v12498_v11 = vrot.slane %v7401_v22, 9  ;;  %v12312_v28 = vrot.slane %v4779_v14, 9  ;;  %v4911_v7 = vrot.slane %v16697_v34, 5  ;;  %v14150_v50 = vld [vmem:[#allocation2 + $0x98] sm:$0x1] }
 0x389   : >> { %v12359_v10 = vcombine.low %v4905_v43, %v4908_v48  ;;  %v7477_v47 = vrot.slane %v7475_v40, 4  ;;  %v7478_v37 = vrot.slane %v14145_v0, 5  ;;  %v4914_v25 = vrot.slane %v14146_v32, 5  ;;  %v14154_v0 = vld [vmem:[#allocation2 + $0xa4] sm:$0x1] }
 0x38a   : >> { %v12327_v52 = vcombine.low %v14147_v63, %v14141_v35  ;;  %v4912_v19 = vsel %vm14521_vm6, %v12312_v28, %v4911_v7  ;;  %v4913_v57 = vrot.slane %v4911_v7, 4  ;;  %v7482_v29 = vrot.slane %v16519_v8, 5  ;;  %v7403_v35 = vld [vmem:[#allocation2 + $0x60] sm:$0xe] }
 0x38b   : >> { %v5386_v15 = vsel %vm1282_vm7, %v12359_v10, %v5269_v36  ;;  %v12513_v1 = vcombine.low %v7469_v18, %v7472_v42  ;;  %v7476_v30 = vsel %vm14521_vm6, %v12498_v11, %v7475_v40  ;;  %v7479_v5 = vsel %vm14521_vm6, %v7477_v47, %v7478_v37  ;;  %v14151_v40 = vld [vmem:[#allocation2 + $0x68] sm:$0x1]  ;;  %v14152_v36 = vld [vmem:[#allocation2 + $0x84] sm:$0xf]  ;;  %v7404_v11 = vld [vmem:[#allocation2 + $0x6c] sm:$0xe] }
 0x38c   : >> { %7341 = vmatmul.mubr.bf16.gmra.mrb[52].mxu1 %v5318_v41  ;;  %v4915_v9 = vsel %vm14521_vm6, %v4913_v57, %v4914_v25  ;;  %v7489_v26 = vrot.slane %v16543_v53, 5  ;;  %v5322_v31 = vsel %vm1282_vm7, %v12327_v52, %v5109_v59  ;;  %v12499_v8 = vrot.slane %v7402_v46, 9  ;;  %v4781_v41 = vld [vmem:[#allocation2 + $0x9c] sm:$0xe]  ;;  %v5111_v10 = vpop.permute.xlu1 %5110  ;;  %v14155_v46 = vld [vmem:[#allocation2 + $0x74] sm:$0x1] }
 0x38d   : >> { %7348 = vmatprep.mubr.bf16.mxu1 %v5386_v15  ;;  %13623 = vmatmul.mubr.msk.bf16.vlgmr.msra.gmra.mrb[48].mxu0 %vm1282_vm7, %v12511_v21  ;;  %v12360_v38 = vcombine.low %v4912_v19, %v4915_v9  ;;  %v12313_v20 = vrot.slane %v4780_v17, 9  ;;  %v4918_v45 = vrot.slane %v16714_v55, 5  ;;  %v7484_v33 = vrot.slane %v7482_v29, 4  ;;  %v16730_v15 = vld [vmem:[#allocation2 + $0xa0] sm:$0xf] }
 0x38e   : >> { %13626 = vmatprep.mubr.msk.bf16.mxu0 %vm1282_vm7, %v12512_v54  ;;  %v7485_v60 = vrot.slane %v14149_v16, 5  ;;  %v4921_v6 = vrot.slane %v14150_v50, 5  ;;  %v12514_v13 = vcombine.low %v7476_v30, %v7479_v5  ;;  %v12500_v23 = vrot.slane %v7403_v35, 9  ;;  %v7405_v19 = vld [vmem:[#allocation2 + $0x78] sm:$0xe] }
 0x38f   : >> { %v5390_v24 = vsel %vm1282_vm7, %v12360_v38, %v5271_v2  ;;  %v4919_v53 = vsel %vm14521_vm6, %v12313_v20, %v4918_v45  ;;  %v4920_v43 = vrot.slane %v4918_v45, 4  ;;  %v7491_v22 = vrot.slane %v7489_v26, 4  ;;  %v14156_v38 = vld [vmem:[#allocation2 + $0x80] sm:$0x1]  ;;  %v7406_v16 = vld [vmem:[#allocation2 + $0x84] sm:$0xe] }
 0x390   : >> { %v7492_v14 = vrot.slane %v14151_v40, 5  ;;  %v12328_v48 = vcombine.low %v14152_v36, %v16697_v34  ;;  %v7483_v54 = vsel %vm14521_vm6, %v12499_v8, %v7482_v29  ;;  %v7486_v18 = vsel %vm14521_vm6, %v7484_v33, %v7485_v60  ;;  %v5273_v34 = vpop.permute.xlu0 %5272  ;;  %v14157_v8 = vld [vmem:[#allocation2 + $0x90] sm:$0xf]  ;;  %v14158_v36 = vld [vmem:[#allocation2 + $0x8c] sm:$0x1] }
 0x391   : >> { %v4922_v21 = vsel %vm14521_vm6, %v4920_v43, %v4921_v6  ;;  %v7496_v28 = vrot.slane %v16566_v44, 5  ;;  %v12314_v7 = vrot.slane %v4781_v41, 9  ;;  %v4925_v47 = vrot.slane %v16730_v15, 5  ;;  %v7407_v40 = vld [vmem:[#allocation2 + $0x90] sm:$0xe] }
 0x392   : >> { %v12361_v42 = vcombine.low %v4919_v53, %v4922_v21  ;;  %v4928_v37 = vrot.slane %v14154_v0, 5  ;;  %v7490_v32 = vsel %vm14521_vm6, %v12500_v23, %v7489_v26  ;;  %v7493_v25 = vsel %vm14521_vm6, %v7491_v22, %v7492_v14 }
 0x393   : >> { %v7503_v63 = vrot.slane %v16587_v49, 5  ;;  %v5326_v52 = vsel %vm1282_vm7, %v12328_v48, %v5111_v10  ;;  %v4927_v44 = vrot.slane %v4925_v47, 4  ;;  %v12515_v57 = vcombine.low %v7483_v54, %v7486_v18 }
 0x394   : >> { %7349 = vmatmul.mubr.bf16.gmra.mrb[56].mxu1 %v5322_v31  ;;  %v12501_v59 = vrot.slane %v7404_v11, 9  ;;  %v7499_v29 = vrot.slane %v14155_v46, 5  ;;  %v5394_v17 = vsel %vm1282_vm7, %v12361_v42, %v5273_v34  ;;  %v7498_v2 = vrot.slane %v7496_v28, 4  ;;  %v4782_v31 = vld [vmem:[#allocation2 + $0xa8] sm:$0xe] }
 0x395   : >> { %7356 = vmatprep.mubr.bf16.mxu1 %v5390_v24  ;;  %13627 = vmatmul.mubr.msk.bf16.gmra.mrb[52].mxu0 %vm1282_vm7, %v12513_v1  ;;  %v12516_v1 = vcombine.low %v7490_v32, %v7493_v25  ;;  %v4926_v9 = vsel %vm14521_vm6, %v12314_v7, %v4925_v47  ;;  %v4929_v30 = vsel %vm14521_vm6, %v4927_v44, %v4928_v37  ;;  %v12502_v49 = vrot.slane %v7405_v19, 9  ;;  %v14159_v42 = vld [vmem:[#allocation2 + $0x98] sm:$0x1]  ;;  %v14160_v7 = vld [vmem:[#allocation2 + $0x9c] sm:$0xf] }
 0x396   : >> { %13630 = vmatprep.mubr.msk.bf16.mxu0 %vm1282_vm7, %v12514_v13  ;;  %v7505_v5 = vrot.slane %v7503_v63, 4  ;;  %v7506_v26 = vrot.slane %v14156_v38, 5  ;;  %v12329_v35 = vcombine.low %v14157_v8, %v16714_v55  ;;  %v4932_v20 = vrot.slane %v16454_v58, 5  ;;  %v4783_v37 = vld [vmem:[#allocation2 + $0xb4] sm:$0xe] }
 0x397   : >> { %v7497_v45 = vsel %vm14521_vm6, %v12501_v59, %v7496_v28  ;;  %v7510_v60 = vrot.slane %v16608_v27, 5  ;;  %v12362_v24 = vcombine.low %v4926_v9, %v4929_v30  ;;  %v7500_v50 = vsel %vm14521_vm6, %v7498_v2, %v7499_v29  ;;  %v7408_v19 = vld [vmem:[#allocation2 + $0x9c] sm:$0xe]  ;;  %v7409_v29 = vld [vmem:[#allocation2 + $0xa8] sm:$0xe] }
 0x398   : >> { %v12315_v55 = vrot.slane %v4782_v31, 9  ;;  %v4934_v13 = vrot.slane %v4932_v20, 4  ;;  %v4935_v58 = vrot.slane %v16459_v4, 5  ;;  %v7504_v53 = vsel %vm14521_vm6, %v12502_v49, %v7503_v63  ;;  %v14163_v8 = vld [vmem:[#allocation2 + $0xb0] sm:$0x1] }
 0x399   : >> { %v7507_v43 = vsel %vm14521_vm6, %v7505_v5, %v7506_v26  ;;  %v7517_v23 = vrot.slane %v16627_v39, 5  ;;  %v12503_v22 = vrot.slane %v7406_v16, 9  ;;  %v12517_v14 = vcombine.low %v7497_v45, %v7500_v50  ;;  %v14162_v5 = vld [vmem:[#allocation2 + $0xa4] sm:$0x1]  ;;  %v14164_v16 = vld [vmem:[#allocation2 + $0xb8] sm:$0xf] }
 0x39a   : >> { %v5113_v33 = vpop.permute.xlu1 %5112  ;;  %v7512_v41 = vrot.slane %v7510_v60, 4  ;;  %v7513_v48 = vrot.slane %v14158_v36, 5  ;;  %v12518_v54 = vcombine.low %v7504_v53, %v7507_v43  ;;  %v4933_v4 = vsel %vm14521_vm6, %v12315_v55, %v4932_v20  ;;  %v14165_v55 = vld [vmem:[#allocation2 + $0xc4] sm:$0xf]  ;;  %v7411_v53 = vld [vmem:[#allocation2 + $0xc0] sm:$0xe] }
 0x39b   : >> { %v5330_v27 = vsel %vm1282_vm7, %v12329_v35, %v5113_v33  ;;  %v4936_v18 = vsel %vm14521_vm6, %v4934_v13, %v4935_v58  ;;  %v12504_v10 = vrot.slane %v7407_v40, 9  ;;  %v7519_v39 = vrot.slane %v7517_v23, 4  ;;  %v14168_v36 = vld [vmem:[#allocation2 + $0xbc] sm:$0x1] }
 0x39c   : >> { %7357 = vmatmul.mubr.bf16.gmra.mrb[60].mxu1 %v5326_v52  ;;  %v5275_v6 = vpop.permute.xlu0 %5274  ;;  %v7520_v11 = vrot.slane %v14159_v42, 5  ;;  %v7511_v28 = vsel %vm14521_vm6, %v12503_v22, %v7510_v60  ;;  %v7514_v34 = vsel %vm14521_vm6, %v7512_v41, %v7513_v48  ;;  %v12330_v47 = vcombine.low %v14160_v7, %v16730_v15  ;;  %v14170_v7 = vld [vmem:[#allocation2 + $0xd0] sm:$0xf] }
 0x39d   : >> { %7364 = vmatprep.mubr.bf16.mxu1 %v5394_v17  ;;  %13631 = vmatmul.mubr.msk.bf16.gmra.mrb[56].mxu0 %vm1282_vm7, %v12515_v57  ;;  %v5398_v21 = vsel %vm1282_vm7, %v12362_v24, %v5275_v6  ;;  %v12363_v0 = vcombine.low %v4933_v4, %v4936_v18  ;;  %v4939_v32 = vrot.slane %v16496_v3, 5  ;;  %v7524_v25 = vrot.slane %v16647_v12, 5  ;;  %v14161_v57 = vld [vmem:[#allocation2 + $0xac] sm:$0xf]  ;;  %v7410_v6 = vld [vmem:[#allocation2 + $0xb4] sm:$0xe] }
 0x39e   : >> { %13634 = vmatprep.mubr.msk.bf16.mxu0 %vm1282_vm7, %v12516_v1  ;;  %v7518_v63 = vsel %vm14521_vm6, %v12504_v10, %v7517_v23  ;;  %v7521_v52 = vsel %vm14521_vm6, %v7519_v39, %v7520_v11  ;;  %v7531_v59 = vrot.slane %v14161_v57, 5  ;;  %v12519_v46 = vcombine.low %v7511_v28, %v7514_v34  ;;  %v14166_v23 = vld [vmem:[#allocation2 + $0xa8] sm:$0xf] }
 0x39f   : >> { %v12316_v17 = vrot.slane %v4783_v37, 9  ;;  %v4941_v2 = vrot.slane %v4939_v32, 4  ;;  %v4942_v12 = vrot.slane %v16504_v56, 5  ;;  %v12520_v9 = vcombine.low %v7518_v63, %v7521_v52  ;;  %v14169_v18 = vld [vmem:[#allocation2 + $0xc8] sm:$0x1] }
 0x3a0   : >> { %v12505_v30 = vrot.slane %v7408_v19, 9  ;;  %v7526_v49 = vrot.slane %v7524_v25, 4  ;;  %v7527_v38 = vrot.slane %v14162_v5, 5  ;;  %v12506_v26 = vrot.slane %v7409_v29, 9 }
 0x3a1   : >> { %v7533_v31 = vrot.slane %v7531_v59, 4  ;;  %v7534_v35 = vrot.slane %v14163_v8, 5  ;;  %v4940_v20 = vsel %vm14521_vm6, %v12316_v17, %v4939_v32  ;;  %v4943_v45 = vsel %vm14521_vm6, %v4941_v2, %v4942_v12  ;;  %v7412_v32 = vld [vmem:[#allocation2 + $0xcc] sm:$0xe] }
 0x3a2   : >> { %v7525_v56 = vsel %vm14521_vm6, %v12505_v30, %v7524_v25  ;;  %v7528_v33 = vsel %vm14521_vm6, %v7526_v49, %v7527_v38  ;;  %v7538_v60 = vrot.slane %v14164_v16, 5  ;;  %v7532_v24 = vsel %vm14521_vm6, %v12506_v26, %v7531_v59  ;;  %v14172_v59 = vld [vmem:[#allocation2 + $0xb4] sm:$0xf] }
 0x3a3   : >> { %v7535_v50 = vsel %vm14521_vm6, %v7533_v31, %v7534_v35  ;;  %v7545_v13 = vrot.slane %v14165_v55, 5  ;;  %v12364_v58 = vcombine.low %v4940_v20, %v4943_v45  ;;  %v12521_v43 = vcombine.low %v7525_v56, %v7528_v33 }
 0x3a4   : >> { %7365 = vmatmul.mubr.bf16.gmra.mrb[64].mxu1 %v5330_v27  ;;  %v14167_v27 = vld [vmem:[#allocation2 + $0xac] sm:$0xf]  ;;  %v12522_v40 = vcombine.low %v7532_v24, %v7535_v50  ;;  %v7540_v41 = vrot.slane %v7538_v60, 4  ;;  %v7541_v48 = vrot.slane %v14168_v36, 5  ;;  %v7548_v10 = vrot.slane %v14169_v18, 5 }
 0x3a5   : >> { %7372 = vmatprep.mubr.bf16.mxu1 %v5398_v21  ;;  %13635 = vmatmul.mubr.msk.bf16.gmra.mrb[60].mxu0 %vm1282_vm7, %v12517_v14  ;;  %v12331_v22 = vcombine.low %v14166_v23, %v14167_v27  ;;  %v12507_v14 = vrot.slane %v7410_v6, 9  ;;  %v7547_v4 = vrot.slane %v7545_v13, 4  ;;  %v12509_v52 = vrot.slane %v7412_v32, 9 }
 0x3a6   : >> { %13638 = vmatprep.mubr.msk.bf16.mxu0 %vm1282_vm7, %v12518_v54  ;;  %v12508_v54 = vrot.slane %v7411_v53, 9  ;;  %v7542_v34 = vsel %vm14521_vm6, %v7540_v41, %v7541_v48 }
 0x3a7   : >> { %v7539_v28 = vsel %vm14521_vm6, %v12507_v14, %v7538_v60  ;;  %v7549_v37 = vsel %vm14521_vm6, %v7547_v4, %v7548_v10 }
 0x3a8   : >> { %v5277_v44 = vpop.permute.xlu0 %5276  ;;  %v5115_v15 = vpop.permute.xlu1 %5114  ;;  %v12523_v25 = vcombine.low %v7539_v28, %v7542_v34 }
 0x3a9   : >> { %v5334_v3 = vsel %vm1282_vm7, %v12330_v47, %v5115_v15  ;;  %v5402_v1 = vsel %vm1282_vm7, %v12363_v0, %v5277_v44  ;;  %v7552_v47 = vrot.slane %v14170_v7, 5  ;;  %v7546_v0 = vsel %vm14521_vm6, %v12508_v54, %v7545_v13  ;;  %v14171_v44 = vld [vmem:[#allocation2 + $0xd4] sm:$0x1] }
 0x3aa   : >> { %v12524_v63 = vcombine.low %v7546_v0, %v7549_v37  ;;  %v7555_v57 = vrot.slane %v14171_v44, 5 }
 0x3ab   : >> { %v7554_v19 = vrot.slane %v7552_v47, 4  ;;  %v7553_v29 = vsel %vm14521_vm6, %v12509_v52, %v7552_v47 }
 0x3ac   : >> { %7373 = vmatmul.mubr.bf16.gmra.mrb[68].mxu1 %v5334_v3 }
 0x3ad   : >> { %7380 = vmatprep.mubr.bf16.mxu1 %v5402_v1  ;;  %13639 = vmatmul.mubr.msk.bf16.gmra.mrb[64].mxu0 %vm1282_vm7, %v12519_v46  ;;  %v14173_v46 = vld [vmem:[#allocation2 + $0xb8] sm:$0xf]  ;;  %v7556_v17 = vsel %vm14521_vm6, %v7554_v19, %v7555_v57 }
 0x3ae   : >> { %13642 = vmatprep.mubr.msk.bf16.mxu0 %vm1282_vm7, %v12520_v9  ;;  %v12332_v15 = vcombine.low %v14172_v59, %v14173_v46  ;;  %v12525_v2 = vcombine.low %v7553_v29, %v7556_v17 }
 0x3b4   : >> { %v5279_v21 = vpop.permute.xlu0 %5278 }
 0x3b5   : >> { %v5117_v39 = vpop.permute.xlu1 %5116  ;;  %v5406_v42 = vsel %vm1282_vm7, %v12364_v58, %v5279_v21  ;;  %13643 = vmatmul.mubr.msk.bf16.gmra.mrb[68].mxu0 %vm1282_vm7, %v12521_v43 }
 0x3b6   : >> { %v5338_v11 = vsel %vm1282_vm7, %v12331_v22, %v5117_v39  ;;  %13646 = vmatprep.mubr.msk.bf16.mxu0 %vm1282_vm7, %v12522_v40 }
 0x3b7   : >> { %7381 = vmatmul.mubr.bf16.gmra.mrb[72].mxu1 %v5338_v11 }
 0x3b8   : >> { %7388 = vmatprep.mubr.bf16.mxu1 %v5406_v42 }
 0x3bd   : >> { %13647 = vmatmul.mubr.msk.bf16.gmra.mrb[72].mxu0 %vm1282_vm7, %v12523_v25 }
 0x3be   : >> { %13650 = vmatprep.mubr.msk.bf16.mxu0 %vm1282_vm7, %v12524_v63 }
 0x3c0   : >> { %v5119_v3 = vpop.permute.xlu1 %5118 }
 0x3c1   : >> { %v5342_v1 = vsel %vm1282_vm7, %v12332_v15, %v5119_v3 }
 0x3c2   : >> { %7389 = vmatmul.mubr.bf16.gmra.mrb[76].mxu1 %v5342_v1 }
 0x3c5   : >> { %13651 = vmatmul.mubr.msk.bf16.gmra.mrb[76].mxu0 %vm1282_vm7, %v12525_v2 }
 0x3e0   : >> { %v13174_v12 = vpop.f32.mrb[0].mxu1 }
 0x3e1   : >> { %v13175_v9 = vpop.f32.mrb[1].mxu1 }
 0x3e2   : >> { %v16815_v30 = vadd.f32 %v13175_v9, %v13174_v12  ;;  %v13177_v49 = vpop.f32.mrb[2].mxu1 }
 0x3e3   : >> { %v13178_v5 = vpop.f32.mrb[3].mxu1 }
 0x3e4   : >> { %v13102_v38 = vpop.f32.mrb[0].mxu0  ;;  %v16817_v26 = vadd.f32 %v13178_v5, %v13177_v49 }
 0x3e5   : >> { %v13103_v31 = vpop.f32.mrb[1].mxu0 }
 0x3e6   : >> { %v13104_v8 = vadd.f32 %v13103_v31, %v13102_v38  ;;  %v13105_v35 = vpop.f32.mrb[2].mxu0 }
 0x3e7   : >> { %v13106_v20 = vpop.f32.mrb[3].mxu0 }
 0x3e8   : >> { %v13107_v45 = vadd.f32 %v13106_v20, %v13105_v35 }
 0x3ea   : >> { %v13180_v56 = vpop.f32.mrb[4].mxu1 }
 0x3eb   : >> { %v13181_v33 = vpop.f32.mrb[5].mxu1 }
 0x3ec   : >> { %v16819_v16 = vadd.f32 %v13181_v33, %v13180_v56  ;;  %v13183_v60 = vpop.f32.mrb[6].mxu1 }
 0x3ed   : >> { %v13184_v24 = vpop.f32.mrb[7].mxu1 }
 0x3ee   : >> { %v16821_v50 = vadd.f32 %v13184_v24, %v13183_v60 }
 0x3f2   : >> { %v13108_v6 = vpop.f32.mrb[4].mxu0 }
 0x3f3   : >> { %v13109_v55 = vpop.f32.mrb[5].mxu0 }
 0x3f4   : >> { %v13110_v13 = vadd.f32 %v13109_v55, %v13108_v6  ;;  %v13111_v58 = vpop.f32.mrb[6].mxu0 }
 0x3f5   : >> { %v13112_v53 = vpop.f32.mrb[7].mxu0 }
 0x3f6   : >> { %v13113_v43 = vadd.f32 %v13112_v53, %v13111_v58 }
 0x3f8   : >> { %v13186_v23 = vpop.f32.mrb[8].mxu1 }
 0x3f9   : >> { %v13187_v27 = vpop.f32.mrb[9].mxu1 }
 0x3fa   : >> { %v16823_v22 = vadd.f32 %v13187_v27, %v13186_v23  ;;  %v13189_v40 = vpop.f32.mrb[10].mxu1 }
 0x3fb   : >> { %v13190_v14 = vpop.f32.mrb[11].mxu1 }
 0x3fc   : >> { %v16825_v41 = vadd.f32 %v13190_v14, %v13189_v40 }
 0x400   : >> { %v13114_v36 = vpop.f32.mrb[8].mxu0 }
 0x401   : >> { %v13115_v48 = vpop.f32.mrb[9].mxu0 }
 0x402   : >> { %v13116_v21 = vadd.f32 %v13115_v48, %v13114_v36  ;;  %v13117_v54 = vpop.f32.mrb[10].mxu0 }
 0x403   : >> { %v13118_v4 = vpop.f32.mrb[11].mxu0 }
 0x404   : >> { %v13119_v18 = vadd.f32 %v13118_v4, %v13117_v54 }
 0x406   : >> { %v13192_v10 = vpop.f32.mrb[12].mxu1 }
 0x407   : >> { %v13193_v39 = vpop.f32.mrb[13].mxu1 }
 0x408   : >> { %v16827_v42 = vadd.f32 %v13193_v39, %v13192_v10  ;;  %v13195_v11 = vpop.f32.mrb[14].mxu1 }
 0x409   : >> { %v13196_v28 = vpop.f32.mrb[15].mxu1 }
 0x40a   : >> { %v16829_v34 = vadd.f32 %v13196_v28, %v13195_v11 }
 0x410   : >> { %v13120_v7 = vpop.f32.mrb[12].mxu0  ;;  %v13214_v47 = vpop.f32.mrb[16].mxu1 }
 0x411   : >> { %v13121_v0 = vpop.f32.mrb[13].mxu0  ;;  %v13215_v37 = vpop.f32.mrb[17].mxu1 }
 0x412   : >> { %v13122_v32 = vadd.f32 %v13121_v0, %v13120_v7  ;;  %v13123_v25 = vpop.f32.mrb[14].mxu0  ;;  %v13216_v63 = vadd.f32 %v13215_v37, %v13214_v47  ;;  %v13217_v52 = vpop.f32.mrb[18].mxu1 }
 0x413   : >> { %v13124_v19 = vpop.f32.mrb[15].mxu0  ;;  %v13218_v44 = vpop.f32.mrb[19].mxu1 }
 0x414   : >> { %v13125_v57 = vadd.f32 %v13124_v19, %v13123_v25  ;;  %v13219_v59 = vadd.f32 %v13218_v44, %v13217_v52  ;;  %v16831_v46 = vadd.f32 %v13216_v63, %v13104_v8 }
 0x416   : >> { %v16833_v15 = vadd.f32 %v13219_v59, %v13107_v45 }
 0x41b   : >> { %v13220_v17 = vpop.f32.mrb[20].mxu1 }
 0x41c   : >> { %v13126_v29 = vpop.f32.mrb[16].mxu0  ;;  %v13221_v1 = vpop.f32.mrb[21].mxu1 }
 0x41d   : >> { %v13127_v3 = vpop.f32.mrb[17].mxu0  ;;  %v13222_v9 = vadd.f32 %v13221_v1, %v13220_v17  ;;  %v13223_v49 = vpop.f32.mrb[22].mxu1 }
 0x41e   : >> { %v13128_v2 = vadd.f32 %v13127_v3, %v13126_v29  ;;  %v13129_v12 = vpop.f32.mrb[18].mxu0  ;;  %v13224_v38 = vpop.f32.mrb[23].mxu1 }
 0x41f   : >> { %v13130_v5 = vpop.f32.mrb[19].mxu0  ;;  %v13225_v35 = vadd.f32 %v13224_v38, %v13223_v49  ;;  %v16835_v20 = vadd.f32 %v13222_v9, %v13110_v13 }
 0x420   : >> { %v13131_v31 = vadd.f32 %v13130_v5, %v13129_v12 }
 0x421   : >> { %v16837_v56 = vadd.f32 %v13225_v35, %v13113_v43 }
 0x427   : >> { %v13226_v8 = vpop.f32.mrb[24].mxu1 }
 0x428   : >> { %v13227_v33 = vpop.f32.mrb[25].mxu1  ;;  %v13132_v45 = vpop.f32.mrb[20].mxu0 }
 0x429   : >> { %v13228_v60 = vadd.f32 %v13227_v33, %v13226_v8  ;;  %v13229_v24 = vpop.f32.mrb[26].mxu1  ;;  %v13133_v6 = vpop.f32.mrb[21].mxu0 }
 0x42a   : >> { %v13230_v55 = vpop.f32.mrb[27].mxu1  ;;  %v13134_v58 = vadd.f32 %v13133_v6, %v13132_v45  ;;  %v13135_v53 = vpop.f32.mrb[22].mxu0 }
 0x42b   : >> { %v13231_v23 = vadd.f32 %v13230_v55, %v13229_v24  ;;  %v16839_v27 = vadd.f32 %v13228_v60, %v13116_v21  ;;  %v13136_v40 = vpop.f32.mrb[23].mxu0 }
 0x42c   : >> { %v13137_v14 = vadd.f32 %v13136_v40, %v13135_v53 }
 0x42d   : >> { %v16841_v36 = vadd.f32 %v13231_v23, %v13119_v18 }
 0x42f   : >> { %v13232_v13 = vpop.f32.mrb[28].mxu1 }
 0x430   : >> { %v13233_v48 = vpop.f32.mrb[29].mxu1  ;;  %v13138_v43 = vpop.f32.mrb[24].mxu0 }
 0x431   : >> { %v13234_v54 = vadd.f32 %v13233_v48, %v13232_v13  ;;  %v13235_v4 = vpop.f32.mrb[30].mxu1  ;;  %v13139_v10 = vpop.f32.mrb[25].mxu0 }
 0x432   : >> { %v13236_v39 = vpop.f32.mrb[31].mxu1  ;;  %v13140_v11 = vadd.f32 %v13139_v10, %v13138_v43  ;;  %v13141_v28 = vpop.f32.mrb[26].mxu0 }
 0x433   : >> { %v13237_v7 = vadd.f32 %v13236_v39, %v13235_v4  ;;  %v16843_v47 = vadd.f32 %v13234_v54, %v13122_v32  ;;  %v13142_v0 = vpop.f32.mrb[27].mxu0 }
 0x434   : >> { %v13143_v37 = vadd.f32 %v13142_v0, %v13141_v28 }
 0x435   : >> { %v16845_v21 = vadd.f32 %v13237_v7, %v13125_v57 }
 0x437   : >> { %v13238_v25 = vpop.f32.mrb[32].mxu1 }
 0x438   : >> { %v13239_v63 = vpop.f32.mrb[33].mxu1  ;;  %v13144_v18 = vpop.f32.mrb[28].mxu0 }
 0x439   : >> { %v13240_v52 = vadd.f32 %v13239_v63, %v13238_v25  ;;  %v13241_v19 = vpop.f32.mrb[34].mxu1  ;;  %v13145_v44 = vpop.f32.mrb[29].mxu0 }
 0x43a   : >> { %v13242_v59 = vpop.f32.mrb[35].mxu1  ;;  %v13146_v29 = vadd.f32 %v13145_v44, %v13144_v18  ;;  %v13147_v17 = vpop.f32.mrb[30].mxu0 }
 0x43b   : >> { %v13243_v3 = vadd.f32 %v13242_v59, %v13241_v19  ;;  %v16847_v1 = vadd.f32 %v13240_v52, %v13128_v2  ;;  %v13148_v12 = vpop.f32.mrb[31].mxu0 }
 0x43c   : >> { %v13149_v9 = vadd.f32 %v13148_v12, %v13147_v17 }
 0x43d   : >> { %v16849_v32 = vadd.f32 %v13243_v3, %v13131_v31 }
 0x43f   : >> { %v13244_v49 = vpop.f32.mrb[36].mxu1 }
 0x440   : >> { %v13245_v5 = vpop.f32.mrb[37].mxu1  ;;  %v13150_v57 = vpop.f32.mrb[32].mxu0 }
 0x441   : >> { %v13246_v38 = vadd.f32 %v13245_v5, %v13244_v49  ;;  %v13247_v35 = vpop.f32.mrb[38].mxu1  ;;  %v13151_v8 = vpop.f32.mrb[33].mxu0 }
 0x442   : >> { %v13248_v33 = vpop.f32.mrb[39].mxu1  ;;  %v13152_v45 = vadd.f32 %v13151_v8, %v13150_v57  ;;  %v13153_v60 = vpop.f32.mrb[34].mxu0 }
 0x443   : >> { %v13249_v24 = vadd.f32 %v13248_v33, %v13247_v35  ;;  %v16851_v6 = vadd.f32 %v13246_v38, %v13134_v58  ;;  %v13154_v55 = vpop.f32.mrb[35].mxu0 }
 0x444   : >> { %v13155_v53 = vadd.f32 %v13154_v55, %v13153_v60 }
 0x445   : >> { %v16853_v2 = vadd.f32 %v13249_v24, %v13137_v14 }
 0x447   : >> { %v13250_v23 = vpop.f32.mrb[40].mxu1 }
 0x448   : >> { %v13251_v40 = vpop.f32.mrb[41].mxu1  ;;  %v13156_v31 = vpop.f32.mrb[36].mxu0 }
 0x449   : >> { %v13252_v13 = vadd.f32 %v13251_v40, %v13250_v23  ;;  %v13253_v48 = vpop.f32.mrb[42].mxu1  ;;  %v13157_v43 = vpop.f32.mrb[37].mxu0 }
 0x44a   : >> { %v13254_v54 = vpop.f32.mrb[43].mxu1  ;;  %v13158_v4 = vadd.f32 %v13157_v43, %v13156_v31  ;;  %v13159_v10 = vpop.f32.mrb[38].mxu0 }
 0x44b   : >> { %v13255_v39 = vadd.f32 %v13254_v54, %v13253_v48  ;;  %v16855_v28 = vadd.f32 %v13252_v13, %v13140_v11  ;;  %v13160_v7 = vpop.f32.mrb[39].mxu0  ;;  %v16877_v54 = vld [vmem:[%s7878_s25] ss:$0 sm:$0xff] }
 0x44c   : >> { %v13161_v0 = vadd.f32 %v13160_v7, %v13159_v10 }
 0x44d   : >> { %v16857_v58 = vadd.f32 %v13255_v39, %v13143_v37 }
 0x44f   : >> { %v13256_v25 = vpop.f32.mrb[44].mxu1 }
 0x450   : >> { %v13257_v63 = vpop.f32.mrb[45].mxu1  ;;  %v13162_v14 = vpop.f32.mrb[40].mxu0 }
 0x451   : >> { %v13258_v18 = vadd.f32 %v13257_v63, %v13256_v25  ;;  %v13259_v52 = vpop.f32.mrb[46].mxu1  ;;  %v13163_v19 = vpop.f32.mrb[41].mxu0 }
 0x452   : >> { %v13260_v44 = vpop.f32.mrb[47].mxu1  ;;  %v13164_v59 = vadd.f32 %v13163_v19, %v13162_v14  ;;  %v13165_v17 = vpop.f32.mrb[42].mxu0 }
 0x453   : >> { %v13261_v3 = vadd.f32 %v13260_v44, %v13259_v52  ;;  %v16859_v12 = vadd.f32 %v13258_v18, %v13146_v29  ;;  %v13166_v49 = vpop.f32.mrb[43].mxu0 }
 0x454   : >> { %v16861_v5 = vadd.f32 %v13166_v49, %v13165_v17 }
 0x455   : >> { %v16863_v11 = vadd.f32 %v13261_v3, %v13149_v9 }
 0x457   : >> { %v13262_v37 = vpop.f32.mrb[48].mxu1 }
 0x458   : >> { %v13263_v57 = vpop.f32.mrb[49].mxu1  ;;  %v13168_v38 = vpop.f32.mrb[44].mxu0 }
 0x459   : >> { %v13264_v35 = vadd.f32 %v13263_v57, %v13262_v37  ;;  %v13265_v8 = vpop.f32.mrb[50].mxu1  ;;  %v13169_v33 = vpop.f32.mrb[45].mxu0 }
 0x45a   : >> { %v13266_v60 = vpop.f32.mrb[51].mxu1  ;;  %v16865_v24 = vadd.f32 %v13169_v33, %v13168_v38  ;;  %v13171_v55 = vpop.f32.mrb[46].mxu0 }
 0x45b   : >> { %v13267_v23 = vadd.f32 %v13266_v60, %v13265_v8  ;;  %v16867_v40 = vadd.f32 %v13264_v35, %v13152_v45  ;;  %v13172_v29 = vpop.f32.mrb[47].mxu0 }
 0x45c   : >> { %v16869_v31 = vadd.f32 %v13172_v29, %v13171_v55 }
 0x45d   : >> { %v16871_v13 = vadd.f32 %v13267_v23, %v13155_v53 }
 0x45f   : >> { %v13268_v9 = vpop.f32.mrb[52].mxu1 }
 0x460   : >> { %v13269_v48 = vpop.f32.mrb[53].mxu1  ;;  %v13624_v43 = vpop.f32.mrb[48].mxu0 }
 0x461   : >> { %v13270_v10 = vadd.f32 %v13269_v48, %v13268_v9  ;;  %v13271_v39 = vpop.f32.mrb[54].mxu1  ;;  %v7848_v7 = vadd.f32 %v13624_v43, %v16835_v20  ;;  %v7719_v45 = vpop.f32.mrb[49].mxu0 }
 0x462   : >> { %v13272_v25 = vpop.f32.mrb[55].mxu1  ;;  %v7846_v63 = vadd.f32 %v7719_v45, %v16831_v46  ;;  %v13625_v14 = vpop.f32.mrb[50].mxu0 }
 0x463   : >> { %v13273_v53 = vadd.f32 %v13272_v25, %v13271_v39  ;;  %v16881_v18 = vadd.f32 %v13270_v10, %v13158_v4  ;;  %v7888_v52 = vadd.f32 %v16877_v54, %v7848_v7  ;;  %v7849_v19 = vadd.f32 %v13625_v14, %v16837_v56  ;;  %v7722_v44 = vpop.f32.mrb[51].mxu0 }
 0x464   : >> { %v7886_v17 = vadd.f32 %v16877_v54, %v7846_v63  ;;  %v7847_v3 = vadd.f32 %v7722_v44, %v16833_v15 }
 0x465   : >> { %v16887_v49 = vadd.f32 %v13273_v53, %v13161_v0  ;;  %v7889_v20 = vadd.f32 %v16877_v54, %v7849_v19  ;;  %v7920_v57 = vmax.f32 %v7888_v52, 0.0 }
 0x466   : >> { %v7887_v37 = vadd.f32 %v16877_v54, %v7847_v3  ;;  %v7918_v35 = vmax.f32 %v7886_v17, 0.0 }
 0x467   : >> { %v13274_v46 = vpop.f32.mrb[56].mxu1  ;;  %v7921_v38 = vmax.f32 %v7889_v20, 0.0 }
 0x468   : >> { %v13275_v4 = vpop.f32.mrb[57].mxu1  ;;  %v7919_v8 = vmax.f32 %v7887_v37, 0.0  ;;  %v13628_v33 = vpop.f32.mrb[52].mxu0 }
 0x469   : >> { %v13276_v60 = vadd.f32 %v13275_v4, %v13274_v46  ;;  %v13277_v56 = vpop.f32.mrb[58].mxu1  ;;  %v7951_v55 = vpack.c.bf16 %v7921_v38, %v7920_v57  ;;  %v7852_v23 = vadd.f32 %v13628_v33, %v16843_v47  ;;  %v7735_v29 = vpop.f32.mrb[53].mxu0 }
 0x46a   : >> { %v13278_v15 = vpop.f32.mrb[59].mxu1  ;;  %v7950_v0 = vpack.c.bf16 %v7919_v8, %v7918_v35  ;;  %v7850_v9 = vadd.f32 %v7735_v29, %v16839_v27  ;;  %v13629_v48 = vpop.f32.mrb[54].mxu0 }
 0x46b   : >> { %v13279_v43 = vadd.f32 %v13278_v15, %v13277_v56  ;;  %v16893_v10 = vadd.f32 %v13276_v60, %v13164_v59  ;;  %v7974_v39 = vshrl.u32 %v7951_v55, 16  ;;  %v7892_v7 = vadd.f32 %v16877_v54, %v7852_v23  ;;  %v7738_v25 = vpop.f32.mrb[55].mxu0 }
 0x46c   : >> { %v7853_v45 = vadd.f32 %v13629_v48, %v16845_v21  ;;  %v7967_v63 = vshrl.u32 %v7950_v0, 16  ;;  %v7890_v14 = vadd.f32 %v16877_v54, %v7850_v9  ;;  %v7851_v47 = vadd.f32 %v7738_v25, %v16841_v36 }
 0x46d   : >> { %v7976_v53 = vrot.slane %v7974_v39, 7  ;;  %v7977_v52 = vshll.u32 %v7951_v55, 16  ;;  %v16901_v27 = vadd.f32 %v13279_v43, %v16861_v5  ;;  %v7970_v44 = vshll.u32 %v7950_v0, 16 }
 0x46e   : >> { %v7893_v19 = vadd.f32 %v16877_v54, %v7853_v45  ;;  %v7969_v59 = vrot.slane %v7967_v63, 7  ;;  %v7924_v17 = vmax.f32 %v7892_v7, 0.0  ;;  %v7891_v3 = vadd.f32 %v16877_v54, %v7851_v47 }
 0x46f   : >> { %v13280_v20 = vpop.f32.mrb[60].mxu1  ;;  %v7979_v21 = vor.u32 %v7977_v52, %v7976_v53  ;;  %v8127_v37 = vsel %vm15764_vm10, %v7976_v53, 0  ;;  %v7922_v46 = vmax.f32 %v7890_v14, 0.0 }
 0x470   : >> { %v7925_v57 = vmax.f32 %v7893_v19, 0.0  ;;  %v13281_v36 = vpop.f32.mrb[61].mxu1  ;;  %v12552_v38 = vcombine.low %v8127_v37, %v8127_v37  ;;  %v7972_v4 = vor.u32 %v7970_v44, %v7969_v59  ;;  %v8126_v35 = vsel %vm15764_vm10, %v7969_v59, 0  ;;  %v13632_v8 = vpop.f32.mrb[56].mxu0 }
 0x471   : >> { %v7923_v5 = vmax.f32 %v7891_v3, 0.0  ;;  %v13283_v33 = vpop.f32.mrb[62].mxu1  ;;  %v8111_v60 = vsel %vm15764_vm10, 0, %v7979_v21  ;;  %v12549_v56 = vcombine.low %v8126_v35, %v8126_v35  ;;  %v7856_v23 = vadd.f32 %v13632_v8, %v16851_v6  ;;  %v7751_v29 = vpop.f32.mrb[57].mxu0 }
 0x472   : >> { %v7953_v55 = vpack.c.bf16 %v7925_v57, %v7924_v17  ;;  %v13284_v15 = vpop.f32.mrb[63].mxu1  ;;  %v12550_v0 = vcombine.low %v8111_v60, %v8111_v60  ;;  %v12551_v9 = vcombine.high %v8111_v60, %v8111_v60  ;;  %8323 = vst.msk [vmem:[#allocation2 + $0x20] sm:$0xf] %vm227_vm0, %v12552_v38  ;;  %v8110_v48 = vsel %vm15764_vm10, 0, %v7972_v4  ;;  %v13633_v39 = vpop.f32.mrb[58].mxu0 }
 0x473   : >> { %v7952_v43 = vpack.c.bf16 %v7923_v5, %v7922_v46  ;;  %v12547_v7 = vcombine.low %v8110_v48, %v8110_v48  ;;  %v12548_v45 = vcombine.high %v8110_v48, %v8110_v48  ;;  %8320 = vst.msk [vmem:[#allocation2 + $0x14] sm:$0xf] %vm227_vm0, %v12549_v56  ;;  %v7754_v14 = vpop.f32.mrb[59].mxu0  ;;  %v7896_v53 = vadd.f32 %v16877_v54, %v7856_v23 }
 0x474   : >> { %v7988_v25 = vshrl.u32 %v7953_v55, 16  ;;  %v7991_v63 = vshll.u32 %v7953_v55, 16  ;;  %8321 = vst.msk [vmem:[#allocation2 + $0x18] sm:$0xf] %vm227_vm0, %v12550_v0  ;;  %8322 = vst.msk [vmem:[#allocation2 + $0x1c] sm:$0xf] %vm227_vm0, %v12551_v9  ;;  %v7854_v52 = vadd.f32 %v7751_v29, %v16847_v1  ;;  %v7857_v59 = vadd.f32 %v13633_v39, %v16853_v2 }
 0x475   : >> { %v7981_v6 = vshrl.u32 %v7952_v43, 16  ;;  %v7984_v47 = vshll.u32 %v7952_v43, 16  ;;  %8318 = vst.msk [vmem:[#allocation2 + $0xc] sm:$0xf] %vm227_vm0, %v12547_v7  ;;  %8319 = vst.msk [vmem:[#allocation2 + $0x10] sm:$0xf] %vm227_vm0, %v12548_v45  ;;  %v7855_v44 = vadd.f32 %v7754_v14, %v16849_v32  ;;  %v16923_v17 = vadd.f32 %v13281_v36, %v13280_v20 }
 0x476   : >> { %v7990_v19 = vrot.slane %v7988_v25, 7  ;;  %v7928_v21 = vmax.f32 %v7896_v53, 0.0  ;;  %v7894_v37 = vadd.f32 %v16877_v54, %v7854_v52  ;;  %v16926_v46 = vadd.f32 %v13284_v15, %v13283_v33 }
 0x477   : >> { %v7983_v3 = vrot.slane %v7981_v6, 7  ;;  %v13286_v57 = vpop.f32.mrb[64].mxu1  ;;  %v7897_v4 = vadd.f32 %v16877_v54, %v7857_v59  ;;  %v7895_v35 = vadd.f32 %v16877_v54, %v7855_v44 }
 0x478   : >> { %v7993_v38 = vor.u32 %v7991_v63, %v7990_v19  ;;  %v8129_v1 = vsel %vm15764_vm10, %v7990_v19, 0  ;;  %v13287_v2 = vpop.f32.mrb[65].mxu1  ;;  %v7926_v36 = vmax.f32 %v7894_v37, 0.0  ;;  %v13636_v8 = vpop.f32.mrb[60].mxu0 }
 0x479   : >> { %v12558_v5 = vcombine.low %v8129_v1, %v8129_v1  ;;  %v7986_v32 = vor.u32 %v7984_v47, %v7983_v3  ;;  %v8128_v20 = vsel %vm15764_vm10, %v7983_v3, 0  ;;  %v13289_v60 = vpop.f32.mrb[66].mxu1  ;;  %v7929_v55 = vmax.f32 %v7897_v4, 0.0  ;;  %v7767_v29 = vpop.f32.mrb[61].mxu0 }
 0x47a   : >> { %v8113_v33 = vsel %vm15764_vm10, 0, %v7993_v38  ;;  %v12555_v56 = vcombine.low %v8128_v20, %v8128_v20  ;;  %v7927_v23 = vmax.f32 %v7895_v35, 0.0  ;;  %v13290_v15 = vpop.f32.mrb[67].mxu1  ;;  %v7860_v43 = vadd.f32 %v13636_v8, %v16859_v12  ;;  %v13637_v39 = vpop.f32.mrb[62].mxu0 }
 0x47b   : >> { %v12556_v0 = vcombine.low %v8113_v33, %v8113_v33  ;;  %v12557_v9 = vcombine.high %v8113_v33, %v8113_v33  ;;  %8329 = vst.msk [vmem:[#allocation2 + $0x38] sm:$0xf] %vm227_vm0, %v12558_v5  ;;  %v8112_v48 = vsel %vm15764_vm10, 0, %v7986_v32  ;;  %v7955_v25 = vpack.c.bf16 %v7929_v55, %v7928_v21  ;;  %v7770_v14 = vpop.f32.mrb[63].mxu0 }
 0x47c   : >> { %v12553_v7 = vcombine.low %v8112_v48, %v8112_v48  ;;  %v12554_v45 = vcombine.high %v8112_v48, %v8112_v48  ;;  %8326 = vst.msk [vmem:[#allocation2 + $0x2c] sm:$0xf] %vm227_vm0, %v12555_v56  ;;  %v7954_v63 = vpack.c.bf16 %v7927_v23, %v7926_v36  ;;  %v7900_v6 = vadd.f32 %v16877_v54, %v7860_v43 }
 0x47d   : >> { %8327 = vst.msk [vmem:[#allocation2 + $0x30] sm:$0xf] %vm227_vm0, %v12556_v0  ;;  %8328 = vst.msk [vmem:[#allocation2 + $0x34] sm:$0xf] %vm227_vm0, %v12557_v9  ;;  %v7858_v47 = vadd.f32 %v7767_v29, %v16855_v28  ;;  %v7861_v53 = vadd.f32 %v13637_v39, %v16863_v11  ;;  %v7859_v12 = vadd.f32 %v7770_v14, %v16857_v58  ;;  %v8002_v52 = vshrl.u32 %v7955_v25, 16 }
 0x47e   : >> { %8324 = vst.msk [vmem:[#allocation2 + $0x24] sm:$0xf] %vm227_vm0, %v12553_v7  ;;  %8325 = vst.msk [vmem:[#allocation2 + $0x28] sm:$0xf] %vm227_vm0, %v12554_v45  ;;  %v8005_v19 = vshll.u32 %v7955_v25, 16  ;;  %v7995_v59 = vshrl.u32 %v7954_v63, 16  ;;  %v16952_v4 = vadd.f32 %v13287_v2, %v13286_v57  ;;  %v16954_v58 = vadd.f32 %v13290_v15, %v13289_v60 }
 0x47f   : >> { %v7998_v44 = vshll.u32 %v7954_v63, 16  ;;  %v7932_v3 = vmax.f32 %v7900_v6, 0.0  ;;  %v7898_v21 = vadd.f32 %v16877_v54, %v7858_v47  ;;  %v7901_v37 = vadd.f32 %v16877_v54, %v7861_v53  ;;  %v13292_v28 = vpop.f32.mrb[68].mxu1 }
 0x480   : >> { %v7899_v38 = vadd.f32 %v16877_v54, %v7859_v12  ;;  %v8004_v1 = vrot.slane %v8002_v52, 7  ;;  %v7997_v11 = vrot.slane %v7995_v59, 7  ;;  %v13293_v35 = vpop.f32.mrb[69].mxu1  ;;  %v13640_v36 = vpop.f32.mrb[64].mxu0 }
 0x481   : >> { %v7930_v5 = vmax.f32 %v7898_v21, 0.0  ;;  %v7933_v32 = vmax.f32 %v7901_v37, 0.0  ;;  %v16956_v8 = vadd.f32 %v13293_v35, %v13292_v28  ;;  %v13295_v33 = vpop.f32.mrb[70].mxu1  ;;  %v7783_v57 = vpop.f32.mrb[65].mxu0  ;;  %v7864_v7 = vadd.f32 %v13640_v36, %v16881_v18 }
 0x482   : >> { %v7931_v20 = vmax.f32 %v7899_v38, 0.0  ;;  %v8007_v56 = vor.u32 %v8005_v19, %v8004_v1  ;;  %v8131_v55 = vsel %vm15764_vm10, %v8004_v1, 0  ;;  %v8000_v23 = vor.u32 %v7998_v44, %v7997_v11  ;;  %v13296_v2 = vpop.f32.mrb[71].mxu1  ;;  %v13641_v48 = vpop.f32.mrb[66].mxu0 }
 0x483   : >> { %v8130_v29 = vsel %vm15764_vm10, %v7997_v11, 0  ;;  %v12564_v60 = vcombine.low %v8131_v55, %v8131_v55  ;;  %v7957_v0 = vpack.c.bf16 %v7933_v32, %v7932_v3  ;;  %v7862_v45 = vadd.f32 %v7783_v57, %v16867_v40  ;;  %v7786_v25 = vpop.f32.mrb[67].mxu0 }
 0x484   : >> { %v12561_v15 = vcombine.low %v8130_v29, %v8130_v29  ;;  %v7956_v9 = vpack.c.bf16 %v7931_v20, %v7930_v5  ;;  %v8115_v43 = vsel %vm15764_vm10, 0, %v8007_v56  ;;  %v8114_v39 = vsel %vm15764_vm10, 0, %v8000_v23 }
 0x485   : >> { %v12562_v63 = vcombine.low %v8115_v43, %v8115_v43  ;;  %v12563_v14 = vcombine.high %v8115_v43, %v8115_v43  ;;  %8335 = vst.msk [vmem:[#allocation2 + $0x50] sm:$0xf] %vm227_vm0, %v12564_v60  ;;  %v12559_v6 = vcombine.low %v8114_v39, %v8114_v39  ;;  %v12560_v47 = vcombine.high %v8114_v39, %v8114_v39 }
 0x486   : >> { %8332 = vst.msk [vmem:[#allocation2 + $0x44] sm:$0xf] %vm227_vm0, %v12561_v15  ;;  %v8016_v53 = vshrl.u32 %v7957_v0, 16  ;;  %v8019_v12 = vshll.u32 %v7957_v0, 16  ;;  %v8009_v52 = vshrl.u32 %v7956_v9, 16  ;;  %v8012_v19 = vshll.u32 %v7956_v9, 16 }
 0x487   : >> { %8333 = vst.msk [vmem:[#allocation2 + $0x48] sm:$0xf] %vm227_vm0, %v12562_v63  ;;  %8334 = vst.msk [vmem:[#allocation2 + $0x4c] sm:$0xf] %vm227_vm0, %v12563_v14  ;;  %v7904_v40 = vadd.f32 %v16877_v54, %v7864_v7  ;;  %v7902_v18 = vadd.f32 %v16877_v54, %v7862_v45  ;;  %v7865_v59 = vadd.f32 %v13641_v48, %v16887_v49 }
 0x488   : >> { %8330 = vst.msk [vmem:[#allocation2 + $0x3c] sm:$0xf] %vm227_vm0, %v12559_v6  ;;  %8331 = vst.msk [vmem:[#allocation2 + $0x40] sm:$0xf] %vm227_vm0, %v12560_v47  ;;  %v7863_v44 = vadd.f32 %v7786_v25, %v16871_v13  ;;  %v8018_v3 = vrot.slane %v8016_v53, 7  ;;  %v8011_v21 = vrot.slane %v8009_v52, 7  ;;  %v7359_v37 = vadd.f32 %v16923_v17, %v16865_v24 }
 0x489   : >> { %v13297_v38 = vadd.f32 %v13296_v2, %v13295_v33  ;;  %v7936_v28 = vmax.f32 %v7904_v40, 0.0  ;;  %v7934_v1 = vmax.f32 %v7902_v18, 0.0  ;;  %v7905_v11 = vadd.f32 %v16877_v54, %v7865_v59  ;;  %v13644_v5 = vpop.f32.mrb[68].mxu0 }
 0x48a   : >> { %v7903_v35 = vadd.f32 %v16877_v54, %v7863_v44  ;;  %v8021_v32 = vor.u32 %v8019_v12, %v8018_v3  ;;  %v8133_v20 = vsel %vm15764_vm10, %v8018_v3, 0  ;;  %v8014_v49 = vor.u32 %v8012_v19, %v8011_v21  ;;  %v7799_v36 = vpop.f32.mrb[69].mxu0  ;;  %v13298_v56 = vpop.f32.mrb[72].mxu1 }
 0x48b   : >> { %v8132_v13 = vsel %vm15764_vm10, %v8011_v21, 0  ;;  %v12570_v55 = vcombine.low %v8133_v20, %v8133_v20  ;;  %v7937_v17 = vmax.f32 %v7905_v11, 0.0  ;;  %v13645_v23 = vpop.f32.mrb[70].mxu0  ;;  %v13299_v29 = vpop.f32.mrb[73].mxu1  ;;  %v7868_v60 = vadd.f32 %v13644_v5, %v7359_v37 }
 0x48c   : >> { %v12567_v24 = vcombine.low %v8132_v13, %v8132_v13  ;;  %v7935_v33 = vmax.f32 %v7903_v35, 0.0  ;;  %v8117_v57 = vsel %vm15764_vm10, 0, %v8021_v32  ;;  %v8116_v2 = vsel %vm15764_vm10, 0, %v8014_v49  ;;  %v7802_v0 = vpop.f32.mrb[71].mxu0  ;;  %v13301_v9 = vpop.f32.mrb[74].mxu1 }
 0x48d   : >> { %v7866_v15 = vadd.f32 %v7799_v36, %v16893_v10  ;;  %v12568_v48 = vcombine.low %v8117_v57, %v8117_v57  ;;  %v12569_v43 = vcombine.high %v8117_v57, %v8117_v57  ;;  %8341 = vst.msk [vmem:[#allocation2 + $0x68] sm:$0xf] %vm227_vm0, %v12570_v55  ;;  %v12565_v39 = vcombine.low %v8116_v2, %v8116_v2  ;;  %v13302_v45 = vpop.f32.mrb[75].mxu1 }
 0x48e   : >> { %v12566_v7 = vcombine.high %v8116_v2, %v8116_v2  ;;  %8338 = vst.msk [vmem:[#allocation2 + $0x5c] sm:$0xf] %vm227_vm0, %v12567_v24  ;;  %v7959_v25 = vpack.c.bf16 %v7937_v17, %v7936_v28  ;;  %v7958_v63 = vpack.c.bf16 %v7935_v33, %v7934_v1  ;;  %v7908_v14 = vadd.f32 %v16877_v54, %v7868_v60 }
 0x48f   : >> { %v7906_v6 = vadd.f32 %v16877_v54, %v7866_v15  ;;  %8339 = vst.msk [vmem:[#allocation2 + $0x60] sm:$0xf] %vm227_vm0, %v12568_v48  ;;  %8340 = vst.msk [vmem:[#allocation2 + $0x64] sm:$0xf] %vm227_vm0, %v12569_v43  ;;  %v7362_v10 = vadd.f32 %v16926_v46, %v16869_v31  ;;  %v7867_v47 = vadd.f32 %v7802_v0, %v16901_v27 }
 0x490   : >> { %8336 = vst.msk [vmem:[#allocation2 + $0x54] sm:$0xf] %vm227_vm0, %v12565_v39  ;;  %8337 = vst.msk [vmem:[#allocation2 + $0x58] sm:$0xf] %vm227_vm0, %v12566_v7  ;;  %v13300_v53 = vadd.f32 %v13299_v29, %v13298_v56  ;;  %v7375_v12 = vadd.f32 %v16956_v8, %v16819_v16  ;;  %v8030_v52 = vshrl.u32 %v7959_v25, 16  ;;  %v8033_v19 = vshll.u32 %v7959_v25, 16 }
 0x491   : >> { %v8023_v40 = vshrl.u32 %v7958_v63, 16  ;;  %v8026_v18 = vshll.u32 %v7958_v63, 16  ;;  %v7940_v59 = vmax.f32 %v7908_v14, 0.0  ;;  %v7938_v44 = vmax.f32 %v7906_v6, 0.0  ;;  %v13648_v37 = vpop.f32.mrb[72].mxu0 }
 0x492   : >> { %v7869_v3 = vadd.f32 %v13645_v23, %v7362_v10  ;;  %v7907_v21 = vadd.f32 %v16877_v54, %v7867_v47  ;;  %v8032_v28 = vrot.slane %v8030_v52, 7  ;;  %v7872_v11 = vadd.f32 %v13648_v37, %v7375_v12  ;;  %v7815_v27 = vpop.f32.mrb[73].mxu0 }
 0x493   : >> { %v8025_v1 = vrot.slane %v8023_v40, 7  ;;  %v7367_v31 = vadd.f32 %v16952_v4, %v16815_v30  ;;  %v17008_v8 = vadd.f32 %v13302_v45, %v13301_v9  ;;  %v7378_v35 = vadd.f32 %v13297_v38, %v16821_v50  ;;  %v13649_v5 = vpop.f32.mrb[74].mxu0 }
 0x494   : >> { %v7909_v46 = vadd.f32 %v16877_v54, %v7869_v3  ;;  %v7939_v16 = vmax.f32 %v7907_v21, 0.0  ;;  %v8035_v32 = vor.u32 %v8033_v19, %v8032_v28  ;;  %v8135_v20 = vsel %vm15764_vm10, %v8032_v28, 0  ;;  %v7818_v36 = vpop.f32.mrb[75].mxu0 }
 0x495   : >> { %v8028_v49 = vor.u32 %v8026_v18, %v8025_v1  ;;  %v8134_v13 = vsel %vm15764_vm10, %v8025_v1, 0  ;;  %v12576_v56 = vcombine.low %v8135_v20, %v8135_v20  ;;  %v13304_v24 = vpop.f32.mrb[76].mxu1  ;;  %v7912_v38 = vadd.f32 %v16877_v54, %v7872_v11 }
 0x496   : >> { %v12573_v30 = vcombine.low %v8134_v13, %v8134_v13  ;;  %v7941_v4 = vmax.f32 %v7909_v46, 0.0  ;;  %v7960_v55 = vpack.c.bf16 %v7939_v16, %v7938_v44  ;;  %v8119_v17 = vsel %vm15764_vm10, 0, %v8035_v32  ;;  %v13305_v23 = vpop.f32.mrb[77].mxu1 }
 0x497   : >> { %v8118_v50 = vsel %vm15764_vm10, 0, %v8028_v49  ;;  %v7870_v33 = vadd.f32 %v7815_v27, %v7367_v31  ;;  %v12574_v29 = vcombine.low %v8119_v17, %v8119_v17  ;;  %v12575_v57 = vcombine.high %v8119_v17, %v8119_v17  ;;  %8347 = vst.msk [vmem:[#allocation2 + $0x80] sm:$0xf] %vm227_vm0, %v12576_v56  ;;  %v13307_v15 = vpop.f32.mrb[78].mxu1 }
 0x498   : >> { %v12571_v2 = vcombine.low %v8118_v50, %v8118_v50  ;;  %v12572_v60 = vcombine.high %v8118_v50, %v8118_v50  ;;  %8344 = vst.msk [vmem:[#allocation2 + $0x74] sm:$0xf] %vm227_vm0, %v12573_v30  ;;  %v7961_v0 = vpack.c.bf16 %v7941_v4, %v7940_v59  ;;  %v8037_v9 = vshrl.u32 %v7960_v55, 16  ;;  %v13308_v43 = vpop.f32.mrb[79].mxu1  ;;  %v13652_v63 = vpop.f32.mrb[76].mxu0 }
 0x499   : >> { %v8040_v48 = vshll.u32 %v7960_v55, 16  ;;  %8345 = vst.msk [vmem:[#allocation2 + $0x78] sm:$0xf] %vm227_vm0, %v12574_v29  ;;  %8346 = vst.msk [vmem:[#allocation2 + $0x7c] sm:$0xf] %vm227_vm0, %v12575_v57  ;;  %v7944_v39 = vmax.f32 %v7912_v38, 0.0  ;;  %v7873_v7 = vadd.f32 %v13649_v5, %v7378_v35  ;;  %v7370_v45 = vadd.f32 %v16954_v58, %v16817_v26 }
 0x49a   : >> { %8342 = vst.msk [vmem:[#allocation2 + $0x6c] sm:$0xf] %vm227_vm0, %v12571_v2  ;;  %8343 = vst.msk [vmem:[#allocation2 + $0x70] sm:$0xf] %vm227_vm0, %v12572_v60  ;;  %v13306_v25 = vadd.f32 %v13305_v23, %v13304_v24  ;;  %v8044_v14 = vshrl.u32 %v7961_v0, 16  ;;  %v8039_v6 = vrot.slane %v8037_v9, 7  ;;  %v7910_v10 = vadd.f32 %v16877_v54, %v7870_v33 }
 0x49b   : >> { %v7383_v47 = vadd.f32 %v13300_v53, %v16823_v22  ;;  %v7831_v12 = vpop.f32.mrb[77].mxu0  ;;  %v8047_v52 = vshll.u32 %v7961_v0, 16  ;;  %v7913_v19 = vadd.f32 %v16877_v54, %v7873_v7  ;;  %v7871_v40 = vadd.f32 %v7818_v36, %v7370_v45 }
 0x49c   : >> { %v7391_v18 = vadd.f32 %v13306_v25, %v16827_v42  ;;  %v13653_v59 = vpop.f32.mrb[78].mxu0  ;;  %v8046_v44 = vrot.slane %v8044_v14, 7  ;;  %v8042_v3 = vor.u32 %v8040_v48, %v8039_v6  ;;  %v8136_v26 = vsel %vm15764_vm10, %v8039_v6, 0 }
 0x49d   : >> { %v7874_v58 = vadd.f32 %v7831_v12, %v7383_v47  ;;  %v7834_v21 = vpop.f32.mrb[79].mxu0  ;;  %v12579_v37 = vcombine.low %v8136_v26, %v8136_v26  ;;  %v7945_v28 = vmax.f32 %v7913_v19, 0.0  ;;  %v7911_v1 = vadd.f32 %v16877_v54, %v7871_v40 }
 0x49e   : >> { %v7876_v22 = vadd.f32 %v13652_v63, %v7391_v18  ;;  %v8049_v53 = vor.u32 %v8047_v52, %v8046_v44  ;;  %v8137_v11 = vsel %vm15764_vm10, %v8046_v44, 0  ;;  %v8120_v42 = vsel %vm15764_vm10, 0, %v8042_v3 }
 0x49f   : >> { %v12582_v31 = vcombine.low %v8137_v11, %v8137_v11  ;;  %v12577_v27 = vcombine.low %v8120_v42, %v8120_v42  ;;  %v12578_v46 = vcombine.high %v8120_v42, %v8120_v42  ;;  %8350 = vst.msk [vmem:[#allocation2 + $0x8c] sm:$0xf] %vm227_vm0, %v12579_v37  ;;  %v7963_v16 = vpack.c.bf16 %v7945_v28, %v7944_v39 }
 0x4a0   : >> { %v8121_v35 = vsel %vm15764_vm10, 0, %v8049_v53  ;;  %v7942_v5 = vmax.f32 %v7910_v10, 0.0  ;;  %v7943_v32 = vmax.f32 %v7911_v1, 0.0  ;;  %v13309_v56 = vadd.f32 %v13308_v43, %v13307_v15 }
 0x4a1   : >> { %v12580_v20 = vcombine.low %v8121_v35, %v8121_v35  ;;  %v12581_v49 = vcombine.high %v8121_v35, %v8121_v35  ;;  %8353 = vst.msk [vmem:[#allocation2 + $0x98] sm:$0xf] %vm227_vm0, %v12582_v31  ;;  %8348 = vst.msk [vmem:[#allocation2 + $0x84] sm:$0xf] %vm227_vm0, %v12577_v27  ;;  %v8058_v13 = vshrl.u32 %v7963_v16, 16  ;;  %v7386_v30 = vadd.f32 %v17008_v8, %v16825_v41 }
 0x4a2   : >> { %8349 = vst.msk [vmem:[#allocation2 + $0x88] sm:$0xf] %vm227_vm0, %v12578_v46  ;;  %v7962_v36 = vpack.c.bf16 %v7943_v32, %v7942_v5  ;;  %v8061_v55 = vshll.u32 %v7963_v16, 16  ;;  %v7914_v17 = vadd.f32 %v16877_v54, %v7874_v58  ;;  %v7394_v50 = vadd.f32 %v13309_v56, %v16829_v34 }
 0x4a3   : >> { %8351 = vst.msk [vmem:[#allocation2 + $0x90] sm:$0xf] %vm227_vm0, %v12580_v20  ;;  %8352 = vst.msk [vmem:[#allocation2 + $0x94] sm:$0xf] %vm227_vm0, %v12581_v49  ;;  %v8060_v4 = vrot.slane %v8058_v13, 7  ;;  %v7875_v38 = vadd.f32 %v7834_v21, %v7386_v30  ;;  %v7916_v57 = vadd.f32 %v16877_v54, %v7876_v22 }
 0x4a4   : >> { %v8051_v24 = vshrl.u32 %v7962_v36, 16  ;;  %v8054_v29 = vshll.u32 %v7962_v36, 16  ;;  %v7877_v2 = vadd.f32 %v13653_v59, %v7394_v50  ;;  %v7946_v39 = vmax.f32 %v7914_v17, 0.0  ;;  %v10030_v20 = vld [vmem:[#allocation2 + $0x18] sm:$0xf] (%p4332_p5) }
 0x4a5   : >> { %v8063_v33 = vor.u32 %v8061_v55, %v8060_v4  ;;  %v8139_v23 = vsel %vm15764_vm10, %v8060_v4, 0  ;;  %v7915_v60 = vadd.f32 %v16877_v54, %v7875_v38  ;;  %v7948_v63 = vmax.f32 %v7916_v57, 0.0  ;;  %v10031_v13 = vld [vmem:[#allocation2 + $0x1c] sm:$0xf] (%p4332_p5)  ;;  %v10062_v36 = vld [vmem:[#allocation2 + $0x20] sm:$0x1] (%p4332_p5) }
 0x4a6   : >> { %v12588_v41 = vcombine.low %v8139_v23, %v8139_v23  ;;  %v8053_v8 = vrot.slane %v8051_v24, 7  ;;  %v7917_v7 = vadd.f32 %v16877_v54, %v7877_v2  ;;  %v10079_v17 = vshrl.u32 (%p4332_p5), %v10030_v20, 16 }
 0x4a7   : >> { %v8123_v15 = vsel %vm15764_vm10, 0, %v8063_v33  ;;  %v7947_v45 = vmax.f32 %v7915_v60, 0.0  ;;  %v10082_v50 = vshll.u32 (%p4332_p5), %v10030_v20, 16  ;;  %v10088_v38 = vshll.u32 (%p4332_p5), %v10031_v13, 16 }
 0x4a8   : >> { %v12586_v0 = vcombine.low %v8123_v15, %v8123_v15  ;;  %v12587_v9 = vcombine.high %v8123_v15, %v8123_v15  ;;  %8359 = vst.msk [vmem:[#allocation2 + $0xb0] sm:$0xf] %vm227_vm0, %v12588_v41  ;;  %v8056_v34 = vor.u32 %v8054_v29, %v8053_v8  ;;  %v8138_v48 = vsel %vm15764_vm10, %v8053_v8, 0 }
 0x4a9   : >> { %v12585_v43 = vcombine.low %v8138_v48, %v8138_v48  ;;  %v7949_v10 = vmax.f32 %v7917_v7, 0.0  ;;  %v7964_v47 = vpack.c.bf16 %v7947_v45, %v7946_v39  ;;  %v10092_v29 = vshrl.u32 (%p4332_p5), %v10031_v13, 16  ;;  %v9870_v7 = vld [vmem:[#allocation2 + $0xc] sm:$0xe] (%p4332_p5)  ;;  %v10032_v13 = vld [vmem:[#allocation2 + $0x24] sm:$0xf] (%p4332_p5) }
 0x4aa   : >> { %8357 = vst.msk [vmem:[#allocation2 + $0xa8] sm:$0xf] %vm227_vm0, %v12586_v0  ;;  %8358 = vst.msk [vmem:[#allocation2 + $0xac] sm:$0xf] %vm227_vm0, %v12587_v9  ;;  %v8122_v25 = vsel %vm15764_vm10, 0, %v8056_v34  ;;  %v10098_v57 = vshll.u32 (%p4332_p5), %v10062_v36, 16 }
 0x4ab   : >> { %v12583_v14 = vcombine.low %v8122_v25, %v8122_v25  ;;  %v12584_v6 = vcombine.high %v8122_v25, %v8122_v25  ;;  %8356 = vst.msk [vmem:[#allocation2 + $0xa4] sm:$0xf] %vm227_vm0, %v12585_v43  ;;  %v7965_v54 = vpack.c.bf16 %v7949_v10, %v7948_v63  ;;  %v8065_v12 = vshrl.u32 %v7964_v47, 16  ;;  %v17085_v0 = vld [vmem:[#allocation2 + $0x10] sm:$0xf] (%p4332_p5)  ;;  %v14182_v36 = vld [vmem:[%s18296_s4 + $0x80] sm:$0xff] (%p4332_p5)  }
 0x4ac   : >> { %v8068_v40 = vshll.u32 %v7964_v47, 16  ;;  %v10081_v2 = vrot.slane (%p4332_p5), %v10079_v17, 4  ;;  %v10084_v60 = vrot.slane (%p4332_p5), %v10082_v50, 5  ;;  %v10090_v15 = vrot.slane (%p4332_p5), %v10088_v38, 5  ;;  %v9470_v9 = vld [vmem:[#allocation2 + $0x14] sm:$0x1] (%p4332_p5) }
 0x4ad   : >> { %8354 = vst.msk [vmem:[#allocation2 + $0x9c] sm:$0xf] %vm227_vm0, %v12583_v14  ;;  %8355 = vst.msk [vmem:[#allocation2 + $0xa0] sm:$0xf] %vm227_vm0, %v12584_v6  ;;  %v8072_v52 = vshrl.u32 %v7965_v54, 16  ;;  %v8067_v19 = vrot.slane %v8065_v12, 7 }
 0x4ae   : >> { %v8075_v59 = vshll.u32 %v7965_v54, 16  ;;  %v10094_v43 = vrot.slane (%p4332_p5), %v10092_v29, 4  ;;  %v10100_v39 = vrot.slane (%p4332_p5), %v10098_v57, 5  ;;  %v10085_v45 = vor.u32 (%p4332_p5), %v10084_v60, %v10081_v2  ;;  %v10063_v29 = vld [vmem:[#allocation2 + $0x2c] sm:$0x1] (%p4332_p5) }
 0x4af   : >> { %v8074_v18 = vrot.slane %v8072_v52, 7  ;;  %v8070_v44 = vor.u32 %v8068_v40, %v8067_v19  ;;  %v8140_v3 = vsel %vm15764_vm10, %v8067_v19, 0  ;;  %v10074_v46 = vld [vmem:[#allocation2 + $0xb0] sm:$0x1] (%p4332_p5)  ;;  %v12675_v12 = vrot.slane (%p4332_p5), %v9870_v7, 9  ;;  %v14185_v7 = vld [vmem:[%s18296_s4 + $0x88] sm:$0xff] (%p4332_p5)  }
 0x4b0   : >> { %v12591_v26 = vcombine.low %v8140_v3, %v8140_v3  ;;  %4334 = sbr.rel (!%p4332_p5) target bundleno = 621 (0x26d), region = 82  ;;  %v10386_v49 = vshll.u32 (%p4332_p5), %v10074_v46, 16  ;;  %v10095_v54 = vor.u32 (%p4332_p5), %v10094_v43, %v10090_v15  ;;  %v10086_v40 = vrot.slane (%p4332_p5), %v10085_v45, 4 }
 0x4b1   : >> { %v8077_v58 = vor.u32 %v8075_v59, %v8074_v18  ;;  %v8141_v21 = vsel %vm15764_vm10, %v8074_v18, 0  ;;  %v8124_v37 = vsel %vm15764_vm10, 0, %v8070_v44  ;;  %v10054_v31 = vld [vmem:[#allocation2 + $0xa8] sm:$0xf] (%p4332_p5)  ;;  %v10055_v27 = vld [vmem:[#allocation2 + $0xac] sm:$0xf] (%p4332_p5) }
 0x4b2   : >> { %v12594_v28 = vcombine.low %v8141_v21, %v8141_v21  ;;  %v12589_v1 = vcombine.low %v8124_v37, %v8124_v37  ;;  %v12590_v22 = vcombine.high %v8124_v37, %v8124_v37  ;;  %8362 = vst.msk [vmem:[#allocation2 + $0xbc] sm:$0xf] %vm227_vm0, %v12591_v26  ;;  %v10367_v16 = vshrl.u32 (%p4332_p5), %v10054_v31, 16  ;;  %v9482_v41 = vld [vmem:[#allocation2 + $0xa4] sm:$0x1] (%p4332_p5) }
 0x4b3   : >> { %v8125_v53 = vsel %vm15764_vm10, 0, %v8077_v58  ;;  %v10370_v35 = vshll.u32 (%p4332_p5), %v10054_v31, 16  ;;  %v10376_v5 = vshll.u32 (%p4332_p5), %v10055_v27, 16  ;;  %v10380_v32 = vshrl.u32 (%p4332_p5), %v10055_v27, 16  ;;  %v9001_v46 = vld [vmem:[#allocation2 + $0xac] sm:$0xf] (%p4332_p5) }
 0x4b4   : >> { %v12592_v11 = vcombine.low %v8125_v53, %v8125_v53  ;;  %v12593_v42 = vcombine.high %v8125_v53, %v8125_v53  ;;  %8365 = vst.msk [vmem:[#allocation2 + $0xc8] sm:$0xf] %vm227_vm0, %v12594_v28  ;;  %8360 = vst.msk [vmem:[#allocation2 + $0xb4] sm:$0xf] %vm227_vm0, %v12589_v1  ;;  %v10369_v56 = vrot.slane (%p4332_p5), %v10367_v16, 4  ;;  %v10388_v24 = vrot.slane (%p4332_p5), %v10386_v49, 5 }
 0x4b5   : >> { %8361 = vst.msk [vmem:[#allocation2 + $0xb8] sm:$0xf] %vm227_vm0, %v12590_v22  ;;  %v10372_v30 = vrot.slane (%p4332_p5), %v10370_v35, 5  ;;  %v10378_v4 = vrot.slane (%p4332_p5), %v10376_v5, 5  ;;  %v10382_v55 = vrot.slane (%p4332_p5), %v10380_v32, 4  ;;  %v10007_v14 = vrot.slane (%p4332_p5), %v9482_v41, 5 }
 0x4b6   : >> { %8363 = vst.msk [vmem:[#allocation2 + $0xc0] sm:$0xf] %vm227_vm0, %v12592_v11  ;;  %8364 = vst.msk [vmem:[#allocation2 + $0xc4] sm:$0xf] %vm227_vm0, %v12593_v42  ;;  %v8999_v33 = vld [vmem:[#allocation2 + $0xa0] sm:$0xf] (%p4332_p5)  ;;  %v10091_v21 = vsel (%p4332_p5), %vm14513_vm5, %v10086_v40, %v10090_v15 }
 0x4b7   : > { %v10373_v62 = vor.u32 %v10372_v30, %v10369_v56  ;;  %v10383_v23 = vor.u32 %v10382_v55, %v10378_v4  ;;  %v9882_v8 = vld [vmem:[#allocation2 + $0x9c] sm:$0xe]  ;;  %v10004_v63 = vrot.slane %v8999_v33, 5  ;;  %v10096_v44 = vrot.slane %v10095_v54, 4  ;;  %v9883_v53 = vld [vmem:[#allocation2 + $0xa8] sm:$0xe] }
 0x4b8   : > { %v12687_v25 = vrot.slane %v9882_v8, 9  ;;  %v9920_v3 = vrot.slane %v17085_v0, 5  ;;  %v9923_v26 = vrot.slane %v9470_v9, 5  ;;  %v9483_v16 = vld [vmem:[#allocation2 + $0xb0] sm:$0x1]  ;;  %v14181_v35 = vld [vmem:[%s18296_s4 + $0xc0] sm:$0xff]  }
 0x4b9   : > { %v10374_v34 = vrot.slane %v10373_v62, 4  ;;  %v10384_v48 = vrot.slane %v10383_v23, 4  ;;  %v10006_v59 = vrot.slane %v10004_v63, 4  ;;  %v10075_v28 = vld [vmem:[#allocation2 + $0xbc] sm:$0x1]  ;;  %v10101_v11 = vsel %vm14513_vm5, %v10096_v44, %v10100_v39  ;;  %13726 = vmatprep.subr.bf16.mxu1 %v14181_v35  ;;  %13330 = vmatprep.subr.bf16.mxu0 %v14181_v35  ;;  %v14184_v9 = vld [vmem:[%s18296_s4 + $0xc8] sm:$0xff]  }
 0x4ba   : > { %v10005_v18 = vsel %vm14521_vm6, %v12687_v25, %v10004_v63  ;;  %v9921_v31 = vsel %vm14521_vm6, %v12675_v12, %v9920_v3  ;;  %v9922_v27 = vrot.slane %v9920_v3, 4  ;;  %v12739_v5 = vcombine.low %v10091_v21, %v10101_v11  ;;  %13734 = vmatpush3.bf16.msra.mxu1 %v14182_v36  ;;  %13331 = vmatpush3.bf16.msra.mxu0 %v14182_v36  ;;  %v9471_v40 = vld [vmem:[#allocation2 + $0x20] sm:$0x1]  ;;  %v14186_v11 = vld [vmem:[%s18296_s4 + $0xd0] sm:$0xff]  }
 0x4bb   : > { %v10056_v6 = vld [vmem:[#allocation2 + $0xb4] sm:$0xf]  ;;  %v10379_v10 = vsel %vm14513_vm5, %v10374_v34, %v10378_v4  ;;  %v10389_v47 = vsel %vm14513_vm5, %v10384_v48, %v10388_v24  ;;  %v10008_v37 = vsel %vm14521_vm6, %v10006_v59, %v10007_v14  ;;  %v10410_v4 = vshll.u32 %v10075_v28, 16  ;;  %v10033_v24 = vld [vmem:[#allocation2 + $0x28] sm:$0xf]  ;;  %13727 = vmatprep.subr.bf16.mxu1 %v14184_v9  ;;  %13332 = vmatprep.subr.bf16.mxu0 %v14184_v9 }
 0x4bc   : > { %v10057_v52 = vld [vmem:[#allocation2 + $0xb8] sm:$0xf]  ;;  %v12751_v19 = vcombine.low %v10379_v10, %v10389_v47  ;;  %v10391_v58 = vshrl.u32 %v10056_v6, 16  ;;  %v10394_v1 = vshll.u32 %v10056_v6, 16  ;;  %v12719_v42 = vcombine.low %v10005_v18, %v10008_v37  ;;  %10718 = vrot.lane.b32.xlu1 %v12739_v5, %s14408_s27 }
 0x4bd   : > { %v10400_v22 = vshll.u32 %v10057_v52, 16  ;;  %v9924_v56 = vsel %vm14521_vm6, %v9922_v27, %v9923_v26  ;;  %v10404_v30 = vshrl.u32 %v10057_v52, 16  ;;  %v12688_v55 = vrot.slane %v9883_v53, 9  ;;  %v9871_v6 = vld [vmem:[#allocation2 + $0x18] sm:$0xe] }
 0x4be   : > { %10742 = vrot.lane.b32.xlu0 %v12751_v19, %s14408_s27  ;;  %v10393_v32 = vrot.slane %v10391_v58, 4  ;;  %v10396_v20 = vrot.slane %v10394_v1, 5  ;;  %v12707_v17 = vcombine.low %v9921_v31, %v9924_v56  ;;  %v10011_v38 = vrot.slane %v9001_v46, 5  ;;  %v17126_v52 = vld [vmem:[#allocation2 + $0x1c] sm:$0xf]  ;;  %13735 = vmatpush3.bf16.msra.mxu1 %v14185_v7 }
 0x4bf   : > { %v10402_v49 = vrot.slane %v10400_v22, 5  ;;  %v10014_v33 = vrot.slane %v9483_v16, 5  ;;  %v10406_v62 = vrot.slane %v10404_v30, 4  ;;  %v10412_v23 = vrot.slane %v10410_v4, 5  ;;  %v10058_v18 = vld [vmem:[#allocation2 + $0xc0] sm:$0xf]  ;;  %13333 = vmatpush3.bf16.msra.mxu0 %v14185_v7  ;;  %13728 = vmatprep.subr.bf16.mxu1 %v14186_v11 }
 0x4c0   : > { %v10397_v50 = vor.u32 %v10396_v20, %v10393_v32  ;;  %v10103_v57 = vshrl.u32 %v10032_v13, 16  ;;  %v10106_v41 = vshll.u32 %v10032_v13, 16  ;;  %v10012_v2 = vsel %vm14521_vm6, %v12688_v55, %v10011_v38  ;;  %10558 = vrot.lane.b32.xlu1 %v12707_v17, %s14408_s27  ;;  %v10059_v37 = vld [vmem:[#allocation2 + $0xc4] sm:$0xf]  ;;  %v10076_v27 = vld [vmem:[#allocation2 + $0xc8] sm:$0x1]  ;;  %13334 = vmatprep.subr.bf16.mxu0 %v14186_v11 }
 0x4c1   : > { %v10013_v60 = vrot.slane %v10011_v38, 4  ;;  %v10112_v15 = vshll.u32 %v10033_v24, 16  ;;  %v10407_v34 = vor.u32 %v10406_v62, %v10402_v49  ;;  %v10116_v39 = vshrl.u32 %v10033_v24, 16  ;;  %v9884_v16 = vld [vmem:[#allocation2 + $0xb4] sm:$0xe] }
 0x4c2   : > { %10582 = vrot.lane.b32.xlu0 %v12719_v42, %s14408_s27  ;;  %v10398_v8 = vrot.slane %v10397_v50, 4  ;;  %v10105_v48 = vrot.slane %v10103_v57, 4  ;;  %v10108_v43 = vrot.slane %v10106_v41, 5  ;;  %v10122_v14 = vshll.u32 %v10063_v29, 16  ;;  %v9003_v20 = vld [vmem:[#allocation2 + $0xb8] sm:$0xf] }
 0x4c3   : > { %v10015_v25 = vsel %vm14521_vm6, %v10013_v60, %v10014_v33  ;;  %v10114_v63 = vrot.slane %v10112_v15, 5  ;;  %v10408_v10 = vrot.slane %v10407_v34, 4  ;;  %v10118_v12 = vrot.slane %v10116_v39, 4  ;;  %v10034_v4 = vld [vmem:[#allocation2 + $0x30] sm:$0xf]  ;;  %v14188_v41 = vld [vmem:[%s18296_s4 + $0xd8] sm:$0xff]  }
 0x4c4   : > { %v10403_v45 = vsel %vm14513_vm5, %v10398_v8, %v10402_v49  ;;  %v12720_v47 = vcombine.low %v10012_v2, %v10015_v25  ;;  %v10109_v54 = vor.u32 %v10108_v43, %v10105_v48  ;;  %v10124_v19 = vrot.slane %v10122_v14, 5  ;;  %v9484_v49 = vld [vmem:[#allocation2 + $0xbc] sm:$0x1]  ;;  %v10035_v55 = vld [vmem:[#allocation2 + $0x34] sm:$0xf] }
 0x4c5   : > { %v10413_v59 = vsel %vm14513_vm5, %v10408_v10, %v10412_v23  ;;  %v10119_v3 = vor.u32 %v10118_v12, %v10114_v63  ;;  %v12676_v26 = vrot.slane %v9871_v6, 9  ;;  %v9927_v21 = vrot.slane %v17126_v52, 5  ;;  %v14187_v33 = vld [vmem:[%s18296_s4 + $0x90] sm:$0xff]   ;;  %v10064_v2 = vld [vmem:[#allocation2 + $0x38] sm:$0x1] }
 0x4c6   : > { %v10110_v44 = vrot.slane %v10109_v54, 4  ;;  %v12752_v58 = vcombine.low %v10403_v45, %v10413_v59  ;;  %10584 = vrot.lane.b32.xlu1 %v12720_v47, %s14408_s27  ;;  %v9930_v22 = vrot.slane %v9471_v40, 5  ;;  %v10415_v53 = vshrl.u32 %v10058_v18, 16  ;;  %13736 = vmatpush3.bf16.msra.mxu1 %v14187_v33  ;;  %v17154_v7 = vld [vmem:[#allocation2 + $0x28] sm:$0xf] }
 0x4c7   : > { %v10120_v1 = vrot.slane %v10119_v3, 4  ;;  %v9928_v42 = vsel %vm14521_vm6, %v12676_v26, %v9927_v21  ;;  %v9929_v31 = vrot.slane %v9927_v21, 4  ;;  %v10418_v46 = vshll.u32 %v10058_v18, 16  ;;  %v9872_v45 = vld [vmem:[#allocation2 + $0x24] sm:$0xe]  ;;  %13335 = vmatpush3.bf16.msra.mxu0 %v14187_v33  ;;  %13729 = vmatprep.subr.bf16.mxu1 %v14188_v41  ;;  %v14193_v33 = vld [vmem:[%s18296_s4 + $0xe8] sm:$0xff]  }
 0x4c8   : > { %v10115_v28 = vsel %vm14513_vm5, %v10110_v44, %v10114_v63  ;;  %10744 = vrot.lane.b32.xlu0 %v12752_v58, %s14408_s27  ;;  %v10417_v5 = vrot.slane %v10415_v53, 4  ;;  %v10424_v32 = vshll.u32 %v10059_v37, 16  ;;  %v10428_v30 = vshrl.u32 %v10059_v37, 16  ;;  %v9472_v10 = vld [vmem:[#allocation2 + $0x2c] sm:$0x1]  ;;  %13336 = vmatprep.subr.bf16.mxu0 %v14188_v41 }
 0x4c9   : > { %v10125_v35 = vsel %vm14513_vm5, %v10120_v1, %v10124_v19  ;;  %v9931_v36 = vsel %vm14521_vm6, %v9929_v31, %v9930_v22  ;;  %v10420_v56 = vrot.slane %v10418_v46, 5  ;;  %v10434_v50 = vshll.u32 %v10076_v27, 16  ;;  %v10060_v40 = vld [vmem:[#allocation2 + $0xcc] sm:$0xf]  ;;  %v10061_v26 = vld [vmem:[#allocation2 + $0xd0] sm:$0xf] }
 0x4ca   : > { %v12740_v13 = vcombine.low %v10115_v28, %v10125_v35  ;;  %v12708_v24 = vcombine.low %v9928_v42, %v9931_v36  ;;  %v10426_v17 = vrot.slane %v10424_v32, 5  ;;  %v12689_v38 = vrot.slane %v9884_v16, 9  ;;  %v14190_v1 = vld [vmem:[%s18296_s4 + $0x98] sm:$0xff]   ;;  %v10077_v42 = vld [vmem:[#allocation2 + $0xd4] sm:$0x1] }
 0x4cb   : > { %v10421_v62 = vor.u32 %v10420_v56, %v10417_v5  ;;  %v10430_v23 = vrot.slane %v10428_v30, 4  ;;  %v10018_v29 = vrot.slane %v9003_v20, 5  ;;  %v10021_v57 = vrot.slane %v9484_v49, 5  ;;  %v9005_v27 = vld [vmem:[#allocation2 + $0xc4] sm:$0xf]  ;;  %13737 = vmatpush3.bf16.msra.mxu1 %v14190_v1  ;;  %13337 = vmatpush3.bf16.msra.mxu0 %v14190_v1 }
 0x4cc   : > { %10720 = vrot.lane.b32.xlu0 %v12740_v13, %s14408_s27  ;;  %10560 = vrot.lane.b32.xlu1 %v12708_v24, %s14408_s27  ;;  %v10436_v8 = vrot.slane %v10434_v50, 5  ;;  %v10127_v60 = vshrl.u32 %v10034_v4, 16  ;;  %v10130_v15 = vshll.u32 %v10034_v4, 16  ;;  %v10136_v9 = vshll.u32 %v10035_v55, 16  ;;  %v9885_v32 = vld [vmem:[#allocation2 + $0xc0] sm:$0xe] }
 0x4cd   : > { %v10422_v34 = vrot.slane %v10421_v62, 4  ;;  %v10431_v48 = vor.u32 %v10430_v23, %v10426_v17  ;;  %v10019_v43 = vsel %vm14521_vm6, %v12689_v38, %v10018_v29  ;;  %v10020_v39 = vrot.slane %v10018_v29, 4  ;;  %v14191_v20 = vld [vmem:[%s18296_s4 + $0xe0] sm:$0xff]   ;;  %v9485_v30 = vld [vmem:[#allocation2 + $0xc8] sm:$0x1] }
 0x4ce   : > { %v10129_v25 = vrot.slane %v10127_v60, 4  ;;  %v10132_v63 = vrot.slane %v10130_v15, 5  ;;  %v10138_v14 = vrot.slane %v10136_v9, 5  ;;  %v10140_v6 = vshrl.u32 %v10035_v55, 16  ;;  %v14192_v4 = vld [vmem:[%s18296_s4 + $0xa0] sm:$0xff]   ;;  %13730 = vmatprep.subr.bf16.mxu1 %v14191_v20  ;;  %13338 = vmatprep.subr.bf16.mxu0 %v14191_v20 }
 0x4cf   : > { %v10427_v47 = vsel %vm14513_vm5, %v10422_v34, %v10426_v17  ;;  %v10432_v54 = vrot.slane %v10431_v48, 4  ;;  %v10022_v12 = vsel %vm14521_vm6, %v10020_v39, %v10021_v57  ;;  %v10146_v19 = vshll.u32 %v10064_v2, 16  ;;  %v10036_v38 = vld [vmem:[#allocation2 + $0x3c] sm:$0xf]  ;;  %v10037_v41 = vld [vmem:[#allocation2 + $0x40] sm:$0xf]  ;;  %13738 = vmatpush3.bf16.msra.mxu1 %v14192_v4  ;;  %13339 = vmatpush3.bf16.msra.mxu0 %v14192_v4 }
 0x4d0   : > { %v12721_v18 = vcombine.low %v10019_v43, %v10022_v12  ;;  %v10133_v59 = vor.u32 %v10132_v63, %v10129_v25  ;;  %v10142_v44 = vrot.slane %v10140_v6, 4  ;;  %v12677_v3 = vrot.slane %v9872_v45, 9  ;;  %v10065_v48 = vld [vmem:[#allocation2 + $0x44] sm:$0x1]  ;;  %13731 = vmatprep.subr.bf16.mxu1 %v14193_v33  ;;  %v14195_v45 = vld [vmem:[%s18296_s4 + $0xa8] sm:$0xff]   ;;  %13340 = vmatprep.subr.bf16.mxu0 %v14193_v33 }
 0x4d1   : > { %v10437_v58 = vsel %vm14513_vm5, %v10432_v54, %v10436_v8  ;;  %v10148_v21 = vrot.slane %v10146_v19, 5  ;;  %v9934_v37 = vrot.slane %v17154_v7, 5  ;;  %v9937_v28 = vrot.slane %v9472_v10, 5  ;;  %v17192_v10 = vld [vmem:[#allocation2 + $0x34] sm:$0xf] }
 0x4d2   : > { %v12753_v22 = vcombine.low %v10427_v47, %v10437_v58  ;;  %10586 = vrot.lane.b32.xlu1 %v12721_v18, %s14408_s27  ;;  %v10134_v53 = vrot.slane %v10133_v59, 4  ;;  %v10143_v11 = vor.u32 %v10142_v44, %v10138_v14  ;;  %v10439_v31 = vshrl.u32 %v10060_v40, 16  ;;  %v14196_v47 = vld [vmem:[%s18296_s4 + $0xf0] sm:$0xff]   ;;  %v9473_v58 = vld [vmem:[#allocation2 + $0x38] sm:$0x1] }
 0x4d3   : > { %v9935_v46 = vsel %vm14521_vm6, %v12677_v3, %v9934_v37  ;;  %v9936_v16 = vrot.slane %v9934_v37, 4  ;;  %v10442_v35 = vshll.u32 %v10060_v40, 16  ;;  %v10448_v5 = vshll.u32 %v10061_v26, 16  ;;  %v9873_v18 = vld [vmem:[#allocation2 + $0x30] sm:$0xe]  ;;  %13739 = vmatpush3.bf16.msra.mxu1 %v14195_v45  ;;  %13341 = vmatpush3.bf16.msra.mxu0 %v14195_v45 }
 0x4d4   : > { %10746 = vrot.lane.b32.xlu0 %v12753_v22, %s14408_s27  ;;  %v10139_v49 = vsel %vm14513_vm5, %v10134_v53, %v10138_v14  ;;  %v10144_v13 = vrot.slane %v10143_v11, 4  ;;  %v10441_v36 = vrot.slane %v10439_v31, 4  ;;  %v10452_v56 = vshrl.u32 %v10061_v26, 16  ;;  %v17203_v22 = vld [vmem:[#allocation2 + $0xc] sm:$0xf]  ;;  %13732 = vmatprep.subr.bf16.mxu1 %v14196_v47  ;;  %v14197_v53 = vld [vmem:[%s18296_s4 + $0xb0] sm:$0xff]  }
 0x4d5   : > { %v9938_v55 = vsel %vm14521_vm6, %v9936_v16, %v9937_v28  ;;  %v10444_v24 = vrot.slane %v10442_v35, 5  ;;  %v10450_v17 = vrot.slane %v10448_v5, 5  ;;  %v10458_v50 = vshll.u32 %v10077_v42, 16  ;;  %13342 = vmatprep.subr.bf16.mxu0 %v14196_v47  ;;  %v8367_v20 = vld [vmem:[#allocation2 + $0x4] sm:$0xf] }
 0x4d6   : > { %v10149_v62 = vsel %vm14513_vm5, %v10144_v13, %v10148_v21  ;;  %v12709_v23 = vcombine.low %v9935_v46, %v9938_v55  ;;  %v10454_v29 = vrot.slane %v10452_v56, 4  ;;  %v12690_v57 = vrot.slane %v9885_v32, 9  ;;  %v14198_v46 = vld [vmem:[%s18296_s4 + $0xf8] sm:$0xff]   ;;  %v8398_v4 = vld [vmem:[#allocation2 + $0x8] sm:$0x1] }
 0x4d7   : > { %v12741_v8 = vcombine.low %v10139_v49, %v10149_v62  ;;  %v10445_v2 = vor.u32 %v10444_v24, %v10441_v36  ;;  %v10460_v60 = vrot.slane %v10458_v50, 5  ;;  %v10025_v15 = vrot.slane %v9005_v27, 5  ;;  %v8366_v27 = vld [vmem:[#allocation2] sm:$0xf]  ;;  %13740 = vmatpush3.bf16.msra.mxu1 %v14197_v53  ;;  %v14200_v36 = vld [vmem:[%s18296_s4 + $0xb8] sm:$0xff]   ;;  %13343 = vmatpush3.bf16.msra.mxu0 %v14197_v53 }
 0x4d8   : > { %10562 = vrot.lane.b32.xlu1 %v12709_v23, %s14408_s27  ;;  %v10455_v9 = vor.u32 %v10454_v29, %v10450_v17  ;;  %v10028_v34 = vrot.slane %v9485_v30, 5  ;;  %v10151_v43 = vshrl.u32 %v10036_v38, 16  ;;  %v10154_v39 = vshll.u32 %v10036_v38, 16  ;;  %13733 = vmatprep.subr.bf16.mxu1 %v14198_v46  ;;  %v10038_v33 = vld [vmem:[#allocation2 + $0x48] sm:$0xf]  ;;  %v14202_v23 = vld [vmem:[%s18296_s4 + $0x40] sm:$0xff]  }
 0x4d9   : > { %10722 = vrot.lane.b32.xlu0 %v12741_v8, %s14408_s27  ;;  %v10446_v25 = vrot.slane %v10445_v2, 4  ;;  %v10026_v63 = vsel %vm14521_vm6, %v12690_v57, %v10025_v15  ;;  %v10027_v14 = vrot.slane %v10025_v15, 4  ;;  %v10160_v6 = vshll.u32 %v10037_v41, 16  ;;  %v10039_v62 = vld [vmem:[#allocation2 + $0x4c] sm:$0xf]  ;;  %13344 = vmatprep.subr.bf16.mxu0 %v14198_v46 }
 0x4da   : > { %v10456_v54 = vrot.slane %v10455_v9, 4  ;;  %v10153_v12 = vrot.slane %v10151_v43, 4  ;;  %v10156_v19 = vrot.slane %v10154_v39, 5  ;;  %v10164_v40 = vshrl.u32 %v10037_v41, 16  ;;  %v10066_v2 = vld [vmem:[#allocation2 + $0x50] sm:$0x1] }
 0x4db   : > { %v10451_v59 = vsel %vm14513_vm5, %v10446_v25, %v10450_v17  ;;  %v10029_v44 = vsel %vm14521_vm6, %v10027_v14, %v10028_v34  ;;  %v10162_v3 = vrot.slane %v10160_v6, 5  ;;  %v10170_v26 = vshll.u32 %v10065_v48, 16  ;;  %13741 = vmatpush3.bf16.msra.mxu1 %v14200_v36  ;;  %v9874_v25 = vld [vmem:[#allocation2 + $0x3c] sm:$0xe]  ;;  %13345 = vmatpush3.bf16.msra.mxu0 %v14200_v36  ;;  %v8399_v36 = vld [vmem:[#allocation2 + $0x14] sm:$0x1] }
 0x4dc   : > { %v10461_v21 = vsel %vm14513_vm5, %v10456_v54, %v10460_v60  ;;  %v12722_v37 = vcombine.low %v10026_v63, %v10029_v44  ;;  %v10157_v28 = vor.u32 %v10156_v19, %v10153_v12  ;;  %v10166_v1 = vrot.slane %v10164_v40, 4  ;;  %v14207_v63 = vld [vmem:[%s18296_s4 + $0x100] sm:$0xff]   ;;  %13442 = vmatprep.subr.bf16.mxu1 %v14202_v23  ;;  %v10067_v23 = vld [vmem:[#allocation2 + $0x5c] sm:$0x1] }
 0x4dd   : > { %v12754_v11 = vcombine.low %v10451_v59, %v10461_v21  ;;  %v12678_v42 = vrot.slane %v9873_v18, 9  ;;  %v9941_v31 = vrot.slane %v17192_v10, 5  ;;  %v10172_v5 = vrot.slane %v10170_v26, 5  ;;  %v9474_v12 = vld [vmem:[#allocation2 + $0x44] sm:$0x1]  ;;  %13654 = vmatprep.subr.bf16.mxu0 %v14207_v63 }
 0x4de   : > { %10588 = vrot.lane.b32.xlu1 %v12722_v37, %s14408_s27  ;;  %v10158_v16 = vrot.slane %v10157_v28, 4  ;;  %v10167_v35 = vor.u32 %v10166_v1, %v10162_v3  ;;  %v9944_v32 = vrot.slane %v9473_v58, 5  ;;  %v8415_v55 = vshrl.u32 %v8366_v27, 16  ;;  %v17238_v21 = vld [vmem:[#allocation2 + $0x18] sm:$0xf] }
 0x4df   : > { %10748 = vrot.lane.b32.xlu0 %v12754_v11, %s14408_s27  ;;  %v9942_v49 = vsel %vm14521_vm6, %v12678_v42, %v9941_v31  ;;  %v9943_v13 = vrot.slane %v9941_v31, 4  ;;  %v8418_v24 = vshll.u32 %v8366_v27, 16  ;;  %v12659_v50 = vcombine.low %v17203_v22, %v17085_v0  ;;  %v17230_v0 = vld [vmem:[#allocation2 + $0x40] sm:$0xf]  ;;  %v8368_v11 = vld [vmem:[#allocation2 + $0xc] sm:$0xf] }
 0x4e0   : > { %v10163_v56 = vsel %vm14513_vm5, %v10158_v16, %v10162_v3  ;;  %v10168_v30 = vrot.slane %v10167_v35, 4  ;;  %v8424_v38 = vshll.u32 %v8367_v20, 16  ;;  %v8417_v41 = vrot.slane %v8415_v55, 4  ;;  %v9475_v63 = vld [vmem:[#allocation2 + $0x50] sm:$0x1] }
 0x4e1   : > { %v9945_v17 = vsel %vm14521_vm6, %v9943_v13, %v9944_v32  ;;  %v8420_v8 = vrot.slane %v8418_v24, 5  ;;  %v8428_v9 = vshrl.u32 %v8367_v20, 16  ;;  %v8434_v34 = vshll.u32 %v8398_v4, 16  ;;  %v8369_v13 = vld [vmem:[#allocation2 + $0x10] sm:$0xf] }
 0x4e2   : > { %v10173_v29 = vsel %vm14513_vm5, %v10168_v30, %v10172_v5  ;;  %v12710_v57 = vcombine.low %v9942_v49, %v9945_v17  ;;  %v8426_v15 = vrot.slane %v8424_v38, 5  ;;  %v10175_v43 = vshrl.u32 %v10038_v33, 16  ;;  %v10040_v17 = vld [vmem:[#allocation2 + $0x54] sm:$0xf] }
 0x4e3   : > { %v12742_v60 = vcombine.low %v10163_v56, %v10173_v29  ;;  %v8421_v48 = vor.u32 %v8420_v8, %v8417_v41  ;;  %v10178_v39 = vshll.u32 %v10038_v33, 16  ;;  %v10184_v45 = vshll.u32 %v10039_v62, 16 }
 0x4e4   : > { %10564 = vrot.lane.b32.xlu1 %v12710_v57, %s14408_s27  ;;  %v9487_v14 = vshrl.u32 %v17203_v22, 16  ;;  %v8430_v6 = vrot.slane %v8428_v9, 4  ;;  %v10188_v47 = vshrl.u32 %v10039_v62, 16  ;;  %v10194_v54 = vshll.u32 %v10066_v2, 16  ;;  %v17261_v2 = vld [vmem:[#allocation2 + $0x4c] sm:$0xf] }
 0x4e5   : > { %10724 = vrot.lane.b32.xlu0 %v12742_v60, %s14408_s27  ;;  %v8422_v19 = vrot.slane %v8421_v48, 4  ;;  %v10177_v40 = vrot.slane %v10175_v43, 4  ;;  %v10180_v18 = vrot.slane %v10178_v39, 5  ;;  %v10186_v59 = vrot.slane %v10184_v45, 5  ;;  %v9875_v48 = vld [vmem:[#allocation2 + $0x48] sm:$0xe] }
 0x4e6   : > { %v8431_v44 = vor.u32 %v8430_v6, %v8426_v15  ;;  %v8436_v3 = vrot.slane %v8434_v34, 5  ;;  %v10190_v26 = vrot.slane %v10188_v47, 4  ;;  %v12679_v58 = vrot.slane %v9874_v25, 9 }
 0x4e7   : > { %v9490_v37 = vshll.u32 %v17203_v22, 16  ;;  %v10181_v28 = vor.u32 %v10180_v18, %v10177_v40  ;;  %v9948_v1 = vrot.slane %v17230_v0, 5  ;;  %v9951_v53 = vrot.slane %v9474_v12, 5 }
 0x4e8   : > { %v8427_v42 = vsel %vm14513_vm5, %v8422_v19, %v8426_v15  ;;  %v8432_v31 = vrot.slane %v8431_v44, 4  ;;  %v10191_v27 = vor.u32 %v10190_v26, %v10186_v59  ;;  %v10196_v46 = vrot.slane %v10194_v54, 5 }
 0x4e9   : > { %9278 = vrot.lane.b32.xlu0 %v12659_v50, %s14408_s27  ;;  %v17245_v16 = vrot.slane %v9487_v14, 4  ;;  %v10182_v35 = vrot.slane %v10181_v28, 4  ;;  %v9949_v5 = vsel %vm14521_vm6, %v12679_v58, %v9948_v1  ;;  %v9950_v22 = vrot.slane %v9948_v1, 4  ;;  %v10041_v50 = vld [vmem:[#allocation2 + $0x58] sm:$0xf] }
 0x4ea   : > { %v8437_v32 = vsel %vm14513_vm5, %v8432_v31, %v8436_v3  ;;  %v10192_v20 = vrot.slane %v10191_v27, 4  ;;  %v12660_v49 = vcombine.low %v17238_v21, %v17126_v52  ;;  %v8439_v56 = vshrl.u32 %v8368_v11, 16 }
 0x4eb   : > { %v12627_v30 = vcombine.low %v8427_v42, %v8437_v32  ;;  %v10187_v4 = vsel %vm14513_vm5, %v10182_v35, %v10186_v59  ;;  %v9952_v55 = vsel %vm14521_vm6, %v9950_v22, %v9951_v53  ;;  %v9511_v24 = vshrl.u32 %v17238_v21, 16  ;;  %v17273_v35 = vld [vmem:[#allocation2 + $0x24] sm:$0xf] }
 0x4ec   : > { %v10197_v38 = vsel %vm14513_vm5, %v10192_v20, %v10196_v46  ;;  %v12711_v33 = vcombine.low %v9949_v5, %v9952_v55  ;;  %v8441_v62 = vrot.slane %v8439_v56, 4  ;;  %v8442_v52 = vshll.u32 %v8368_v11, 16  ;;  %v8370_v11 = vld [vmem:[#allocation2 + $0x18] sm:$0xf]  ;;  %v8371_v20 = vld [vmem:[#allocation2 + $0x1c] sm:$0xf] }
 0x4ed   : > { %9118 = vrot.lane.b32.xlu1 %v12627_v30, %s14408_s27  ;;  %v12743_v29 = vcombine.low %v10187_v4, %v10197_v38  ;;  %v8448_v57 = vshll.u32 %v8369_v13, 16  ;;  %v8452_v41 = vshrl.u32 %v8369_v13, 16  ;;  %v8458_v8 = vshll.u32 %v8399_v36, 16  ;;  %v8400_v56 = vld [vmem:[#allocation2 + $0x20] sm:$0x1] }
 0x4ee   : > { %v8444_v60 = vrot.slane %v8442_v52, 5  ;;  %v10199_v15 = vshrl.u32 %v10040_v17, 16  ;;  %v10202_v9 = vshll.u32 %v10040_v17, 16  ;;  %v10208_v34 = vshll.u32 %v10041_v50, 16  ;;  %v10042_v4 = vld [vmem:[#allocation2 + $0x60] sm:$0xf] }
 0x4ef   : > { %10726 = vrot.lane.b32.xlu0 %v12743_v29, %s14408_s27  ;;  %v8450_v43 = vrot.slane %v8448_v57, 5  ;;  %v8454_v39 = vrot.slane %v8452_v41, 4  ;;  %v8460_v45 = vrot.slane %v8458_v8, 5  ;;  %v10212_v25 = vshrl.u32 %v10041_v50, 16  ;;  %v10043_v50 = vld [vmem:[#allocation2 + $0x64] sm:$0xf] }
 0x4f0   : > { %v8445_v14 = vor.u32 %v8444_v60, %v8441_v62  ;;  %v10201_v6 = vrot.slane %v10199_v15, 4  ;;  %v10204_v47 = vrot.slane %v10202_v9, 5  ;;  %v10210_v54 = vrot.slane %v10208_v34, 5  ;;  %v17290_v60 = vld [vmem:[#allocation2 + $0x58] sm:$0xf] }
 0x4f1   : > { %10566 = vrot.lane.b32.xlu1 %v12711_v33, %s14408_s27  ;;  %v8455_v12 = vor.u32 %v8454_v39, %v8450_v43  ;;  %v10214_v19 = vrot.slane %v10212_v25, 4  ;;  %v10218_v40 = vshll.u32 %v10067_v23, 16  ;;  %v12680_v18 = vrot.slane %v9875_v48, 9  ;;  %v10068_v23 = vld [vmem:[#allocation2 + $0x68] sm:$0x1] }
 0x4f2   : > { %v8446_v59 = vrot.slane %v8445_v14, 4  ;;  %v10205_v44 = vor.u32 %v10204_v47, %v10201_v6  ;;  %v9955_v3 = vrot.slane %v17261_v2, 5  ;;  %v9958_v26 = vrot.slane %v9475_v63, 5  ;;  %v9876_v48 = vld [vmem:[#allocation2 + $0x54] sm:$0xe] }
 0x4f3   : > { %v17266_v58 = vrot.slane %v9490_v37, 5  ;;  %9280 = vrot.lane.b32.xlu0 %v12660_v49, %s14408_s27  ;;  %v8456_v28 = vrot.slane %v8455_v12, 4  ;;  %v10215_v1 = vor.u32 %v10214_v19, %v10210_v54  ;;  %v10220_v53 = vrot.slane %v10218_v40, 5  ;;  %v9476_v63 = vld [vmem:[#allocation2 + $0x5c] sm:$0x1] }
 0x4f4   : > { %v8451_v42 = vsel %vm14513_vm5, %v8446_v59, %v8450_v43  ;;  %v10206_v31 = vrot.slane %v10205_v44, 4  ;;  %v9956_v27 = vsel %vm14521_vm6, %v12680_v18, %v9955_v3  ;;  %v9957_v46 = vrot.slane %v9955_v3, 4  ;;  %v17295_v59 = vld [vmem:[#allocation2 + $0x30] sm:$0xf] }
 0x4f5   : > { %v17275_v5 = vrot.slane %v9511_v24, 4  ;;  %v9514_v37 = vshll.u32 %v17238_v21, 16  ;;  %v8461_v22 = vsel %vm14513_vm5, %v8456_v28, %v8460_v45  ;;  %v10216_v32 = vrot.slane %v10215_v1, 4  ;;  %v8372_v1 = vld [vmem:[#allocation2 + $0x24] sm:$0xf] }
 0x4f6   : > { %v12628_v49 = vcombine.low %v8451_v42, %v8461_v22  ;;  %v10211_v13 = vsel %vm14513_vm5, %v10206_v31, %v10210_v54  ;;  %v9959_v36 = vsel %vm14521_vm6, %v9957_v46, %v9958_v26  ;;  %v8463_v30 = vshrl.u32 %v8370_v11, 16  ;;  %v8401_v46 = vld [vmem:[#allocation2 + $0x2c] sm:$0x1] }
 0x4f7   : > { %v10221_v55 = vsel %vm14513_vm5, %v10216_v32, %v10220_v53  ;;  %v12712_v24 = vcombine.low %v9956_v27, %v9959_v36  ;;  %v12661_v21 = vcombine.low %v17273_v35, %v17154_v7  ;;  %v9535_v17 = vshrl.u32 %v17273_v35, 16  ;;  %v8373_v27 = vld [vmem:[#allocation2 + $0x28] sm:$0xf]  ;;  %v10044_v22 = vld [vmem:[#allocation2 + $0x6c] sm:$0xf] }
 0x4f8   : > { %9120 = vrot.lane.b32.xlu1 %v12628_v49, %s14408_s27  ;;  %v12744_v38 = vcombine.low %v10211_v13, %v10221_v55  ;;  %v8465_v33 = vrot.slane %v8463_v30, 4  ;;  %v8466_v62 = vshll.u32 %v8370_v11, 16  ;;  %v8472_v52 = vshll.u32 %v8371_v20, 16 }
 0x4f9   : > { %v8476_v29 = vshrl.u32 %v8371_v20, 16  ;;  %v8482_v57 = vshll.u32 %v8400_v56, 16  ;;  %v10223_v41 = vshrl.u32 %v10042_v4, 16  ;;  %v10226_v8 = vshll.u32 %v10042_v4, 16 }
 0x4fa   : > { %10728 = vrot.lane.b32.xlu0 %v12744_v38, %s14408_s27  ;;  %v8468_v15 = vrot.slane %v8466_v62, 5  ;;  %v8474_v7 = vrot.slane %v8472_v52, 5  ;;  %v10232_v9 = vshll.u32 %v10043_v50, 16  ;;  %v10236_v34 = vshrl.u32 %v10043_v50, 16  ;;  %v10069_v62 = vld [vmem:[#allocation2 + $0x74] sm:$0x1] }
 0x4fb   : > { %v8478_v43 = vrot.slane %v8476_v29, 4  ;;  %v8484_v39 = vrot.slane %v8482_v57, 5  ;;  %v10225_v45 = vrot.slane %v10223_v41, 4  ;;  %v10228_v25 = vrot.slane %v10226_v8, 5  ;;  %v17318_v52 = vld [vmem:[#allocation2 + $0x64] sm:$0xf] }
 0x4fc   : > { %10568 = vrot.lane.b32.xlu1 %v12712_v24, %s14408_s27  ;;  %v8469_v14 = vor.u32 %v8468_v15, %v8465_v33  ;;  %v10234_v6 = vrot.slane %v10232_v9, 5  ;;  %v10238_v47 = vrot.slane %v10236_v34, 4  ;;  %v10242_v54 = vshll.u32 %v10068_v23, 16  ;;  %v9477_v8 = vld [vmem:[#allocation2 + $0x68] sm:$0x1] }
 0x4fd   : > { %v8479_v12 = vor.u32 %v8478_v43, %v8474_v7  ;;  %v10229_v19 = vor.u32 %v10228_v25, %v10225_v45  ;;  %v12681_v40 = vrot.slane %v9876_v48, 9  ;;  %v9962_v18 = vrot.slane %v17290_v60, 5  ;;  %v9877_v15 = vld [vmem:[#allocation2 + $0x60] sm:$0xe] }
 0x4fe   : > { %9282 = vrot.lane.b32.xlu0 %v12661_v21, %s14408_s27  ;;  %v8470_v44 = vrot.slane %v8469_v14, 4  ;;  %v10239_v3 = vor.u32 %v10238_v47, %v10234_v6  ;;  %v10244_v26 = vrot.slane %v10242_v54, 5  ;;  %v9965_v28 = vrot.slane %v9476_v63, 5  ;;  %v10045_v21 = vld [vmem:[#allocation2 + $0x70] sm:$0xf] }
 0x4ff   : > { %v17298_v53 = vrot.slane %v9514_v37, 5  ;;  %v8480_v11 = vrot.slane %v8479_v12, 4  ;;  %v10230_v42 = vrot.slane %v10229_v19, 4  ;;  %v9964_v31 = vrot.slane %v9962_v18, 4 }
 0x500   : > { %v9538_v32 = vshll.u32 %v17273_v35, 16  ;;  %v8475_v20 = vsel %vm14513_vm5, %v8470_v44, %v8474_v7  ;;  %v10240_v49 = vrot.slane %v10239_v3, 4  ;;  %v9963_v13 = vsel %vm14521_vm6, %v12681_v40, %v9962_v18 }
 0x501   : > { %v17305_v36 = vrot.slane %v9535_v17, 4  ;;  %v8485_v37 = vsel %vm14513_vm5, %v8480_v11, %v8484_v39  ;;  %v10235_v56 = vsel %vm14513_vm5, %v10230_v42, %v10234_v6  ;;  %v9966_v30 = vsel %vm14521_vm6, %v9964_v31, %v9965_v28  ;;  %v17327_v42 = vld [vmem:[#allocation2 + $0x3c] sm:$0xf] }
 0x502   : > { %v12629_v4 = vcombine.low %v8475_v20, %v8485_v37  ;;  %v10245_v35 = vsel %vm14513_vm5, %v10240_v49, %v10244_v26  ;;  %v12662_v55 = vcombine.low %v17295_v59, %v17192_v10  ;;  %v9559_v24 = vshrl.u32 %v17295_v59, 16  ;;  %v8374_v20 = vld [vmem:[#allocation2 + $0x30] sm:$0xf]  ;;  %v8375_v49 = vld [vmem:[#allocation2 + $0x34] sm:$0xf] }
 0x503   : > { %v12745_v17 = vcombine.low %v10235_v56, %v10245_v35  ;;  %v12713_v50 = vcombine.low %v9963_v13, %v9966_v30  ;;  %v8487_v38 = vshrl.u32 %v8372_v1, 16  ;;  %v8490_v33 = vshll.u32 %v8372_v1, 16  ;;  %v8402_v30 = vld [vmem:[#allocation2 + $0x38] sm:$0x1] }
 0x504   : > { %9122 = vrot.lane.b32.xlu1 %v12629_v4, %s14408_s27  ;;  %v8496_v23 = vshll.u32 %v8373_v27, 16  ;;  %v8500_v29 = vshrl.u32 %v8373_v27, 16  ;;  %v8506_v57 = vshll.u32 %v8401_v46, 16  ;;  %v10247_v41 = vshrl.u32 %v10044_v22, 16  ;;  %v10046_v4 = vld [vmem:[#allocation2 + $0x78] sm:$0xf] }
 0x505   : > { %10730 = vrot.lane.b32.xlu0 %v12745_v17, %s14408_s27  ;;  %v8489_v10 = vrot.slane %v8487_v38, 4  ;;  %v8492_v7 = vrot.slane %v8490_v33, 5  ;;  %v10250_v9 = vshll.u32 %v10044_v22, 16  ;;  %v10256_v34 = vshll.u32 %v10045_v21, 16 }
 0x506   : > { %v8498_v48 = vrot.slane %v8496_v23, 5  ;;  %v8502_v43 = vrot.slane %v8500_v29, 4  ;;  %v8508_v39 = vrot.slane %v8506_v57, 5  ;;  %v10249_v45 = vrot.slane %v10247_v41, 4  ;;  %v9878_v23 = vld [vmem:[#allocation2 + $0x6c] sm:$0xe] }
 0x507   : > { %v8493_v25 = vor.u32 %v8492_v7, %v8489_v10  ;;  %v10252_v63 = vrot.slane %v10250_v9, 5  ;;  %v10258_v14 = vrot.slane %v10256_v34, 5  ;;  %v10260_v6 = vshrl.u32 %v10045_v21, 16 }
 0x508   : > { %10570 = vrot.lane.b32.xlu1 %v12713_v50, %s14408_s27  ;;  %v8503_v47 = vor.u32 %v8502_v43, %v8498_v48  ;;  %v10266_v54 = vshll.u32 %v10069_v62, 16  ;;  %v12682_v12 = vrot.slane %v9877_v15, 9  ;;  %v9969_v19 = vrot.slane %v17318_v52, 5  ;;  %v10070_v62 = vld [vmem:[#allocation2 + $0x80] sm:$0x1] }
 0x509   : > { %9284 = vrot.lane.b32.xlu0 %v12662_v55, %s14408_s27  ;;  %v8494_v40 = vrot.slane %v8493_v25, 4  ;;  %v10253_v18 = vor.u32 %v10252_v63, %v10249_v45  ;;  %v10262_v44 = vrot.slane %v10260_v6, 4  ;;  %v9972_v3 = vrot.slane %v9477_v8, 5  ;;  %v17348_v15 = vld [vmem:[#allocation2 + $0x70] sm:$0xf] }
 0x50a   : > { %v17325_v26 = vrot.slane %v9538_v32, 5  ;;  %v8504_v28 = vrot.slane %v8503_v47, 4  ;;  %v10268_v1 = vrot.slane %v10266_v54, 5  ;;  %v9971_v11 = vrot.slane %v9969_v19, 4  ;;  %v9478_v6 = vld [vmem:[#allocation2 + $0x74] sm:$0x1] }
 0x50b   : > { %v8499_v31 = vsel %vm14513_vm5, %v8494_v40, %v8498_v48  ;;  %v10254_v27 = vrot.slane %v10253_v18, 4  ;;  %v10263_v46 = vor.u32 %v10262_v44, %v10258_v14  ;;  %v9970_v22 = vsel %vm14521_vm6, %v12682_v12, %v9969_v19 }
 0x50c   : > { %v17333_v13 = vrot.slane %v9559_v24, 4  ;;  %v9562_v32 = vshll.u32 %v17295_v59, 16  ;;  %v8509_v37 = vsel %vm14513_vm5, %v8504_v28, %v8508_v39  ;;  %v9973_v56 = vsel %vm14521_vm6, %v9971_v11, %v9972_v3  ;;  %v10047_v24 = vld [vmem:[#allocation2 + $0x7c] sm:$0xf]  ;;  %v17353_v28 = vld [vmem:[#allocation2 + $0x48] sm:$0xf] }
 0x50d   : > { %v12630_v35 = vcombine.low %v8499_v31, %v8509_v37  ;;  %v10259_v55 = vsel %vm14513_vm5, %v10254_v27, %v10258_v14  ;;  %v10264_v21 = vrot.slane %v10263_v46, 4  ;;  %v12663_v17 = vcombine.low %v17327_v42, %v17230_v0  ;;  %v8376_v46 = vld [vmem:[#allocation2 + $0x3c] sm:$0xf] }
 0x50e   : > { %v12714_v50 = vcombine.low %v9970_v22, %v9973_v56  ;;  %v9583_v59 = vshrl.u32 %v17327_v42, 16  ;;  %v8511_v38 = vshrl.u32 %v8374_v20, 16  ;;  %v8514_v33 = vshll.u32 %v8374_v20, 16  ;;  %v8377_v56 = vld [vmem:[#allocation2 + $0x40] sm:$0xf] }
 0x50f   : > { %9124 = vrot.lane.b32.xlu1 %v12630_v35, %s14408_s27  ;;  %v10269_v29 = vsel %vm14513_vm5, %v10264_v21, %v10268_v1  ;;  %v8520_v57 = vshll.u32 %v8375_v49, 16  ;;  %v8524_v41 = vshrl.u32 %v8375_v49, 16  ;;  %v8530_v8 = vshll.u32 %v8402_v30, 16  ;;  %v8403_v30 = vld [vmem:[#allocation2 + $0x44] sm:$0x1] }
 0x510   : > { %v12746_v10 = vcombine.low %v10259_v55, %v10269_v29  ;;  %v8513_v0 = vrot.slane %v8511_v38, 4  ;;  %v8516_v7 = vrot.slane %v8514_v33, 5  ;;  %v10271_v9 = vshrl.u32 %v10046_v4, 16  ;;  %v10048_v21 = vld [vmem:[#allocation2 + $0x84] sm:$0xf] }
 0x511   : > { %v8522_v34 = vrot.slane %v8520_v57, 5  ;;  %v8526_v48 = vrot.slane %v8524_v41, 4  ;;  %v8532_v43 = vrot.slane %v8530_v8, 5  ;;  %v10274_v39 = vshll.u32 %v10046_v4, 16  ;;  %v10049_v33 = vld [vmem:[#allocation2 + $0x88] sm:$0xf] }
 0x512   : > { %10732 = vrot.lane.b32.xlu0 %v12746_v10, %s14408_s27  ;;  %v8517_v45 = vor.u32 %v8516_v7, %v8513_v0  ;;  %v10273_v25 = vrot.slane %v10271_v9, 4  ;;  %v10280_v63 = vshll.u32 %v10047_v24, 16  ;;  %v10284_v14 = vshrl.u32 %v10047_v24, 16  ;;  %v10071_v10 = vld [vmem:[#allocation2 + $0x8c] sm:$0x1] }
 0x513   : > { %10572 = vrot.lane.b32.xlu1 %v12714_v50, %s14408_s27  ;;  %v8527_v47 = vor.u32 %v8526_v48, %v8522_v34  ;;  %v10276_v54 = vrot.slane %v10274_v39, 5  ;;  %v10290_v12 = vshll.u32 %v10070_v62, 16  ;;  %v12683_v19 = vrot.slane %v9878_v23, 9  ;;  %v9879_v0 = vld [vmem:[#allocation2 + $0x78] sm:$0xe] }
 0x514   : > { %v8518_v40 = vrot.slane %v8517_v45, 4  ;;  %v10282_v18 = vrot.slane %v10280_v63, 5  ;;  %v10286_v44 = vrot.slane %v10284_v14, 4  ;;  %v9976_v3 = vrot.slane %v17348_v15, 5 }
 0x515   : > { %v17355_v1 = vrot.slane %v9562_v32, 5  ;;  %v8528_v11 = vrot.slane %v8527_v47, 4  ;;  %v10277_v31 = vor.u32 %v10276_v54, %v10273_v25  ;;  %v9979_v27 = vrot.slane %v9478_v6, 5  ;;  %v17378_v47 = vld [vmem:[#allocation2 + $0x7c] sm:$0xf] }
 0x516   : > { %9286 = vrot.lane.b32.xlu0 %v12663_v17, %s14408_s27  ;;  %v8523_v22 = vsel %vm14513_vm5, %v8518_v40, %v8522_v34  ;;  %v10287_v20 = vor.u32 %v10286_v44, %v10282_v18  ;;  %v10292_v49 = vrot.slane %v10290_v12, 5  ;;  %v9978_v37 = vrot.slane %v9976_v3, 4 }
 0x517   : > { %v9586_v4 = vshll.u32 %v17327_v42, 16  ;;  %v8533_v32 = vsel %vm14513_vm5, %v8528_v11, %v8532_v43  ;;  %v10278_v35 = vrot.slane %v10277_v31, 4  ;;  %v9977_v55 = vsel %vm14521_vm6, %v12683_v19, %v9976_v3 }
 0x518   : > { %v17365_v24 = vrot.slane %v9583_v59, 4  ;;  %v12631_v17 = vcombine.low %v8523_v22, %v8533_v32  ;;  %v10288_v50 = vrot.slane %v10287_v20, 4  ;;  %v9980_v38 = vsel %vm14521_vm6, %v9978_v37, %v9979_v27  ;;  %v8378_v27 = vld [vmem:[#allocation2 + $0x48] sm:$0xf]  ;;  %v17382_v37 = vld [vmem:[#allocation2 + $0x54] sm:$0xf] }
 0x519   : > { %v10283_v62 = vsel %vm14513_vm5, %v10278_v35, %v10282_v18  ;;  %v12664_v42 = vcombine.low %v17353_v28, %v17261_v2  ;;  %v9607_v23 = vshrl.u32 %v17353_v28, 16  ;;  %v8535_v29 = vshrl.u32 %v8376_v46, 16  ;;  %v9479_v18 = vld [vmem:[#allocation2 + $0x80] sm:$0x1]  ;;  %v8379_v35 = vld [vmem:[#allocation2 + $0x4c] sm:$0xf] }
 0x51a   : > { %9126 = vrot.lane.b32.xlu1 %v12631_v17, %s14408_s27  ;;  %v10293_v59 = vsel %vm14513_vm5, %v10288_v50, %v10292_v49  ;;  %v12715_v57 = vcombine.low %v9977_v55, %v9980_v38  ;;  %v8538_v41 = vshll.u32 %v8376_v46, 16  ;;  %v8544_v8 = vshll.u32 %v8377_v56, 16  ;;  %v8404_v38 = vld [vmem:[#allocation2 + $0x50] sm:$0x1] }
 0x51b   : > { %v12747_v7 = vcombine.low %v10283_v62, %v10293_v59  ;;  %v8537_v9 = vrot.slane %v8535_v29, 4  ;;  %v8548_v34 = vshrl.u32 %v8377_v56, 16  ;;  %v8554_v48 = vshll.u32 %v8403_v30, 16 }
 0x51c   : > { %v8540_v43 = vrot.slane %v8538_v41, 5  ;;  %v8546_v39 = vrot.slane %v8544_v8, 5  ;;  %v10295_v2 = vshrl.u32 %v10048_v21, 16  ;;  %v10298_v45 = vshll.u32 %v10048_v21, 16 }
 0x51d   : > { %10734 = vrot.lane.b32.xlu0 %v12747_v7, %s14408_s27  ;;  %v8550_v25 = vrot.slane %v8548_v34, 4  ;;  %v8556_v63 = vrot.slane %v8554_v48, 5  ;;  %v10304_v14 = vshll.u32 %v10049_v33, 16  ;;  %v10308_v6 = vshrl.u32 %v10049_v33, 16  ;;  %v10050_v33 = vld [vmem:[#allocation2 + $0x90] sm:$0xf] }
 0x51e   : > { %10574 = vrot.lane.b32.xlu1 %v12715_v57, %s14408_s27  ;;  %v8541_v54 = vor.u32 %v8540_v43, %v8537_v9  ;;  %v10297_v12 = vrot.slane %v10295_v2, 4  ;;  %v10300_v19 = vrot.slane %v10298_v45, 5  ;;  %v10314_v40 = vshll.u32 %v10071_v10, 16  ;;  %v10072_v34 = vld [vmem:[#allocation2 + $0x98] sm:$0x1] }
 0x51f   : > { %v8551_v44 = vor.u32 %v8550_v25, %v8546_v39  ;;  %v10306_v3 = vrot.slane %v10304_v14, 5  ;;  %v10310_v11 = vrot.slane %v10308_v6, 4  ;;  %v12684_v31 = vrot.slane %v9879_v0, 9  ;;  %v10051_v0 = vld [vmem:[#allocation2 + $0x94] sm:$0xf] }
 0x520   : > { %v8542_v46 = vrot.slane %v8541_v54, 4  ;;  %v10301_v22 = vor.u32 %v10300_v19, %v10297_v12  ;;  %v10316_v20 = vrot.slane %v10314_v40, 5  ;;  %v9983_v49 = vrot.slane %v17378_v47, 5  ;;  %v17405_v45 = vld [vmem:[#allocation2 + $0x88] sm:$0xf] }
 0x521   : > { %9288 = vrot.lane.b32.xlu0 %v12664_v42, %s14408_s27  ;;  %v8552_v56 = vrot.slane %v8551_v44, 4  ;;  %v10311_v30 = vor.u32 %v10310_v11, %v10306_v3  ;;  %v9986_v32 = vrot.slane %v9479_v18, 5  ;;  %v17389_v62 = vrot.slane %v9586_v4, 5  ;;  %v9480_v6 = vld [vmem:[#allocation2 + $0x8c] sm:$0x1] }
 0x522   : > { %v8547_v55 = vsel %vm14513_vm5, %v8542_v46, %v8546_v39  ;;  %v10302_v21 = vrot.slane %v10301_v22, 4  ;;  %v9984_v17 = vsel %vm14521_vm6, %v12684_v31, %v9983_v49  ;;  %v9985_v50 = vrot.slane %v9983_v49, 4  ;;  %v9880_v40 = vld [vmem:[#allocation2 + $0x84] sm:$0xe] }
 0x523   : > { %v9610_v29 = vshll.u32 %v17353_v28, 16  ;;  %v8557_v42 = vsel %vm14513_vm5, %v8552_v56, %v8556_v63  ;;  %v10312_v59 = vrot.slane %v10311_v30, 4  ;;  %v8559_v10 = vshrl.u32 %v8378_v27, 16 }
 0x524   : > { %v12632_v57 = vcombine.low %v8547_v55, %v8557_v42  ;;  %v10307_v41 = vsel %vm14513_vm5, %v10302_v21, %v10306_v3  ;;  %v9987_v8 = vsel %vm14521_vm6, %v9985_v50, %v9986_v32  ;;  %v17398_v7 = vrot.slane %v9607_v23, 4  ;;  %v17410_v32 = vld [vmem:[#allocation2 + $0x60] sm:$0xf]  ;;  %v8380_v50 = vld [vmem:[#allocation2 + $0x54] sm:$0xf] }
 0x525   : > { %v10317_v4 = vsel %vm14513_vm5, %v10312_v59, %v10316_v20  ;;  %v12716_v9 = vcombine.low %v9984_v17, %v9987_v8  ;;  %v12665_v28 = vcombine.low %v17382_v37, %v17290_v60  ;;  %v8561_v43 = vrot.slane %v8559_v10, 4 }
 0x526   : > { %9128 = vrot.lane.b32.xlu1 %v12632_v57, %s14408_s27  ;;  %v12748_v48 = vcombine.low %v10307_v41, %v10317_v4  ;;  %v8562_v39 = vshll.u32 %v8378_v27, 16  ;;  %v8568_v2 = vshll.u32 %v8379_v35, 16  ;;  %v8572_v25 = vshrl.u32 %v8379_v35, 16  ;;  %v8381_v57 = vld [vmem:[#allocation2 + $0x58] sm:$0xf] }
 0x527   : > { %v8578_v63 = vshll.u32 %v8404_v38, 16  ;;  %v10319_v23 = vshrl.u32 %v10050_v33, 16  ;;  %v10322_v14 = vshll.u32 %v10050_v33, 16  ;;  %v10328_v19 = vshll.u32 %v10051_v0, 16  ;;  %v8405_v41 = vld [vmem:[#allocation2 + $0x5c] sm:$0x1] }
 0x528   : > { %10736 = vrot.lane.b32.xlu0 %v12748_v48, %s14408_s27  ;;  %v8564_v54 = vrot.slane %v8562_v39, 5  ;;  %v8570_v12 = vrot.slane %v8568_v2, 5  ;;  %v10332_v60 = vshrl.u32 %v10051_v0, 16  ;;  %v8574_v18 = vrot.slane %v8572_v25, 4  ;;  %v10052_v48 = vld [vmem:[#allocation2 + $0x9c] sm:$0xf] }
 0x529   : > { %v8580_v44 = vrot.slane %v8578_v63, 5  ;;  %v10321_v3 = vrot.slane %v10319_v23, 4  ;;  %v10324_v11 = vrot.slane %v10322_v14, 5  ;;  %v10330_v27 = vrot.slane %v10328_v19, 5  ;;  %v17434_v19 = vld [vmem:[#allocation2 + $0x94] sm:$0xf] }
 0x52a   : > { %10576 = vrot.lane.b32.xlu1 %v12716_v9, %s14408_s27  ;;  %v8565_v31 = vor.u32 %v8564_v54, %v8561_v43  ;;  %v10334_v46 = vrot.slane %v10332_v60, 4  ;;  %v10338_v22 = vshll.u32 %v10072_v34, 16  ;;  %v8575_v20 = vor.u32 %v8574_v18, %v8570_v12  ;;  %v10053_v43 = vld [vmem:[#allocation2 + $0xa0] sm:$0xf] }
 0x52b   : > { %v10325_v49 = vor.u32 %v10324_v11, %v10321_v3  ;;  %v12685_v56 = vrot.slane %v9880_v40, 9  ;;  %v9990_v30 = vrot.slane %v17405_v45, 5  ;;  %v9993_v17 = vrot.slane %v9480_v6, 5  ;;  %v9481_v3 = vld [vmem:[#allocation2 + $0x98] sm:$0x1] }
 0x52c   : > { %9290 = vrot.lane.b32.xlu0 %v12665_v28, %s14408_s27  ;;  %v8566_v35 = vrot.slane %v8565_v31, 4  ;;  %v10335_v55 = vor.u32 %v10334_v46, %v10330_v27  ;;  %v10340_v21 = vrot.slane %v10338_v22, 5  ;;  %v17413_v38 = vrot.slane %v9610_v29, 5  ;;  %v9881_v46 = vld [vmem:[#allocation2 + $0x90] sm:$0xe] }
 0x52d   : > { %v8576_v33 = vrot.slane %v8575_v20, 4  ;;  %v10326_v42 = vrot.slane %v10325_v49, 4  ;;  %v9992_v59 = vrot.slane %v9990_v30, 4  ;;  %v9631_v8 = vshrl.u32 %v17382_v37, 16 }
 0x52e   : > { %v8571_v10 = vsel %vm14513_vm5, %v8566_v35, %v8570_v12  ;;  %v10336_v0 = vrot.slane %v10335_v55, 4  ;;  %v9991_v4 = vsel %vm14521_vm6, %v12685_v56, %v9990_v30  ;;  %v9634_v9 = vshll.u32 %v17382_v37, 16  ;;  %v10073_v12 = vld [vmem:[#allocation2 + $0xa4] sm:$0x1] }
 0x52f   : > { %v8581_v29 = vsel %vm14513_vm5, %v8576_v33, %v8580_v44  ;;  %v10331_v28 = vsel %vm14513_vm5, %v10326_v42, %v10330_v27  ;;  %v9994_v34 = vsel %vm14521_vm6, %v9992_v59, %v9993_v17  ;;  %v12666_v25 = vcombine.low %v17410_v32, %v17318_v52 }
 0x530   : > { %v12633_v39 = vcombine.low %v8571_v10, %v8581_v29  ;;  %v10341_v2 = vsel %vm14513_vm5, %v10336_v0, %v10340_v21  ;;  %v9655_v37 = vshrl.u32 %v17410_v32, 16  ;;  %v17432_v63 = vpop.permute.xlu0 %10742  ;;  %v12717_v14 = vcombine.low %v9991_v4, %v9994_v34  ;;  %v8382_v4 = vld [vmem:[#allocation2 + $0x60] sm:$0xf]  ;;  %v17443_v29 = vpop.permute.xlu1 %10718 }
 0x531   : > { %v12749_v23 = vcombine.low %v10331_v28, %v10341_v2  ;;  %v8583_v6 = vshrl.u32 %v8380_v50, 16  ;;  %v8586_v54 = vshll.u32 %v8380_v50, 16  ;;  %v8592_v60 = vshll.u32 %v8381_v57, 16 }
 0x532   : > { %9130 = vrot.lane.b32.xlu1 %v12633_v39, %s14408_s27  ;;  %v8596_v40 = vshrl.u32 %v8381_v57, 16  ;;  %v8602_v18 = vshll.u32 %v8405_v41, 16  ;;  %v10343_v44 = vshrl.u32 %v10052_v48, 16  ;;  %v10346_v31 = vshll.u32 %v10052_v48, 16  ;;  %v8383_v39 = vld [vmem:[#allocation2 + $0x64] sm:$0xf] }
 0x533   : > { %10738 = vrot.lane.b32.xlu0 %v12749_v23, %s14408_s27  ;;  %v8585_v52 = vrot.slane %v8583_v6, 4  ;;  %v8588_v11 = vrot.slane %v8586_v54, 5  ;;  %v10352_v27 = vshll.u32 %v10053_v43, 16  ;;  %v8594_v22 = vrot.slane %v8592_v60, 5  ;;  %v8406_v6 = vld [vmem:[#allocation2 + $0x68] sm:$0x1] }
 0x534   : > { %v8598_v20 = vrot.slane %v8596_v40, 4  ;;  %v8604_v49 = vrot.slane %v8602_v18, 5  ;;  %v10345_v56 = vrot.slane %v10343_v44, 4  ;;  %v10348_v35 = vrot.slane %v10346_v31, 5  ;;  %v17440_v59 = vpop.permute.xlu0 %10582 }
 0x535   : > { %v8589_v30 = vor.u32 %v8588_v11, %v8585_v52  ;;  %v10354_v55 = vrot.slane %v10352_v27, 5  ;;  %v10356_v21 = vshrl.u32 %v10053_v43, 16  ;;  %v10362_v50 = vshll.u32 %v10073_v12, 16  ;;  %v8990_v52 = vld [vmem:[#allocation2 + $0x6c] sm:$0xf] }
 0x536   : > { %10578 = vrot.lane.b32.xlu1 %v12717_v14, %s14408_s27  ;;  %v8599_v17 = vor.u32 %v8598_v20, %v8594_v22  ;;  %v12686_v33 = vrot.slane %v9881_v46, 9  ;;  %v9997_v42 = vrot.slane %v17434_v19, 5  ;;  %v10349_v41 = vor.u32 %v10348_v35, %v10345_v56  ;;  %v8384_v11 = vld [vmem:[#allocation2 + $0x6c] sm:$0xf] }
 0x537   : > { %9292 = vrot.lane.b32.xlu0 %v12666_v25, %s14408_s27  ;;  %v8590_v57 = vrot.slane %v8589_v30, 4  ;;  %v10358_v10 = vrot.slane %v10356_v21, 4  ;;  %v10000_v0 = vrot.slane %v9481_v3, 5  ;;  %v17445_v28 = vrot.slane %v9631_v8, 4  ;;  %v17467_v30 = vpop.permute.xlu1 %10558 }
 0x538   : > { %v8600_v34 = vrot.slane %v8599_v17, 4  ;;  %v10364_v48 = vrot.slane %v10362_v50, 5  ;;  %v9999_v43 = vrot.slane %v9997_v42, 4  ;;  %v10350_v23 = vrot.slane %v10349_v41, 4  ;;  %v8407_v17 = vld [vmem:[#allocation2 + $0x74] sm:$0x1] }
 0x539   : > { %v8595_v2 = vsel %vm14513_vm5, %v8590_v57, %v8594_v22  ;;  %v10359_v14 = vor.u32 %v10358_v10, %v10354_v55  ;;  %v9998_v25 = vsel %vm14521_vm6, %v12686_v33, %v9997_v42  ;;  %v17451_v54 = vrot.slane %v9634_v9, 5  ;;  %v17472_v41 = vld [vmem:[#allocation2 + $0x78] sm:$0xf] }
 0x53a   : > { %v9658_v12 = vshll.u32 %v17410_v32, 16  ;;  %v8605_v8 = vsel %vm14513_vm5, %v8600_v34, %v8604_v49  ;;  %v10001_v60 = vsel %vm14521_vm6, %v9999_v43, %v10000_v0  ;;  %v17458_v40 = vrot.slane %v9655_v37, 4  ;;  %v8385_v32 = vld [vmem:[#allocation2 + $0x70] sm:$0xf]  ;;  %v17462_v22 = vpop.permute.xlu0 %10744 }
 0x53b   : > { %v12634_v18 = vcombine.low %v8595_v2, %v8605_v8  ;;  %v10355_v44 = vsel %vm14513_vm5, %v10350_v23, %v10354_v55  ;;  %v10360_v3 = vrot.slane %v10359_v14, 4  ;;  %v12718_v31 = vcombine.low %v9998_v25, %v10001_v60 }
 0x53c   : > { %v9679_v9 = vshrl.u32 %v8990_v52, 16  ;;  %v8607_v27 = vshrl.u32 %v8382_v4, 16  ;;  %v8610_v46 = vshll.u32 %v8382_v4, 16  ;;  %v8616_v20 = vshll.u32 %v8383_v39, 16 }
 0x53d   : > { %9132 = vrot.lane.b32.xlu1 %v12634_v18, %s14408_s27  ;;  %v10365_v37 = vsel %vm14513_vm5, %v10360_v3, %v10364_v48  ;;  %v8620_v49 = vshrl.u32 %v8383_v39, 16  ;;  %v8626_v56 = vshll.u32 %v8406_v6, 16  ;;  %v17469_v50 = vrot.slane %v9658_v12, 5  ;;  %v17478_v6 = vld [vmem:[#allocation2 + $0x84] sm:$0xf]  ;;  %v17482_v3 = vpop.permute.xlu1 %10584 }
 0x53e   : > { %v12750_v35 = vcombine.low %v10355_v44, %v10365_v37  ;;  %v8609_v55 = vrot.slane %v8607_v27, 4  ;;  %v8612_v21 = vrot.slane %v8610_v46, 5  ;;  %v12667_v33 = vcombine.low %v8990_v52, %v17348_v15  ;;  %v17480_v12 = vpop.permute.xlu0 %10720  ;;  %v8386_v27 = vld [vmem:[#allocation2 + $0x78] sm:$0xf] }
 0x53f   : > { %v8618_v42 = vrot.slane %v8616_v20, 5  ;;  %v8622_v57 = vrot.slane %v8620_v49, 4  ;;  %v9682_v10 = vshll.u32 %v8990_v52, 16  ;;  %v8631_v4 = vshrl.u32 %v8384_v11, 16  ;;  %v8387_v49 = vld [vmem:[#allocation2 + $0x7c] sm:$0xf] }
 0x540   : > { %10740 = vrot.lane.b32.xlu0 %v12750_v35, %s14408_s27  ;;  %v8613_v0 = vor.u32 %v8612_v21, %v8609_v55  ;;  %v8634_v34 = vshll.u32 %v8384_v11, 16  ;;  %v8628_v43 = vrot.slane %v8626_v56, 5  ;;  %v8640_v39 = vshll.u32 %v8385_v32, 16  ;;  %v8408_v56 = vld [vmem:[#allocation2 + $0x80] sm:$0x1] }
 0x541   : > { %10580 = vrot.lane.b32.xlu1 %v12718_v31, %s14408_s27  ;;  %v8623_v48 = vor.u32 %v8622_v57, %v8618_v42  ;;  %v8644_v2 = vshrl.u32 %v8385_v32, 16  ;;  %v17476_v23 = vrot.slane %v9679_v9, 4  ;;  %v8633_v15 = vrot.slane %v8631_v4, 4 }
 0x542   : > { %v8614_v14 = vrot.slane %v8613_v0, 4  ;;  %v8636_v25 = vrot.slane %v8634_v34, 5  ;;  %v8642_v60 = vrot.slane %v8640_v39, 5  ;;  %v8650_v44 = vshll.u32 %v8407_v17, 16  ;;  %v14258_v17 = vld [vmem:[#allocation2 + $0xa8] sm:$0xf] }
 0x543   : > { %v8624_v8 = vrot.slane %v8623_v48, 4  ;;  %v8646_v18 = vrot.slane %v8644_v2, 4  ;;  %v17484_v52 = vrot.slane %v9682_v10, 5  ;;  %v12668_v31 = vcombine.low %v17472_v41, %v17378_v47  ;;  %v17503_v39 = vld [vmem:[#allocation2 + $0x9c] sm:$0xf] }
 0x544   : > { %9294 = vrot.lane.b32.xlu0 %v12667_v33, %s14408_s27  ;;  %v8619_v11 = vsel %vm14513_vm5, %v8614_v14, %v8618_v42  ;;  %v8637_v9 = vor.u32 %v8636_v25, %v8633_v15  ;;  %v9703_v32 = vshrl.u32 %v17472_v41, 16  ;;  %v8652_v20 = vrot.slane %v8650_v44, 5  ;;  %v14259_v33 = vld [vmem:[#allocation2 + $0xac] sm:$0xf] }
 0x545   : > { %v8629_v46 = vsel %vm14513_vm5, %v8624_v8, %v8628_v43  ;;  %v8647_v37 = vor.u32 %v8646_v18, %v8642_v60  ;;  %v9706_v55 = vshll.u32 %v17472_v41, 16  ;;  %v12735_v42 = vcombine.low %v14258_v17, %v14259_v33  ;;  %v17509_v8 = vpop.permute.xlu1 %10560  ;;  %v8409_v41 = vld [vmem:[#allocation2 + $0x8c] sm:$0x1] }
 0x546   : > { %v12635_v35 = vcombine.low %v8619_v11, %v8629_v46  ;;  %v8638_v21 = vrot.slane %v8637_v9, 4  ;;  %v12669_v47 = vcombine.low %v17478_v6, %v17405_v45  ;;  %v8655_v10 = vshrl.u32 %v8386_v27, 16  ;;  %v17505_v2 = vpop.permute.xlu0 %10746  ;;  %v14260_v11 = vld [vmem:[#allocation2 + $0xa4] sm:$0x1] }
 0x547   : > { %v8648_v57 = vrot.slane %v8647_v37, 4  ;;  %v8658_v0 = vshll.u32 %v8386_v27, 16  ;;  %v10864_v34 = vsel %vm1282_vm7, %v12735_v42, %v17432_v63  ;;  %v8664_v48 = vshll.u32 %v8387_v49, 16 }
 0x548   : > { %9134 = vrot.lane.b32.xlu1 %v12635_v35, %s14408_s27  ;;  %9296 = vrot.lane.b32.xlu0 %v12668_v31, %s14408_s27  ;;  %v8643_v4 = vsel %vm14513_vm5, %v8638_v21, %v8642_v60  ;;  %v8668_v43 = vshrl.u32 %v8387_v49, 16  ;;  %v8657_v14 = vrot.slane %v8655_v10, 4  ;;  %v8674_v25 = vshll.u32 %v8408_v56, 16  ;;  %v17517_v49 = vld [vmem:[#allocation2 + $0xa0] sm:$0xf] }
 0x549   : > { %v8653_v45 = vsel %vm14513_vm5, %v8648_v57, %v8652_v20  ;;  %11134 = vmatprep.mubr.bf16.mxu1 %v10864_v34  ;;  %v8660_v15 = vrot.slane %v8658_v0, 5  ;;  %v8666_v60 = vrot.slane %v8664_v48, 5  ;;  %v9794_v63 = vshll.u32 %v14260_v11, 16  ;;  %v14262_v48 = vld [vmem:[#allocation2 + $0x14] sm:$0x1] }
 0x54a   : > { %v12636_v18 = vcombine.low %v8643_v4, %v8653_v45  ;;  %v8670_v44 = vrot.slane %v8668_v43, 4  ;;  %v17511_v31 = vrot.slane %v9703_v32, 4  ;;  %v9775_v27 = vshrl.u32 %v17503_v39, 16  ;;  %v14263_v45 = vld [vmem:[#allocation2 + $0x10] sm:$0xf] }
 0x54b   : > { %v8661_v9 = vor.u32 %v8660_v15, %v8657_v14  ;;  %v9778_v46 = vshll.u32 %v17503_v39, 16  ;;  %v8676_v20 = vrot.slane %v8674_v25, 5  ;;  %v9784_v56 = vshll.u32 %v17517_v49, 16  ;;  %v17523_v4 = vpop.permute.xlu0 %10722  ;;  %v17527_v15 = vld [vmem:[#allocation2 + $0xa8] sm:$0xf]  ;;  %v17529_v25 = vpop.permute.xlu1 %10586 }
 0x54c   : > { %9136 = vrot.lane.b32.xlu1 %v12636_v18, %s14408_s27  ;;  %9298 = vrot.lane.b32.xlu0 %v12669_v47, %s14408_s27  ;;  %v8671_v37 = vor.u32 %v8670_v44, %v8666_v60  ;;  %v9788_v35 = vshrl.u32 %v17517_v49, 16  ;;  %v9796_v32 = vrot.slane %v9794_v63, 5  ;;  %v9777_v17 = vrot.slane %v9775_v27, 4  ;;  %v14264_v27 = vld [vmem:[#allocation2 + $0x18] sm:$0xf] }
 0x54d   : > { %v8662_v21 = vrot.slane %v8661_v9, 4  ;;  %v9780_v33 = vrot.slane %v9778_v46, 5  ;;  %v9786_v57 = vrot.slane %v9784_v56, 5  ;;  %v9493_v0 = vor.u32 %v17266_v58, %v17245_v16 }
 0x54e   : > { %v8672_v42 = vrot.slane %v8671_v37, 4  ;;  %v9790_v10 = vrot.slane %v9788_v35, 4  ;;  %v9506_v43 = vshll.u32 %v14262_v48, 16  ;;  %v9496_v14 = vshll.u32 %v14263_v45, 16  ;;  %v14266_v35 = vld [vmem:[#allocation2 + $0xb4] sm:$0xf] }
 0x54f   : > { %v8667_v47 = vsel %vm14513_vm5, %v8662_v21, %v8666_v60  ;;  %v9781_v34 = vor.u32 %v9780_v33, %v9777_v17  ;;  %v9494_v11 = vrot.slane %v9493_v0, 4  ;;  %v9500_v16 = vshrl.u32 %v14263_v45, 16  ;;  %v14265_v60 = vld [vmem:[#allocation2 + $0x1c] sm:$0xf]  ;;  %v14267_v21 = vld [vmem:[#allocation2 + $0xb8] sm:$0xf] }
 0x550   : > { %v8677_v18 = vsel %vm14513_vm5, %v8672_v42, %v8676_v20  ;;  %v9791_v44 = vor.u32 %v9790_v10, %v9786_v57  ;;  %v9498_v9 = vrot.slane %v9496_v14, 5  ;;  %v12723_v46 = vcombine.low %v14264_v27, %v14265_v60  ;;  %v14269_v27 = vld [vmem:[#allocation2 + $0xb0] sm:$0x1] }
 0x551   : > { %v12637_v58 = vcombine.low %v8667_v47, %v8677_v18  ;;  %v9782_v63 = vrot.slane %v9781_v34, 4  ;;  %v9502_v56 = vrot.slane %v9500_v16, 4  ;;  %v12736_v17 = vcombine.low %v14266_v35, %v14267_v21  ;;  %v17540_v47 = vld [vmem:[#allocation2 + $0x90] sm:$0xf]  ;;  %v17546_v18 = vpop.permute.xlu0 %10748 }
 0x552   : > { %v9792_v37 = vrot.slane %v9791_v44, 4  ;;  %v9799_v33 = vshrl.u32 %v17527_v15, 16  ;;  %v9508_v42 = vrot.slane %v9506_v43, 5  ;;  %v10816_v10 = vsel %vm1282_vm7, %v12723_v46, %v17443_v29  ;;  %v14204_v29 = vld [vmem:[%s18296_s4] sm:$0xff]   ;;  %v17551_v44 = vld [vmem:[#allocation2 + $0xac] sm:$0xf] }
 0x553   : > { %9138 = vrot.lane.b32.xlu1 %v12637_v58, %s14408_s27  ;;  %v9787_v20 = vsel %vm14513_vm5, %v9782_v63, %v9786_v57  ;;  %v9802_v0 = vshll.u32 %v17527_v15, 16  ;;  %v9499_v48 = vsel %vm14513_vm5, %v9494_v11, %v9498_v9  ;;  %v9503_v45 = vor.u32 %v9502_v56, %v9498_v9  ;;  %11038 = vmatprep.mubr.bf16.mxu0 %v10816_v10  ;;  %v17555_v58 = vpop.permute.xlu1 %10562  ;;  %v14206_v9 = vld [vmem:[%s18296_s4 + $0x48] sm:$0xff]  }
 0x554   : > { %v9797_v34 = vsel %vm14513_vm5, %v9792_v37, %v9796_v32  ;;  %v9801_v14 = vrot.slane %v9799_v33, 4  ;;  %v9808_v16 = vshll.u32 %v17551_v44, 16  ;;  %v9812_v32 = vshrl.u32 %v17551_v44, 16  ;;  %v8388_v37 = vld [vmem:[#allocation2 + $0x84] sm:$0xf] }
 0x555   : > { %v12703_v57 = vcombine.low %v9787_v20, %v9797_v34  ;;  %v9804_v43 = vrot.slane %v9802_v0, 5  ;;  %v9504_v11 = vrot.slane %v9503_v45, 4  ;;  %v10868_v63 = vsel %vm1282_vm7, %v12736_v17, %v17462_v22  ;;  %v8389_v20 = vld [vmem:[#allocation2 + $0x88] sm:$0xf] }
 0x556   : > { %v9818_v60 = vshll.u32 %v14269_v27, 16  ;;  %v12670_v46 = vcombine.low %v17540_v47, %v17434_v19  ;;  %v9810_v21 = vrot.slane %v9808_v16, 5  ;;  %v9814_v33 = vrot.slane %v9812_v32, 4  ;;  %v14209_v45 = vld [vmem:[%s18296_s4 + $0x8] sm:$0xff]  }
 0x557   : > { %v10800_v56 = vsel %vm1282_vm7, %v12703_v57, %v17440_v59  ;;  %v9805_v35 = vor.u32 %v9804_v43, %v9801_v14  ;;  %v17568_v22 = vrot.slane %v9706_v55, 5  ;;  %v9727_v17 = vshrl.u32 %v17478_v6, 16  ;;  %v14228_v16 = vld [vmem:[%s18296_s4 + $0x108] sm:$0xff]   ;;  %v17590_v27 = vpop.permute.xlu1 %10588 }
 0x558   : > { %v9509_v10 = vsel %vm14513_vm5, %v9504_v11, %v9508_v42  ;;  %11135 = vmatmul.mubr.bf16.vlgmr.msra.gmra.mrb[0].mxu1 %v10800_v56  ;;  %v9820_v0 = vrot.slane %v9818_v60, 5  ;;  %9300 = vrot.lane.b32.xlu0 %v12670_v46, %s14408_s27  ;;  %v9815_v34 = vor.u32 %v9814_v33, %v9810_v21  ;;  %v8679_v55 = vshrl.u32 %v8388_v37, 16  ;;  %v14271_v33 = vld [vmem:[#allocation2 + $0x24] sm:$0xf] }
 0x559   : > { %v12691_v19 = vcombine.low %v9499_v48, %v9509_v10  ;;  %13443 = vmatpush3.bf16.msra.mxu1 %v14204_v29  ;;  %v9806_v59 = vrot.slane %v9805_v35, 4  ;;  %11142 = vmatprep.mubr.bf16.mxu1 %v10868_v63  ;;  %v9730_v14 = vshll.u32 %v17478_v6, 16  ;;  %v8682_v57 = vshll.u32 %v8388_v37, 16  ;;  %v14211_v48 = vld [vmem:[%s18296_s4 + $0x50] sm:$0xff]   ;;  %v17581_v29 = vpop.permute.xlu0 %10724 }
 0x55a   : > { %13444 = vmatprep.subr.bf16.mxu1 %v14206_v9  ;;  %v8688_v42 = vshll.u32 %v8389_v20, 16  ;;  %v8692_v43 = vshrl.u32 %v8389_v20, 16  ;;  %v9816_v63 = vrot.slane %v9815_v34, 4  ;;  %v8681_v9 = vrot.slane %v8679_v55, 4 }
 0x55b   : > { %v10752_v32 = vsel %vm1282_vm7, %v12691_v19, %v17467_v30  ;;  %v9811_v11 = vsel %vm14513_vm5, %v9806_v59, %v9810_v21  ;;  %v8684_v60 = vrot.slane %v8682_v57, 5  ;;  %v8698_v56 = vshll.u32 %v8409_v41, 16  ;;  %v14270_v30 = vld [vmem:[%s18296_s4 + $0x100] sm:$0xff]   ;;  %v14272_v21 = vld [vmem:[#allocation2 + $0x28] sm:$0xf] }
 0x55c   : > { %11039 = vmatmul.mubr.bf16.vlgmr.msra.gmra.mrb[0].mxu0 %v10752_v32  ;;  %v8690_v46 = vrot.slane %v8688_v42, 5  ;;  %v8694_v37 = vrot.slane %v8692_v43, 4  ;;  %v9821_v35 = vsel %vm14513_vm5, %v9816_v63, %v9820_v0  ;;  %v12724_v20 = vcombine.low %v14271_v33, %v14272_v21  ;;  %v14273_v19 = vld [vmem:[#allocation2 + $0x1c] sm:$0xf]  ;;  %v14212_v0 = vld [vmem:[%s18296_s4 + $0x10] sm:$0xff]  }
 0x55d   : > { %13445 = vmatpush3.bf16.msra.mxu1 %v14209_v45  ;;  %13655 = vmatpush3.bf16.msra.mxu0 %v14270_v30  ;;  %v9517_v10 = vor.u32 %v17298_v53, %v17275_v5  ;;  %v9520_v59 = vshll.u32 %v14273_v19, 16  ;;  %v12704_v34 = vcombine.low %v9811_v11, %v9821_v35  ;;  %v8685_v55 = vor.u32 %v8684_v60, %v8681_v9  ;;  %v17602_v45 = vld [vmem:[#allocation2 + $0xb4] sm:$0xf]  ;;  %v14274_v60 = vld [vmem:[#allocation2 + $0x20] sm:$0x1] }
 0x55e   : > { %v8695_v41 = vor.u32 %v8694_v37, %v8690_v46  ;;  %v8700_v57 = vrot.slane %v8698_v56, 5  ;;  %13446 = vmatprep.subr.bf16.mxu1 %v14211_v48  ;;  %13656 = vmatprep.subr.bf16.mxu0 %v14228_v16  ;;  %v14238_v42 = vld [vmem:[%s18296_s4 + $0x110] sm:$0xff]   ;;  %v10820_v5 = vsel %vm1282_vm7, %v12724_v20, %v17480_v12  ;;  %v9524_v32 = vshrl.u32 %v14273_v19, 16  ;;  %v14214_v48 = vld [vmem:[%s18296_s4 + $0x58] sm:$0xff]   ;;  %v17618_v56 = vpop.permute.xlu0 %9278  ;;  %v14275_v30 = vld [vmem:[#allocation2 + $0xc0] sm:$0xf] }
 0x55f   : > { %v17609_v53 = vrot.slane %v9517_v10, 4  ;;  %v17611_v43 = vrot.slane %v9520_v59, 5  ;;  %v10804_v11 = vsel %vm1282_vm7, %v12704_v34, %v17482_v3  ;;  %v8686_v63 = vrot.slane %v8685_v55, 4  ;;  %11046 = vmatprep.mubr.bf16.mxu0 %v10820_v5  ;;  %v14276_v33 = vld [vmem:[#allocation2 + $0xc4] sm:$0xf]  ;;  %v17625_v3 = vpop.permute.xlu1 %10564  ;;  %v14216_v55 = vld [vmem:[%s18296_s4 + $0x18] sm:$0xff]  }
 0x560   : > { %v8696_v9 = vrot.slane %v8695_v41, 4  ;;  %v9530_v37 = vshll.u32 %v14274_v60, 16  ;;  %v9526_v35 = vrot.slane %v9524_v32, 4  ;;  %11143 = vmatmul.mubr.bf16.gmra.mrb[4].mxu1 %v10804_v11  ;;  %v12737_v21 = vcombine.low %v14275_v30, %v14276_v33  ;;  %v8390_v41 = vld [vmem:[#allocation2 + $0x90] sm:$0xf] }
 0x561   : > { %v9523_v12 = vsel %vm14513_vm5, %v17609_v53, %v17611_v43  ;;  %v9823_v20 = vshrl.u32 %v17602_v45, 16  ;;  %13657 = vmatpush3.bf16.msra.mxu0 %v14228_v16  ;;  %v8691_v10 = vsel %vm14513_vm5, %v8686_v63, %v8690_v46  ;;  %13447 = vmatpush3.bf16.msra.mxu1 %v14212_v0  ;;  %v9826_v34 = vshll.u32 %v17602_v45, 16  ;;  %v14245_v16 = vld [vmem:[%s18296_s4 + $0x118] sm:$0xff]   ;;  %v14218_v53 = vld [vmem:[%s18296_s4 + $0x60] sm:$0xff]   ;;  %v8391_v30 = vld [vmem:[#allocation2 + $0x94] sm:$0xf] }
 0x562   : > { %v8701_v19 = vsel %vm14513_vm5, %v8696_v9, %v8700_v57  ;;  %v9532_v59 = vrot.slane %v9530_v37, 5  ;;  %13658 = vmatprep.subr.bf16.mxu0 %v14238_v42  ;;  %v9527_v46 = vor.u32 %v9526_v35, %v17611_v43  ;;  %v10872_v57 = vsel %vm1282_vm7, %v12737_v21, %v17505_v2  ;;  %13448 = vmatprep.subr.bf16.mxu1 %v14214_v48  ;;  %v17644_v11 = vld [vmem:[#allocation2 + $0xb8] sm:$0xf]  ;;  %v14278_v60 = vld [vmem:[#allocation2 + $0xbc] sm:$0x1] }
 0x563   : > { %v12638_v5 = vcombine.low %v8691_v10, %v8701_v19  ;;  %v9825_v0 = vrot.slane %v9823_v20, 4  ;;  %v9828_v32 = vrot.slane %v9826_v34, 5  ;;  %v9832_v63 = vshll.u32 %v17644_v11, 16  ;;  %11150 = vmatprep.mubr.bf16.mxu1 %v10872_v57  ;;  %v8410_v19 = vld [vmem:[#allocation2 + $0x98] sm:$0x1]  ;;  %v14219_v34 = vld [vmem:[%s18296_s4 + $0x20] sm:$0xff]   ;;  %v17654_v57 = vpop.permute.xlu0 %10726 }
 0x564   : > { %v9836_v9 = vshrl.u32 %v17644_v11, 16  ;;  %v9842_v37 = vshll.u32 %v14278_v60, 16  ;;  %v9528_v2 = vrot.slane %v9527_v46, 4  ;;  %v12671_v43 = vcombine.low %v17503_v39, %v17517_v49 }
 0x565   : > { %9140 = vrot.lane.b32.xlu1 %v12638_v5, %s14408_s27  ;;  %v8703_v48 = vshrl.u32 %v8390_v41, 16  ;;  %v8706_v35 = vshll.u32 %v8390_v41, 16  ;;  %13659 = vmatpush3.bf16.msra.mxu0 %v14238_v42  ;;  %v9829_v33 = vor.u32 %v9828_v32, %v9825_v0  ;;  %v9834_v21 = vrot.slane %v9832_v63, 5  ;;  %v17662_v41 = vpop.permute.xlu1 %9118 }
 0x566   : > { %v9838_v20 = vrot.slane %v9836_v9, 4  ;;  %v9844_v10 = vrot.slane %v9842_v37, 5  ;;  %13449 = vmatpush3.bf16.msra.mxu1 %v14216_v55  ;;  %13660 = vmatprep.subr.bf16.mxu0 %v14245_v16  ;;  %v9533_v5 = vsel %vm14513_vm5, %v9528_v2, %v9532_v59  ;;  %v8712_v42 = vshll.u32 %v8391_v30, 16  ;;  %v14221_v55 = vld [vmem:[%s18296_s4 + $0x68] sm:$0xff]   ;;  %v14279_v59 = vld [vmem:[#allocation2 + $0x30] sm:$0xf] }
 0x567   : > { %9302 = vrot.lane.b32.xlu0 %v12671_v43, %s14408_s27  ;;  %v8705_v39 = vrot.slane %v8703_v48, 4  ;;  %v8708_v49 = vrot.slane %v8706_v35, 5  ;;  %13450 = vmatprep.subr.bf16.mxu1 %v14218_v53  ;;  %v12692_v46 = vcombine.low %v9523_v12, %v9533_v5  ;;  %v9830_v0 = vrot.slane %v9829_v33, 4  ;;  %v17664_v2 = vld [vmem:[#allocation2 + $0x34] sm:$0xf] }
 0x568   : > { %v9839_v32 = vor.u32 %v9838_v20, %v9834_v21  ;;  %v8716_v63 = vshrl.u32 %v8391_v30, 16  ;;  %v8714_v60 = vrot.slane %v8712_v42, 5  ;;  %v8722_v37 = vshll.u32 %v8410_v19, 16  ;;  %v14223_v30 = vld [vmem:[%s18296_s4 + $0x28] sm:$0xff]   ;;  %v17683_v42 = vld [vmem:[#allocation2 + $0xc0] sm:$0xf] }
 0x569   : > { %v8709_v9 = vor.u32 %v8708_v49, %v8705_v39  ;;  %v12725_v43 = vcombine.low %v14279_v59, %v17664_v2  ;;  %13661 = vmatpush3.bf16.msra.mxu0 %v14245_v16  ;;  %v10756_v53 = vsel %vm1282_vm7, %v12692_v46, %v17509_v8  ;;  %v9835_v48 = vsel %vm14513_vm5, %v9830_v0, %v9834_v21  ;;  %v14225_v8 = vld [vmem:[%s18296_s4 + $0x70] sm:$0xff]   ;;  %v14281_v5 = vld [vmem:[#allocation2 + $0x28] sm:$0xf]  ;;  %v17685_v46 = vpop.permute.xlu0 %9280 }
 0x56a   : > { %v9840_v35 = vrot.slane %v9839_v32, 4  ;;  %v8718_v12 = vrot.slane %v8716_v63, 4  ;;  %13451 = vmatpush3.bf16.msra.mxu1 %v14219_v34  ;;  %11047 = vmatmul.mubr.bf16.gmra.mrb[4].mxu0 %v10756_v53  ;;  %v8724_v20 = vrot.slane %v8722_v37, 5  ;;  %v9541_v16 = vor.u32 %v17325_v26, %v17305_v36  ;;  %v17689_v32 = vpop.permute.xlu1 %10566  ;;  %v14283_v37 = vld [vmem:[#allocation2 + $0xcc] sm:$0xf]  ;;  %v14226_v53 = vld [vmem:[%s18296_s4 + $0x30] sm:$0xff]  }
 0x56b   : > { %v8710_v33 = vrot.slane %v8709_v9, 4  ;;  %v10824_v19 = vsel %vm1282_vm7, %v12725_v43, %v17523_v4  ;;  %13452 = vmatprep.subr.bf16.mxu1 %v14221_v55  ;;  %v9544_v39 = vshll.u32 %v14281_v5, 16  ;;  %v9548_v49 = vshrl.u32 %v14281_v5, 16  ;;  %v14282_v55 = vld [vmem:[#allocation2 + $0x2c] sm:$0x1] }
 0x56c   : > { %v9845_v21 = vsel %vm14513_vm5, %v9840_v35, %v9844_v10  ;;  %v8719_v34 = vor.u32 %v8718_v12, %v8714_v60  ;;  %11054 = vmatprep.mubr.bf16.mxu0 %v10824_v19  ;;  %v9542_v26 = vrot.slane %v9541_v16, 4  ;;  %v9554_v0 = vshll.u32 %v14282_v55, 16  ;;  %v14284_v59 = vld [vmem:[#allocation2 + $0xd0] sm:$0xf] }
 0x56d   : > { %v12705_v4 = vcombine.low %v9835_v48, %v9845_v21  ;;  %v8715_v36 = vsel %vm14513_vm5, %v8710_v33, %v8714_v60  ;;  %v9546_v10 = vrot.slane %v9544_v39, 5  ;;  %v9550_v9 = vrot.slane %v9548_v49, 4  ;;  %v14227_v33 = vld [vmem:[%s18296_s4 + $0x78] sm:$0xff]  }
 0x56e   : > { %v8720_v63 = vrot.slane %v8719_v34, 4  ;;  %v12738_v43 = vcombine.low %v14283_v37, %v14284_v59  ;;  %13453 = vmatpush3.bf16.msra.mxu1 %v14223_v30  ;;  %v9556_v60 = vrot.slane %v9554_v0, 5  ;;  %v9847_v35 = vshrl.u32 %v17683_v42, 16  ;;  %v8392_v21 = vld [vmem:[#allocation2 + $0x9c] sm:$0xf] }
 0x56f   : > { %v10808_v48 = vsel %vm1282_vm7, %v12705_v4, %v17529_v25  ;;  %v9850_v12 = vshll.u32 %v17683_v42, 16  ;;  %13454 = vmatprep.subr.bf16.mxu1 %v14225_v8  ;;  %v9547_v19 = vsel %vm14513_vm5, %v9542_v26, %v9546_v10  ;;  %v9551_v16 = vor.u32 %v9550_v9, %v9546_v10  ;;  %v17707_v8 = vld [vmem:[#allocation2 + $0xc4] sm:$0xf]  ;;  %v17710_v4 = vld [vmem:[#allocation2 + $0xa0] sm:$0xf] }
 0x570   : > { %v8725_v30 = vsel %vm14513_vm5, %v8720_v63, %v8724_v20  ;;  %11151 = vmatmul.mubr.bf16.gmra.mrb[8].mxu1 %v10808_v48  ;;  %v10876_v25 = vsel %vm1282_vm7, %v12738_v43, %v17546_v18  ;;  %v9849_v5 = vrot.slane %v9847_v35, 4  ;;  %v9856_v49 = vshll.u32 %v17707_v8, 16  ;;  %v14286_v26 = vld [vmem:[#allocation2 + $0xc8] sm:$0x1]  ;;  %v14231_v18 = vld [vmem:[%s18296_s4 + $0x38] sm:$0xff]   ;;  %v17721_v48 = vpop.permute.xlu1 %9120 }
 0x571   : > { %v12639_v34 = vcombine.low %v8715_v36, %v8725_v30  ;;  %v9852_v39 = vrot.slane %v9850_v12, 5  ;;  %11158 = vmatprep.mubr.bf16.mxu1 %v10876_v25  ;;  %v9552_v20 = vrot.slane %v9551_v16, 4  ;;  %v9860_v55 = vshrl.u32 %v17707_v8, 16  ;;  %v17718_v36 = vpop.permute.xlu0 %10728  ;;  %v8411_v37 = vld [vmem:[#allocation2 + $0xa4] sm:$0x1] }
 0x572   : > { %v9866_v0 = vshll.u32 %v14286_v26, 16  ;;  %v12672_v63 = vcombine.low %v17527_v15, %v17551_v44  ;;  %13455 = vmatpush3.bf16.msra.mxu1 %v14226_v53  ;;  %v9858_v9 = vrot.slane %v9856_v49, 5  ;;  %v8727_v59 = vshrl.u32 %v8392_v21, 16 }
 0x573   : > { %9142 = vrot.lane.b32.xlu1 %v12639_v34, %s14408_s27  ;;  %v9853_v10 = vor.u32 %v9852_v39, %v9849_v5  ;;  %v8730_v43 = vshll.u32 %v8392_v21, 16  ;;  %13456 = vmatprep.subr.bf16.mxu1 %v14227_v33  ;;  %v9557_v15 = vsel %vm14513_vm5, %v9552_v20, %v9556_v60  ;;  %v9862_v44 = vrot.slane %v9860_v55, 4  ;;  %v14287_v20 = vld [vmem:[#allocation2 + $0x3c] sm:$0xf]  ;;  %v17732_v55 = vld [vmem:[#allocation2 + $0x40] sm:$0xf] }
 0x574   : > { %v9868_v53 = vrot.slane %v9866_v0, 5  ;;  %9304 = vrot.lane.b32.xlu0 %v12672_v63, %s14408_s27  ;;  %v8736_v35 = vshll.u32 %v17710_v4, 16  ;;  %v12693_v12 = vcombine.low %v9547_v19, %v9557_v15  ;;  %v8729_v16 = vrot.slane %v8727_v59, 4  ;;  %v8798_v15 = vld [vmem:[#allocation2] sm:$0xe] }
 0x575   : > { %v9854_v30 = vrot.slane %v9853_v10, 4  ;;  %v8732_v25 = vrot.slane %v8730_v43, 5  ;;  %v9863_v34 = vor.u32 %v9862_v44, %v9858_v9  ;;  %v8740_v21 = vshrl.u32 %v17710_v4, 16  ;;  %v17741_v44 = vpop.permute.xlu1 %10568 }
 0x576   : > { %v8738_v5 = vrot.slane %v8736_v35, 5  ;;  %v8746_v33 = vshll.u32 %v8411_v37, 16  ;;  %13457 = vmatpush3.bf16.msra.mxu1 %v14231_v18  ;;  %v10760_v39 = vsel %vm1282_vm7, %v12693_v12, %v17555_v58  ;;  %v12726_v19 = vcombine.low %v14287_v20, %v17732_v55  ;;  %v17737_v18 = vpop.permute.xlu0 %9282 }
 0x577   : > { %v9859_v60 = vsel %vm14513_vm5, %v9854_v30, %v9858_v9  ;;  %v8733_v49 = vor.u32 %v8732_v25, %v8729_v16  ;;  %11055 = vmatmul.mubr.bf16.gmra.mrb[8].mxu0 %v10760_v39  ;;  %v9864_v26 = vrot.slane %v9863_v34, 4  ;;  %v8742_v0 = vrot.slane %v8740_v21, 4  ;;  %v14289_v9 = vld [vmem:[#allocation2 + $0x34] sm:$0xf]  ;;  %v14290_v16 = vld [vmem:[#allocation2 + $0x38] sm:$0x1] }
 0x578   : > { %v8748_v63 = vrot.slane %v8746_v33, 5  ;;  %v9565_v10 = vor.u32 %v17355_v1, %v17333_v13  ;;  %v10828_v58 = vsel %vm1282_vm7, %v12726_v19, %v17581_v29  ;;  %v9568_v59 = vshll.u32 %v14289_v9, 16  ;;  %v8394_v19 = vld [vmem:[#allocation2 + $0xa8] sm:$0xf] }
 0x579   : > { %v8734_v37 = vrot.slane %v8733_v49, 4  ;;  %v9572_v43 = vshrl.u32 %v14289_v9, 16  ;;  %v9869_v35 = vsel %vm14513_vm5, %v9864_v26, %v9868_v53  ;;  %v8743_v12 = vor.u32 %v8742_v0, %v8738_v5  ;;  %11062 = vmatprep.mubr.bf16.mxu0 %v10828_v58  ;;  %v14291_v49 = vld [vmem:[#allocation2 + $0x4] sm:$0xf]  ;;  %v17751_v58 = vld [vmem:[#allocation2 + $0xac] sm:$0xf] }
 0x57a   : > { %v9566_v30 = vrot.slane %v9565_v10, 4  ;;  %v9578_v25 = vshll.u32 %v14290_v16, 16  ;;  %v12706_v13 = vcombine.low %v9859_v60, %v9869_v35  ;;  %v9570_v34 = vrot.slane %v9568_v59, 5  ;;  %v14292_v10 = vld [vmem:[#allocation2 + $0x8] sm:$0x1]  ;;  %v17761_v16 = vpop.permute.xlu1 %9122 }
 0x57b   : > { %v8739_v1 = vsel %vm14513_vm5, %v8734_v37, %v8738_v5  ;;  %v9574_v29 = vrot.slane %v9572_v43, 4  ;;  %v8744_v21 = vrot.slane %v8743_v12, 4  ;;  %v12595_v39 = vrot.slane %v8798_v15, 9  ;;  %v14293_v35 = vld [vmem:[#allocation2] sm:$0xf] }
 0x57c   : > { %v9580_v33 = vrot.slane %v9578_v25, 5  ;;  %v8864_v20 = vrot.slane %v14291_v49, 5  ;;  %v10812_v53 = vsel %vm1282_vm7, %v12706_v13, %v17590_v27  ;;  %v9571_v26 = vsel %vm14513_vm5, %v9566_v30, %v9570_v34  ;;  %v17759_v27 = vpop.permute.xlu0 %10730  ;;  %v17766_v25 = vld [vmem:[#allocation2 + $0xb0] sm:$0x1] }
 0x57d   : > { %v9575_v0 = vor.u32 %v9574_v29, %v9570_v34  ;;  %v8867_v60 = vrot.slane %v14292_v10, 5  ;;  %v8749_v5 = vsel %vm14513_vm5, %v8744_v21, %v8748_v63  ;;  %11159 = vmatmul.mubr.bf16.gmra.mrb[12].mxu1 %v10812_v53  ;;  %v12673_v59 = vcombine.low %v17602_v45, %v17644_v11  ;;  %v14294_v10 = vld [vmem:[#allocation2 + $0x48] sm:$0xf] }
 0x57e   : > { %v8865_v37 = vsel %vm14521_vm6, %v12595_v39, %v8864_v20  ;;  %v8866_v9 = vrot.slane %v8864_v20, 4  ;;  %v12640_v43 = vcombine.low %v8739_v1, %v8749_v5  ;;  %v12611_v12 = vcombine.low %v14293_v35, %v14291_v49 }
 0x57f   : > { %v9576_v15 = vrot.slane %v9575_v0, 4  ;;  %v8751_v30 = vshrl.u32 %v8394_v19, 16  ;;  %9306 = vrot.lane.b32.xlu0 %v12673_v59, %s14408_s27  ;;  %v8754_v13 = vshll.u32 %v8394_v19, 16  ;;  %v8760_v34 = vshll.u32 %v17751_v58, 16 }
 0x580   : > { %v8868_v63 = vsel %vm14521_vm6, %v8866_v9, %v8867_v60  ;;  %v8764_v45 = vshrl.u32 %v17751_v58, 16  ;;  %9144 = vrot.lane.b32.xlu1 %v12640_v43, %s14408_s27  ;;  %v9312_v29 = vsel %vm1282_vm7, %v12611_v12, %v17662_v41  ;;  %v8770_v0 = vshll.u32 %v17766_v25, 16  ;;  %v17778_v60 = vld [vmem:[#allocation2 + $0x4c] sm:$0xf]  ;;  %v14296_v9 = vld [vmem:[#allocation2 + $0x40] sm:$0xf] }
 0x581   : > { %v9581_v11 = vsel %vm14513_vm5, %v9576_v15, %v9580_v33  ;;  %v12643_v1 = vcombine.low %v8865_v37, %v8868_v63  ;;  %v8753_v21 = vrot.slane %v8751_v30, 4  ;;  %v8756_v49 = vrot.slane %v8754_v13, 5  ;;  %v8799_v43 = vld [vmem:[#allocation2 + $0xc] sm:$0xe]  ;;  %v17789_v63 = vpop.permute.xlu1 %10570  ;;  %v14297_v13 = vld [vmem:[#allocation2 + $0x44] sm:$0x1] }
 0x582   : > { %v12694_v39 = vcombine.low %v9571_v26, %v9581_v11  ;;  %v8762_v20 = vrot.slane %v8760_v34, 5  ;;  %v8766_v53 = vrot.slane %v8764_v45, 4  ;;  %v12727_v5 = vcombine.low %v14294_v10, %v17778_v60 }
 0x583   : > { %v9376_v19 = vsel %vm1282_vm7, %v12643_v1, %v17618_v56  ;;  %v9589_v33 = vor.u32 %v17389_v62, %v17365_v24  ;;  %v8757_v26 = vor.u32 %v8756_v49, %v8753_v21  ;;  %v9592_v59 = vshll.u32 %v14296_v9, 16  ;;  %v17785_v56 = vpop.permute.xlu0 %9284  ;;  %v14298_v1 = vld [vmem:[#allocation2 + $0x10] sm:$0xf] }
 0x584   : > { %v10764_v41 = vsel %vm1282_vm7, %v12694_v39, %v17625_v3  ;;  %v8767_v37 = vor.u32 %v8766_v53, %v8762_v20  ;;  %11295 = vmatprep.mubr.bf16.mxu1 %v9376_v19  ;;  %v8772_v15 = vrot.slane %v8770_v0, 5  ;;  %v10832_v35 = vsel %vm1282_vm7, %v12727_v5, %v17654_v57  ;;  %v14299_v39 = vld [vmem:[#allocation2 + $0x14] sm:$0x1]  ;;  %v17797_v5 = vld [vmem:[#allocation2 + $0xb8] sm:$0xf] }
 0x585   : > { %11063 = vmatmul.mubr.bf16.gmra.mrb[12].mxu0 %v10764_v41  ;;  %v9590_v12 = vrot.slane %v9589_v33, 4  ;;  %v9596_v30 = vshrl.u32 %v14296_v9, 16  ;;  %v8758_v24 = vrot.slane %v8757_v26, 4  ;;  %v9594_v3 = vrot.slane %v9592_v59, 5  ;;  %11296 = vmatmul.mubr.bf16.vlgmr.msra.gmra.mrb[16].mxu1 %v9312_v29  ;;  %v8396_v53 = vld [vmem:[#allocation2 + $0xb4] sm:$0xf] }
 0x586   : > { %v8768_v62 = vrot.slane %v8767_v37, 4  ;;  %v9602_v34 = vshll.u32 %v14297_v13, 16  ;;  %11070 = vmatprep.mubr.bf16.mxu0 %v10832_v35  ;;  %v12596_v11 = vrot.slane %v8799_v43, 9  ;;  %v8871_v21 = vrot.slane %v14298_v1, 5  ;;  %v14300_v9 = vld [vmem:[#allocation2 + $0xc] sm:$0xf] }
 0x587   : > { %v9598_v45 = vrot.slane %v9596_v30, 4  ;;  %v8874_v49 = vrot.slane %v14299_v39, 5  ;;  %v8763_v57 = vsel %vm14513_vm5, %v8758_v24, %v8762_v20  ;;  %v9595_v0 = vsel %vm14513_vm5, %v9590_v12, %v9594_v3  ;;  %v17803_v59 = vld [vmem:[#allocation2 + $0xbc] sm:$0x1]  ;;  %v17805_v35 = vpop.permute.xlu0 %10732 }
 0x588   : > { %v8773_v19 = vsel %vm14513_vm5, %v8768_v62, %v8772_v15  ;;  %v9604_v10 = vrot.slane %v9602_v34, 5  ;;  %v8872_v41 = vsel %vm14521_vm6, %v12596_v11, %v8871_v21  ;;  %v8873_v26 = vrot.slane %v8871_v21, 4 }
 0x589   : > { %v12641_v29 = vcombine.low %v8763_v57, %v8773_v19  ;;  %v9599_v33 = vor.u32 %v9598_v45, %v9594_v3  ;;  %v12674_v37 = vcombine.low %v17683_v42, %v17707_v8  ;;  %v12612_v20 = vcombine.low %v14300_v9, %v14298_v1  ;;  %v17812_v3 = vpop.permute.xlu1 %9124  ;;  %v14301_v57 = vld [vmem:[#allocation2 + $0x54] sm:$0xf]  ;;  %v17822_v19 = vld [vmem:[#allocation2 + $0x58] sm:$0xf] }
 0x58a   : > { %v8775_v43 = vshrl.u32 %v8396_v53, 16  ;;  %v8778_v15 = vshll.u32 %v8396_v53, 16  ;;  %v8875_v30 = vsel %vm14521_vm6, %v8873_v26, %v8874_v49  ;;  %v8784_v24 = vshll.u32 %v17797_v5, 16 }
 0x58b   : > { %9146 = vrot.lane.b32.xlu1 %v12641_v29, %s14408_s27  ;;  %v9600_v12 = vrot.slane %v9599_v33, 4  ;;  %v8788_v62 = vshrl.u32 %v17797_v5, 16  ;;  %v12644_v42 = vcombine.low %v8872_v41, %v8875_v30  ;;  %9308 = vrot.lane.b32.xlu0 %v12674_v37, %s14408_s27  ;;  %v9316_v8 = vsel %vm1282_vm7, %v12612_v20, %v17721_v48  ;;  %v14303_v41 = vld [vmem:[#allocation2 + $0x4c] sm:$0xf]  ;;  %v8800_v37 = vld [vmem:[#allocation2 + $0x18] sm:$0xe] }
 0x58c   : > { %v8777_v13 = vrot.slane %v8775_v43, 4  ;;  %v8780_v34 = vrot.slane %v8778_v15, 5  ;;  %v8786_v11 = vrot.slane %v8784_v24, 5  ;;  %v8794_v21 = vshll.u32 %v17803_v59, 16  ;;  %v17831_v43 = vpop.permute.xlu0 %9286  ;;  %v14304_v24 = vld [vmem:[#allocation2 + $0x50] sm:$0x1] }
 0x58d   : > { %v9605_v45 = vsel %vm14513_vm5, %v9600_v12, %v9604_v10  ;;  %v8790_v1 = vrot.slane %v8788_v62, 4  ;;  %v9380_v49 = vsel %vm1282_vm7, %v12644_v42, %v17685_v46  ;;  %v12728_v29 = vcombine.low %v14301_v57, %v17822_v19  ;;  %v14307_v57 = vld [vmem:[#allocation2 + $0x18] sm:$0xf] }
 0x58e   : > { %v12695_v39 = vcombine.low %v9595_v0, %v9605_v45  ;;  %v8781_v53 = vor.u32 %v8780_v34, %v8777_v13  ;;  %v8796_v33 = vrot.slane %v8794_v21, 5  ;;  %11303 = vmatprep.mubr.bf16.mxu1 %v9380_v49  ;;  %v9613_v10 = vor.u32 %v17413_v38, %v17398_v7  ;;  %v17833_v38 = vpop.permute.xlu1 %10572  ;;  %v14305_v13 = vld [vmem:[#allocation2 + $0x1c] sm:$0xf] }
 0x58f   : > { %v8791_v48 = vor.u32 %v8790_v1, %v8786_v11  ;;  %v9616_v26 = vshll.u32 %v14303_v41, 16  ;;  %v10836_v46 = vsel %vm1282_vm7, %v12728_v29, %v17718_v36  ;;  %v9620_v20 = vshrl.u32 %v14303_v41, 16  ;;  %11304 = vmatmul.mubr.bf16.gmra.mrb[20].mxu1 %v9316_v8  ;;  %v14306_v1 = vld [vmem:[#allocation2 + $0x20] sm:$0x1] }
 0x590   : > { %v10768_v0 = vsel %vm1282_vm7, %v12695_v39, %v17689_v32  ;;  %v8782_v9 = vrot.slane %v8781_v53, 4  ;;  %v9614_v12 = vrot.slane %v9613_v10, 4  ;;  %v9626_v7 = vshll.u32 %v14304_v24, 16  ;;  %v17843_v10 = vld [vmem:[#allocation2 + $0x64] sm:$0xf] }
 0x591   : > { %11071 = vmatmul.mubr.bf16.gmra.mrb[16].mxu0 %v10768_v0  ;;  %v8792_v15 = vrot.slane %v8791_v48, 4  ;;  %v9618_v30 = vrot.slane %v9616_v26, 5  ;;  %v9622_v32 = vrot.slane %v9620_v20, 4  ;;  %v12597_v42 = vrot.slane %v8800_v37, 9  ;;  %v14308_v48 = vld [vmem:[#allocation2 + $0x60] sm:$0xf] }
 0x592   : > { %v8787_v62 = vsel %vm14513_vm5, %v8782_v9, %v8786_v11  ;;  %11078 = vmatprep.mubr.bf16.mxu0 %v10836_v46  ;;  %v8878_v36 = vrot.slane %v14305_v13, 5  ;;  %v9628_v45 = vrot.slane %v9626_v7, 5  ;;  %v8881_v21 = vrot.slane %v14306_v1, 5  ;;  %v14310_v26 = vld [vmem:[#allocation2 + $0x58] sm:$0xf] }
 0x593   : > { %v8797_v8 = vsel %vm14513_vm5, %v8792_v15, %v8796_v33  ;;  %v9619_v34 = vsel %vm14513_vm5, %v9614_v12, %v9618_v30  ;;  %v9623_v49 = vor.u32 %v9622_v32, %v9618_v30  ;;  %v12613_v29 = vcombine.low %v14307_v57, %v14305_v13  ;;  %v14311_v20 = vld [vmem:[#allocation2 + $0x5c] sm:$0x1]  ;;  %v8801_v12 = vld [vmem:[#allocation2 + $0x24] sm:$0xe]  ;;  %v17851_v30 = vpop.permute.xlu0 %10734 }
 0x594   : > { %v12642_v39 = vcombine.low %v8787_v62, %v8797_v8  ;;  %v8879_v53 = vsel %vm14521_vm6, %v12597_v42, %v8878_v36  ;;  %v8880_v11 = vrot.slane %v8878_v36, 4  ;;  %v12729_v41 = vcombine.low %v14308_v48, %v17843_v10  ;;  %v17859_v62 = vpop.permute.xlu1 %9126  ;;  %v14314_v57 = vld [vmem:[#allocation2 + $0x24] sm:$0xf] }
 0x595   : > { %v9637_v33 = vor.u32 %v17451_v54, %v17445_v28  ;;  %v9640_v37 = vshll.u32 %v14310_v26, 16  ;;  %v9624_v0 = vrot.slane %v9623_v49, 4  ;;  %v9644_v46 = vshrl.u32 %v14310_v26, 16 }
 0x596   : > { %9148 = vrot.lane.b32.xlu1 %v12642_v39, %s14408_s27  ;;  %v8882_v9 = vsel %vm14521_vm6, %v8880_v11, %v8881_v21  ;;  %v9650_v15 = vshll.u32 %v14311_v20, 16  ;;  %v17855_v24 = vrot.slane %v9727_v17, 4  ;;  %v9320_v28 = vsel %vm1282_vm7, %v12613_v29, %v17761_v16  ;;  %v14312_v21 = vld [vmem:[#allocation2 + $0x28] sm:$0xf] }
 0x597   : > { %v12645_v7 = vcombine.low %v8879_v53, %v8882_v9  ;;  %v9638_v54 = vrot.slane %v9637_v33, 4  ;;  %v9629_v32 = vsel %vm14513_vm5, %v9624_v0, %v9628_v45  ;;  %v10840_v42 = vsel %vm1282_vm7, %v12729_v41, %v17759_v27  ;;  %v14313_v53 = vld [vmem:[#allocation2 + $0x2c] sm:$0x1]  ;;  %v17873_v33 = vld [vmem:[#allocation2 + $0x70] sm:$0xf] }
 0x598   : > { %v9642_v13 = vrot.slane %v9640_v37, 5  ;;  %v9646_v36 = vrot.slane %v9644_v46, 4  ;;  %v12696_v8 = vcombine.low %v9619_v34, %v9629_v32  ;;  %v12598_v1 = vrot.slane %v8801_v12, 9  ;;  %v14315_v41 = vld [vmem:[#allocation2 + $0x6c] sm:$0xf]  ;;  %v17878_v46 = vpop.permute.xlu0 %9288 }
 0x599   : > { %v9384_v17 = vsel %vm1282_vm7, %v12645_v7, %v17737_v18  ;;  %v8885_v39 = vrot.slane %v14312_v21, 5  ;;  %v9652_v49 = vrot.slane %v9650_v15, 5  ;;  %v8888_v11 = vrot.slane %v14313_v53, 5  ;;  %v14317_v0 = vld [vmem:[#allocation2 + $0x64] sm:$0xf] }
 0x59a   : > { %11311 = vmatprep.mubr.bf16.mxu1 %v9384_v17  ;;  %v9647_v16 = vor.u32 %v9646_v36, %v9642_v13  ;;  %v12614_v29 = vcombine.low %v14314_v57, %v14312_v21  ;;  %v10772_v45 = vsel %vm1282_vm7, %v12696_v8, %v17741_v44  ;;  %v9643_v27 = vsel %vm14513_vm5, %v9638_v54, %v9642_v13  ;;  %v8802_v9 = vld [vmem:[#allocation2 + $0x30] sm:$0xe]  ;;  %v14318_v7 = vld [vmem:[#allocation2 + $0x68] sm:$0x1]  ;;  %v17886_v54 = vpop.permute.xlu1 %10574 }
 0x59b   : > { %11312 = vmatmul.mubr.bf16.gmra.mrb[24].mxu1 %v9320_v28  ;;  %v8886_v18 = vsel %vm14521_vm6, %v12598_v1, %v8885_v39  ;;  %v8887_v34 = vrot.slane %v8885_v39, 4  ;;  %11079 = vmatmul.mubr.bf16.gmra.mrb[20].mxu0 %v10772_v45  ;;  %v12730_v26 = vcombine.low %v14315_v41, %v17873_v33  ;;  %v9661_v37 = vor.u32 %v17469_v50, %v17458_v40  ;;  %v14319_v1 = vld [vmem:[#allocation2 + $0x34] sm:$0xf]  ;;  %v14320_v39 = vld [vmem:[#allocation2 + $0x38] sm:$0x1] }
 0x59c   : > { %v9648_v48 = vrot.slane %v9647_v16, 4  ;;  %v9664_v44 = vshll.u32 %v14317_v0, 16  ;;  %v17882_v20 = vrot.slane %v9730_v14, 5  ;;  %11086 = vmatprep.mubr.bf16.mxu0 %v10840_v42  ;;  %v9668_v12 = vshrl.u32 %v14317_v0, 16  ;;  %v14323_v41 = vld [vmem:[#allocation2 + $0x78] sm:$0xf] }
 0x59d   : > { %v8889_v15 = vsel %vm14521_vm6, %v8887_v34, %v8888_v11  ;;  %v9674_v28 = vshll.u32 %v14318_v7, 16  ;;  %v9324_v32 = vsel %vm1282_vm7, %v12614_v29, %v17812_v3  ;;  %v9662_v14 = vrot.slane %v9661_v37, 4  ;;  %v14321_v11 = vld [vmem:[#allocation2 + $0x30] sm:$0xf]  ;;  %v17902_v34 = vpop.permute.xlu0 %10736 }
 0x59e   : > { %v9653_v40 = vsel %vm14513_vm5, %v9648_v48, %v9652_v49  ;;  %v12646_v50 = vcombine.low %v8886_v18, %v8889_v15  ;;  %v9666_v13 = vrot.slane %v9664_v44, 5  ;;  %v9670_v36 = vrot.slane %v9668_v12, 4  ;;  %v8803_v18 = vld [vmem:[#allocation2 + $0x3c] sm:$0xe]  ;;  %v9129_v44 = vpop.permute.xlu1 %9128  ;;  %v14325_v15 = vld [vmem:[#allocation2 + $0x74] sm:$0x1] }
 0x59f   : > { %v12697_v6 = vcombine.low %v9643_v27, %v9653_v40  ;;  %v12599_v42 = vrot.slane %v8802_v9, 9  ;;  %v10844_v17 = vsel %vm1282_vm7, %v12730_v26, %v17805_v35  ;;  %v8892_v21 = vrot.slane %v14319_v1, 5  ;;  %v14322_v35 = vld [vmem:[#allocation2 + $0x70] sm:$0xf]  ;;  %v17906_v26 = vld [vmem:[#allocation2 + $0x7c] sm:$0xf] }
 0x5a0   : > { %v9388_v8 = vsel %vm1282_vm7, %v12646_v50, %v17785_v56  ;;  %v8895_v16 = vrot.slane %v14320_v39, 5  ;;  %v9671_v3 = vor.u32 %v9670_v36, %v9666_v13  ;;  %v9676_v53 = vrot.slane %v9674_v28, 5 }
 0x5a1   : > { %v10776_v49 = vsel %vm1282_vm7, %v12697_v6, %v17789_v63  ;;  %11319 = vmatprep.mubr.bf16.mxu1 %v9388_v8  ;;  %v12615_v57 = vcombine.low %v14321_v11, %v14319_v1  ;;  %v8893_v29 = vsel %vm14521_vm6, %v12599_v42, %v8892_v21  ;;  %v8894_v45 = vrot.slane %v8892_v21, 4  ;;  %v14327_v21 = vld [vmem:[#allocation2 + $0x44] sm:$0x1] }
 0x5a2   : > { %v9685_v56 = vor.u32 %v17484_v52, %v17476_v23  ;;  %v9688_v27 = vshll.u32 %v14322_v35, 16  ;;  %v9667_v63 = vsel %vm14513_vm5, %v9662_v14, %v9666_v13  ;;  %v9672_v48 = vrot.slane %v9671_v3, 4  ;;  %v14326_v14 = vld [vmem:[#allocation2 + $0x40] sm:$0xf]  ;;  %v17924_v3 = vpop.permute.xlu0 %9290 }
 0x5a3   : > { %11320 = vmatmul.mubr.bf16.gmra.mrb[28].mxu1 %v9324_v32  ;;  %v12731_v37 = vcombine.low %v14323_v41, %v17906_v26  ;;  %v9692_v0 = vshrl.u32 %v14322_v35, 16  ;;  %11087 = vmatmul.mubr.bf16.gmra.mrb[24].mxu0 %v10776_v49  ;;  %v8896_v23 = vsel %vm14521_vm6, %v8894_v45, %v8895_v16  ;;  %v9698_v12 = vshll.u32 %v14325_v15, 16  ;;  %v8804_v45 = vld [vmem:[#allocation2 + $0x48] sm:$0xe]  ;;  %v14329_v35 = vld [vmem:[#allocation2 + $0x3c] sm:$0xf] }
 0x5a4   : > { %v9686_v52 = vrot.slane %v9685_v56, 4  ;;  %v9690_v9 = vrot.slane %v9688_v27, 5  ;;  %v9677_v7 = vsel %vm14513_vm5, %v9672_v48, %v9676_v53  ;;  %11094 = vmatprep.mubr.bf16.mxu0 %v10844_v17  ;;  %v12647_v28 = vcombine.low %v8893_v29, %v8896_v23 }
 0x5a5   : > { %v9694_v40 = vrot.slane %v9692_v0, 4  ;;  %v12600_v50 = vrot.slane %v8803_v18, 9  ;;  %v9751_v32 = vshrl.u32 %v17540_v47, 16  ;;  %v12698_v13 = vcombine.low %v9667_v63, %v9677_v7  ;;  %v14330_v63 = vld [vmem:[#allocation2 + $0x80] sm:$0x1] }
 0x5a6   : > { %v9328_v6 = vsel %vm1282_vm7, %v12615_v57, %v17859_v62  ;;  %v8899_v36 = vrot.slane %v14326_v14, 5  ;;  %v9392_v42 = vsel %vm1282_vm7, %v12647_v28, %v17831_v43  ;;  %v9700_v1 = vrot.slane %v9698_v12, 5  ;;  %v14328_v57 = vld [vmem:[#allocation2 + $0x7c] sm:$0xf]  ;;  %v14333_v28 = vld [vmem:[#allocation2 + $0x4c] sm:$0xf] }
 0x5a7   : > { %v9695_v8 = vor.u32 %v9694_v40, %v9690_v9  ;;  %v8902_v39 = vrot.slane %v14327_v21, 5  ;;  %v10848_v17 = vsel %vm1282_vm7, %v12731_v37, %v17851_v30  ;;  %11327 = vmatprep.mubr.bf16.mxu1 %v9392_v42  ;;  %v9691_v16 = vsel %vm14513_vm5, %v9686_v52, %v9690_v9  ;;  %v17930_v30 = vpop.permute.xlu1 %10576  ;;  %v14331_v37 = vld [vmem:[#allocation2 + $0x84] sm:$0xf]  ;;  %v10739_v42 = vpop.permute.xlu0 %10738 }
 0x5a8   : > { %v8900_v49 = vsel %vm14521_vm6, %v12600_v50, %v8899_v36  ;;  %v8901_v62 = vrot.slane %v8899_v36, 4  ;;  %v10780_v43 = vsel %vm1282_vm7, %v12698_v13, %v17833_v38  ;;  %v9709_v11 = vor.u32 %v17568_v22, %v17511_v31  ;;  %v17936_v31 = vld [vmem:[#allocation2 + $0x88] sm:$0xf]  ;;  %v14334_v50 = vld [vmem:[#allocation2 + $0x50] sm:$0x1] }
 0x5a9   : > { %v9696_v53 = vrot.slane %v9695_v8, 4  ;;  %v9712_v29 = vshll.u32 %v14328_v57, 16  ;;  %v12616_v27 = vcombine.low %v14329_v35, %v14326_v14  ;;  %v9716_v18 = vshrl.u32 %v14328_v57, 16 }
 0x5aa   : > { %v8903_v56 = vsel %vm14521_vm6, %v8901_v62, %v8902_v39  ;;  %v9722_v48 = vshll.u32 %v14330_v63, 16  ;;  %v12732_v22 = vcombine.low %v14331_v37, %v17936_v31  ;;  %v17939_v23 = vrot.slane %v9751_v32, 4  ;;  %v14335_v39 = vld [vmem:[#allocation2 + $0x88] sm:$0xf]  ;;  %v17961_v63 = vld [vmem:[#allocation2 + $0x94] sm:$0xf] }
 0x5ab   : > { %v9701_v38 = vsel %vm14513_vm5, %v9696_v53, %v9700_v1  ;;  %11328 = vmatmul.mubr.bf16.gmra.mrb[32].mxu1 %v9328_v6  ;;  %v12648_v41 = vcombine.low %v8900_v49, %v8903_v56  ;;  %v9714_v0 = vrot.slane %v9712_v29, 5  ;;  %11095 = vmatmul.mubr.bf16.gmra.mrb[28].mxu0 %v10780_v43  ;;  %v9710_v52 = vrot.slane %v9709_v11, 4  ;;  %v14336_v11 = vld [vmem:[#allocation2 + $0x8c] sm:$0x1] }
 0x5ac   : > { %v9718_v9 = vrot.slane %v9716_v18, 4  ;;  %v12601_v15 = vrot.slane %v8804_v45, 9  ;;  %v12699_v12 = vcombine.low %v9691_v16, %v9701_v38  ;;  %11102 = vmatprep.mubr.bf16.mxu0 %v10848_v17  ;;  %v8906_v40 = vrot.slane %v14333_v28, 5  ;;  %v8805_v16 = vld [vmem:[#allocation2 + $0x54] sm:$0xe] }
 0x5ad   : > { %v9396_v7 = vsel %vm1282_vm7, %v12648_v41, %v17878_v46  ;;  %v8909_v13 = vrot.slane %v14334_v50, 5  ;;  %v9754_v6 = vshll.u32 %v17540_v47, 16  ;;  %v9332_v14 = vsel %vm1282_vm7, %v12616_v27, %v9129_v44  ;;  %v9131_v46 = vpop.permute.xlu1 %9130  ;;  %v14338_v18 = vld [vmem:[#allocation2 + $0x90] sm:$0xf] }
 0x5ae   : > { %11335 = vmatprep.mubr.bf16.mxu1 %v9396_v7  ;;  %v9719_v32 = vor.u32 %v9718_v9, %v9714_v0  ;;  %v9724_v36 = vrot.slane %v9722_v48, 5  ;;  %v10852_v8 = vsel %vm1282_vm7, %v12732_v22, %v17902_v34  ;;  %v8907_v1 = vsel %vm14521_vm6, %v12601_v15, %v8906_v40  ;;  %v17964_v48 = vld [vmem:[#allocation2 + $0x58] sm:$0xf] }
 0x5af   : > { %v8908_v21 = vrot.slane %v8906_v40, 4  ;;  %v9736_v17 = vshll.u32 %v14335_v39, 16  ;;  %v9715_v47 = vsel %vm14513_vm5, %v9710_v52, %v9714_v0  ;;  %v9733_v44 = vor.u32 %v17882_v20, %v17855_v24  ;;  %v14337_v24 = vld [vmem:[#allocation2 + $0x48] sm:$0xf]  ;;  %v9293_v0 = vpop.permute.xlu0 %9292  ;;  %v14341_v52 = vld [vmem:[#allocation2 + $0x5c] sm:$0x1] }
 0x5b0   : > { %v9720_v49 = vrot.slane %v9719_v32, 4  ;;  %v9740_v62 = vshrl.u32 %v14335_v39, 16  ;;  %v10784_v43 = vsel %vm1282_vm7, %v12699_v12, %v17886_v54  ;;  %v9746_v57 = vshll.u32 %v14336_v11, 16 }
 0x5b1   : > { %v8910_v34 = vsel %vm14521_vm6, %v8908_v21, %v8909_v13  ;;  %v17957_v53 = vrot.slane %v9736_v17, 5  ;;  %v12602_v35 = vrot.slane %v8805_v16, 9  ;;  %v9756_v27 = vrot.slane %v9754_v6, 5  ;;  %v17970_v12 = vpop.permute.xlu1 %10578  ;;  %v14342_v13 = vld [vmem:[#allocation2 + $0x94] sm:$0xf] }
 0x5b2   : > { %v9725_v29 = vsel %vm14513_vm5, %v9720_v49, %v9724_v36  ;;  %v12649_v45 = vcombine.low %v8907_v1, %v8910_v34  ;;  %v9742_v56 = vrot.slane %v9740_v62, 4  ;;  %v12617_v20 = vcombine.low %v14337_v24, %v14333_v28  ;;  %v17989_v34 = vld [vmem:[#allocation2 + $0x64] sm:$0xf] }
 0x5b3   : > { %11336 = vmatmul.mubr.bf16.gmra.mrb[36].mxu1 %v9332_v14  ;;  %v12733_v54 = vcombine.low %v14338_v18, %v17961_v63  ;;  %v8913_v38 = vrot.slane %v17964_v48, 5  ;;  %11103 = vmatmul.mubr.bf16.gmra.mrb[32].mxu0 %v10784_v43  ;;  %v9734_v37 = vrot.slane %v9733_v44, 4  ;;  %v8916_v9 = vrot.slane %v14341_v52, 5  ;;  %v10741_v43 = vpop.permute.xlu0 %10740 }
 0x5b4   : > { %v9400_v41 = vsel %vm1282_vm7, %v12649_v45, %v17924_v3  ;;  %v9743_v22 = vor.u32 %v9742_v56, %v17957_v53  ;;  %v12700_v15 = vcombine.low %v9715_v47, %v9725_v29  ;;  %11110 = vmatprep.mubr.bf16.mxu0 %v10852_v8  ;;  %v9748_v50 = vrot.slane %v9746_v57, 5  ;;  %v8806_v3 = vld [vmem:[#allocation2 + $0x60] sm:$0xe]  ;;  %v14346_v57 = vld [vmem:[#allocation2 + $0x54] sm:$0xf] }
 0x5b5   : > { %11343 = vmatprep.mubr.bf16.mxu1 %v9400_v41  ;;  %v8914_v7 = vsel %vm14521_vm6, %v12602_v35, %v8913_v38  ;;  %v8915_v28 = vrot.slane %v8913_v38, 4  ;;  %v9760_v6 = vshll.u32 %v14342_v13, 16  ;;  %v9336_v14 = vsel %vm1282_vm7, %v12617_v20, %v9131_v46  ;;  %v14343_v46 = vld [vmem:[#allocation2 + $0x98] sm:$0x1]  ;;  %v9133_v29 = vpop.permute.xlu1 %9132  ;;  %v8807_v56 = vld [vmem:[#allocation2 + $0x6c] sm:$0xe] }
 0x5b6   : > { %v9744_v40 = vrot.slane %v9743_v22, 4  ;;  %v10856_v32 = vsel %vm1282_vm7, %v12733_v54, %v10739_v42  ;;  %v9764_v8 = vshrl.u32 %v14342_v13, 16  ;;  %v9739_v1 = vsel %vm14513_vm5, %v9734_v37, %v17957_v53  ;;  %v14347_v35 = vld [vmem:[#allocation2 + $0x9c] sm:$0xf] }
 0x5b7   : > { %v8917_v36 = vsel %vm14521_vm6, %v8915_v28, %v8916_v9  ;;  %v9757_v39 = vor.u32 %v9756_v27, %v17939_v23  ;;  %v17982_v17 = vrot.slane %v9760_v6, 5  ;;  %v10788_v16 = vsel %vm1282_vm7, %v12700_v15, %v17930_v30  ;;  %v14345_v23 = vld [vmem:[#allocation2 + $0x68] sm:$0x1]  ;;  %v17994_v27 = vld [vmem:[#allocation2 + $0xa0] sm:$0xf]  ;;  %v9295_v15 = vpop.permute.xlu0 %9294 }
 0x5b8   : > { %v12650_v21 = vcombine.low %v8914_v7, %v8917_v36  ;;  %v9766_v47 = vrot.slane %v9764_v8, 4  ;;  %v9770_v49 = vshll.u32 %v14343_v46, 16  ;;  %v12603_v42 = vrot.slane %v8806_v3, 9  ;;  %v14349_v37 = vld [vmem:[#allocation2 + $0x1c] sm:$0xf] }
 0x5b9   : > { %v9749_v44 = vsel %vm14513_vm5, %v9744_v40, %v9748_v50  ;;  %v8920_v53 = vrot.slane %v17989_v34, 5  ;;  %v8923_v11 = vrot.slane %v14345_v23, 5  ;;  %v12618_v30 = vcombine.low %v14346_v57, %v17964_v48  ;;  %v11424_v48 = vld [vmem:[#allocation2 + $0x18] sm:$0xe]  ;;  %v14351_v40 = vld [vmem:[#allocation2 + $0x74] sm:$0x1] }
 0x5ba   : > { %v9404_v62 = vsel %vm1282_vm7, %v12650_v21, %v9293_v0  ;;  %v9767_v45 = vor.u32 %v9766_v47, %v17982_v17  ;;  %v12734_v24 = vcombine.low %v14347_v35, %v17994_v27  ;;  %v9758_v20 = vrot.slane %v9757_v39, 4  ;;  %v17999_v0 = vld [vmem:[#allocation2 + $0x70] sm:$0xf]  ;;  %v14352_v3 = vld [vmem:[#allocation2 + $0x20] sm:$0x1]  ;;  %v10581_v21 = vpop.permute.xlu1 %10580 }
 0x5bb   : > { %11344 = vmatmul.mubr.bf16.gmra.mrb[40].mxu1 %v9336_v14  ;;  %11111 = vmatmul.mubr.bf16.gmra.mrb[36].mxu0 %v10788_v16  ;;  %v8921_v18 = vsel %vm14521_vm6, %v12603_v42, %v8920_v53  ;;  %v8922_v54 = vrot.slane %v8920_v53, 4  ;;  %v12701_v38 = vcombine.low %v9739_v1, %v9749_v44  ;;  %v9772_v41 = vrot.slane %v9770_v49, 5  ;;  %v11425_v44 = vld [vmem:[#allocation2 + $0x24] sm:$0xe]  ;;  %v14354_v53 = vld [vmem:[#allocation2 + $0x60] sm:$0xf] }
 0x5bc   : > { %11351 = vmatprep.mubr.bf16.mxu1 %v9404_v62  ;;  %11118 = vmatprep.mubr.bf16.mxu0 %v10856_v32  ;;  %v11474_v22 = vrot.slane %v14349_v37, 5  ;;  %v8927_v52 = vrot.slane %v17999_v0, 5  ;;  %v9768_v9 = vrot.slane %v9767_v45, 4  ;;  %v12604_v28 = vrot.slane %v8807_v56, 9  ;;  %v14353_v62 = vld [vmem:[#allocation2 + $0x28] sm:$0xf] }
 0x5bd   : > { %v8924_v7 = vsel %vm14521_vm6, %v8922_v54, %v8923_v11  ;;  %v8930_v50 = vrot.slane %v14351_v40, 5  ;;  %v11477_v14 = vrot.slane %v14352_v3, 5  ;;  %v9340_v32 = vsel %vm1282_vm7, %v12618_v30, %v9133_v29  ;;  %v11426_v56 = vld [vmem:[#allocation2 + $0x30] sm:$0xe]  ;;  %v14358_v40 = vld [vmem:[#allocation2 + $0x38] sm:$0x1] }
 0x5be   : > { %v12651_v13 = vcombine.low %v8921_v18, %v8924_v7  ;;  %v8929_v6 = vrot.slane %v8927_v52, 4  ;;  %v12787_v36 = vrot.slane %v11424_v48, 9  ;;  %v10792_v8 = vsel %vm1282_vm7, %v12701_v38, %v17970_v12  ;;  %v8808_v12 = vld [vmem:[#allocation2 + $0x78] sm:$0xe]  ;;  %v9135_v30 = vpop.permute.xlu1 %9134  ;;  %v14356_v18 = vld [vmem:[#allocation2 + $0x80] sm:$0x1] }
 0x5bf   : > { %v10860_v1 = vsel %vm1282_vm7, %v12734_v24, %v10741_v43  ;;  %v11476_v16 = vrot.slane %v11474_v22, 4  ;;  %v9763_v47 = vsel %vm14513_vm5, %v9758_v20, %v17982_v17  ;;  %v9773_v46 = vsel %vm14513_vm5, %v9768_v9, %v9772_v41  ;;  %v18021_v17 = vld [vmem:[#allocation2 + $0x7c] sm:$0xf]  ;;  %v9297_v24 = vpop.permute.xlu0 %9296  ;;  %v14357_v41 = vld [vmem:[#allocation2 + $0x2c] sm:$0x1] }
 0x5c0   : > { %v9408_v39 = vsel %vm1282_vm7, %v12651_v13, %v9295_v15  ;;  %v8928_v49 = vsel %vm14521_vm6, %v12604_v28, %v8927_v52  ;;  %v8931_v42 = vsel %vm14521_vm6, %v8929_v6, %v8930_v50  ;;  %v11481_v43 = vrot.slane %v14353_v62, 5  ;;  %v18034_v6 = vld [vmem:[#allocation2 + $0x88] sm:$0xf] }
 0x5c1   : > { %v12619_v23 = vcombine.low %v14354_v53, %v17989_v34  ;;  %v11475_v51 = vsel %vm14521_vm6, %v12787_v36, %v11474_v22  ;;  %v8934_v11 = vrot.slane %v18021_v17, 5  ;;  %v12702_v57 = vcombine.low %v9763_v47, %v9773_v46  ;;  %v8809_v36 = vld [vmem:[#allocation2 + $0x84] sm:$0xe]  ;;  %v11427_v47 = vld [vmem:[#allocation2 + $0x3c] sm:$0xe] }
 0x5c2   : > { %v11478_v29 = vsel %vm14521_vm6, %v11476_v16, %v11477_v14  ;;  %v12652_v45 = vcombine.low %v8928_v49, %v8931_v42  ;;  %v11488_v35 = vrot.slane %v17664_v2, 5  ;;  %v12605_v34 = vrot.slane %v8808_v12, 9  ;;  %v14360_v14 = vld [vmem:[#allocation2 + $0x6c] sm:$0xf]  ;;  %v11428_v12 = vld [vmem:[#allocation2 + $0x48] sm:$0xe] }
 0x5c3   : > { %11352 = vmatmul.mubr.bf16.gmra.mrb[44].mxu1 %v9340_v32  ;;  %11119 = vmatmul.mubr.bf16.gmra.mrb[40].mxu0 %v10792_v8  ;;  %v8936_v20 = vrot.slane %v8934_v11, 4  ;;  %v8937_v54 = vrot.slane %v14356_v18, 5  ;;  %v12788_v38 = vrot.slane %v11425_v44, 9  ;;  %v11484_v48 = vrot.slane %v14357_v41, 5  ;;  %v9299_v42 = vpop.permute.xlu0 %9298  ;;  %v18055_v18 = vld [vmem:[#allocation2 + $0x94] sm:$0xf] }
 0x5c4   : > { %11359 = vmatprep.mubr.bf16.mxu1 %v9408_v39  ;;  %11126 = vmatprep.mubr.bf16.mxu0 %v10860_v1  ;;  %v11483_v37 = vrot.slane %v11481_v43, 4  ;;  %v9344_v22 = vsel %vm1282_vm7, %v12619_v23, %v9135_v30  ;;  %v12803_v52 = vcombine.low %v11475_v51, %v11478_v29  ;;  %v12789_v9 = vrot.slane %v11426_v56, 9  ;;  %v14362_v30 = vld [vmem:[#allocation2 + $0x44] sm:$0x1] }
 0x5c5   : > { %v10796_v15 = vsel %vm1282_vm7, %v12702_v57, %v10581_v21  ;;  %v9412_v7 = vsel %vm1282_vm7, %v12652_v45, %v9297_v24  ;;  %v11490_v28 = vrot.slane %v11488_v35, 4  ;;  %v11491_v2 = vrot.slane %v14358_v40, 5  ;;  %v9137_v21 = vpop.permute.xlu1 %9136  ;;  %v14363_v24 = vld [vmem:[#allocation2 + $0x50] sm:$0x1] }
 0x5c6   : > { %v8935_v50 = vsel %vm14521_vm6, %v12605_v34, %v8934_v11  ;;  %v8938_v13 = vsel %vm14521_vm6, %v8936_v20, %v8937_v54  ;;  %v8941_v3 = vrot.slane %v18034_v6, 5  ;;  %v12620_v32 = vcombine.low %v14360_v14, %v17999_v0  ;;  %v14366_v14 = vld [vmem:[#allocation2 + $0x98] sm:$0x1] }
 0x5c7   : > { %v11482_v8 = vsel %vm14521_vm6, %v12788_v38, %v11481_v43  ;;  %v11485_v1 = vsel %vm14521_vm6, %v11483_v37, %v11484_v48  ;;  %v11495_v39 = vrot.slane %v17732_v55, 5  ;;  %v11489_v16 = vsel %vm14521_vm6, %v12789_v9, %v11488_v35  ;;  %v14361_v43 = vld [vmem:[#allocation2 + $0x8c] sm:$0x1]  ;;  %v14365_v38 = vld [vmem:[#allocation2 + $0x78] sm:$0xf] }
 0x5c8   : > { %v11492_v0 = vsel %vm14521_vm6, %v11490_v28, %v11491_v2  ;;  %v12653_v46 = vcombine.low %v8935_v50, %v8938_v13  ;;  %v11502_v49 = vrot.slane %v17778_v60, 5  ;;  %v12606_v44 = vrot.slane %v8809_v36, 9  ;;  %v8810_v48 = vld [vmem:[#allocation2 + $0x90] sm:$0xe]  ;;  %v11430_v50 = vld [vmem:[#allocation2 + $0x60] sm:$0xe] }
 0x5c9   : > { %v8943_v62 = vrot.slane %v8941_v3, 4  ;;  %v8944_v53 = vrot.slane %v14361_v43, 5  ;;  %v12804_v23 = vcombine.low %v11482_v8, %v11485_v1  ;;  %v9348_v55 = vsel %vm1282_vm7, %v12620_v32, %v9137_v21 }
 0x5ca   : > { %v12805_v51 = vcombine.low %v11489_v16, %v11492_v0  ;;  %v12790_v11 = vrot.slane %v11427_v47, 9  ;;  %v11497_v57 = vrot.slane %v11495_v39, 4  ;;  %v11498_v29 = vrot.slane %v14362_v30, 5  ;;  %v9301_v2 = vpop.permute.xlu0 %9300  ;;  %v11431_v30 = vld [vmem:[#allocation2 + $0x6c] sm:$0xe] }
 0x5cb   : > { %11360 = vmatmul.mubr.bf16.gmra.mrb[48].mxu1 %v9344_v22  ;;  %11127 = vmatmul.mubr.bf16.gmra.mrb[44].mxu0 %v10796_v15  ;;  %v9416_v45 = vsel %vm1282_vm7, %v12653_v46, %v9299_v42  ;;  %v12791_v56 = vrot.slane %v11428_v12, 9  ;;  %v11504_v35 = vrot.slane %v11502_v49, 4  ;;  %v11505_v60 = vrot.slane %v14363_v24, 5 }
 0x5cc   : > { %11367 = vmatprep.mubr.bf16.mxu1 %v9412_v7  ;;  %13662 = vmatprep.mubr.msk.bf16.mxu0 %vm1282_vm7, %v12803_v52  ;;  %v8942_v34 = vsel %vm14521_vm6, %v12606_v44, %v8941_v3  ;;  %v8945_v20 = vsel %vm14521_vm6, %v8943_v62, %v8944_v53  ;;  %v8948_v54 = vrot.slane %v18055_v18, 5  ;;  %v12621_v41 = vcombine.low %v14365_v38, %v18021_v17  ;;  %v9139_v52 = vpop.permute.xlu1 %9138  ;;  %v11429_v7 = vld [vmem:[#allocation2 + $0x54] sm:$0xe]  ;;  %v8811_v62 = vld [vmem:[#allocation2 + $0x9c] sm:$0xe] }
 0x5cd   : > { %v11496_v37 = vsel %vm14521_vm6, %v12790_v11, %v11495_v39  ;;  %v11499_v22 = vsel %vm14521_vm6, %v11497_v57, %v11498_v29  ;;  %v11509_v9 = vrot.slane %v17822_v19, 5  ;;  %v11503_v15 = vsel %vm14521_vm6, %v12791_v56, %v11502_v49  ;;  %v14367_v39 = vld [vmem:[#allocation2 + $0x5c] sm:$0x1]  ;;  %v14368_v49 = vld [vmem:[#allocation2 + $0x68] sm:$0x1] }
 0x5ce   : > { %v11506_v17 = vsel %vm14521_vm6, %v11504_v35, %v11505_v60  ;;  %v12654_v28 = vcombine.low %v8942_v34, %v8945_v20  ;;  %v11516_v40 = vrot.slane %v17843_v10, 5  ;;  %v12607_v13 = vrot.slane %v8810_v48, 9  ;;  %v11432_v56 = vld [vmem:[#allocation2 + $0x78] sm:$0xe]  ;;  %v14370_v60 = vld [vmem:[#allocation2 + $0xa4] sm:$0x1] }
 0x5cf   : > { %v8950_v3 = vrot.slane %v8948_v54, 4  ;;  %v8951_v32 = vrot.slane %v14366_v14, 5  ;;  %v12806_v36 = vcombine.low %v11496_v37, %v11499_v22  ;;  %v9352_v19 = vsel %vm1282_vm7, %v12621_v41, %v9139_v52  ;;  %v14371_v41 = vld [vmem:[#allocation2 + $0x74] sm:$0x1] }
 0x5d0   : > { %v12807_v8 = vcombine.low %v11503_v15, %v11506_v17  ;;  %v12792_v1 = vrot.slane %v11429_v7, 9  ;;  %v11511_v21 = vrot.slane %v11509_v9, 4  ;;  %v11512_v16 = vrot.slane %v14367_v39, 5  ;;  %v14372_v15 = vld [vmem:[#allocation2 + $0x80] sm:$0x1] }
 0x5d1   : > { %v9420_v0 = vsel %vm1282_vm7, %v12654_v28, %v9301_v2  ;;  %v12793_v47 = vrot.slane %v11430_v50, 9  ;;  %v11518_v46 = vrot.slane %v11516_v40, 4  ;;  %v11519_v10 = vrot.slane %v14368_v49, 5  ;;  %v14373_v2 = vld [vmem:[#allocation2 + $0x90] sm:$0xf] }
 0x5d2   : > { %v8949_v42 = vsel %vm14521_vm6, %v12607_v13, %v8948_v54  ;;  %v8952_v12 = vsel %vm14521_vm6, %v8950_v3, %v8951_v32  ;;  %v8955_v44 = vrot.slane %v17710_v4, 5  ;;  %v11510_v43 = vsel %vm14521_vm6, %v12792_v1, %v11509_v9  ;;  %v11433_v13 = vld [vmem:[#allocation2 + $0x84] sm:$0xe] }
 0x5d3   : > { %11368 = vmatmul.mubr.bf16.gmra.mrb[52].mxu1 %v9348_v55  ;;  %13663 = vmatmul.mubr.msk.bf16.vlgmr.msra.gmra.mrb[48].mxu0 %vm1282_vm7, %v12804_v23  ;;  %v11513_v53 = vsel %vm14521_vm6, %v11511_v21, %v11512_v16  ;;  %v14369_v23 = vld [vmem:[#allocation2 + $0x84] sm:$0xf]  ;;  %v11517_v4 = vsel %vm14521_vm6, %v12793_v47, %v11516_v40  ;;  %v11520_v57 = vsel %vm14521_vm6, %v11518_v46, %v11519_v10  ;;  %v11530_v35 = vrot.slane %v17906_v26, 5 }
 0x5d4   : > { %11375 = vmatprep.mubr.bf16.mxu1 %v9416_v45  ;;  %13666 = vmatprep.mubr.msk.bf16.mxu0 %vm1282_vm7, %v12805_v51  ;;  %v12622_v55 = vcombine.low %v14369_v23, %v18034_v6  ;;  %v11523_v51 = vrot.slane %v17873_v33, 5  ;;  %v12655_v29 = vcombine.low %v8949_v42, %v8952_v12  ;;  %v12608_v24 = vrot.slane %v8811_v62, 9  ;;  %v14374_v42 = vld [vmem:[#allocation2 + $0x8c] sm:$0x1] }
 0x5d5   : > { %v8957_v6 = vrot.slane %v8955_v44, 4  ;;  %v8958_v34 = vrot.slane %v14370_v60, 5  ;;  %v12808_v33 = vcombine.low %v11510_v43, %v11513_v53  ;;  %v12794_v54 = vrot.slane %v11431_v30, 9  ;;  %v14375_v53 = vld [vmem:[#allocation2 + $0x98] sm:$0x1] }
 0x5d6   : > { %v11525_v38 = vrot.slane %v11523_v51, 4  ;;  %v11526_v48 = vrot.slane %v14371_v41, 5  ;;  %v12809_v37 = vcombine.low %v11517_v4, %v11520_v57  ;;  %v12795_v52 = vrot.slane %v11432_v56, 9  ;;  %v11435_v30 = vld [vmem:[#allocation2 + $0x9c] sm:$0xe] }
 0x5d7   : > { %v9141_v11 = vpop.permute.xlu1 %9140  ;;  %v11532_v9 = vrot.slane %v11530_v35, 4  ;;  %v11533_v17 = vrot.slane %v14372_v15, 5  ;;  %v8956_v26 = vsel %vm14521_vm6, %v12608_v24, %v8955_v44  ;;  %v8959_v7 = vsel %vm14521_vm6, %v8957_v6, %v8958_v34  ;;  %v14377_v6 = vld [vmem:[#allocation2 + $0x9c] sm:$0xf]  ;;  %v14378_v60 = vld [vmem:[#allocation2 + $0xa0] sm:$0xf] }
 0x5d8   : > { %v9356_v20 = vsel %vm1282_vm7, %v12622_v55, %v9141_v11  ;;  %v11524_v28 = vsel %vm14521_vm6, %v12794_v54, %v11523_v51  ;;  %v11527_v40 = vsel %vm14521_vm6, %v11525_v38, %v11526_v48  ;;  %v12623_v50 = vcombine.low %v14373_v2, %v18055_v18  ;;  %v14379_v38 = vld [vmem:[#allocation2 + $0xa4] sm:$0x1]  ;;  %v8813_v48 = vld [vmem:[#allocation2 + $0xb4] sm:$0xe] }
 0x5d9   : > { %v9303_v45 = vpop.permute.xlu0 %9302  ;;  %v8962_v3 = vrot.slane %v17751_v58, 5  ;;  %v11537_v32 = vrot.slane %v17936_v31, 5  ;;  %v11534_v1 = vsel %vm14521_vm6, %v11532_v9, %v11533_v17  ;;  %v11544_v18 = vrot.slane %v17961_v63, 5 }
 0x5da   : > { %v9424_v22 = vsel %vm1282_vm7, %v12655_v29, %v9303_v45  ;;  %v12810_v39 = vcombine.low %v11524_v28, %v11527_v40  ;;  %v12796_v16 = vrot.slane %v11433_v13, 9  ;;  %v8965_v31 = vrot.slane %v17766_v25, 5  ;;  %v14376_v29 = vld [vmem:[#allocation2 + $0xac] sm:$0xf]  ;;  %v14381_v13 = vld [vmem:[#allocation2 + $0xb8] sm:$0xf] }
 0x5db   : > { %11376 = vmatmul.mubr.bf16.gmra.mrb[56].mxu1 %v9352_v19  ;;  %13667 = vmatmul.mubr.msk.bf16.gmra.mrb[52].mxu0 %vm1282_vm7, %v12806_v36  ;;  %v12656_v36 = vcombine.low %v8956_v26, %v8959_v7  ;;  %v8812_v19 = vld [vmem:[#allocation2 + $0xa8] sm:$0xe]  ;;  %v8964_v46 = vrot.slane %v8962_v3, 4  ;;  %v11539_v10 = vrot.slane %v11537_v32, 4  ;;  %v11540_v12 = vrot.slane %v14374_v42, 5 }
 0x5dc   : > { %11383 = vmatprep.mubr.bf16.mxu1 %v9420_v0  ;;  %13670 = vmatprep.mubr.msk.bf16.mxu0 %vm1282_vm7, %v12807_v8  ;;  %v11531_v8 = vsel %vm14521_vm6, %v12795_v52, %v11530_v35  ;;  %v11434_v0 = vld [vmem:[#allocation2 + $0x90] sm:$0xe]  ;;  %v12609_v47 = vrot.slane %v8812_v19, 9  ;;  %v11546_v43 = vrot.slane %v11544_v18, 4  ;;  %v11547_v23 = vrot.slane %v14375_v53, 5 }
 0x5dd   : > { %v12811_v49 = vcombine.low %v11531_v8, %v11534_v1  ;;  %v12797_v62 = vrot.slane %v11434_v0, 9  ;;  %v8966_v25 = vsel %vm14521_vm6, %v8964_v46, %v8965_v31  ;;  %v11538_v55 = vsel %vm14521_vm6, %v12796_v16, %v11537_v32  ;;  %v11436_v35 = vld [vmem:[#allocation2 + $0xa8] sm:$0xe]  ;;  %v11438_v8 = vld [vmem:[#allocation2 + $0xc0] sm:$0xe] }
 0x5de   : > { %v8963_v63 = vsel %vm14521_vm6, %v12609_v47, %v8962_v3  ;;  %v11541_v51 = vsel %vm14521_vm6, %v11539_v10, %v11540_v12  ;;  %v11551_v11 = vrot.slane %v17994_v27, 5  ;;  %v11548_v57 = vsel %vm14521_vm6, %v11546_v43, %v11547_v23  ;;  %v14384_v46 = vld [vmem:[#allocation2 + $0xa8] sm:$0xf]  ;;  %v14385_v31 = vld [vmem:[#allocation2 + $0xac] sm:$0xf] }
 0x5df   : > { %v11545_v4 = vsel %vm14521_vm6, %v12797_v62, %v11544_v18  ;;  %v11558_v45 = vrot.slane %v14376_v29, 5  ;;  %v12657_v56 = vcombine.low %v8963_v63, %v8966_v25  ;;  %v12812_v24 = vcombine.low %v11538_v55, %v11541_v51  ;;  %v14386_v12 = vld [vmem:[#allocation2 + $0xc8] sm:$0x1]  ;;  %v14387_v63 = vld [vmem:[#allocation2 + $0xd0] sm:$0xf] }
 0x5e0   : > { %v12624_v34 = vcombine.low %v14377_v6, %v14378_v60  ;;  %v12798_v54 = vrot.slane %v11435_v30, 9  ;;  %v11553_v27 = vrot.slane %v11551_v11, 4  ;;  %v11554_v41 = vrot.slane %v14379_v38, 5  ;;  %v14389_v60 = vld [vmem:[#allocation2 + $0xb4] sm:$0xf] }
 0x5e1   : > { %v12799_v9 = vrot.slane %v11436_v35, 9  ;;  %v11560_v15 = vrot.slane %v11558_v45, 4  ;;  %v12610_v28 = vrot.slane %v8813_v48, 9  ;;  %v8972_v40 = vrot.slane %v17803_v59, 5  ;;  %v14382_v59 = vld [vmem:[#allocation2 + $0xc4] sm:$0xf] }
 0x5e2   : > { %v11552_v2 = vsel %vm14521_vm6, %v12798_v54, %v11551_v11  ;;  %v11565_v3 = vrot.slane %v14381_v13, 5  ;;  %v11572_v19 = vrot.slane %v14382_v59, 5  ;;  %v12801_v10 = vrot.slane %v11438_v8, 9 }
 0x5e3   : > { %11384 = vmatmul.mubr.bf16.gmra.mrb[60].mxu1 %v9356_v20  ;;  %13671 = vmatmul.mubr.msk.bf16.gmra.mrb[56].mxu0 %vm1282_vm7, %v12808_v33  ;;  %v8969_v33 = vrot.slane %v17797_v5, 5  ;;  %v12813_v20 = vcombine.low %v11545_v4, %v11548_v57  ;;  %v11579_v25 = vrot.slane %v14387_v63, 5  ;;  %v11439_v57 = vld [vmem:[#allocation2 + $0xcc] sm:$0xe] }
 0x5e4   : > { %11391 = vmatprep.mubr.bf16.mxu1 %v9424_v22  ;;  %13674 = vmatprep.mubr.msk.bf16.mxu0 %vm1282_vm7, %v12809_v37  ;;  %v14380_v37 = vld [vmem:[#allocation2 + $0xb0] sm:$0x1]  ;;  %v11567_v0 = vrot.slane %v11565_v3, 4  ;;  %v11574_v42 = vrot.slane %v11572_v19, 4  ;;  %v11573_v11 = vsel %vm14521_vm6, %v12801_v10, %v11572_v19 }
 0x5e5   : > { %v9143_v14 = vpop.permute.xlu1 %9142  ;;  %v11561_v22 = vrot.slane %v14380_v37, 5  ;;  %v8971_v5 = vrot.slane %v8969_v33, 4  ;;  %v11581_v35 = vrot.slane %v11579_v25, 4 }
 0x5e6   : > { %v9305_v21 = vpop.permute.xlu0 %9304  ;;  %v9360_v58 = vsel %vm1282_vm7, %v12623_v50, %v9143_v14  ;;  %v11555_v50 = vsel %vm14521_vm6, %v11553_v27, %v11554_v41  ;;  %v11559_v14 = vsel %vm14521_vm6, %v12799_v9, %v11558_v45 }
 0x5e7   : > { %v9428_v44 = vsel %vm1282_vm7, %v12656_v36, %v9305_v21  ;;  %v11562_v32 = vsel %vm14521_vm6, %v11560_v15, %v11561_v22  ;;  %v11437_v36 = vld [vmem:[#allocation2 + $0xb4] sm:$0xe]  ;;  %v12814_v1 = vcombine.low %v11552_v2, %v11555_v50  ;;  %v8970_v21 = vsel %vm14521_vm6, %v12610_v28, %v8969_v33 }
 0x5e8   : > { %v8973_v18 = vsel %vm14521_vm6, %v8971_v5, %v8972_v40  ;;  %v12800_v16 = vrot.slane %v11437_v36, 9 }
 0x5e9   : > { %v12658_v62 = vcombine.low %v8970_v21, %v8973_v18 }
 0x5ea   : > { %v11566_v53 = vsel %vm14521_vm6, %v12800_v16, %v11565_v3 }
 0x5eb   : > { %11392 = vmatmul.mubr.bf16.gmra.mrb[64].mxu1 %v9360_v58  ;;  %13675 = vmatmul.mubr.msk.bf16.gmra.mrb[60].mxu0 %vm1282_vm7, %v12810_v39  ;;  %v12815_v39 = vcombine.low %v11559_v14, %v11562_v32  ;;  %v14383_v58 = vld [vmem:[#allocation2 + $0xbc] sm:$0x1] }
 0x5ec   : > { %11399 = vmatprep.mubr.bf16.mxu1 %v9428_v44  ;;  %13678 = vmatprep.mubr.msk.bf16.mxu0 %vm1282_vm7, %v12811_v49  ;;  %v11568_v47 = vrot.slane %v14383_v58, 5  ;;  %v12625_v49 = vcombine.low %v14384_v46, %v14385_v31  ;;  %v11575_v44 = vrot.slane %v14386_v12, 5 }
 0x5ee   : > { %v11569_v23 = vsel %vm14521_vm6, %v11567_v0, %v11568_v47  ;;  %v11576_v4 = vsel %vm14521_vm6, %v11574_v42, %v11575_v44 }
 0x5ef   : > { %v12816_v29 = vcombine.low %v11566_v53, %v11569_v23  ;;  %v12817_v45 = vcombine.low %v11573_v11, %v11576_v4 }
 0x5f1   : > { %v9307_v52 = vpop.permute.xlu0 %9306 }
 0x5f2   : > { %v9145_v17 = vpop.permute.xlu1 %9144  ;;  %v9432_v26 = vsel %vm1282_vm7, %v12657_v56, %v9307_v52  ;;  %v12802_v56 = vrot.slane %v11439_v57, 9 }
 0x5f3   : > { %13679 = vmatmul.mubr.msk.bf16.gmra.mrb[64].mxu0 %vm1282_vm7, %v12812_v24  ;;  %v9364_v7 = vsel %vm1282_vm7, %v12624_v34, %v9145_v17  ;;  %v14388_v24 = vld [vmem:[#allocation2 + $0xd4] sm:$0x1]  ;;  %v14390_v34 = vld [vmem:[#allocation2 + $0xb8] sm:$0xf] }
 0x5f4   : > { %11400 = vmatmul.mubr.bf16.gmra.mrb[68].mxu1 %v9364_v7  ;;  %13682 = vmatprep.mubr.msk.bf16.mxu0 %vm1282_vm7, %v12813_v20  ;;  %v11582_v6 = vrot.slane %v14388_v24, 5  ;;  %v12626_v33 = vcombine.low %v14389_v60, %v14390_v34  ;;  %v11580_v20 = vsel %vm14521_vm6, %v12802_v56, %v11579_v25 }
 0x5f5   : > { %11407 = vmatprep.mubr.bf16.mxu1 %v9432_v26 }
 0x5f6   : > { %v11583_v54 = vsel %vm14521_vm6, %v11581_v35, %v11582_v6 }
 0x5f7   : > { %v12818_v38 = vcombine.low %v11580_v20, %v11583_v54 }
 0x5fb   : > { %13683 = vmatmul.mubr.msk.bf16.gmra.mrb[68].mxu0 %vm1282_vm7, %v12814_v1 }
 0x5fc   : > { %13686 = vmatprep.mubr.msk.bf16.mxu0 %vm1282_vm7, %v12815_v39 }
 0x5fd   : > { %v9147_v43 = vpop.permute.xlu1 %9146  ;;  %v9309_v51 = vpop.permute.xlu0 %9308 }
 0x5fe   : > { %v9368_v55 = vsel %vm1282_vm7, %v12625_v49, %v9147_v43  ;;  %v9436_v30 = vsel %vm1282_vm7, %v12658_v62, %v9309_v51 }
 0x5ff   : > { %11408 = vmatmul.mubr.bf16.gmra.mrb[72].mxu1 %v9368_v55 }
 0x600   : > { %11415 = vmatprep.mubr.bf16.mxu1 %v9436_v30 }
 0x603   : > { %13687 = vmatmul.mubr.msk.bf16.gmra.mrb[72].mxu0 %vm1282_vm7, %v12816_v29 }
 0x604   : > { %13690 = vmatprep.mubr.msk.bf16.mxu0 %vm1282_vm7, %v12817_v45 }
 0x608   : > { %v9149_v27 = vpop.permute.xlu1 %9148 }
 0x609   : > { %v9372_v41 = vsel %vm1282_vm7, %v12626_v33, %v9149_v27 }
 0x60a   : > { %11416 = vmatmul.mubr.bf16.gmra.mrb[76].mxu1 %v9372_v41 }
 0x60b   : > { %13691 = vmatmul.mubr.msk.bf16.gmra.mrb[76].mxu0 %vm1282_vm7, %v12818_v38 }
 0x62b   : > { %v13418_v48 = vpop.f32.mrb[0].mxu1 }
 0x62c   : > { %v13419_v37 = vpop.f32.mrb[1].mxu1 }
 0x62d   : > { %v18167_v22 = vadd.f32 %v13419_v37, %v13418_v48  ;;  %v13421_v52 = vpop.f32.mrb[2].mxu1 }
 0x62e   : > { %v13422_v9 = vpop.f32.mrb[3].mxu1 }
 0x62f   : > { %v13346_v15 = vpop.f32.mrb[0].mxu0  ;;  %v18169_v17 = vadd.f32 %v13422_v9, %v13421_v52 }
 0x630   : > { %v13347_v26 = vpop.f32.mrb[1].mxu0 }
 0x631   : > { %v13348_v7 = vadd.f32 %v13347_v26, %v13346_v15  ;;  %v13349_v61 = vpop.f32.mrb[2].mxu0 }
 0x632   : > { %v13350_v28 = vpop.f32.mrb[3].mxu0 }
 0x633   : > { %v13351_v5 = vadd.f32 %v13350_v28, %v13349_v61  ;;  %v13424_v40 = vpop.f32.mrb[4].mxu1 }
 0x634   : > { %v13425_v2 = vpop.f32.mrb[5].mxu1 }
 0x635   : > { %v18171_v50 = vadd.f32 %v13425_v2, %v13424_v40  ;;  %v13427_v13 = vpop.f32.mrb[6].mxu1 }
 0x636   : > { %v13428_v3 = vpop.f32.mrb[7].mxu1 }
 0x637   : > { %v18173_v14 = vadd.f32 %v13428_v3, %v13427_v13 }
 0x63d   : > { %v13352_v32 = vpop.f32.mrb[4].mxu0 }
 0x63e   : > { %v13353_v36 = vpop.f32.mrb[5].mxu0 }
 0x63f   : > { %v13354_v59 = vadd.f32 %v13353_v36, %v13352_v32  ;;  %v13355_v19 = vpop.f32.mrb[6].mxu0 }
 0x640   : > { %v13356_v8 = vpop.f32.mrb[7].mxu0 }
 0x641   : > { %v13357_v1 = vadd.f32 %v13356_v8, %v13355_v19 }
 0x643   : > { %v13430_v21 = vpop.f32.mrb[8].mxu1 }
 0x644   : > { %v13431_v18 = vpop.f32.mrb[9].mxu1 }
 0x645   : > { %v18175_v39 = vadd.f32 %v13431_v18, %v13430_v21  ;;  %v13433_v16 = vpop.f32.mrb[10].mxu1 }
 0x646   : > { %v13434_v0 = vpop.f32.mrb[11].mxu1 }
 0x647   : > { %v18177_v58 = vadd.f32 %v13434_v0, %v13433_v16 }
 0x64a   : > { %v13358_v47 = vpop.f32.mrb[8].mxu0 }
 0x64b   : > { %v13359_v46 = vpop.f32.mrb[9].mxu0 }
 0x64c   : > { %v13360_v31 = vadd.f32 %v13359_v46, %v13358_v47  ;;  %v13361_v49 = vpop.f32.mrb[10].mxu0 }
 0x64d   : > { %v13362_v10 = vpop.f32.mrb[11].mxu0 }
 0x64e   : > { %v13363_v42 = vadd.f32 %v13362_v10, %v13361_v49 }
 0x650   : > { %v13436_v12 = vpop.f32.mrb[12].mxu1 }
 0x651   : > { %v13437_v44 = vpop.f32.mrb[13].mxu1 }
 0x652   : > { %v18179_v62 = vadd.f32 %v13437_v44, %v13436_v12  ;;  %v13439_v43 = vpop.f32.mrb[14].mxu1 }
 0x653   : > { %v13440_v53 = vpop.f32.mrb[15].mxu1 }
 0x654   : > { %v18181_v23 = vadd.f32 %v13440_v53, %v13439_v43 }
 0x658   : > { %v13364_v63 = vpop.f32.mrb[12].mxu0  ;;  %v13458_v55 = vpop.f32.mrb[16].mxu1 }
 0x659   : > { %v13365_v25 = vpop.f32.mrb[13].mxu0  ;;  %v13459_v4 = vpop.f32.mrb[17].mxu1 }
 0x65a   : > { %v13366_v51 = vadd.f32 %v13365_v25, %v13364_v63  ;;  %v13367_v11 = vpop.f32.mrb[14].mxu0  ;;  %v13460_v30 = vadd.f32 %v13459_v4, %v13458_v55  ;;  %v13461_v29 = vpop.f32.mrb[18].mxu1 }
 0x65b   : > { %v13368_v57 = vpop.f32.mrb[15].mxu0  ;;  %v13462_v56 = vpop.f32.mrb[19].mxu1 }
 0x65c   : > { %v13369_v45 = vadd.f32 %v13368_v57, %v13367_v11  ;;  %v13463_v35 = vadd.f32 %v13462_v56, %v13461_v29  ;;  %v18183_v24 = vadd.f32 %v13460_v30, %v13348_v7 }
 0x65e   : > { %v18185_v6 = vadd.f32 %v13463_v35, %v13351_v5 }
 0x662   : > { %v13464_v60 = vpop.f32.mrb[20].mxu1 }
 0x663   : > { %v13465_v33 = vpop.f32.mrb[21].mxu1 }
 0x664   : > { %v13370_v34 = vpop.f32.mrb[16].mxu0  ;;  %v13466_v54 = vadd.f32 %v13465_v33, %v13464_v60  ;;  %v13467_v27 = vpop.f32.mrb[22].mxu1 }
 0x665   : > { %v13371_v20 = vpop.f32.mrb[17].mxu0  ;;  %v13468_v48 = vpop.f32.mrb[23].mxu1 }
 0x666   : > { %v13372_v38 = vadd.f32 %v13371_v20, %v13370_v34  ;;  %v13373_v41 = vpop.f32.mrb[18].mxu0  ;;  %v13469_v52 = vadd.f32 %v13468_v48, %v13467_v27  ;;  %v18187_v9 = vadd.f32 %v13466_v54, %v13354_v59 }
 0x667   : > { %v13374_v37 = vpop.f32.mrb[19].mxu0 }
 0x668   : > { %v13375_v15 = vadd.f32 %v13374_v37, %v13373_v41  ;;  %v18189_v26 = vadd.f32 %v13469_v52, %v13357_v1 }
 0x66e   : > { %v13470_v7 = vpop.f32.mrb[24].mxu1  ;;  %v13376_v61 = vpop.f32.mrb[20].mxu0 }
 0x66f   : > { %v13471_v28 = vpop.f32.mrb[25].mxu1  ;;  %v13377_v5 = vpop.f32.mrb[21].mxu0 }
 0x670   : > { %v13472_v40 = vadd.f32 %v13471_v28, %v13470_v7  ;;  %v13473_v2 = vpop.f32.mrb[26].mxu1  ;;  %v13378_v13 = vadd.f32 %v13377_v5, %v13376_v61  ;;  %v13379_v3 = vpop.f32.mrb[22].mxu0 }
 0x671   : > { %v13474_v32 = vpop.f32.mrb[27].mxu1  ;;  %v13380_v36 = vpop.f32.mrb[23].mxu0 }
 0x672   : > { %v13475_v19 = vadd.f32 %v13474_v32, %v13473_v2  ;;  %v18191_v8 = vadd.f32 %v13472_v40, %v13360_v31  ;;  %v13381_v21 = vadd.f32 %v13380_v36, %v13379_v3 }
 0x674   : > { %v18193_v18 = vadd.f32 %v13475_v19, %v13363_v42 }
 0x676   : > { %v13476_v59 = vpop.f32.mrb[28].mxu1  ;;  %v13382_v16 = vpop.f32.mrb[24].mxu0 }
 0x677   : > { %v13477_v1 = vpop.f32.mrb[29].mxu1  ;;  %v13383_v0 = vpop.f32.mrb[25].mxu0 }
 0x678   : > { %v13478_v47 = vadd.f32 %v13477_v1, %v13476_v59  ;;  %v13479_v46 = vpop.f32.mrb[30].mxu1  ;;  %v13384_v49 = vadd.f32 %v13383_v0, %v13382_v16  ;;  %v13385_v10 = vpop.f32.mrb[26].mxu0 }
 0x679   : > { %v13480_v12 = vpop.f32.mrb[31].mxu1  ;;  %v13386_v44 = vpop.f32.mrb[27].mxu0 }
 0x67a   : > { %v13481_v43 = vadd.f32 %v13480_v12, %v13479_v46  ;;  %v18195_v53 = vadd.f32 %v13478_v47, %v13366_v51  ;;  %v13387_v63 = vadd.f32 %v13386_v44, %v13385_v10 }
 0x67c   : > { %v18197_v25 = vadd.f32 %v13481_v43, %v13369_v45 }
 0x67e   : > { %v13482_v31 = vpop.f32.mrb[32].mxu1  ;;  %v13388_v55 = vpop.f32.mrb[28].mxu0 }
 0x67f   : > { %v13483_v42 = vpop.f32.mrb[33].mxu1  ;;  %v13389_v11 = vpop.f32.mrb[29].mxu0 }
 0x680   : > { %v13484_v4 = vadd.f32 %v13483_v42, %v13482_v31  ;;  %v13485_v57 = vpop.f32.mrb[34].mxu1  ;;  %v13390_v30 = vadd.f32 %v13389_v11, %v13388_v55  ;;  %v13391_v29 = vpop.f32.mrb[30].mxu0 }
 0x681   : > { %v13486_v56 = vpop.f32.mrb[35].mxu1  ;;  %v13392_v35 = vpop.f32.mrb[31].mxu0 }
 0x682   : > { %v13487_v60 = vadd.f32 %v13486_v56, %v13485_v57  ;;  %v18199_v34 = vadd.f32 %v13484_v4, %v13372_v38  ;;  %v13393_v33 = vadd.f32 %v13392_v35, %v13391_v29 }
 0x684   : > { %v18201_v20 = vadd.f32 %v13487_v60, %v13375_v15 }
 0x686   : > { %v13488_v51 = vpop.f32.mrb[36].mxu1  ;;  %v13394_v54 = vpop.f32.mrb[32].mxu0 }
 0x687   : > { %v13489_v45 = vpop.f32.mrb[37].mxu1  ;;  %v13395_v27 = vpop.f32.mrb[33].mxu0 }
 0x688   : > { %v13490_v41 = vadd.f32 %v13489_v45, %v13488_v51  ;;  %v13491_v48 = vpop.f32.mrb[38].mxu1  ;;  %v13396_v37 = vadd.f32 %v13395_v27, %v13394_v54  ;;  %v13397_v52 = vpop.f32.mrb[34].mxu0 }
 0x689   : > { %v13492_v7 = vpop.f32.mrb[39].mxu1  ;;  %v13398_v61 = vpop.f32.mrb[35].mxu0 }
 0x68a   : > { %v13493_v28 = vadd.f32 %v13492_v7, %v13491_v48  ;;  %v18203_v5 = vadd.f32 %v13490_v41, %v13378_v13  ;;  %v13399_v40 = vadd.f32 %v13398_v61, %v13397_v52 }
 0x68c   : > { %v18205_v2 = vadd.f32 %v13493_v28, %v13381_v21 }
 0x68e   : > { %v13494_v38 = vpop.f32.mrb[40].mxu1  ;;  %v13400_v3 = vpop.f32.mrb[36].mxu0 }
 0x68f   : > { %v13495_v15 = vpop.f32.mrb[41].mxu1  ;;  %v13401_v32 = vpop.f32.mrb[37].mxu0 }
 0x690   : > { %v13496_v36 = vadd.f32 %v13495_v15, %v13494_v38  ;;  %v13497_v19 = vpop.f32.mrb[42].mxu1  ;;  %v13402_v59 = vadd.f32 %v13401_v32, %v13400_v3  ;;  %v13403_v16 = vpop.f32.mrb[38].mxu0 }
 0x691   : > { %v13498_v1 = vpop.f32.mrb[43].mxu1  ;;  %v13404_v0 = vpop.f32.mrb[39].mxu0 }
 0x692   : > { %v13499_v47 = vadd.f32 %v13498_v1, %v13497_v19  ;;  %v18207_v46 = vadd.f32 %v13496_v36, %v13384_v49  ;;  %v13405_v10 = vadd.f32 %v13404_v0, %v13403_v16 }
 0x694   : > { %v18209_v12 = vadd.f32 %v13499_v47, %v13387_v63 }
 0x696   : > { %v13500_v13 = vpop.f32.mrb[44].mxu1  ;;  %v13406_v44 = vpop.f32.mrb[40].mxu0 }
 0x697   : > { %v13501_v21 = vpop.f32.mrb[45].mxu1  ;;  %v13407_v43 = vpop.f32.mrb[41].mxu0 }
 0x698   : > { %v13502_v31 = vadd.f32 %v13501_v21, %v13500_v13  ;;  %v13503_v55 = vpop.f32.mrb[46].mxu1  ;;  %v13408_v42 = vadd.f32 %v13407_v43, %v13406_v44  ;;  %v13409_v11 = vpop.f32.mrb[42].mxu0 }
 0x699   : > { %v13504_v4 = vpop.f32.mrb[47].mxu1  ;;  %v13410_v57 = vpop.f32.mrb[43].mxu0 }
 0x69a   : > { %v13505_v29 = vadd.f32 %v13504_v4, %v13503_v55  ;;  %v18211_v56 = vadd.f32 %v13502_v31, %v13390_v30  ;;  %v13411_v35 = vadd.f32 %v13410_v57, %v13409_v11 }
 0x69c   : > { %v18213_v60 = vadd.f32 %v13505_v29, %v13393_v33 }
 0x69e   : > { %v13506_v49 = vpop.f32.mrb[48].mxu1  ;;  %v13412_v51 = vpop.f32.mrb[44].mxu0 }
 0x69f   : > { %v13507_v63 = vpop.f32.mrb[49].mxu1  ;;  %v13413_v54 = vpop.f32.mrb[45].mxu0 }
 0x6a0   : > { %v13508_v45 = vadd.f32 %v13507_v63, %v13506_v49  ;;  %v13509_v27 = vpop.f32.mrb[50].mxu1  ;;  %v13414_v41 = vadd.f32 %v13413_v54, %v13412_v51  ;;  %v13415_v48 = vpop.f32.mrb[46].mxu0 }
 0x6a1   : > { %v13510_v52 = vpop.f32.mrb[51].mxu1  ;;  %v13416_v7 = vpop.f32.mrb[47].mxu0 }
 0x6a2   : > { %v13511_v61 = vadd.f32 %v13510_v52, %v13509_v27  ;;  %v18215_v28 = vadd.f32 %v13508_v45, %v13396_v37  ;;  %v13417_v38 = vadd.f32 %v13416_v7, %v13415_v48 }
 0x6a4   : > { %v18217_v30 = vadd.f32 %v13511_v61, %v13399_v40 }
 0x6a6   : > { %v13512_v33 = vpop.f32.mrb[52].mxu1  ;;  %v13664_v3 = vpop.f32.mrb[48].mxu0 }
 0x6a7   : > { %v13513_v15 = vpop.f32.mrb[53].mxu1  ;;  %v11875_v32 = vadd.f32 %v13664_v3, %v18187_v9  ;;  %v11746_v36 = vpop.f32.mrb[49].mxu0 }
 0x6a8   : > { %v13514_v19 = vadd.f32 %v13513_v15, %v13512_v33  ;;  %v13515_v16 = vpop.f32.mrb[54].mxu1  ;;  %v11873_v1 = vadd.f32 %v11746_v36, %v18183_v24  ;;  %v13665_v0 = vpop.f32.mrb[50].mxu0 }
 0x6a9   : > { %v13516_v47 = vpop.f32.mrb[55].mxu1  ;;  %11907 = vst [vmem:[%s14588_s12 + $0x10] sm:$0xff] %v11875_v32  ;;  %v11876_v37 = vadd.f32 %v13665_v0, %v18189_v26  ;;  %v11749_v40 = vpop.f32.mrb[51].mxu0 }
 0x6aa   : > { %v13517_v13 = vadd.f32 %v13516_v47, %v13515_v16  ;;  %v18223_v44 = vadd.f32 %v13514_v19, %v13402_v59  ;;  %11905 = vst [vmem:[%s14588_s12] sm:$0xff] %v11873_v1  ;;  %v11874_v21 = vadd.f32 %v11749_v40, %v18185_v6 }
 0x6ab   : > { %11908 = vst [vmem:[%s14588_s12 + $0x18] sm:$0xff] %v11876_v37 }
 0x6ac   : > { %v18228_v9 = vadd.f32 %v13517_v13, %v13405_v10  ;;  %11906 = vst [vmem:[%s14588_s12 + $0x8] sm:$0xff] %v11874_v21 }
 0x6ae   : > { %v13518_v43 = vpop.f32.mrb[56].mxu1  ;;  %v13668_v24 = vpop.f32.mrb[52].mxu0 }
 0x6af   : > { %v13519_v31 = vpop.f32.mrb[57].mxu1  ;;  %v11879_v55 = vadd.f32 %v13668_v24, %v18195_v53  ;;  %v11762_v26 = vpop.f32.mrb[53].mxu0 }
 0x6b0   : > { %v13520_v11 = vadd.f32 %v13519_v31, %v13518_v43  ;;  %v13521_v59 = vpop.f32.mrb[58].mxu1  ;;  %v11877_v4 = vadd.f32 %v11762_v26, %v18191_v8  ;;  %v13669_v57 = vpop.f32.mrb[54].mxu0 }
 0x6b1   : > { %v13522_v29 = vpop.f32.mrb[59].mxu1  ;;  %11911 = vst [vmem:[%s14588_s12 + $0x30] sm:$0xff] %v11879_v55  ;;  %v11880_v6 = vadd.f32 %v13669_v57, %v18197_v25  ;;  %v11765_v10 = vpop.f32.mrb[55].mxu0 }
 0x6b2   : > { %v13523_v49 = vadd.f32 %v13522_v29, %v13521_v59  ;;  %v18235_v51 = vadd.f32 %v13520_v11, %v13408_v42  ;;  %11909 = vst [vmem:[%s14588_s12 + $0x20] sm:$0xff] %v11877_v4  ;;  %v11878_v63 = vadd.f32 %v11765_v10, %v18193_v18 }
 0x6b3   : > { %11912 = vst [vmem:[%s14588_s12 + $0x38] sm:$0xff] %v11880_v6 }
 0x6b4   : > { %v18240_v53 = vadd.f32 %v13523_v49, %v13411_v35  ;;  %11910 = vst [vmem:[%s14588_s12 + $0x28] sm:$0xff] %v11878_v63 }
 0x6b6   : > { %v13524_v54 = vpop.f32.mrb[60].mxu1  ;;  %v13672_v8 = vpop.f32.mrb[56].mxu0 }
 0x6b7   : > { %v13525_v45 = vpop.f32.mrb[61].mxu1  ;;  %v11883_v27 = vadd.f32 %v13672_v8, %v18203_v5  ;;  %v11778_v25 = vpop.f32.mrb[57].mxu0 }
 0x6b8   : > { %v13526_v48 = vadd.f32 %v13525_v45, %v13524_v54  ;;  %v13527_v42 = vpop.f32.mrb[62].mxu1  ;;  %v11881_v52 = vadd.f32 %v11778_v25, %v18199_v34  ;;  %v13673_v7 = vpop.f32.mrb[58].mxu0 }
 0x6b9   : > { %v13528_v61 = vpop.f32.mrb[63].mxu1  ;;  %11915 = vst [vmem:[%s14588_s12 + $0x50] sm:$0xff] %v11883_v27  ;;  %v11884_v18 = vadd.f32 %v13673_v7, %v18205_v2  ;;  %v11781_v35 = vpop.f32.mrb[59].mxu0 }
 0x6ba   : > { %v13529_v33 = vadd.f32 %v13528_v61, %v13527_v42  ;;  %v11386_v3 = vadd.f32 %v13526_v48, %v13414_v41  ;;  %11913 = vst [vmem:[%s14588_s12 + $0x40] sm:$0xff] %v11881_v52  ;;  %v11882_v15 = vadd.f32 %v11781_v35, %v18201_v20 }
 0x6bb   : > { %11916 = vst [vmem:[%s14588_s12 + $0x58] sm:$0xff] %v11884_v18 }
 0x6bc   : > { %v11389_v5 = vadd.f32 %v13529_v33, %v13417_v38  ;;  %11914 = vst [vmem:[%s14588_s12 + $0x48] sm:$0xff] %v11882_v15 }
 0x6be   : > { %v13530_v32 = vpop.f32.mrb[64].mxu1  ;;  %v13676_v36 = vpop.f32.mrb[60].mxu0 }
 0x6bf   : > { %v13531_v34 = vpop.f32.mrb[65].mxu1  ;;  %v11887_v19 = vadd.f32 %v13676_v36, %v18211_v56  ;;  %v11794_v16 = vpop.f32.mrb[61].mxu0 }
 0x6c0   : > { %v13532_v2 = vadd.f32 %v13531_v34, %v13530_v32  ;;  %v13533_v1 = vpop.f32.mrb[66].mxu1  ;;  %v11885_v41 = vadd.f32 %v11794_v16, %v18207_v46  ;;  %v13677_v0 = vpop.f32.mrb[62].mxu0 }
 0x6c1   : > { %v13534_v47 = vpop.f32.mrb[67].mxu1  ;;  %11919 = vst [vmem:[%s14588_s12 + $0x70] sm:$0xff] %v11887_v19  ;;  %v11888_v20 = vadd.f32 %v13677_v0, %v18213_v60  ;;  %v11797_v38 = vpop.f32.mrb[63].mxu0 }
 0x6c2   : > { %v13535_v37 = vadd.f32 %v13534_v47, %v13533_v1  ;;  %v11394_v40 = vadd.f32 %v13532_v2, %v18167_v22  ;;  %11917 = vst [vmem:[%s14588_s12 + $0x60] sm:$0xff] %v11885_v41  ;;  %v11886_v13 = vadd.f32 %v11797_v38, %v18209_v12 }
 0x6c3   : > { %11920 = vst [vmem:[%s14588_s12 + $0x78] sm:$0xff] %v11888_v20 }
 0x6c4   : > { %v11397_v56 = vadd.f32 %v13535_v37, %v18169_v17  ;;  %11918 = vst [vmem:[%s14588_s12 + $0x68] sm:$0xff] %v11886_v13 }
 0x6c6   : > { %v13680_v46 = vpop.f32.mrb[64].mxu0 }
 0x6c7   : > { %v11891_v21 = vadd.f32 %v13680_v46, %v18223_v44  ;;  %v11810_v43 = vpop.f32.mrb[65].mxu0  ;;  %v13536_v60 = vpop.f32.mrb[68].mxu1 }
 0x6c8   : > { %v11889_v24 = vadd.f32 %v11810_v43, %v18215_v28  ;;  %v13681_v31 = vpop.f32.mrb[66].mxu0  ;;  %v13537_v55 = vpop.f32.mrb[69].mxu1 }
 0x6c9   : > { %11923 = vst [vmem:[%s14588_s12 + $0x90] sm:$0xff] %v11891_v21  ;;  %v11892_v22 = vadd.f32 %v13681_v31, %v18228_v9  ;;  %v11813_v12 = vpop.f32.mrb[67].mxu0  ;;  %v13538_v26 = vadd.f32 %v13537_v55, %v13536_v60  ;;  %v13539_v11 = vpop.f32.mrb[70].mxu1 }
 0x6ca   : > { %11921 = vst [vmem:[%s14588_s12 + $0x80] sm:$0xff] %v11889_v24  ;;  %v11890_v17 = vadd.f32 %v11813_v12, %v18217_v30  ;;  %v13540_v59 = vpop.f32.mrb[71].mxu1 }
 0x6cb   : > { %11924 = vst [vmem:[%s14588_s12 + $0x98] sm:$0xff] %v11892_v22  ;;  %v13541_v44 = vadd.f32 %v13540_v59, %v13539_v11  ;;  %v11402_v4 = vadd.f32 %v13538_v26, %v18171_v50 }
 0x6cc   : > { %11922 = vst [vmem:[%s14588_s12 + $0x88] sm:$0xff] %v11890_v17 }
 0x6cd   : > { %v11405_v28 = vadd.f32 %v13541_v44, %v18173_v14 }
 0x6ce   : > { %v13684_v57 = vpop.f32.mrb[68].mxu0 }
 0x6cf   : > { %v11895_v9 = vadd.f32 %v13684_v57, %v11386_v3  ;;  %v11826_v29 = vpop.f32.mrb[69].mxu0 }
 0x6d0   : > { %v11893_v6 = vadd.f32 %v11826_v29, %v18235_v51  ;;  %v13685_v10 = vpop.f32.mrb[70].mxu0 }
 0x6d1   : > { %11927 = vst [vmem:[%s14588_s12 + $0xb0] sm:$0xff] %v11895_v9  ;;  %v11896_v49 = vadd.f32 %v13685_v10, %v11389_v5  ;;  %v11829_v30 = vpop.f32.mrb[71].mxu0 }
 0x6d2   : > { %v13542_v63 = vpop.f32.mrb[72].mxu1  ;;  %11925 = vst [vmem:[%s14588_s12 + $0xa0] sm:$0xff] %v11893_v6  ;;  %v11894_v54 = vadd.f32 %v11829_v30, %v18240_v53 }
 0x6d3   : > { %v13543_v8 = vpop.f32.mrb[73].mxu1  ;;  %11928 = vst [vmem:[%s14588_s12 + $0xb8] sm:$0xff] %v11896_v49 }
 0x6d4   : > { %v13544_v50 = vadd.f32 %v13543_v8, %v13542_v63  ;;  %v13545_v14 = vpop.f32.mrb[74].mxu1  ;;  %11926 = vst [vmem:[%s14588_s12 + $0xa8] sm:$0xff] %v11894_v54 }
 0x6d5   : > { %v13546_v45 = vpop.f32.mrb[75].mxu1 }
 0x6d6   : > { %v13547_v27 = vadd.f32 %v13546_v45, %v13545_v14  ;;  %v11410_v51 = vadd.f32 %v13544_v50, %v18175_v39  ;;  %v13688_v25 = vpop.f32.mrb[72].mxu0 }
 0x6d7   : > { %v11899_v48 = vadd.f32 %v13688_v25, %v11402_v4  ;;  %v11842_v42 = vpop.f32.mrb[73].mxu0 }
 0x6d8   : > { %v11413_v52 = vadd.f32 %v13547_v27, %v18177_v58  ;;  %v11897_v7 = vadd.f32 %v11842_v42, %v11394_v40  ;;  %v13689_v61 = vpop.f32.mrb[74].mxu0 }
 0x6d9   : > { %11931 = vst [vmem:[%s14588_s12 + $0xd0] sm:$0xff] %v11899_v48  ;;  %v11900_v53 = vadd.f32 %v13689_v61, %v11405_v28  ;;  %v11845_v18 = vpop.f32.mrb[75].mxu0 }
 0x6da   : > { %11929 = vst [vmem:[%s14588_s12 + $0xc0] sm:$0xff] %v11897_v7  ;;  %v11898_v35 = vadd.f32 %v11845_v18, %v11397_v56 }
 0x6db   : > { %11932 = vst [vmem:[%s14588_s12 + $0xd8] sm:$0xff] %v11900_v53 }
 0x6dc   : > { %11930 = vst [vmem:[%s14588_s12 + $0xc8] sm:$0xff] %v11898_v35 }
 0x6dd   : > { %v13548_v33 = vpop.f32.mrb[76].mxu1 }
 0x6de   : > { %v13549_v3 = vpop.f32.mrb[77].mxu1  ;;  %v13692_v39 = vpop.f32.mrb[76].mxu0 }
 0x6df   : > { %v13550_v15 = vadd.f32 %v13549_v3, %v13548_v33  ;;  %v13551_v5 = vpop.f32.mrb[78].mxu1  ;;  %v11858_v32 = vpop.f32.mrb[77].mxu0 }
 0x6e0   : > { %v13552_v58 = vpop.f32.mrb[79].mxu1  ;;  %v11901_v34 = vadd.f32 %v11858_v32, %v11410_v51  ;;  %v13693_v16 = vpop.f32.mrb[78].mxu0 }
 0x6e1   : > { %v11418_v36 = vadd.f32 %v13550_v15, %v18179_v62  ;;  %v13553_v19 = vadd.f32 %v13552_v58, %v13551_v5  ;;  %v11861_v2 = vpop.f32.mrb[79].mxu0 }
 0x6e2   : > { %11933 = vst [vmem:[%s14588_s12 + $0xe0] sm:$0xff] %v11901_v34  ;;  %v11902_v0 = vadd.f32 %v11861_v2, %v11413_v52 }
 0x6e3   : > { %v11903_v1 = vadd.f32 %v13692_v39, %v11418_v36  ;;  %v11421_v41 = vadd.f32 %v13553_v19, %v18181_v23 }
 0x6e4   : > { %11934 = vst [vmem:[%s14588_s12 + $0xe8] sm:$0xff] %v11902_v0 }
 0x6e5   : > { %11935 = vst [vmem:[%s14588_s12 + $0xf0] sm:$0xff] %v11903_v1  ;;  %v11904_v47 = vadd.f32 %v13693_v16, %v11421_v41 }
 0x6e7   : > { %11936 = vst [vmem:[%s14588_s12 + $0xf8] sm:$0xff] %v11904_v47 }
 0x6e8 PF: > { %s15_s18 = sadd.s32 1, %s14401_s18  }
 0x6e9   : > { %p12_p6 = scmp.ge.s32.totalorder %s15_s18, 4  }
 0x6eb   :  { %14 = sbr.rel (!%p12_p6) target bundleno = 1 (0x1), region = 93 }

</bundles_post_ra>
